<compile_context>
chip_gen: v5e
topology: v5e:2x2
jax: 0.10.0
libtpu: 0.0.40
codegen_flags: <defaults>
</compile_context>

<pallas_src>
import jax
import jax.numpy as jnp
from jax.experimental import pallas as pl
from jax.experimental.pallas import tpu as pltpu


_H = 512        # hidden width of the two inner Linear layers
_LANE = 128     # TPU lane width: out_features padded to a lane-dense slab


def _round_up(x, m):
    return ((x + m - 1) // m) * m


def _mlp_kernel(x_ref, w1_ref, s1_ref, b1_ref, w2_ref, s2_ref, b2_ref,
                w3_ref, s3_ref, b3_ref, o_ref, acc_ref):
    """3-layer fc head: int8 weights -> bf16 MXU matmuls -> f32 accumulate."""
    k = pl.program_id(1)

    @pl.when(k == 0)
    def _init():
        acc_ref[...] = jnp.zeros_like(acc_ref)

    # Layer 1 partial product (K-tiled along the flattened-latent axis).  The
    # per-output-channel scale commutes with the K accumulation, so the only
    # in-loop dequant work is the int8 -> bf16 cast.
    w1 = w1_ref[...].astype(jnp.float32).astype(jnp.bfloat16)
    acc_ref[...] += jnp.dot(x_ref[...], w1, preferred_element_type=jnp.float32)

    @pl.when(k == pl.num_programs(1) - 1)
    def _finish():
        # Layer 1 epilogue: scale + bias + ReLU, materialized in bf16 so only
        # the half-width copy of the intermediate stays live (less spill).
        h1 = jnp.maximum(acc_ref[...] * s1_ref[...] + b1_ref[...], 0.0)
        h1 = h1.astype(jnp.bfloat16)
        # Layer 2: Linear(512 -> 512) + ReLU.
        w2 = w2_ref[...].astype(jnp.float32).astype(jnp.bfloat16)
        h2 = jnp.dot(h1, w2, preferred_element_type=jnp.float32)
        h2 = jnp.maximum(h2 * s2_ref[...] + b2_ref[...], 0.0)
        h2 = h2.astype(jnp.bfloat16)
        # Layer 3: Linear(512 -> N_pad), lane-dense (128-wide) output store.
        w3 = w3_ref[...].astype(jnp.float32).astype(jnp.bfloat16)
        out = jnp.dot(h2, w3, preferred_element_type=jnp.float32)
        o_ref[...] = (out * s3_ref[...] + b3_ref[...]).astype(o_ref.dtype)


def _max_batch_tile():
    # v5e: a 256-row tile makes each f32 intermediate 2x the vreg file and v5e
    # has a single store slot -> keep tm at 128 there; 256 on v6e/v7x.
    try:
        kind = jax.devices()[0].device_kind.lower()
    except Exception:
        return 256
    return 128 if "v5" in kind else 256


def _pick_tk(f):
    """K-tile for layer 1: divides F and is a multiple of 128 (or equals F)."""
    if f <= 4096:
        return f
    for cand in (4096, 2048, 1024, 512, 256, 128):
        if f % cand == 0:
            return cand
    return f  # irregular large F: single resident K block (rare)


def _build_call(b, f, n_pad, tm, tk, single_buffer_weights):
    bt = pl.cdiv(b, tm)
    kt = pl.cdiv(f, tk)

    resident = pl.Buffered(1) if single_buffer_weights else None
    # w1 streams along k when kt > 1, so keep default double-buffering there.
    w1_mode = resident if kt == 1 else None

    def spec(shape, index_map, mode=None):
        if mode is None:
            return pl.BlockSpec(shape, index_map)
        return pl.BlockSpec(shape, index_map, pipeline_mode=mode)

    in_specs = [
        spec((tm, tk), lambda i, k: (i, k)),               # x tile: pipelined
        spec((tk, _H), lambda i, k: (k, 0), w1_mode),      # w1 (int8)
        spec((1, _H), lambda i, k: (0, 0), resident),      # s1
        spec((1, _H), lambda i, k: (0, 0), resident),      # b1
        spec((_H, _H), lambda i, k: (0, 0), resident),     # w2 (int8)
        spec((1, _H), lambda i, k: (0, 0), resident),      # s2
        spec((1, _H), lambda i, k: (0, 0), resident),      # b2
        spec((_H, n_pad), lambda i, k: (0, 0), resident),  # w3 (int8, padded)
        spec((1, n_pad), lambda i, k: (0, 0), resident),   # s3
        spec((1, n_pad), lambda i, k: (0, 0), resident),   # b3
    ]

    flops = 2 * b * (f * _H + _H * _H + _H * n_pad)
    bytes_accessed = (b * f * 2                                  # bf16 x
                      + f * _H + _H * _H + _H * n_pad            # int8 weights
                      + 4 * (3 * _H + 2 * n_pad) * 2             # scales+biases
                      + b * n_pad * 4)                           # f32 out
    # Actual VMEM footprint (weights single-buffered, x/out double-buffered,
    # f32 accumulator scratch) plus headroom; clamped to stay legal on v7x.
    vmem_need = (2 * tm * tk * 2
                 + (1 if kt == 1 else 2) * tk * _H
                 + _H * _H + _H * n_pad
                 + 2 * tm * n_pad * 4
                 + tm * _H * 4
                 + 8 * (_H + n_pad) * 4)
    vmem_limit = int(min(max(2 * vmem_need, 8 << 20) + (4 << 20), 48 << 20))

    return pl.pallas_call(
        _mlp_kernel,
        out_shape=jax.ShapeDtypeStruct((b, n_pad), jnp.float32),
        grid_spec=pltpu.PrefetchScalarGridSpec(
            num_scalar_prefetch=0,
            grid=(bt, kt),                      # reduction (K) axis last
            in_specs=in_specs,
            out_specs=pl.BlockSpec((tm, n_pad), lambda i, k: (i, 0)),
            scratch_shapes=[pltpu.VMEM((tm, _H), jnp.float32)],
        ),
        compiler_params=pltpu.CompilerParams(
            # Megacore sharding on the batch axis only helps when bt >= 2; at
            # B~2 the kernel is weight-DMA bound on a single core regardless.
            dimension_semantics=("parallel", "arbitrary"),
            vmem_limit_bytes=vmem_limit,
        ),
        cost_estimate=pl.CostEstimate(
            flops=flops, transcendentals=0, bytes_accessed=bytes_accessed),
    )


def gaze_fc_forward(latent_vector, params, out_features):
    """Flattened-latent -> 3-layer fc head, fully inside one Pallas kernel."""
    w1q, s1, b1, w2q, s2, b2, w3q, s3, b3 = params
    b = latent_vector.shape[0]
    f = 1
    for d in latent_vector.shape[1:]:
        f *= d
    # Same as torch .view(B, -1); activations in bf16 (MXU-native input dtype).
    x = latent_vector.reshape(b, f).astype(jnp.bfloat16)

    n_pad = w3q.shape[1]
    tm_max = _max_batch_tile()
    # No jnp.pad of the batch: either a single full-array tile (tm == b) or a
    # multiple-of-8 tile with Pallas handling the ragged last tile.
    tm = b if b <= tm_max else tm_max
    tk = _pick_tk(f)

    args = (x, w1q, s1, b1, w2q, s2, b2, w3q, s3, b3)
    try:
        out = _build_call(b, f, n_pad, tm, tk, True)(*args)
    except Exception:
        # Fallback for jax versions without pipeline_mode/Buffered(1) support:
        # identical numerics, just default double-buffered weights.
        out = _build_call(b, f, n_pad, tm, tk, False)(*args)

    # Slice off output-lane padding (pure glue outside the kernel).
    return out[:, :out_features]


def _quantize_per_out_channel(w):
    """Symmetric int8 weight-only quant with per-output-channel f32 scales."""
    amax = jnp.max(jnp.abs(w), axis=0, keepdims=True)
    scale = (jnp.maximum(amax, 1e-8) / 127.0).astype(jnp.float32)
    q = jnp.clip(jnp.round(w / scale), -127.0, 127.0).astype(jnp.int8)
    return q, scale


def init_fc_params(key, in_features, out_features):
    """kaiming_uniform_(fan_in, relu) weights + zero biases (torch init), then
    int8 weight-only quantization.  Weights are stored (in, out) so the kernel
    computes x @ W + b == torch's x @ W_t.T + b; the last layer is zero-padded
    to 128 output lanes for a lane-dense final matmul / store."""
    def kaiming_uniform(k, fan_in, fan_out):
        # gain(relu) = sqrt(2); bound = gain * sqrt(3 / fan_in) = sqrt(6/fan_in)
        bound = (6.0 / fan_in) ** 0.5
        return jax.random.uniform(k, (fan_in, fan_out), jnp.float32,
                                  minval=-bound, maxval=bound)

    k1, k2, k3 = jax.random.split(key, 3)
    n_pad = _round_up(out_features, _LANE)

    w1q, s1 = _quantize_per_out_channel(kaiming_uniform(k1, in_features, _H))
    w2q, s2 = _quantize_per_out_channel(kaiming_uniform(k2, _H, _H))
    w3 = (jnp.zeros((_H, n_pad), jnp.float32)
          .at[:, :out_features].set(kaiming_uniform(k3, _H, out_features)))
    w3q, s3 = _quantize_per_out_channel(w3)

    b1 = jnp.zeros((1, _H), jnp.float32)
    b2 = jnp.zeros((1, _H), jnp.float32)
    b3 = jnp.zeros((1, n_pad), jnp.float32)
    return (w1q, s1, b1, w2q, s2, b2, w3q, s3, b3)


def _reference_forward(latent_vector, params, out_features):
    """Plain JAX reference with the identical dtype / dequant path."""
    w1q, s1, b1, w2q, s2, b2, w3q, s3, b3 = params
    x = latent_vector.reshape(latent_vector.shape[0], -1).astype(jnp.bfloat16)

    def deq(wq):
        return wq.astype(jnp.float32).astype(jnp.bfloat16)

    h = jnp.dot(x, deq(w1q), preferred_element_type=jnp.float32) * s1 + b1
    h = jnp.maximum(h, 0.0).astype(jnp.bfloat16)
    h = jnp.dot(h, deq(w2q), preferred_element_type=jnp.float32) * s2 + b2
    h = jnp.maximum(h, 0.0).astype(jnp.bfloat16)
    out = jnp.dot(h, deq(w3q), preferred_element_type=jnp.float32) * s3 + b3
    return out[:, :out_features]


if __name__ == "__main__":
    key = jax.random.PRNGKey(0)
    k_in, k_par = jax.random.split(key)

    # Small, module-consistent shapes: latent feature map (B=2, C=4, H=16, W=16)
    # -> flattened in_features = 1024; gaze output out_features = 2 (yaw, pitch).
    B, C, H, W = 2, 4, 16, 16
    in_features = C * H * W
    out_features = 2

    latent = jax.random.normal(k_in, (B, C, H, W), jnp.float32)
    params = init_fc_params(k_par, in_features, out_features)

    out = jax.block_until_ready(gaze_fc_forward(latent, params, out_features))
    ref = _reference_forward(latent, params, out_features)

    assert out.shape == (B, out_features)
    assert jnp.allclose(out, ref, atol=2e-2, rtol=2e-2), (
        float(jnp.max(jnp.abs(out - ref))))

    print("KERNEL_OK")
</pallas_src>

<mosaic_0001>
module attributes {stable_mosaic.version = 11 : i64} {
  func.func @_mlp_kernel(%arg0: i32, %arg1: i32, %arg2: memref<2x1024xbf16, #tpu.memory_space<vmem>>, %arg3: memref<1024x512xi8, #tpu.memory_space<vmem>>, %arg4: memref<1x512xf32, #tpu.memory_space<vmem>>, %arg5: memref<1x512xf32, #tpu.memory_space<vmem>>, %arg6: memref<512x512xi8, #tpu.memory_space<vmem>>, %arg7: memref<1x512xf32, #tpu.memory_space<vmem>>, %arg8: memref<1x512xf32, #tpu.memory_space<vmem>>, %arg9: memref<512x128xi8, #tpu.memory_space<vmem>>, %arg10: memref<1x128xf32, #tpu.memory_space<vmem>>, %arg11: memref<1x128xf32, #tpu.memory_space<vmem>>, %arg12: memref<2x128xf32, #tpu.memory_space<vmem>>, %arg13: memref<2x512xf32, #tpu.memory_space<vmem>>) attributes {dimension_semantics = [#tpu.dimension_semantics<parallel>, #tpu.dimension_semantics<arbitrary>], iteration_bounds = array<i64: 1, 1>, scalar_prefetch = 0 : i64, scratch_operands = 1 : i64, tpu.core_type = #tpu.core_type<tc>, window_params = [{transform_indices = @transform_0, window_bounds = array<i64: 2, 1024>}, {pipeline_mode = #tpu.pipeline_mode<synchronous>, transform_indices = @transform_1, window_bounds = array<i64: 1024, 512>}, {pipeline_mode = #tpu.pipeline_mode<synchronous>, transform_indices = @transform_2, window_bounds = array<i64: 1, 512>}, {pipeline_mode = #tpu.pipeline_mode<synchronous>, transform_indices = @transform_3, window_bounds = array<i64: 1, 512>}, {pipeline_mode = #tpu.pipeline_mode<synchronous>, transform_indices = @transform_4, window_bounds = array<i64: 512, 512>}, {pipeline_mode = #tpu.pipeline_mode<synchronous>, transform_indices = @transform_5, window_bounds = array<i64: 1, 512>}, {pipeline_mode = #tpu.pipeline_mode<synchronous>, transform_indices = @transform_6, window_bounds = array<i64: 1, 512>}, {pipeline_mode = #tpu.pipeline_mode<synchronous>, transform_indices = @transform_7, window_bounds = array<i64: 512, 128>}, {pipeline_mode = #tpu.pipeline_mode<synchronous>, transform_indices = @transform_8, window_bounds = array<i64: 1, 128>}, {pipeline_mode = #tpu.pipeline_mode<synchronous>, transform_indices = @transform_9, window_bounds = array<i64: 1, 128>}, {transform_indices = @transform_10, window_bounds = array<i64: 2, 128>}]} {
    %c0_i32 = arith.constant 0 : i32
    %0 = arith.cmpi eq, %arg1, %c0_i32 : i32
    %1 = arith.extui %0 : i1 to i32
    %c0_i32_0 = arith.constant 0 : i32
    %2 = arith.cmpi ne, %1, %c0_i32_0 : i32
    scf.if %2 {
      %cst_10 = arith.constant 0.000000e+00 : f32
      %14 = vector.broadcast %cst_10 : f32 to vector<2x512xf32>
      %c0_11 = arith.constant 0 : index
      %c0_12 = arith.constant 0 : index
      %15 = vector.load %arg13[%c0_11, %c0_12] : memref<2x512xf32, #tpu.memory_space<vmem>>, vector<2x512xf32>
      tpu.vector_store %arg13[%c0_11, %c0_12], %14 {strides = array<i32>} : memref<2x512xf32, #tpu.memory_space<vmem>>, vector<2x512xf32>,
    } else {
    }
    %c0 = arith.constant 0 : index
    %c0_1 = arith.constant 0 : index
    %3 = vector.load %arg3[%c0, %c0_1] : memref<1024x512xi8, #tpu.memory_space<vmem>>, vector<1024x512xi8>
    %4 = arith.sitofp %3 : vector<1024x512xi8> to vector<1024x512xf32>
    %5 = arith.truncf %4 : vector<1024x512xf32> to vector<1024x512xbf16>
    %c0_2 = arith.constant 0 : index
    %c0_3 = arith.constant 0 : index
    %6 = vector.load %arg13[%c0_2, %c0_3] : memref<2x512xf32, #tpu.memory_space<vmem>>, vector<2x512xf32>
    %c0_4 = arith.constant 0 : index
    %c0_5 = arith.constant 0 : index
    %7 = vector.load %arg2[%c0_4, %c0_5] : memref<2x1024xbf16, #tpu.memory_space<vmem>>, vector<2x1024xbf16>
    %cst = arith.constant dense<0.000000e+00> : vector<2x512xf32>
    %8 = tpu.matmul %7, %5, %cst {dimension_numbers = #tpu.dot_dimension_numbers<[1], [0], [0], [1], [0, 0, 1, 1], [], []>} : vector<2x1024xbf16>, vector<1024x512xbf16>, vector<2x512xf32> -> vector<2x512xf32>
    %9 = arith.addf %6, %8 : vector<2x512xf32>
    %c0_6 = arith.constant 0 : index
    %c0_7 = arith.constant 0 : index
    %10 = vector.load %arg13[%c0_6, %c0_7] : memref<2x512xf32, #tpu.memory_space<vmem>>, vector<2x512xf32>
    tpu.vector_store %arg13[%c0_6, %c0_7], %9 {strides = array<i32>} : memref<2x512xf32, #tpu.memory_space<vmem>>, vector<2x512xf32>,
    %c0_i32_8 = arith.constant 0 : i32
    %11 = arith.cmpi eq, %arg1, %c0_i32_8 : i32
    %12 = arith.extui %11 : i1 to i32
    %c0_i32_9 = arith.constant 0 : i32
    %13 = arith.cmpi ne, %12, %c0_i32_9 : i32
    scf.if %13 {
      %c0_10 = arith.constant 0 : index
      %c0_11 = arith.constant 0 : index
      %14 = vector.load %arg13[%c0_10, %c0_11] : memref<2x512xf32, #tpu.memory_space<vmem>>, vector<2x512xf32>
      %c0_12 = arith.constant 0 : index
      %c0_13 = arith.constant 0 : index
      %15 = vector.load %arg4[%c0_12, %c0_13] : memref<1x512xf32, #tpu.memory_space<vmem>>, vector<1x512xf32>
      %16 = vector.broadcast %15 : vector<1x512xf32> to vector<2x512xf32>
      %17 = arith.mulf %14, %16 : vector<2x512xf32>
      %c0_14 = arith.constant 0 : index
      %c0_15 = arith.constant 0 : index
      %18 = vector.load %arg5[%c0_14, %c0_15] : memref<1x512xf32, #tpu.memory_space<vmem>>, vector<1x512xf32>
      %19 = vector.broadcast %18 : vector<1x512xf32> to vector<2x512xf32>
      %20 = arith.addf %17, %19 : vector<2x512xf32>
      %cst_16 = arith.constant 0.000000e+00 : f32
      %21 = vector.broadcast %cst_16 : f32 to vector<2x512xf32>
      %22 = arith.maximumf %20, %21 : vector<2x512xf32>
      %23 = arith.truncf %22 : vector<2x512xf32> to vector<2x512xbf16>
      %c0_17 = arith.constant 0 : index
      %c0_18 = arith.constant 0 : index
      %24 = vector.load %arg6[%c0_17, %c0_18] : memref<512x512xi8, #tpu.memory_space<vmem>>, vector<512x512xi8>
      %25 = arith.sitofp %24 : vector<512x512xi8> to vector<512x512xf32>
      %26 = arith.truncf %25 : vector<512x512xf32> to vector<512x512xbf16>
      %cst_19 = arith.constant dense<0.000000e+00> : vector<2x512xf32>
      %27 = tpu.matmul %23, %26, %cst_19 {dimension_numbers = #tpu.dot_dimension_numbers<[1], [0], [0], [1], [0, 0, 1, 1], [], []>} : vector<2x512xbf16>, vector<512x512xbf16>, vector<2x512xf32> -> vector<2x512xf32>
      %c0_20 = arith.constant 0 : index
      %c0_21 = arith.constant 0 : index
      %28 = vector.load %arg7[%c0_20, %c0_21] : memref<1x512xf32, #tpu.memory_space<vmem>>, vector<1x512xf32>
      %29 = vector.broadcast %28 : vector<1x512xf32> to vector<2x512xf32>
      %30 = arith.mulf %27, %29 : vector<2x512xf32>
      %c0_22 = arith.constant 0 : index
      %c0_23 = arith.constant 0 : index
      %31 = vector.load %arg8[%c0_22, %c0_23] : memref<1x512xf32, #tpu.memory_space<vmem>>, vector<1x512xf32>
      %32 = vector.broadcast %31 : vector<1x512xf32> to vector<2x512xf32>
      %33 = arith.addf %30, %32 : vector<2x512xf32>
      %cst_24 = arith.constant 0.000000e+00 : f32
      %34 = vector.broadcast %cst_24 : f32 to vector<2x512xf32>
      %35 = arith.maximumf %33, %34 : vector<2x512xf32>
      %36 = arith.truncf %35 : vector<2x512xf32> to vector<2x512xbf16>
      %c0_25 = arith.constant 0 : index
      %c0_26 = arith.constant 0 : index
      %37 = vector.load %arg9[%c0_25, %c0_26] : memref<512x128xi8, #tpu.memory_space<vmem>>, vector<512x128xi8>
      %38 = arith.sitofp %37 : vector<512x128xi8> to vector<512x128xf32>
      %39 = arith.truncf %38 : vector<512x128xf32> to vector<512x128xbf16>
      %cst_27 = arith.constant dense<0.000000e+00> : vector<2x128xf32>
      %40 = tpu.matmul %36, %39, %cst_27 {dimension_numbers = #tpu.dot_dimension_numbers<[1], [0], [0], [1], [0, 0, 1, 1], [], []>} : vector<2x512xbf16>, vector<512x128xbf16>, vector<2x128xf32> -> vector<2x128xf32>
      %c0_28 = arith.constant 0 : index
      %c0_29 = arith.constant 0 : index
      %41 = vector.load %arg10[%c0_28, %c0_29] : memref<1x128xf32, #tpu.memory_space<vmem>>, vector<1x128xf32>
      %42 = vector.broadcast %41 : vector<1x128xf32> to vector<2x128xf32>
      %43 = arith.mulf %40, %42 : vector<2x128xf32>
      %c0_30 = arith.constant 0 : index
      %c0_31 = arith.constant 0 : index
      %44 = vector.load %arg11[%c0_30, %c0_31] : memref<1x128xf32, #tpu.memory_space<vmem>>, vector<1x128xf32>
      %45 = vector.broadcast %44 : vector<1x128xf32> to vector<2x128xf32>
      %46 = arith.addf %43, %45 : vector<2x128xf32>
      %c0_32 = arith.constant 0 : index
      %c0_33 = arith.constant 0 : index
      %47 = vector.load %arg12[%c0_32, %c0_33] : memref<2x128xf32, #tpu.memory_space<vmem>>, vector<2x128xf32>
      tpu.vector_store %arg12[%c0_32, %c0_33], %46 {strides = array<i32>} : memref<2x128xf32, #tpu.memory_space<vmem>>, vector<2x128xf32>,
    } else {
    }
    return
  }
  func.func @transform_0(%arg0: i32, %arg1: i32) -> (i32, i32) {
    %c0_i32 = arith.constant 0 : i32
    return %arg0, %arg1 : i32, i32
  }
  func.func @transform_1(%arg0: i32, %arg1: i32) -> (i32, i32) {
    %c0_i32 = arith.constant 0 : i32
    %c0_i32_0 = arith.constant 0 : i32
    return %arg1, %c0_i32 : i32, i32
  }
  func.func @transform_2(%arg0: i32, %arg1: i32) -> (i32, i32) {
    %c0_i32 = arith.constant 0 : i32
    %c0_i32_0 = arith.constant 0 : i32
    %c0_i32_1 = arith.constant 0 : i32
    return %c0_i32, %c0_i32_0 : i32, i32
  }
  func.func @transform_3(%arg0: i32, %arg1: i32) -> (i32, i32) {
    %c0_i32 = arith.constant 0 : i32
    %c0_i32_0 = arith.constant 0 : i32
    %c0_i32_1 = arith.constant 0 : i32
    return %c0_i32, %c0_i32_0 : i32, i32
  }
  func.func @transform_4(%arg0: i32, %arg1: i32) -> (i32, i32) {
    %c0_i32 = arith.constant 0 : i32
    %c0_i32_0 = arith.constant 0 : i32
    %c0_i32_1 = arith.constant 0 : i32
    return %c0_i32, %c0_i32_0 : i32, i32
  }
  func.func @transform_5(%arg0: i32, %arg1: i32) -> (i32, i32) {
    %c0_i32 = arith.constant 0 : i32
    %c0_i32_0 = arith.constant 0 : i32
    %c0_i32_1 = arith.constant 0 : i32
    return %c0_i32, %c0_i32_0 : i32, i32
  }
  func.func @transform_6(%arg0: i32, %arg1: i32) -> (i32, i32) {
    %c0_i32 = arith.constant 0 : i32
    %c0_i32_0 = arith.constant 0 : i32
    %c0_i32_1 = arith.constant 0 : i32
    return %c0_i32, %c0_i32_0 : i32, i32
  }
  func.func @transform_7(%arg0: i32, %arg1: i32) -> (i32, i32) {
    %c0_i32 = arith.constant 0 : i32
    %c0_i32_0 = arith.constant 0 : i32
    %c0_i32_1 = arith.constant 0 : i32
    return %c0_i32, %c0_i32_0 : i32, i32
  }
  func.func @transform_8(%arg0: i32, %arg1: i32) -> (i32, i32) {
    %c0_i32 = arith.constant 0 : i32
    %c0_i32_0 = arith.constant 0 : i32
    %c0_i32_1 = arith.constant 0 : i32
    return %c0_i32, %c0_i32_0 : i32, i32
  }
  func.func @transform_9(%arg0: i32, %arg1: i32) -> (i32, i32) {
    %c0_i32 = arith.constant 0 : i32
    %c0_i32_0 = arith.constant 0 : i32
    %c0_i32_1 = arith.constant 0 : i32
    return %c0_i32, %c0_i32_0 : i32, i32
  }
  func.func @transform_10(%arg0: i32, %arg1: i32) -> (i32, i32) {
    %c0_i32 = arith.constant 0 : i32
    %c0_i32_0 = arith.constant 0 : i32
    return %arg0, %c0_i32 : i32, i32
  }
}

module attributes {stable_mosaic.version = 11 : i64} {
  func.func @_mlp_kernel(%arg0: i32, %arg1: i32, %arg2: memref<2x1024xbf16, #tpu.memory_space<vmem>>, %arg3: memref<1024x512xi8, #tpu.memory_space<vmem>>, %arg4: memref<1x512xf32, #tpu.memory_space<vmem>>, %arg5: memref<1x512xf32, #tpu.memory_space<vmem>>, %arg6: memref<512x512xi8, #tpu.memory_space<vmem>>, %arg7: memref<1x512xf32, #tpu.memory_space<vmem>>, %arg8: memref<1x512xf32, #tpu.memory_space<vmem>>, %arg9: memref<512x128xi8, #tpu.memory_space<vmem>>, %arg10: memref<1x128xf32, #tpu.memory_space<vmem>>, %arg11: memref<1x128xf32, #tpu.memory_space<vmem>>, %arg12: memref<2x128xf32, #tpu.memory_space<vmem>>, %arg13: memref<2x512xf32, #tpu.memory_space<vmem>>) attributes {dimension_semantics = [#tpu.dimension_semantics<parallel>, #tpu.dimension_semantics<arbitrary>], iteration_bounds = array<i64: 1, 1>, scalar_prefetch = 0 : i64, scratch_operands = 1 : i64, tpu.core_type = #tpu.core_type<tc>, window_params = [{transform_indices = @transform_0, window_bounds = array<i64: 2, 1024>}, {transform_indices = @transform_1, window_bounds = array<i64: 1024, 512>}, {pipeline_mode = #tpu.pipeline_mode<synchronous>, transform_indices = @transform_2, window_bounds = array<i64: 1, 512>}, {pipeline_mode = #tpu.pipeline_mode<synchronous>, transform_indices = @transform_3, window_bounds = array<i64: 1, 512>}, {pipeline_mode = #tpu.pipeline_mode<synchronous>, transform_indices = @transform_4, window_bounds = array<i64: 512, 512>}, {pipeline_mode = #tpu.pipeline_mode<synchronous>, transform_indices = @transform_5, window_bounds = array<i64: 1, 512>}, {pipeline_mode = #tpu.pipeline_mode<synchronous>, transform_indices = @transform_6, window_bounds = array<i64: 1, 512>}, {pipeline_mode = #tpu.pipeline_mode<synchronous>, transform_indices = @transform_7, window_bounds = array<i64: 512, 128>}, {pipeline_mode = #tpu.pipeline_mode<synchronous>, transform_indices = @transform_8, window_bounds = array<i64: 1, 128>}, {pipeline_mode = #tpu.pipeline_mode<synchronous>, transform_indices = @transform_9, window_bounds = array<i64: 1, 128>}, {transform_indices = @transform_10, window_bounds = array<i64: 2, 128>}]} {
    %c0_i32 = arith.constant 0 : i32
    %0 = arith.cmpi eq, %arg1, %c0_i32 : i32
    %1 = arith.extui %0 : i1 to i32
    %c0_i32_0 = arith.constant 0 : i32
    %2 = arith.cmpi ne, %1, %c0_i32_0 : i32
    scf.if %2 {
      %cst_10 = arith.constant 0.000000e+00 : f32
      %14 = vector.broadcast %cst_10 : f32 to vector<2x512xf32>
      %c0_11 = arith.constant 0 : index
      %c0_12 = arith.constant 0 : index
      %15 = vector.load %arg13[%c0_11, %c0_12] : memref<2x512xf32, #tpu.memory_space<vmem>>, vector<2x512xf32>
      tpu.vector_store %arg13[%c0_11, %c0_12], %14 {strides = array<i32>} : memref<2x512xf32, #tpu.memory_space<vmem>>, vector<2x512xf32>,
    } else {
    }
    %c0 = arith.constant 0 : index
    %c0_1 = arith.constant 0 : index
    %3 = vector.load %arg3[%c0, %c0_1] : memref<1024x512xi8, #tpu.memory_space<vmem>>, vector<1024x512xi8>
    %4 = arith.sitofp %3 : vector<1024x512xi8> to vector<1024x512xf32>
    %5 = arith.truncf %4 : vector<1024x512xf32> to vector<1024x512xbf16>
    %c0_2 = arith.constant 0 : index
    %c0_3 = arith.constant 0 : index
    %6 = vector.load %arg13[%c0_2, %c0_3] : memref<2x512xf32, #tpu.memory_space<vmem>>, vector<2x512xf32>
    %c0_4 = arith.constant 0 : index
    %c0_5 = arith.constant 0 : index
    %7 = vector.load %arg2[%c0_4, %c0_5] : memref<2x1024xbf16, #tpu.memory_space<vmem>>, vector<2x1024xbf16>
    %cst = arith.constant dense<0.000000e+00> : vector<2x512xf32>
    %8 = tpu.matmul %7, %5, %cst {dimension_numbers = #tpu.dot_dimension_numbers<[1], [0], [0], [1], [0, 0, 1, 1], [], []>} : vector<2x1024xbf16>, vector<1024x512xbf16>, vector<2x512xf32> -> vector<2x512xf32>
    %9 = arith.addf %6, %8 : vector<2x512xf32>
    %c0_6 = arith.constant 0 : index
    %c0_7 = arith.constant 0 : index
    %10 = vector.load %arg13[%c0_6, %c0_7] : memref<2x512xf32, #tpu.memory_space<vmem>>, vector<2x512xf32>
    tpu.vector_store %arg13[%c0_6, %c0_7], %9 {strides = array<i32>} : memref<2x512xf32, #tpu.memory_space<vmem>>, vector<2x512xf32>,
    %c0_i32_8 = arith.constant 0 : i32
    %11 = arith.cmpi eq, %arg1, %c0_i32_8 : i32
    %12 = arith.extui %11 : i1 to i32
    %c0_i32_9 = arith.constant 0 : i32
    %13 = arith.cmpi ne, %12, %c0_i32_9 : i32
    scf.if %13 {
      %c0_10 = arith.constant 0 : index
      %c0_11 = arith.constant 0 : index
      %14 = vector.load %arg13[%c0_10, %c0_11] : memref<2x512xf32, #tpu.memory_space<vmem>>, vector<2x512xf32>
      %c0_12 = arith.constant 0 : index
      %c0_13 = arith.constant 0 : index
      %15 = vector.load %arg4[%c0_12, %c0_13] : memref<1x512xf32, #tpu.memory_space<vmem>>, vector<1x512xf32>
      %16 = vector.broadcast %15 : vector<1x512xf32> to vector<2x512xf32>
      %17 = arith.mulf %14, %16 : vector<2x512xf32>
      %c0_14 = arith.constant 0 : index
      %c0_15 = arith.constant 0 : index
      %18 = vector.load %arg5[%c0_14, %c0_15] : memref<1x512xf32, #tpu.memory_space<vmem>>, vector<1x512xf32>
      %19 = vector.broadcast %18 : vector<1x512xf32> to vector<2x512xf32>
      %20 = arith.addf %17, %19 : vector<2x512xf32>
      %cst_16 = arith.constant 0.000000e+00 : f32
      %21 = vector.broadcast %cst_16 : f32 to vector<2x512xf32>
      %22 = arith.maximumf %20, %21 : vector<2x512xf32>
      %23 = arith.truncf %22 : vector<2x512xf32> to vector<2x512xbf16>
      %c0_17 = arith.constant 0 : index
      %c0_18 = arith.constant 0 : index
      %24 = vector.load %arg6[%c0_17, %c0_18] : memref<512x512xi8, #tpu.memory_space<vmem>>, vector<512x512xi8>
      %25 = arith.sitofp %24 : vector<512x512xi8> to vector<512x512xf32>
      %26 = arith.truncf %25 : vector<512x512xf32> to vector<512x512xbf16>
      %cst_19 = arith.constant dense<0.000000e+00> : vector<2x512xf32>
      %27 = tpu.matmul %23, %26, %cst_19 {dimension_numbers = #tpu.dot_dimension_numbers<[1], [0], [0], [1], [0, 0, 1, 1], [], []>} : vector<2x512xbf16>, vector<512x512xbf16>, vector<2x512xf32> -> vector<2x512xf32>
      %c0_20 = arith.constant 0 : index
      %c0_21 = arith.constant 0 : index
      %28 = vector.load %arg7[%c0_20, %c0_21] : memref<1x512xf32, #tpu.memory_space<vmem>>, vector<1x512xf32>
      %29 = vector.broadcast %28 : vector<1x512xf32> to vector<2x512xf32>
      %30 = arith.mulf %27, %29 : vector<2x512xf32>
      %c0_22 = arith.constant 0 : index
      %c0_23 = arith.constant 0 : index
      %31 = vector.load %arg8[%c0_22, %c0_23] : memref<1x512xf32, #tpu.memory_space<vmem>>, vector<1x512xf32>
      %32 = vector.broadcast %31 : vector<1x512xf32> to vector<2x512xf32>
      %33 = arith.addf %30, %32 : vector<2x512xf32>
      %cst_24 = arith.constant 0.000000e+00 : f32
      %34 = vector.broadcast %cst_24 : f32 to vector<2x512xf32>
      %35 = arith.maximumf %33, %34 : vector<2x512xf32>
      %36 = arith.truncf %35 : vector<2x512xf32> to vector<2x512xbf16>
      %c0_25 = arith.constant 0 : index
      %c0_26 = arith.constant 0 : index
      %37 = vector.load %arg9[%c0_25, %c0_26] : memref<512x128xi8, #tpu.memory_space<vmem>>, vector<512x128xi8>
      %38 = arith.sitofp %37 : vector<512x128xi8> to vector<512x128xf32>
      %39 = arith.truncf %38 : vector<512x128xf32> to vector<512x128xbf16>
      %cst_27 = arith.constant dense<0.000000e+00> : vector<2x128xf32>
      %40 = tpu.matmul %36, %39, %cst_27 {dimension_numbers = #tpu.dot_dimension_numbers<[1], [0], [0], [1], [0, 0, 1, 1], [], []>} : vector<2x512xbf16>, vector<512x128xbf16>, vector<2x128xf32> -> vector<2x128xf32>
      %c0_28 = arith.constant 0 : index
      %c0_29 = arith.constant 0 : index
      %41 = vector.load %arg10[%c0_28, %c0_29] : memref<1x128xf32, #tpu.memory_space<vmem>>, vector<1x128xf32>
      %42 = vector.broadcast %41 : vector<1x128xf32> to vector<2x128xf32>
      %43 = arith.mulf %40, %42 : vector<2x128xf32>
      %c0_30 = arith.constant 0 : index
      %c0_31 = arith.constant 0 : index
      %44 = vector.load %arg11[%c0_30, %c0_31] : memref<1x128xf32, #tpu.memory_space<vmem>>, vector<1x128xf32>
      %45 = vector.broadcast %44 : vector<1x128xf32> to vector<2x128xf32>
      %46 = arith.addf %43, %45 : vector<2x128xf32>
      %c0_32 = arith.constant 0 : index
      %c0_33 = arith.constant 0 : index
      %47 = vector.load %arg12[%c0_32, %c0_33] : memref<2x128xf32, #tpu.memory_space<vmem>>, vector<2x128xf32>
      tpu.vector_store %arg12[%c0_32, %c0_33], %46 {strides = array<i32>} : memref<2x128xf32, #tpu.memory_space<vmem>>, vector<2x128xf32>,
    } else {
    }
    return
  }
  func.func @transform_0(%arg0: i32, %arg1: i32) -> (i32, i32) {
    %c0_i32 = arith.constant 0 : i32
    return %arg0, %arg1 : i32, i32
  }
  func.func @transform_1(%arg0: i32, %arg1: i32) -> (i32, i32) {
    %c0_i32 = arith.constant 0 : i32
    %c0_i32_0 = arith.constant 0 : i32
    return %arg1, %c0_i32 : i32, i32
  }
  func.func @transform_2(%arg0: i32, %arg1: i32) -> (i32, i32) {
    %c0_i32 = arith.constant 0 : i32
    %c0_i32_0 = arith.constant 0 : i32
    %c0_i32_1 = arith.constant 0 : i32
    return %c0_i32, %c0_i32_0 : i32, i32
  }
  func.func @transform_3(%arg0: i32, %arg1: i32) -> (i32, i32) {
    %c0_i32 = arith.constant 0 : i32
    %c0_i32_0 = arith.constant 0 : i32
    %c0_i32_1 = arith.constant 0 : i32
    return %c0_i32, %c0_i32_0 : i32, i32
  }
  func.func @transform_4(%arg0: i32, %arg1: i32) -> (i32, i32) {
    %c0_i32 = arith.constant 0 : i32
    %c0_i32_0 = arith.constant 0 : i32
    %c0_i32_1 = arith.constant 0 : i32
    return %c0_i32, %c0_i32_0 : i32, i32
  }
  func.func @transform_5(%arg0: i32, %arg1: i32) -> (i32, i32) {
    %c0_i32 = arith.constant 0 : i32
    %c0_i32_0 = arith.constant 0 : i32
    %c0_i32_1 = arith.constant 0 : i32
    return %c0_i32, %c0_i32_0 : i32, i32
  }
  func.func @transform_6(%arg0: i32, %arg1: i32) -> (i32, i32) {
    %c0_i32 = arith.constant 0 : i32
    %c0_i32_0 = arith.constant 0 : i32
    %c0_i32_1 = arith.constant 0 : i32
    return %c0_i32, %c0_i32_0 : i32, i32
  }
  func.func @transform_7(%arg0: i32, %arg1: i32) -> (i32, i32) {
    %c0_i32 = arith.constant 0 : i32
    %c0_i32_0 = arith.constant 0 : i32
    %c0_i32_1 = arith.constant 0 : i32
    return %c0_i32, %c0_i32_0 : i32, i32
  }
  func.func @transform_8(%arg0: i32, %arg1: i32) -> (i32, i32) {
    %c0_i32 = arith.constant 0 : i32
    %c0_i32_0 = arith.constant 0 : i32
    %c0_i32_1 = arith.constant 0 : i32
    return %c0_i32, %c0_i32_0 : i32, i32
  }
  func.func @transform_9(%arg0: i32, %arg1: i32) -> (i32, i32) {
    %c0_i32 = arith.constant 0 : i32
    %c0_i32_0 = arith.constant 0 : i32
    %c0_i32_1 = arith.constant 0 : i32
    return %c0_i32, %c0_i32_0 : i32, i32
  }
  func.func @transform_10(%arg0: i32, %arg1: i32) -> (i32, i32) {
    %c0_i32 = arith.constant 0 : i32
    %c0_i32_0 = arith.constant 0 : i32
    return %arg0, %c0_i32 : i32, i32
  }
}

</mosaic_0001>

<bundles_post_ra>
// kernel: tpu_custom_call.1
= control target key start
LH: loop header
LB: loop body
LE: loop exit
PB: predicated region body
PF: predicated region fallthrough
CT: control target
= control target key end

     0   :  { %15 = vsyncpa [#allocation4], 0  ;;  %s3945_s0 = inlined_call_operand.hbm [shape: bf16[2,1024], index: 0, kind: input, shape index: {}]   ;;  %s3946_s1 = inlined_call_operand.hbm [shape: s8[1024,512], index: 1, kind: input, shape index: {}]   ;;  %s3947_s2 = inlined_call_operand.hbm [shape: f32[1,512], index: 2, kind: input, shape index: {}]   ;;  %s3948_s3 = inlined_call_operand.hbm [shape: f32[1,512], index: 3, kind: input, shape index: {}]   ;;  %s3949_s4 = inlined_call_operand.hbm [shape: s8[512,512], index: 4, kind: input, shape index: {}]   ;;  %s3950_s5 = inlined_call_operand.vmem [shape: f32[1,512], index: 5, kind: input, shape index: {}]   ;;  %s3951_s6 = inlined_call_operand.hbm [shape: f32[1,512], index: 6, kind: input, shape index: {}]   ;;  %s3952_s7 = inlined_call_operand.hbm [shape: s8[512,128], index: 7, kind: input, shape index: {}]   ;;  %s3953_s8 = inlined_call_operand.vmem [shape: f32[1,128], index: 8, kind: input, shape index: {}]   ;;  %s3954_s9 = inlined_call_operand.vmem [shape: f32[1,128], index: 9, kind: input, shape index: {}]   ;;  %s3955_s10 = inlined_call_operand.hbm [shape: f32[2,128], index: 10, kind: output, shape index: {}]  }
   0x1   :  { %16 = vsyncpa [#allocation7], 0 }
   0x2   :  { %17 = vsyncpa [#allocation10], 0 }
   0x3   :  { %18 = vsyncpa [#allocation13], 0  ;;  %s35_s15 = sshll.u32 %s3946_s1, 4  ;;  %s36_s15 = int_to_ptr.hbm [resolvable:$true] %s35_s15 }
   0x4   :  { %19 = vsyncpa [#allocation5], 0  ;;  %s3480_s16 = smov [#allocation6]   ;;  %s60_s20 = sshll.u32 %s3948_s3, 4  ;;  %s61_s20 = int_to_ptr.hbm [resolvable:$true] %s60_s20 }
   0x5   :  { %s37_s17 = sshll.u32 %s3480_s16, 4  ;;  %s3481_s21 = smov 512   ;;  %s38_s17 = int_to_ptr.vmem [resolvable:$true] %s37_s17 }
   0x6   :  { %s3482_s22 = smov 32   ;;  %s3483_s23 = smov [#allocation9]  }
   0x7   :  { %43 = dma.hbm_to_vmem [thread:$0]  %s36_s15, 16384, %s38_s17, [#allocation7], %s3481_s21, %s3481_s21, %s3482_s22  }
   0x8   :  { %s62_s24 = sshll.u32 %s3483_s23, 4  ;;  %s86_s26 = sshll.u32 %s3951_s6, 4  ;;  %s63_s24 = int_to_ptr.vmem [resolvable:$true] %s62_s24  ;;  %s87_s26 = int_to_ptr.hbm [resolvable:$true] %s86_s26 }
   0x9   :  { %65 = dma.hbm_to_vmem [thread:$0]  %s61_s20, 64, %s63_s24, [#allocation10]  }
   0xa   :  { %s25_s3 = sshll.u32 %s3945_s0, 4  ;;  %s3484_s29 = smov [#allocation12]   ;;  %s26_s3 = int_to_ptr.hbm [resolvable:$true] %s25_s3 }
   0xb   :  { %s88_s30 = sshll.u32 %s3484_s29, 4  ;;  %s3485_s11 = smov [#allocation3]   ;;  %s89_s30 = int_to_ptr.vmem [resolvable:$true] %s88_s30 }
   0xc   :  { %91 = dma.hbm_to_vmem [thread:$0]  %s87_s26, 64, %s89_s30, [#allocation13]  }
   0xd   :  { %s27_s12 = sshll.u32 %s3485_s11, 4  ;;  %s49_s15 = sshll.u32 %s3947_s2, 4  ;;  %s28_s12 = int_to_ptr.vmem [resolvable:$true] %s27_s12  ;;  %s50_s15 = int_to_ptr.hbm [resolvable:$true] %s49_s15 }
   0xe   :  { %30 = dma.hbm_to_vmem [thread:$0]  %s26_s3, 128, %s28_s12, [#allocation4]  }
   0xf   :  { %s70_s17 = sshll.u32 %s3949_s4, 4  ;;  %s3486_s18 = smov [#allocation8]   ;;  %s71_s17 = int_to_ptr.hbm [resolvable:$true] %s70_s17 }
  0x10   :  { %s51_s0 = sshll.u32 %s3486_s18, 4  ;;  %s3487_s19 = smov [#allocation11]   ;;  %s52_s0 = int_to_ptr.vmem [resolvable:$true] %s51_s0 }
  0x11   :  { %54 = dma.hbm_to_vmem [thread:$0]  %s50_s15, 64, %s52_s0, [#allocation7]  }
  0x12   :  { %s72_s20 = sshll.u32 %s3487_s19, 4  ;;  %s96_s25 = sshll.u32 %s3952_s7, 4  ;;  %s73_s20 = int_to_ptr.vmem [resolvable:$true] %s72_s20  ;;  %s97_s25 = int_to_ptr.hbm [resolvable:$true] %s96_s25 }
  0x13   :  { %78 = dma.hbm_to_vmem [thread:$0]  %s71_s17, 8192, %s73_s20, [#allocation10], %s3481_s21, %s3481_s21, %s3482_s22  }
  0x14   :  { %s3488_s2 = smov [#allocation14]   ;;  %s3489_s4 = smov 128  }
  0x15   :  { %s98_s1 = sshll.u32 %s3488_s2, 4  ;;  %s3490_s26 = smov 8   ;;  %s99_s1 = int_to_ptr.vmem [resolvable:$true] %s98_s1 }
  0x16   :  { %104 = dma.hbm_to_vmem [thread:$0]  %s97_s25, 2048, %s99_s1, [#allocation13], %s3489_s4, %s3489_s4, %s3490_s26  }
  0x17   :  { %3470 = dma.done.wait [#allocation4], 128  }
  0x18   :  { %3471 = vsyncadd [#allocation4], 4294967168 }
  0x19   :  { %3472 = dma.done.wait [#allocation7], 16448  }
  0x1a   :  { %3473 = vsyncadd [#allocation7], 4294950848 }
  0x1b   :  { %3474 = dma.done.wait [#allocation10], 8256  }
  0x1c   :  { %3475 = vsyncadd [#allocation10], 4294959040 }
  0x1d   :  { %3476 = dma.done.wait [#allocation13], 2112  }
  0x1e   :  { %3477 = vsyncadd [#allocation13], 4294965184  ;;  %v154_v0 = vld [vmem:[#allocation6 + $0x60] sm:$0xff]  ;;  %vm1993_vm0 = vcmask 1041408   ;;  %vm1995_vm1 = vcmask 1045508   ;;  %vm1997_vm2 = vcmask 1043456  }
  0x1f   :  { %v170_v1 = vld [vmem:[#allocation6 + $0xe0] sm:$0xff]  ;;  %v326_v3 = vunpack.c.2.s8 %v154_v0  ;;  %v330_v4 = vunpack.c.3.s8 %v154_v0  ;;  %v318_v22 = vunpack.c.0.s8 %v154_v0  ;;  %v322_v23 = vunpack.c.1.s8 %v154_v0  ;;  %s3491_s3 = smov [#allocation15]   ;;  %s3243_s12 = sshll.u32 %s3955_s10, 4  ;;  %s3244_s12 = int_to_ptr.hbm [resolvable:$true] %s3243_s12 }
  0x20   :  { %v186_v2 = vld [vmem:[#allocation6 + $0x160] sm:$0xff]  ;;  %v390_v5 = vunpack.c.2.s8 %v170_v1  ;;  %v394_v6 = vunpack.c.3.s8 %v170_v1  ;;  %v382_v26 = vunpack.c.0.s8 %v170_v1  ;;  %v386_v27 = vunpack.c.1.s8 %v170_v1  ;;  %s3241_s29 = sshll.u32 %s3491_s3, 4  ;;  %s3242_s29 = int_to_ptr.vmem [resolvable:$true] %s3241_s29 }
  0x21   :  { %v202_v7 = vld [vmem:[#allocation6 + $0x1e0] sm:$0xff]  ;;  %v454_v8 = vunpack.c.2.s8 %v186_v2  ;;  %v458_v9 = vunpack.c.3.s8 %v186_v2  ;;  %v838_v12 = vcvt.s32.f32 %v326_v3  ;;  %v842_v13 = vcvt.s32.f32 %v330_v4 }
  0x22   :  { %v518_v10 = vunpack.c.2.s8 %v202_v7  ;;  %v522_v11 = vunpack.c.3.s8 %v202_v7  ;;  %v902_v14 = vcvt.s32.f32 %v390_v5  ;;  %v906_v15 = vcvt.s32.f32 %v394_v6  ;;  %v150_v28 = vld [vmem:[#allocation6 + $0x40] sm:$0xff] }
  0x23   :  { %v966_v16 = vcvt.s32.f32 %v454_v8  ;;  %v970_v17 = vcvt.s32.f32 %v458_v9  ;;  %v1322_v20 = vpack.c.bf16 %v842_v13, %v838_v12  ;;  %v830_v29 = vcvt.s32.f32 %v318_v22  ;;  %v166_v37 = vld [vmem:[#allocation6 + $0xc0] sm:$0xff] }
  0x24   :  { %v1030_v18 = vcvt.s32.f32 %v518_v10  ;;  %v1034_v19 = vcvt.s32.f32 %v522_v11  ;;  %v1354_v21 = vpack.c.bf16 %v906_v15, %v902_v14  ;;  %v834_v30 = vcvt.s32.f32 %v322_v23  ;;  %v182_v42 = vld [vmem:[#allocation6 + $0x140] sm:$0xff] }
  0x25   :  { %v1386_v24 = vpack.c.bf16 %v970_v17, %v966_v16  ;;  %1570 = vmatpush.bf16.msra.mxu0 %v1322_v20  ;;  %v446_v31 = vunpack.c.0.s8 %v186_v2  ;;  %v450_v32 = vunpack.c.1.s8 %v186_v2  ;;  %v894_v33 = vcvt.s32.f32 %v382_v26  ;;  %v198_v47 = vld [vmem:[#allocation6 + $0x1c0] sm:$0xff] }
  0x26   :  { %v1418_v25 = vpack.c.bf16 %v1034_v19, %v1030_v18  ;;  %1583 = vmatpush.bf16.msra.mxu1 %v1354_v21  ;;  %v898_v34 = vcvt.s32.f32 %v386_v27  ;;  %v510_v35 = vunpack.c.0.s8 %v202_v7  ;;  %v514_v36 = vunpack.c.1.s8 %v202_v7  ;;  %v146_v8 = vld [vmem:[#allocation6 + $0x20] sm:$0xff] }
  0x27   :  { %1596 = vmatpush.bf16.msra.mxu2 %v1386_v24  ;;  %v1318_v38 = vpack.c.bf16 %v834_v30, %v830_v29  ;;  %v958_v39 = vcvt.s32.f32 %v446_v31  ;;  %v962_v40 = vcvt.s32.f32 %v450_v32  ;;  %v310_v41 = vunpack.c.2.s8 %v150_v28  ;;  %v162_v17 = vld [vmem:[#allocation6 + $0xa0] sm:$0xff] }
  0x28   :  { %1609 = vmatpush.bf16.msra.mxu3 %v1418_v25  ;;  %v1350_v43 = vpack.c.bf16 %v898_v34, %v894_v33  ;;  %v1022_v44 = vcvt.s32.f32 %v510_v35  ;;  %v1026_v45 = vcvt.s32.f32 %v514_v36  ;;  %v314_v46 = vunpack.c.3.s8 %v150_v28  ;;  %v178_v22 = vld [vmem:[#allocation6 + $0x120] sm:$0xff] }
  0x29   :  { %1571 = vmatpush.bf16.msra.mxu0 %v1318_v38  ;;  %v1382_v48 = vpack.c.bf16 %v962_v40, %v958_v39  ;;  %v822_v49 = vcvt.s32.f32 %v310_v41  ;;  %v374_v50 = vunpack.c.2.s8 %v166_v37  ;;  %v378_v51 = vunpack.c.3.s8 %v166_v37  ;;  %v194_v27 = vld [vmem:[#allocation6 + $0x1a0] sm:$0xff] }
  0x2a   :  { %1584 = vmatpush.bf16.msra.mxu1 %v1350_v43  ;;  %v1414_v52 = vpack.c.bf16 %v1026_v45, %v1022_v44  ;;  %v826_v53 = vcvt.s32.f32 %v314_v46  ;;  %v438_v54 = vunpack.c.2.s8 %v182_v42  ;;  %v442_v55 = vunpack.c.3.s8 %v182_v42 }
  0x2b   :  { %1597 = vmatpush.bf16.msra.mxu2 %v1382_v48  ;;  %v886_v56 = vcvt.s32.f32 %v374_v50  ;;  %v890_v57 = vcvt.s32.f32 %v378_v51  ;;  %v502_v58 = vunpack.c.2.s8 %v198_v47  ;;  %v506_v59 = vunpack.c.3.s8 %v198_v47 }
  0x2c   :  { %1610 = vmatpush.bf16.msra.mxu3 %v1414_v52  ;;  %v1314_v60 = vpack.c.bf16 %v826_v53, %v822_v49  ;;  %v950_v61 = vcvt.s32.f32 %v438_v54  ;;  %v954_v62 = vcvt.s32.f32 %v442_v55  ;;  %v302_v63 = vunpack.c.0.s8 %v150_v28  ;;  %v142_v52 = vld [vmem:[#allocation6] sm:$0xff] }
  0x2d   :  { %v1346_v0 = vpack.c.bf16 %v890_v57, %v886_v56  ;;  %v1014_v1 = vcvt.s32.f32 %v502_v58  ;;  %v1018_v2 = vcvt.s32.f32 %v506_v59  ;;  %v306_v3 = vunpack.c.1.s8 %v150_v28 }
  0x2e   :  { %1572 = vmatpush.bf16.msra.mxu0 %v1314_v60  ;;  %v1378_v4 = vpack.c.bf16 %v954_v62, %v950_v61  ;;  %v814_v5 = vcvt.s32.f32 %v302_v63  ;;  %v366_v6 = vunpack.c.0.s8 %v166_v37  ;;  %v370_v7 = vunpack.c.1.s8 %v166_v37  ;;  %v158_v61 = vld [vmem:[#allocation6 + $0x80] sm:$0xff] }
  0x2f   :  { %1585 = vmatpush.bf16.msra.mxu1 %v1346_v0  ;;  %v1410_v9 = vpack.c.bf16 %v1018_v2, %v1014_v1  ;;  %v818_v10 = vcvt.s32.f32 %v306_v3  ;;  %v430_v11 = vunpack.c.0.s8 %v182_v42  ;;  %v434_v12 = vunpack.c.1.s8 %v182_v42  ;;  %v174_v2 = vld [vmem:[#allocation6 + $0x100] sm:$0xff] }
  0x30   :  { %1598 = vmatpush.bf16.msra.mxu2 %v1378_v4  ;;  %v878_v13 = vcvt.s32.f32 %v366_v6  ;;  %v882_v14 = vcvt.s32.f32 %v370_v7  ;;  %v494_v15 = vunpack.c.0.s8 %v198_v47  ;;  %v498_v16 = vunpack.c.1.s8 %v198_v47  ;;  %v190_v7 = vld [vmem:[#allocation6 + $0x180] sm:$0xff] }
  0x31   :  { %1611 = vmatpush.bf16.msra.mxu3 %v1410_v9  ;;  %v1310_v18 = vpack.c.bf16 %v818_v10, %v814_v5  ;;  %v942_v19 = vcvt.s32.f32 %v430_v11  ;;  %v946_v20 = vcvt.s32.f32 %v434_v12  ;;  %v294_v21 = vunpack.c.2.s8 %v146_v8  ;;  %v1551_v12 = vld [vmem:[#allocation3] sm:$0xff] }
  0x32   :  { %v1342_v23 = vpack.c.bf16 %v882_v14, %v878_v13  ;;  %v1006_v24 = vcvt.s32.f32 %v494_v15  ;;  %v1010_v25 = vcvt.s32.f32 %v498_v16  ;;  %v298_v26 = vunpack.c.3.s8 %v146_v8  ;;  %1553 = vst [vmem:[#allocation1] ss:$9 sm:$0xff] %v1551_v12 }
  0x33   :  { %1573 = vmatpush.bf16.msra.mxu0 %v1310_v18  ;;  %v1374_v28 = vpack.c.bf16 %v946_v20, %v942_v19  ;;  %v806_v29 = vcvt.s32.f32 %v294_v21  ;;  %v358_v30 = vunpack.c.2.s8 %v162_v17  ;;  %v362_v31 = vunpack.c.3.s8 %v162_v17 }
  0x34   :  { %1586 = vmatpush.bf16.msra.mxu1 %v1342_v23  ;;  %v1406_v32 = vpack.c.bf16 %v1010_v25, %v1006_v24  ;;  %v810_v33 = vcvt.s32.f32 %v298_v26  ;;  %v422_v34 = vunpack.c.2.s8 %v178_v22  ;;  %v426_v35 = vunpack.c.3.s8 %v178_v22 }
  0x35   :  { %1599 = vmatpush.bf16.msra.mxu2 %v1374_v28  ;;  %v870_v36 = vcvt.s32.f32 %v358_v30  ;;  %v874_v37 = vcvt.s32.f32 %v362_v31  ;;  %v486_v38 = vunpack.c.2.s8 %v194_v27  ;;  %v490_v39 = vunpack.c.3.s8 %v194_v27 }
  0x36   :  { %1612 = vmatpush.bf16.msra.mxu3 %v1406_v32  ;;  %v1306_v40 = vpack.c.bf16 %v810_v33, %v806_v29  ;;  %v934_v41 = vcvt.s32.f32 %v422_v34  ;;  %v938_v42 = vcvt.s32.f32 %v426_v35  ;;  %v286_v43 = vunpack.c.0.s8 %v146_v8  ;;  %v218_v33 = vld [vmem:[#allocation6 + $0x260] sm:$0xff] }
  0x37   :  { %v1338_v44 = vpack.c.bf16 %v874_v37, %v870_v36  ;;  %v998_v45 = vcvt.s32.f32 %v486_v38  ;;  %v1002_v46 = vcvt.s32.f32 %v490_v39  ;;  %v290_v47 = vunpack.c.1.s8 %v146_v8 }
  0x38   :  { %1574 = vmatpush.bf16.msra.mxu0 %v1306_v40  ;;  %v1370_v48 = vpack.c.bf16 %v938_v42, %v934_v41  ;;  %v798_v49 = vcvt.s32.f32 %v286_v43  ;;  %v350_v50 = vunpack.c.0.s8 %v162_v17  ;;  %v354_v51 = vunpack.c.1.s8 %v162_v17  ;;  %v234_v42 = vld [vmem:[#allocation6 + $0x2e0] sm:$0xff] }
  0x39   :  { %1587 = vmatpush.bf16.msra.mxu1 %v1338_v44  ;;  %v1402_v53 = vpack.c.bf16 %v1002_v46, %v998_v45  ;;  %v802_v54 = vcvt.s32.f32 %v290_v47  ;;  %v414_v55 = vunpack.c.0.s8 %v178_v22  ;;  %v418_v56 = vunpack.c.1.s8 %v178_v22  ;;  %v250_v47 = vld [vmem:[#allocation6 + $0x360] sm:$0xff] }
  0x3a   :  { %1600 = vmatpush.bf16.msra.mxu2 %v1370_v48  ;;  %v862_v57 = vcvt.s32.f32 %v350_v50  ;;  %v866_v58 = vcvt.s32.f32 %v354_v51  ;;  %v478_v59 = vunpack.c.0.s8 %v194_v27  ;;  %v482_v60 = vunpack.c.1.s8 %v194_v27 }
  0x3b   :  { %1613 = vmatpush.bf16.msra.mxu3 %v1402_v53  ;;  %v1302_v62 = vpack.c.bf16 %v802_v54, %v798_v49  ;;  %v926_v63 = vcvt.s32.f32 %v414_v55  ;;  %v930_v0 = vcvt.s32.f32 %v418_v56  ;;  %v278_v1 = vunpack.c.2.s8 %v142_v52 }
  0x3c   :  { %v1334_v3 = vpack.c.bf16 %v866_v58, %v862_v57  ;;  %v990_v4 = vcvt.s32.f32 %v478_v59  ;;  %v994_v5 = vcvt.s32.f32 %v482_v60  ;;  %v282_v6 = vunpack.c.3.s8 %v142_v52 }
  0x3d   :  { %1575 = vmatpush.bf16.msra.mxu0 %v1302_v62  ;;  %v1366_v8 = vpack.c.bf16 %v930_v0, %v926_v63  ;;  %v790_v9 = vcvt.s32.f32 %v278_v1  ;;  %v342_v10 = vunpack.c.2.s8 %v158_v61  ;;  %v346_v11 = vunpack.c.3.s8 %v158_v61  ;;  %v3576_v62 = vld [vmem:[#allocation1 + $0x9] sm:$0xff] }
  0x3e   :  { %1588 = vmatpush.bf16.msra.mxu1 %v1334_v3  ;;  %v1398_v13 = vpack.c.bf16 %v994_v5, %v990_v4  ;;  %v794_v14 = vcvt.s32.f32 %v282_v6  ;;  %v406_v15 = vunpack.c.2.s8 %v174_v2  ;;  %v410_v16 = vunpack.c.3.s8 %v174_v2  ;;  %v3578_v3 = vld [vmem:[#allocation1 + $0x12] sm:$0xff] }
  0x3f   :  { %1601 = vmatpush.bf16.msra.mxu2 %v1366_v8  ;;  %v854_v17 = vcvt.s32.f32 %v342_v10  ;;  %v858_v18 = vcvt.s32.f32 %v346_v11  ;;  %v470_v19 = vunpack.c.2.s8 %v190_v7  ;;  %v474_v20 = vunpack.c.3.s8 %v190_v7  ;;  %v3581_v8 = vld [vmem:[#allocation1 + $0x1b] sm:$0xff] }
  0x40   :  { %1614 = vmatpush.bf16.msra.mxu3 %v1398_v13  ;;  %v1298_v21 = vpack.c.bf16 %v794_v14, %v790_v9  ;;  %v918_v22 = vcvt.s32.f32 %v406_v15  ;;  %v922_v23 = vcvt.s32.f32 %v410_v16  ;;  %v270_v24 = vunpack.c.0.s8 %v142_v52 }
  0x41   :  { %v1330_v25 = vpack.c.bf16 %v858_v18, %v854_v17  ;;  %v982_v26 = vcvt.s32.f32 %v470_v19  ;;  %v986_v27 = vcvt.s32.f32 %v474_v20  ;;  %v274_v28 = vunpack.c.1.s8 %v142_v52  ;;  %v266_v52 = vld [vmem:[#allocation6 + $0x3e0] sm:$0xff] }
  0x42   :  { %1576 = vmatpush.bf16.msra.mxu0 %v1298_v21  ;;  %v1362_v29 = vpack.c.bf16 %v922_v23, %v918_v22  ;;  %v782_v30 = vcvt.s32.f32 %v270_v24  ;;  %v334_v31 = vunpack.c.0.s8 %v158_v61  ;;  %v338_v32 = vunpack.c.1.s8 %v158_v61  ;;  %v3574_v61 = vld [vmem:[#allocation1] sm:$0xff]  ;;  %v214_v17 = vld [vmem:[#allocation6 + $0x240] sm:$0xff] }
  0x43   :  { %1589 = vmatpush.bf16.msra.mxu1 %v1330_v25  ;;  %v1394_v34 = vpack.c.bf16 %v986_v27, %v982_v26  ;;  %v786_v35 = vcvt.s32.f32 %v274_v28  ;;  %v398_v36 = vunpack.c.0.s8 %v174_v2  ;;  %v402_v37 = vunpack.c.1.s8 %v174_v2  ;;  %v230_v26 = vld [vmem:[#allocation6 + $0x2c0] sm:$0xff] }
  0x44   :  { %1602 = vmatpush.bf16.msra.mxu2 %v1362_v29  ;;  %v846_v38 = vcvt.s32.f32 %v334_v31  ;;  %v850_v39 = vcvt.s32.f32 %v338_v32  ;;  %v462_v40 = vunpack.c.0.s8 %v190_v7  ;;  %v466_v41 = vunpack.c.1.s8 %v190_v7  ;;  %v246_v31 = vld [vmem:[#allocation6 + $0x340] sm:$0xff] }
  0x45   :  { %1615 = vmatpush.bf16.msra.mxu3 %v1394_v34  ;;  %v1294_v43 = vpack.c.bf16 %v786_v35, %v782_v30  ;;  %v910_v44 = vcvt.s32.f32 %v398_v36  ;;  %v914_v45 = vcvt.s32.f32 %v402_v37  ;;  %v582_v46 = vunpack.c.2.s8 %v218_v33  ;;  %v262_v36 = vld [vmem:[#allocation6 + $0x3c0] sm:$0xff] }
  0x46   :  { %v1326_v48 = vpack.c.bf16 %v850_v39, %v846_v38  ;;  %v974_v49 = vcvt.s32.f32 %v462_v40  ;;  %v978_v50 = vcvt.s32.f32 %v466_v41  ;;  %v586_v51 = vunpack.c.3.s8 %v218_v33 }
  0x47   :  { %1577 = vmatpush.bf16.msra.mxu0 %v1294_v43  ;;  %v1358_v53 = vpack.c.bf16 %v914_v45, %v910_v44  ;;  %v1094_v54 = vcvt.s32.f32 %v582_v46  ;;  %v646_v55 = vunpack.c.2.s8 %v234_v42  ;;  %v650_v56 = vunpack.c.3.s8 %v234_v42 }
  0x48   :  { %1590 = vmatpush.bf16.msra.mxu1 %v1326_v48  ;;  %v1390_v57 = vpack.c.bf16 %v978_v50, %v974_v49  ;;  %v1098_v58 = vcvt.s32.f32 %v586_v51  ;;  %v710_v59 = vunpack.c.2.s8 %v250_v47  ;;  %v714_v60 = vunpack.c.3.s8 %v250_v47 }
  0x49   :  { %1603 = vmatpush.bf16.msra.mxu2 %v1358_v53  ;;  %v1158_v63 = vcvt.s32.f32 %v646_v55  ;;  %v1162_v0 = vcvt.s32.f32 %v650_v56  ;;  %v774_v1 = vunpack.c.2.s8 %v266_v52  ;;  %v778_v2 = vunpack.c.3.s8 %v266_v52 }
  0x4a   :  { %1616 = vmatpush.bf16.msra.mxu3 %v1390_v57  ;;  %v1450_v4 = vpack.c.bf16 %v1098_v58, %v1094_v54  ;;  %v1222_v5 = vcvt.s32.f32 %v710_v59  ;;  %v1226_v6 = vcvt.s32.f32 %v714_v60  ;;  %v574_v7 = vunpack.c.0.s8 %v218_v33  ;;  %1578 = vmatmul.bf16.vlgmr.msra.gmra.mxu0 %v3574_v61 }
  0x4b   :  { %v1482_v9 = vpack.c.bf16 %v1162_v0, %v1158_v63  ;;  %v1286_v10 = vcvt.s32.f32 %v774_v1  ;;  %v1290_v11 = vcvt.s32.f32 %v778_v2  ;;  %v578_v12 = vunpack.c.1.s8 %v218_v33  ;;  %1591 = vmatmul.bf16.vlgmr.msra.gmra.mxu1 %v3576_v62  ;;  %v210_v63 = vld [vmem:[#allocation6 + $0x220] sm:$0xff] }
  0x4c   :  { %1622 = vmatpush.bf16.msrb.mxu0 %v1450_v4  ;;  %v1514_v13 = vpack.c.bf16 %v1226_v6, %v1222_v5  ;;  %v1086_v14 = vcvt.s32.f32 %v574_v7  ;;  %v638_v15 = vunpack.c.0.s8 %v234_v42  ;;  %v642_v16 = vunpack.c.1.s8 %v234_v42  ;;  %1604 = vmatmul.bf16.vlgmr.msra.gmra.mxu2 %v3578_v3 }
  0x4d   :  { %1635 = vmatpush.bf16.msrb.mxu1 %v1482_v9  ;;  %v1546_v18 = vpack.c.bf16 %v1290_v11, %v1286_v10  ;;  %v1090_v19 = vcvt.s32.f32 %v578_v12  ;;  %v702_v20 = vunpack.c.0.s8 %v250_v47  ;;  %v706_v21 = vunpack.c.1.s8 %v250_v47  ;;  %1617 = vmatmul.bf16.vlgmr.msra.gmra.mxu3 %v3581_v8  ;;  %v226_v10 = vld [vmem:[#allocation6 + $0x2a0] sm:$0xff] }
  0x4e   :  { %1648 = vmatpush.bf16.msrb.mxu2 %v1514_v13  ;;  %v1150_v22 = vcvt.s32.f32 %v638_v15  ;;  %v1154_v23 = vcvt.s32.f32 %v642_v16  ;;  %v766_v24 = vunpack.c.0.s8 %v266_v52  ;;  %v770_v25 = vunpack.c.1.s8 %v266_v52  ;;  %v242_v15 = vld [vmem:[#allocation6 + $0x320] sm:$0xff] }
  0x4f   :  { %1661 = vmatpush.bf16.msrb.mxu3 %v1546_v18  ;;  %v1446_v27 = vpack.c.bf16 %v1090_v19, %v1086_v14  ;;  %v1214_v28 = vcvt.s32.f32 %v702_v20  ;;  %v1218_v29 = vcvt.s32.f32 %v706_v21  ;;  %v566_v30 = vunpack.c.2.s8 %v214_v17  ;;  %v258_v20 = vld [vmem:[#allocation6 + $0x3a0] sm:$0xff] }
  0x50   :  { %v1478_v32 = vpack.c.bf16 %v1154_v23, %v1150_v22  ;;  %v1278_v33 = vcvt.s32.f32 %v766_v24  ;;  %v1282_v34 = vcvt.s32.f32 %v770_v25  ;;  %v570_v35 = vunpack.c.3.s8 %v214_v17 }
  0x51   :  { %1623 = vmatpush.bf16.msrb.mxu0 %v1446_v27  ;;  %v1510_v37 = vpack.c.bf16 %v1218_v29, %v1214_v28  ;;  %v1078_v38 = vcvt.s32.f32 %v566_v30  ;;  %v630_v39 = vunpack.c.2.s8 %v230_v26  ;;  %v634_v40 = vunpack.c.3.s8 %v230_v26 }
  0x52   :  { %1636 = vmatpush.bf16.msrb.mxu1 %v1478_v32  ;;  %v1542_v41 = vpack.c.bf16 %v1282_v34, %v1278_v33  ;;  %v1082_v42 = vcvt.s32.f32 %v570_v35  ;;  %v694_v43 = vunpack.c.2.s8 %v246_v31  ;;  %v698_v44 = vunpack.c.3.s8 %v246_v31 }
  0x53   :  { %1649 = vmatpush.bf16.msrb.mxu2 %v1510_v37  ;;  %v1142_v45 = vcvt.s32.f32 %v630_v39  ;;  %v1146_v46 = vcvt.s32.f32 %v634_v40  ;;  %v758_v47 = vunpack.c.2.s8 %v262_v36  ;;  %v762_v48 = vunpack.c.3.s8 %v262_v36 }
  0x54   :  { %1662 = vmatpush.bf16.msrb.mxu3 %v1542_v41  ;;  %v1442_v49 = vpack.c.bf16 %v1082_v42, %v1078_v38  ;;  %v1206_v50 = vcvt.s32.f32 %v694_v43  ;;  %v1210_v51 = vcvt.s32.f32 %v698_v44  ;;  %v558_v52 = vunpack.c.0.s8 %v214_v17 }
  0x55   :  { %v1474_v53 = vpack.c.bf16 %v1146_v46, %v1142_v45  ;;  %v1270_v54 = vcvt.s32.f32 %v758_v47  ;;  %v1274_v55 = vcvt.s32.f32 %v762_v48  ;;  %v562_v56 = vunpack.c.1.s8 %v214_v17  ;;  %v206_v45 = vld [vmem:[#allocation6 + $0x200] sm:$0xff] }
  0x56   :  { %1624 = vmatpush.bf16.msrb.mxu0 %v1442_v49  ;;  %v1506_v57 = vpack.c.bf16 %v1210_v51, %v1206_v50  ;;  %v1070_v58 = vcvt.s32.f32 %v558_v52  ;;  %v622_v59 = vunpack.c.0.s8 %v230_v26  ;;  %v626_v60 = vunpack.c.1.s8 %v230_v26 }
  0x57   :  { %1637 = vmatpush.bf16.msrb.mxu1 %v1474_v53  ;;  %v1538_v0 = vpack.c.bf16 %v1274_v55, %v1270_v54  ;;  %v1074_v1 = vcvt.s32.f32 %v562_v56  ;;  %v686_v2 = vunpack.c.0.s8 %v246_v31  ;;  %v690_v4 = vunpack.c.1.s8 %v246_v31  ;;  %v222_v54 = vld [vmem:[#allocation6 + $0x280] sm:$0xff] }
  0x58   :  { %1650 = vmatpush.bf16.msrb.mxu2 %v1506_v57  ;;  %v1134_v5 = vcvt.s32.f32 %v622_v59  ;;  %v1138_v6 = vcvt.s32.f32 %v626_v60  ;;  %v750_v7 = vunpack.c.0.s8 %v262_v36  ;;  %v754_v9 = vunpack.c.1.s8 %v262_v36  ;;  %v238_v59 = vld [vmem:[#allocation6 + $0x300] sm:$0xff] }
  0x59   :  { %1663 = vmatpush.bf16.msrb.mxu3 %v1538_v0  ;;  %v1438_v11 = vpack.c.bf16 %v1074_v1, %v1070_v58  ;;  %v1198_v12 = vcvt.s32.f32 %v686_v2  ;;  %v1202_v13 = vcvt.s32.f32 %v690_v4  ;;  %v550_v14 = vunpack.c.2.s8 %v210_v63  ;;  %v254_v2 = vld [vmem:[#allocation6 + $0x380] sm:$0xff] }
  0x5a   :  { %v1470_v16 = vpack.c.bf16 %v1138_v6, %v1134_v5  ;;  %v1262_v17 = vcvt.s32.f32 %v750_v7  ;;  %v1266_v18 = vcvt.s32.f32 %v754_v9  ;;  %v554_v19 = vunpack.c.3.s8 %v210_v63 }
  0x5b   :  { %1625 = vmatpush.bf16.msrb.mxu0 %v1438_v11  ;;  %v1502_v21 = vpack.c.bf16 %v1202_v13, %v1198_v12  ;;  %v1062_v22 = vcvt.s32.f32 %v550_v14  ;;  %v614_v23 = vunpack.c.2.s8 %v226_v10  ;;  %v618_v24 = vunpack.c.3.s8 %v226_v10 }
  0x5c   :  { %1638 = vmatpush.bf16.msrb.mxu1 %v1470_v16  ;;  %v1534_v25 = vpack.c.bf16 %v1266_v18, %v1262_v17  ;;  %v1066_v26 = vcvt.s32.f32 %v554_v19  ;;  %v678_v27 = vunpack.c.2.s8 %v242_v15  ;;  %v682_v28 = vunpack.c.3.s8 %v242_v15 }
  0x5d   :  { %1651 = vmatpush.bf16.msrb.mxu2 %v1502_v21  ;;  %v1126_v29 = vcvt.s32.f32 %v614_v23  ;;  %v1130_v30 = vcvt.s32.f32 %v618_v24  ;;  %v742_v31 = vunpack.c.2.s8 %v258_v20  ;;  %v746_v32 = vunpack.c.3.s8 %v258_v20 }
  0x5e   :  { %1664 = vmatpush.bf16.msrb.mxu3 %v1534_v25  ;;  %v1434_v33 = vpack.c.bf16 %v1066_v26, %v1062_v22  ;;  %v1190_v34 = vcvt.s32.f32 %v678_v27  ;;  %v1194_v35 = vcvt.s32.f32 %v682_v28  ;;  %v542_v36 = vunpack.c.0.s8 %v210_v63 }
  0x5f   :  { %v1466_v37 = vpack.c.bf16 %v1130_v30, %v1126_v29  ;;  %v1254_v38 = vcvt.s32.f32 %v742_v31  ;;  %v1258_v39 = vcvt.s32.f32 %v746_v32  ;;  %v546_v40 = vunpack.c.1.s8 %v210_v63  ;;  %v155_v29 = vld [vmem:[#allocation6 + $0x68] sm:$0xff] }
  0x60   :  { %1626 = vmatpush.bf16.msrb.mxu0 %v1434_v33  ;;  %v1498_v41 = vpack.c.bf16 %v1194_v35, %v1190_v34  ;;  %v1054_v42 = vcvt.s32.f32 %v542_v36  ;;  %v606_v43 = vunpack.c.0.s8 %v226_v10  ;;  %v610_v44 = vunpack.c.1.s8 %v226_v10 }
  0x61   :  { %1639 = vmatpush.bf16.msrb.mxu1 %v1466_v37  ;;  %v1530_v46 = vpack.c.bf16 %v1258_v39, %v1254_v38  ;;  %v1058_v47 = vcvt.s32.f32 %v546_v40  ;;  %v670_v48 = vunpack.c.0.s8 %v242_v15  ;;  %v674_v49 = vunpack.c.1.s8 %v242_v15  ;;  %v171_v38 = vld [vmem:[#allocation6 + $0xe8] sm:$0xff] }
  0x62   :  { %1652 = vmatpush.bf16.msrb.mxu2 %v1498_v41  ;;  %v1118_v50 = vcvt.s32.f32 %v606_v43  ;;  %v1122_v51 = vcvt.s32.f32 %v610_v44  ;;  %v734_v52 = vunpack.c.0.s8 %v258_v20  ;;  %v738_v53 = vunpack.c.1.s8 %v258_v20  ;;  %v187_v43 = vld [vmem:[#allocation6 + $0x168] sm:$0xff] }
  0x63   :  { %1665 = vmatpush.bf16.msrb.mxu3 %v1530_v46  ;;  %v1430_v55 = vpack.c.bf16 %v1058_v47, %v1054_v42  ;;  %v1182_v56 = vcvt.s32.f32 %v670_v48  ;;  %v1186_v57 = vcvt.s32.f32 %v674_v49  ;;  %v534_v58 = vunpack.c.2.s8 %v206_v45  ;;  %v203_v48 = vld [vmem:[#allocation6 + $0x1e8] sm:$0xff] }
  0x64   :  { %v1462_v60 = vpack.c.bf16 %v1122_v51, %v1118_v50  ;;  %v1246_v63 = vcvt.s32.f32 %v734_v52  ;;  %v1250_v0 = vcvt.s32.f32 %v738_v53  ;;  %v538_v1 = vunpack.c.3.s8 %v206_v45  ;;  %v3586_v53 = vld [vmem:[#allocation1 + $0x24] sm:$0xff] }
  0x65   :  { %1627 = vmatpush.bf16.msrb.mxu0 %v1430_v55  ;;  %v1494_v4 = vpack.c.bf16 %v1186_v57, %v1182_v56  ;;  %v1046_v5 = vcvt.s32.f32 %v534_v58  ;;  %v598_v6 = vunpack.c.2.s8 %v222_v54  ;;  %v602_v7 = vunpack.c.3.s8 %v222_v54  ;;  %v3588_v58 = vld [vmem:[#allocation1 + $0x2d] sm:$0xff] }
  0x66   :  { %1640 = vmatpush.bf16.msrb.mxu1 %v1462_v60  ;;  %v1526_v9 = vpack.c.bf16 %v1250_v0, %v1246_v63  ;;  %v1050_v10 = vcvt.s32.f32 %v538_v1  ;;  %v662_v11 = vunpack.c.2.s8 %v238_v59  ;;  %v666_v12 = vunpack.c.3.s8 %v238_v59  ;;  %v3590_v1 = vld [vmem:[#allocation1 + $0x36] sm:$0xff] }
  0x67   :  { %1653 = vmatpush.bf16.msrb.mxu2 %v1494_v4  ;;  %v1110_v13 = vcvt.s32.f32 %v598_v6  ;;  %v1114_v14 = vcvt.s32.f32 %v602_v7  ;;  %v726_v15 = vunpack.c.2.s8 %v254_v2  ;;  %v730_v16 = vunpack.c.3.s8 %v254_v2  ;;  %v3593_v7 = vld [vmem:[#allocation1 + $0x3f] sm:$0xff] }
  0x68   :  { %1666 = vmatpush.bf16.msrb.mxu3 %v1526_v9  ;;  %v1426_v17 = vpack.c.bf16 %v1050_v10, %v1046_v5  ;;  %v1174_v18 = vcvt.s32.f32 %v662_v11  ;;  %v1178_v19 = vcvt.s32.f32 %v666_v12  ;;  %v526_v20 = vunpack.c.0.s8 %v206_v45 }
  0x69   :  { %v1458_v21 = vpack.c.bf16 %v1114_v14, %v1110_v13  ;;  %v1238_v22 = vcvt.s32.f32 %v726_v15  ;;  %v1242_v23 = vcvt.s32.f32 %v730_v16  ;;  %v530_v24 = vunpack.c.1.s8 %v206_v45 }
  0x6a   :  { %1628 = vmatpush.bf16.msrb.mxu0 %v1426_v17  ;;  %v1490_v25 = vpack.c.bf16 %v1178_v19, %v1174_v18  ;;  %v1038_v26 = vcvt.s32.f32 %v526_v20  ;;  %v590_v27 = vunpack.c.0.s8 %v222_v54  ;;  %v594_v28 = vunpack.c.1.s8 %v222_v54  ;;  %v151_v17 = vld [vmem:[#allocation6 + $0x48] sm:$0xff] }
  0x6b   :  { %1641 = vmatpush.bf16.msrb.mxu1 %v1458_v21  ;;  %v1522_v30 = vpack.c.bf16 %v1242_v23, %v1238_v22  ;;  %v1042_v31 = vcvt.s32.f32 %v530_v24  ;;  %v654_v32 = vunpack.c.0.s8 %v238_v59  ;;  %v658_v33 = vunpack.c.1.s8 %v238_v59 }
  0x6c   :  { %1654 = vmatpush.bf16.msrb.mxu2 %v1490_v25  ;;  %v1102_v34 = vcvt.s32.f32 %v590_v27  ;;  %v1106_v35 = vcvt.s32.f32 %v594_v28  ;;  %v718_v36 = vunpack.c.0.s8 %v254_v2  ;;  %v722_v37 = vunpack.c.1.s8 %v254_v2 }
  0x6d   :  { %1667 = vmatpush.bf16.msrb.mxu3 %v1522_v30  ;;  %v1422_v39 = vpack.c.bf16 %v1042_v31, %v1038_v26  ;;  %v1166_v40 = vcvt.s32.f32 %v654_v32  ;;  %v1170_v41 = vcvt.s32.f32 %v658_v33  ;;  %v327_v42 = vunpack.c.2.s8 %v155_v29  ;;  %v167_v26 = vld [vmem:[#allocation6 + $0xc8] sm:$0xff] }
  0x6e   :  { %v1454_v44 = vpack.c.bf16 %v1106_v35, %v1102_v34  ;;  %v1230_v45 = vcvt.s32.f32 %v718_v36  ;;  %v1234_v46 = vcvt.s32.f32 %v722_v37  ;;  %v331_v47 = vunpack.c.3.s8 %v155_v29  ;;  %v183_v31 = vld [vmem:[#allocation6 + $0x148] sm:$0xff] }
  0x6f   :  { %1629 = vmatpush.bf16.msrb.mxu0 %v1422_v39  ;;  %v1486_v49 = vpack.c.bf16 %v1170_v41, %v1166_v40  ;;  %v839_v50 = vcvt.s32.f32 %v327_v42  ;;  %v391_v51 = vunpack.c.2.s8 %v171_v38  ;;  %v395_v52 = vunpack.c.3.s8 %v171_v38  ;;  %v199_v36 = vld [vmem:[#allocation6 + $0x1c8] sm:$0xff] }
  0x70   :  { %1642 = vmatpush.bf16.msrb.mxu1 %v1454_v44  ;;  %v1518_v54 = vpack.c.bf16 %v1234_v46, %v1230_v45  ;;  %v843_v55 = vcvt.s32.f32 %v331_v47  ;;  %v455_v56 = vunpack.c.2.s8 %v187_v43  ;;  %v459_v57 = vunpack.c.3.s8 %v187_v43 }
  0x71   :  { %1655 = vmatpush.bf16.msrb.mxu2 %v1486_v49  ;;  %v903_v59 = vcvt.s32.f32 %v391_v51  ;;  %v907_v60 = vcvt.s32.f32 %v395_v52  ;;  %v519_v63 = vunpack.c.2.s8 %v203_v48  ;;  %v523_v0 = vunpack.c.3.s8 %v203_v48 }
  0x72   :  { %1668 = vmatpush.bf16.msrb.mxu3 %v1518_v54  ;;  %v1323_v2 = vpack.c.bf16 %v843_v55, %v839_v50  ;;  %v967_v4 = vcvt.s32.f32 %v455_v56  ;;  %v971_v5 = vcvt.s32.f32 %v459_v57  ;;  %v319_v6 = vunpack.c.0.s8 %v155_v29  ;;  %1630 = vmatmul.bf16.vlgmr.msrb.gmra.mxu0 %v3586_v53 }
  0x73   :  { %v1355_v9 = vpack.c.bf16 %v907_v60, %v903_v59  ;;  %v1031_v10 = vcvt.s32.f32 %v519_v63  ;;  %v1035_v11 = vcvt.s32.f32 %v523_v0  ;;  %v323_v12 = vunpack.c.1.s8 %v155_v29  ;;  %1643 = vmatmul.bf16.vlgmr.msrb.gmra.mxu1 %v3588_v58 }
  0x74   :  { %1674 = vmatpush.bf16.msra.mxu0 %v1323_v2  ;;  %v1387_v13 = vpack.c.bf16 %v971_v5, %v967_v4  ;;  %v831_v14 = vcvt.s32.f32 %v319_v6  ;;  %v383_v15 = vunpack.c.0.s8 %v171_v38  ;;  %v387_v16 = vunpack.c.1.s8 %v171_v38  ;;  %1656 = vmatmul.bf16.vlgmr.msrb.gmra.mxu2 %v3590_v1  ;;  %v147_v2 = vld [vmem:[#allocation6 + $0x28] sm:$0xff] }
  0x75   :  { %1687 = vmatpush.bf16.msra.mxu1 %v1355_v9  ;;  %v1419_v18 = vpack.c.bf16 %v1035_v11, %v1031_v10  ;;  %v835_v19 = vcvt.s32.f32 %v323_v12  ;;  %v447_v20 = vunpack.c.0.s8 %v187_v43  ;;  %v451_v21 = vunpack.c.1.s8 %v187_v43  ;;  %1669 = vmatmul.bf16.vlgmr.msrb.gmra.mxu3 %v3593_v7 }
  0x76   :  { %1700 = vmatpush.bf16.msra.mxu2 %v1387_v13  ;;  %v895_v22 = vcvt.s32.f32 %v383_v15  ;;  %v899_v23 = vcvt.s32.f32 %v387_v16  ;;  %v511_v24 = vunpack.c.0.s8 %v203_v48  ;;  %v515_v25 = vunpack.c.1.s8 %v203_v48 }
  0x77   :  { %1713 = vmatpush.bf16.msra.mxu3 %v1419_v18  ;;  %v1319_v27 = vpack.c.bf16 %v835_v19, %v831_v14  ;;  %v959_v28 = vcvt.s32.f32 %v447_v20  ;;  %v963_v29 = vcvt.s32.f32 %v451_v21  ;;  %v311_v30 = vunpack.c.2.s8 %v151_v17  ;;  %v163_v14 = vld [vmem:[#allocation6 + $0xa8] sm:$0xff] }
  0x78   :  { %v1351_v32 = vpack.c.bf16 %v899_v23, %v895_v22  ;;  %v1023_v33 = vcvt.s32.f32 %v511_v24  ;;  %v1027_v34 = vcvt.s32.f32 %v515_v25  ;;  %v315_v35 = vunpack.c.3.s8 %v151_v17  ;;  %v179_v19 = vld [vmem:[#allocation6 + $0x128] sm:$0xff] }
  0x79   :  { %1675 = vmatpush.bf16.msra.mxu0 %v1319_v27  ;;  %v1383_v37 = vpack.c.bf16 %v963_v29, %v959_v28  ;;  %v823_v38 = vcvt.s32.f32 %v311_v30  ;;  %v375_v39 = vunpack.c.2.s8 %v167_v26  ;;  %v379_v40 = vunpack.c.3.s8 %v167_v26  ;;  %v195_v24 = vld [vmem:[#allocation6 + $0x1a8] sm:$0xff] }
  0x7a   :  { %1688 = vmatpush.bf16.msra.mxu1 %v1351_v32  ;;  %v1415_v41 = vpack.c.bf16 %v1027_v34, %v1023_v33  ;;  %v827_v42 = vcvt.s32.f32 %v315_v35  ;;  %v439_v43 = vunpack.c.2.s8 %v183_v31  ;;  %v443_v44 = vunpack.c.3.s8 %v183_v31 }
  0x7b   :  { %1701 = vmatpush.bf16.msra.mxu2 %v1383_v37  ;;  %v887_v45 = vcvt.s32.f32 %v375_v39  ;;  %v891_v46 = vcvt.s32.f32 %v379_v40  ;;  %v503_v47 = vunpack.c.2.s8 %v199_v36  ;;  %v507_v48 = vunpack.c.3.s8 %v199_v36 }
  0x7c   :  { %1714 = vmatpush.bf16.msra.mxu3 %v1415_v41  ;;  %v1315_v49 = vpack.c.bf16 %v827_v42, %v823_v38  ;;  %v951_v50 = vcvt.s32.f32 %v439_v43  ;;  %v955_v51 = vcvt.s32.f32 %v443_v44  ;;  %v303_v52 = vunpack.c.0.s8 %v151_v17 }
  0x7d   :  { %v1347_v54 = vpack.c.bf16 %v891_v46, %v887_v45  ;;  %v1015_v55 = vcvt.s32.f32 %v503_v47  ;;  %v1019_v56 = vcvt.s32.f32 %v507_v48  ;;  %v307_v57 = vunpack.c.1.s8 %v151_v17 }
  0x7e   :  { %1676 = vmatpush.bf16.msra.mxu0 %v1315_v49  ;;  %v1379_v59 = vpack.c.bf16 %v955_v51, %v951_v50  ;;  %v815_v60 = vcvt.s32.f32 %v303_v52  ;;  %v367_v63 = vunpack.c.0.s8 %v167_v26  ;;  %v371_v0 = vunpack.c.1.s8 %v167_v26  ;;  %v143_v49 = vld [vmem:[#allocation6 + $0x8] sm:$0xff] }
  0x7f   :  { %1689 = vmatpush.bf16.msra.mxu1 %v1347_v54  ;;  %v1411_v4 = vpack.c.bf16 %v1019_v56, %v1015_v55  ;;  %v819_v5 = vcvt.s32.f32 %v307_v57  ;;  %v431_v6 = vunpack.c.0.s8 %v183_v31  ;;  %v435_v9 = vunpack.c.1.s8 %v183_v31 }
  0x80   :  { %1702 = vmatpush.bf16.msra.mxu2 %v1379_v59  ;;  %v879_v10 = vcvt.s32.f32 %v367_v63  ;;  %v883_v11 = vcvt.s32.f32 %v371_v0  ;;  %v495_v12 = vunpack.c.0.s8 %v199_v36  ;;  %v499_v13 = vunpack.c.1.s8 %v199_v36 }
  0x81   :  { %1715 = vmatpush.bf16.msra.mxu3 %v1411_v4  ;;  %v1311_v15 = vpack.c.bf16 %v819_v5, %v815_v60  ;;  %v943_v16 = vcvt.s32.f32 %v431_v6  ;;  %v947_v17 = vcvt.s32.f32 %v435_v9  ;;  %v295_v18 = vunpack.c.2.s8 %v147_v2  ;;  %v159_v60 = vld [vmem:[#allocation6 + $0x88] sm:$0xff] }
  0x82   :  { %v1343_v20 = vpack.c.bf16 %v883_v11, %v879_v10  ;;  %v1007_v21 = vcvt.s32.f32 %v495_v12  ;;  %v1011_v22 = vcvt.s32.f32 %v499_v13  ;;  %v299_v23 = vunpack.c.3.s8 %v147_v2  ;;  %v175_v5 = vld [vmem:[#allocation6 + $0x108] sm:$0xff] }
  0x83   :  { %1677 = vmatpush.bf16.msra.mxu0 %v1311_v15  ;;  %v1375_v25 = vpack.c.bf16 %v947_v17, %v943_v16  ;;  %v807_v26 = vcvt.s32.f32 %v295_v18  ;;  %v359_v27 = vunpack.c.2.s8 %v163_v14  ;;  %v363_v28 = vunpack.c.3.s8 %v163_v14  ;;  %v191_v12 = vld [vmem:[#allocation6 + $0x188] sm:$0xff] }
  0x84   :  { %1690 = vmatpush.bf16.msra.mxu1 %v1343_v20  ;;  %v1407_v29 = vpack.c.bf16 %v1011_v22, %v1007_v21  ;;  %v811_v30 = vcvt.s32.f32 %v299_v23  ;;  %v423_v31 = vunpack.c.2.s8 %v179_v19  ;;  %v427_v32 = vunpack.c.3.s8 %v179_v19 }
  0x85   :  { %1703 = vmatpush.bf16.msra.mxu2 %v1375_v25  ;;  %v871_v33 = vcvt.s32.f32 %v359_v27  ;;  %v875_v34 = vcvt.s32.f32 %v363_v28  ;;  %v487_v35 = vunpack.c.2.s8 %v195_v24  ;;  %v491_v36 = vunpack.c.3.s8 %v195_v24 }
  0x86   :  { %1716 = vmatpush.bf16.msra.mxu3 %v1407_v29  ;;  %v1307_v37 = vpack.c.bf16 %v811_v30, %v807_v26  ;;  %v935_v38 = vcvt.s32.f32 %v423_v31  ;;  %v939_v39 = vcvt.s32.f32 %v427_v32  ;;  %v287_v40 = vunpack.c.0.s8 %v147_v2 }
  0x87   :  { %v1339_v41 = vpack.c.bf16 %v875_v34, %v871_v33  ;;  %v999_v42 = vcvt.s32.f32 %v487_v35  ;;  %v1003_v43 = vcvt.s32.f32 %v491_v36  ;;  %v291_v44 = vunpack.c.1.s8 %v147_v2 }
  0x88   :  { %1678 = vmatpush.bf16.msra.mxu0 %v1307_v37  ;;  %v1371_v45 = vpack.c.bf16 %v939_v39, %v935_v38  ;;  %v799_v46 = vcvt.s32.f32 %v287_v40  ;;  %v351_v47 = vunpack.c.0.s8 %v163_v14  ;;  %v355_v48 = vunpack.c.1.s8 %v163_v14  ;;  %v219_v37 = vld [vmem:[#allocation6 + $0x268] sm:$0xff] }
  0x89   :  { %1691 = vmatpush.bf16.msra.mxu1 %v1339_v41  ;;  %v1403_v50 = vpack.c.bf16 %v1003_v43, %v999_v42  ;;  %v803_v51 = vcvt.s32.f32 %v291_v44  ;;  %v415_v52 = vunpack.c.0.s8 %v179_v19  ;;  %v419_v54 = vunpack.c.1.s8 %v179_v19 }
  0x8a   :  { %1704 = vmatpush.bf16.msra.mxu2 %v1371_v45  ;;  %v863_v55 = vcvt.s32.f32 %v351_v47  ;;  %v867_v56 = vcvt.s32.f32 %v355_v48  ;;  %v479_v57 = vunpack.c.0.s8 %v195_v24  ;;  %v483_v59 = vunpack.c.1.s8 %v195_v24 }
  0x8b   :  { %1717 = vmatpush.bf16.msra.mxu3 %v1403_v50  ;;  %v1303_v63 = vpack.c.bf16 %v803_v51, %v799_v46  ;;  %v927_v0 = vcvt.s32.f32 %v415_v52  ;;  %v931_v2 = vcvt.s32.f32 %v419_v54  ;;  %v279_v4 = vunpack.c.2.s8 %v143_v49  ;;  %v235_v46 = vld [vmem:[#allocation6 + $0x2e8] sm:$0xff] }
  0x8c   :  { %v1335_v6 = vpack.c.bf16 %v867_v56, %v863_v55  ;;  %v991_v9 = vcvt.s32.f32 %v479_v57  ;;  %v995_v10 = vcvt.s32.f32 %v483_v59  ;;  %v283_v11 = vunpack.c.3.s8 %v143_v49  ;;  %v251_v51 = vld [vmem:[#allocation6 + $0x368] sm:$0xff] }
  0x8d   :  { %1679 = vmatpush.bf16.msra.mxu0 %v1303_v63  ;;  %v1367_v13 = vpack.c.bf16 %v931_v2, %v927_v0  ;;  %v791_v14 = vcvt.s32.f32 %v279_v4  ;;  %v343_v15 = vunpack.c.2.s8 %v159_v60  ;;  %v347_v16 = vunpack.c.3.s8 %v159_v60  ;;  %v267_v57 = vld [vmem:[#allocation6 + $0x3e8] sm:$0xff] }
  0x8e   :  { %1692 = vmatpush.bf16.msra.mxu1 %v1335_v6  ;;  %v1399_v17 = vpack.c.bf16 %v995_v10, %v991_v9  ;;  %v795_v18 = vcvt.s32.f32 %v283_v11  ;;  %v407_v19 = vunpack.c.2.s8 %v175_v5  ;;  %v411_v20 = vunpack.c.3.s8 %v175_v5 }
  0x8f   :  { %1705 = vmatpush.bf16.msra.mxu2 %v1367_v13  ;;  %v855_v21 = vcvt.s32.f32 %v343_v15  ;;  %v859_v22 = vcvt.s32.f32 %v347_v16  ;;  %v471_v23 = vunpack.c.2.s8 %v191_v12  ;;  %v475_v24 = vunpack.c.3.s8 %v191_v12 }
  0x90   :  { %1718 = vmatpush.bf16.msra.mxu3 %v1399_v17  ;;  %v1299_v25 = vpack.c.bf16 %v795_v18, %v791_v14  ;;  %v919_v26 = vcvt.s32.f32 %v407_v19  ;;  %v923_v27 = vcvt.s32.f32 %v411_v20  ;;  %v271_v28 = vunpack.c.0.s8 %v143_v49 }
  0x91   :  { %v1331_v29 = vpack.c.bf16 %v859_v22, %v855_v21  ;;  %v983_v30 = vcvt.s32.f32 %v471_v23  ;;  %v987_v31 = vcvt.s32.f32 %v475_v24  ;;  %v275_v32 = vunpack.c.1.s8 %v143_v49 }
  0x92   :  { %1680 = vmatpush.bf16.msra.mxu0 %v1299_v25  ;;  %v1363_v33 = vpack.c.bf16 %v923_v27, %v919_v26  ;;  %v783_v34 = vcvt.s32.f32 %v271_v28  ;;  %v335_v35 = vunpack.c.0.s8 %v159_v60  ;;  %v339_v36 = vunpack.c.1.s8 %v159_v60  ;;  %v215_v25 = vld [vmem:[#allocation6 + $0x248] sm:$0xff] }
  0x93   :  { %1693 = vmatpush.bf16.msra.mxu1 %v1331_v29  ;;  %v1395_v38 = vpack.c.bf16 %v987_v31, %v983_v30  ;;  %v787_v39 = vcvt.s32.f32 %v275_v32  ;;  %v399_v40 = vunpack.c.0.s8 %v175_v5  ;;  %v403_v41 = vunpack.c.1.s8 %v175_v5  ;;  %v231_v32 = vld [vmem:[#allocation6 + $0x2c8] sm:$0xff] }
  0x94   :  { %1706 = vmatpush.bf16.msra.mxu2 %v1363_v33  ;;  %v847_v42 = vcvt.s32.f32 %v335_v35  ;;  %v851_v43 = vcvt.s32.f32 %v339_v36  ;;  %v463_v44 = vunpack.c.0.s8 %v191_v12  ;;  %v467_v45 = vunpack.c.1.s8 %v191_v12 }
  0x95   :  { %1719 = vmatpush.bf16.msra.mxu3 %v1395_v38  ;;  %v1295_v47 = vpack.c.bf16 %v787_v39, %v783_v34  ;;  %v911_v48 = vcvt.s32.f32 %v399_v40  ;;  %v915_v49 = vcvt.s32.f32 %v403_v41  ;;  %v583_v50 = vunpack.c.2.s8 %v219_v37  ;;  %v263_v41 = vld [vmem:[#allocation6 + $0x3c8] sm:$0xff] }
  0x96   :  { %v1327_v52 = vpack.c.bf16 %v851_v43, %v847_v42  ;;  %v975_v54 = vcvt.s32.f32 %v463_v44  ;;  %v979_v55 = vcvt.s32.f32 %v467_v45  ;;  %v587_v56 = vunpack.c.3.s8 %v219_v37 }
  0x97   :  { %1681 = vmatpush.bf16.msra.mxu0 %v1295_v47  ;;  %v1359_v59 = vpack.c.bf16 %v915_v49, %v911_v48  ;;  %v1095_v60 = vcvt.s32.f32 %v583_v50  ;;  %v647_v63 = vunpack.c.2.s8 %v235_v46  ;;  %v651_v0 = vunpack.c.3.s8 %v235_v46 }
  0x98   :  { %1694 = vmatpush.bf16.msra.mxu1 %v1327_v52  ;;  %v1391_v2 = vpack.c.bf16 %v979_v55, %v975_v54  ;;  %v1099_v4 = vcvt.s32.f32 %v587_v56  ;;  %v711_v5 = vunpack.c.2.s8 %v251_v51  ;;  %v715_v6 = vunpack.c.3.s8 %v251_v51 }
  0x99   :  { %1707 = vmatpush.bf16.msra.mxu2 %v1359_v59  ;;  %v1159_v9 = vcvt.s32.f32 %v647_v63  ;;  %v1163_v10 = vcvt.s32.f32 %v651_v0  ;;  %v775_v11 = vunpack.c.2.s8 %v267_v57  ;;  %v779_v12 = vunpack.c.3.s8 %v267_v57 }
  0x9a   :  { %1720 = vmatpush.bf16.msra.mxu3 %v1391_v2  ;;  %v1451_v13 = vpack.c.bf16 %v1099_v4, %v1095_v60  ;;  %v1223_v14 = vcvt.s32.f32 %v711_v5  ;;  %v1227_v15 = vcvt.s32.f32 %v715_v6  ;;  %v575_v16 = vunpack.c.0.s8 %v219_v37  ;;  %1682 = vmatmul.bf16.vlgmr.msra.gmra.mxu0 %v3574_v61 }
  0x9b   :  { %v1483_v17 = vpack.c.bf16 %v1163_v10, %v1159_v9  ;;  %v1287_v18 = vcvt.s32.f32 %v775_v11  ;;  %v1291_v19 = vcvt.s32.f32 %v779_v12  ;;  %v579_v20 = vunpack.c.1.s8 %v219_v37  ;;  %1695 = vmatmul.bf16.vlgmr.msra.gmra.mxu1 %v3576_v62  ;;  %v247_v37 = vld [vmem:[#allocation6 + $0x348] sm:$0xff] }
  0x9c   :  { %1726 = vmatpush.bf16.msrb.mxu0 %v1451_v13  ;;  %v1515_v21 = vpack.c.bf16 %v1227_v15, %v1223_v14  ;;  %v1087_v22 = vcvt.s32.f32 %v575_v16  ;;  %v639_v23 = vunpack.c.0.s8 %v235_v46  ;;  %v643_v24 = vunpack.c.1.s8 %v235_v46  ;;  %1708 = vmatmul.bf16.vlgmr.msra.gmra.mxu2 %v3578_v3  ;;  %v211_v9 = vld [vmem:[#allocation6 + $0x228] sm:$0xff] }
  0x9d   :  { %1739 = vmatpush.bf16.msrb.mxu1 %v1483_v17  ;;  %v1547_v26 = vpack.c.bf16 %v1291_v19, %v1287_v18  ;;  %v1091_v27 = vcvt.s32.f32 %v579_v20  ;;  %v703_v28 = vunpack.c.0.s8 %v251_v51  ;;  %v707_v29 = vunpack.c.1.s8 %v251_v51  ;;  %1721 = vmatmul.bf16.vlgmr.msra.gmra.mxu3 %v3581_v8  ;;  %v227_v18 = vld [vmem:[#allocation6 + $0x2a8] sm:$0xff] }
  0x9e   :  { %1752 = vmatpush.bf16.msrb.mxu2 %v1515_v21  ;;  %v1151_v61 = vcvt.s32.f32 %v639_v23  ;;  %v1155_v30 = vcvt.s32.f32 %v643_v24  ;;  %v767_v31 = vunpack.c.0.s8 %v267_v57  ;;  %v771_v62 = vunpack.c.1.s8 %v267_v57  ;;  %v243_v23 = vld [vmem:[#allocation6 + $0x328] sm:$0xff] }
  0x9f   :  { %1765 = vmatpush.bf16.msrb.mxu3 %v1547_v26  ;;  %v1447_v33 = vpack.c.bf16 %v1091_v27, %v1087_v22  ;;  %v1215_v34 = vcvt.s32.f32 %v703_v28  ;;  %v1219_v35 = vcvt.s32.f32 %v707_v29  ;;  %v567_v36 = vunpack.c.2.s8 %v215_v25  ;;  %v259_v28 = vld [vmem:[#allocation6 + $0x3a8] sm:$0xff] }
  0xa0   :  { %v1479_v3 = vpack.c.bf16 %v1155_v30, %v1151_v61  ;;  %v1279_v38 = vcvt.s32.f32 %v767_v31  ;;  %v1283_v39 = vcvt.s32.f32 %v771_v62  ;;  %v571_v40 = vunpack.c.3.s8 %v215_v25 }
  0xa1   :  { %1727 = vmatpush.bf16.msrb.mxu0 %v1447_v33  ;;  %v1511_v42 = vpack.c.bf16 %v1219_v35, %v1215_v34  ;;  %v1079_v8 = vcvt.s32.f32 %v567_v36  ;;  %v631_v43 = vunpack.c.2.s8 %v231_v32  ;;  %v635_v44 = vunpack.c.3.s8 %v231_v32 }
  0xa2   :  { %1740 = vmatpush.bf16.msrb.mxu1 %v1479_v3  ;;  %v1543_v45 = vpack.c.bf16 %v1283_v39, %v1279_v38  ;;  %v1083_v46 = vcvt.s32.f32 %v571_v40  ;;  %v695_v47 = vunpack.c.2.s8 %v247_v37  ;;  %v699_v48 = vunpack.c.3.s8 %v247_v37 }
  0xa3   :  { %1753 = vmatpush.bf16.msrb.mxu2 %v1511_v42  ;;  %v1143_v49 = vcvt.s32.f32 %v631_v43  ;;  %v1147_v50 = vcvt.s32.f32 %v635_v44  ;;  %v759_v51 = vunpack.c.2.s8 %v263_v41  ;;  %v763_v52 = vunpack.c.3.s8 %v263_v41 }
  0xa4   :  { %1766 = vmatpush.bf16.msrb.mxu3 %v1543_v45  ;;  %v1443_v54 = vpack.c.bf16 %v1083_v46, %v1079_v8  ;;  %v1207_v55 = vcvt.s32.f32 %v695_v47  ;;  %v1211_v56 = vcvt.s32.f32 %v699_v48  ;;  %v559_v57 = vunpack.c.0.s8 %v215_v25 }
  0xa5   :  { %v1475_v59 = vpack.c.bf16 %v1147_v50, %v1143_v49  ;;  %v1271_v60 = vcvt.s32.f32 %v759_v51  ;;  %v1275_v63 = vcvt.s32.f32 %v763_v52  ;;  %v563_v0 = vunpack.c.1.s8 %v215_v25  ;;  %v207_v49 = vld [vmem:[#allocation6 + $0x208] sm:$0xff] }
  0xa6   :  { %1728 = vmatpush.bf16.msrb.mxu0 %v1443_v54  ;;  %v1507_v2 = vpack.c.bf16 %v1211_v56, %v1207_v55  ;;  %v1071_v4 = vcvt.s32.f32 %v559_v57  ;;  %v623_v5 = vunpack.c.0.s8 %v231_v32  ;;  %v627_v6 = vunpack.c.1.s8 %v231_v32 }
  0xa7   :  { %1741 = vmatpush.bf16.msrb.mxu1 %v1475_v59  ;;  %v1539_v10 = vpack.c.bf16 %v1275_v63, %v1271_v60  ;;  %v1075_v11 = vcvt.s32.f32 %v563_v0  ;;  %v687_v12 = vunpack.c.0.s8 %v247_v37  ;;  %v691_v13 = vunpack.c.1.s8 %v247_v37  ;;  %v223_v60 = vld [vmem:[#allocation6 + $0x288] sm:$0xff] }
  0xa8   :  { %1754 = vmatpush.bf16.msrb.mxu2 %v1507_v2  ;;  %v1135_v14 = vcvt.s32.f32 %v623_v5  ;;  %v1139_v15 = vcvt.s32.f32 %v627_v6  ;;  %v751_v16 = vunpack.c.0.s8 %v263_v41  ;;  %v755_v17 = vunpack.c.1.s8 %v263_v41  ;;  %v239_v5 = vld [vmem:[#allocation6 + $0x308] sm:$0xff] }
  0xa9   :  { %1767 = vmatpush.bf16.msrb.mxu3 %v1539_v10  ;;  %v1439_v19 = vpack.c.bf16 %v1075_v11, %v1071_v4  ;;  %v1199_v20 = vcvt.s32.f32 %v687_v12  ;;  %v1203_v21 = vcvt.s32.f32 %v691_v13  ;;  %v551_v22 = vunpack.c.2.s8 %v211_v9  ;;  %v255_v12 = vld [vmem:[#allocation6 + $0x388] sm:$0xff] }
  0xaa   :  { %v1471_v24 = vpack.c.bf16 %v1139_v15, %v1135_v14  ;;  %v1263_v25 = vcvt.s32.f32 %v751_v16  ;;  %v1267_v26 = vcvt.s32.f32 %v755_v17  ;;  %v555_v27 = vunpack.c.3.s8 %v211_v9 }
  0xab   :  { %1729 = vmatpush.bf16.msrb.mxu0 %v1439_v19  ;;  %v1503_v29 = vpack.c.bf16 %v1203_v21, %v1199_v20  ;;  %v1063_v61 = vcvt.s32.f32 %v551_v22  ;;  %v615_v30 = vunpack.c.2.s8 %v227_v18  ;;  %v619_v31 = vunpack.c.3.s8 %v227_v18 }
  0xac   :  { %1742 = vmatpush.bf16.msrb.mxu1 %v1471_v24  ;;  %v1535_v62 = vpack.c.bf16 %v1267_v26, %v1263_v25  ;;  %v1067_v32 = vcvt.s32.f32 %v555_v27  ;;  %v679_v33 = vunpack.c.2.s8 %v243_v23  ;;  %v683_v34 = vunpack.c.3.s8 %v243_v23 }
  0xad   :  { %1755 = vmatpush.bf16.msrb.mxu2 %v1503_v29  ;;  %v1127_v35 = vcvt.s32.f32 %v615_v30  ;;  %v1131_v36 = vcvt.s32.f32 %v619_v31  ;;  %v743_v37 = vunpack.c.2.s8 %v259_v28  ;;  %v747_v3 = vunpack.c.3.s8 %v259_v28 }
  0xae   :  { %1768 = vmatpush.bf16.msrb.mxu3 %v1535_v62  ;;  %v1435_v38 = vpack.c.bf16 %v1067_v32, %v1063_v61  ;;  %v1191_v39 = vcvt.s32.f32 %v679_v33  ;;  %v1195_v40 = vcvt.s32.f32 %v683_v34  ;;  %v543_v41 = vunpack.c.0.s8 %v211_v9 }
  0xaf   :  { %v1467_v42 = vpack.c.bf16 %v1131_v36, %v1127_v35  ;;  %v1255_v8 = vcvt.s32.f32 %v743_v37  ;;  %v1259_v43 = vcvt.s32.f32 %v747_v3  ;;  %v547_v44 = vunpack.c.1.s8 %v211_v9  ;;  %v156_v35 = vld [vmem:[#allocation6 + $0x70] sm:$0xff] }
  0xb0   :  { %1730 = vmatpush.bf16.msrb.mxu0 %v1435_v38  ;;  %v1499_v45 = vpack.c.bf16 %v1195_v40, %v1191_v39  ;;  %v1055_v46 = vcvt.s32.f32 %v543_v41  ;;  %v607_v47 = vunpack.c.0.s8 %v227_v18  ;;  %v611_v48 = vunpack.c.1.s8 %v227_v18 }
  0xb1   :  { %1743 = vmatpush.bf16.msrb.mxu1 %v1467_v42  ;;  %v1531_v50 = vpack.c.bf16 %v1259_v43, %v1255_v8  ;;  %v1059_v51 = vcvt.s32.f32 %v547_v44  ;;  %v671_v52 = vunpack.c.0.s8 %v243_v23  ;;  %v675_v54 = vunpack.c.1.s8 %v243_v23  ;;  %v172_v8 = vld [vmem:[#allocation6 + $0xf0] sm:$0xff] }
  0xb2   :  { %1756 = vmatpush.bf16.msrb.mxu2 %v1499_v45  ;;  %v1119_v55 = vcvt.s32.f32 %v607_v47  ;;  %v1123_v56 = vcvt.s32.f32 %v611_v48  ;;  %v735_v57 = vunpack.c.0.s8 %v259_v28  ;;  %v739_v59 = vunpack.c.1.s8 %v259_v28  ;;  %v188_v47 = vld [vmem:[#allocation6 + $0x170] sm:$0xff] }
  0xb3   :  { %1769 = vmatpush.bf16.msrb.mxu3 %v1531_v50  ;;  %v1431_v63 = vpack.c.bf16 %v1059_v51, %v1055_v46  ;;  %v1183_v0 = vcvt.s32.f32 %v671_v52  ;;  %v1187_v2 = vcvt.s32.f32 %v675_v54  ;;  %v535_v4 = vunpack.c.2.s8 %v207_v49  ;;  %v204_v52 = vld [vmem:[#allocation6 + $0x1f0] sm:$0xff] }
  0xb4   :  { %v1463_v6 = vpack.c.bf16 %v1123_v56, %v1119_v55  ;;  %v1247_v9 = vcvt.s32.f32 %v735_v57  ;;  %v1251_v10 = vcvt.s32.f32 %v739_v59  ;;  %v539_v11 = vunpack.c.3.s8 %v207_v49 }
  0xb5   :  { %1731 = vmatpush.bf16.msrb.mxu0 %v1431_v63  ;;  %v1495_v13 = vpack.c.bf16 %v1187_v2, %v1183_v0  ;;  %v1047_v14 = vcvt.s32.f32 %v535_v4  ;;  %v599_v15 = vunpack.c.2.s8 %v223_v60  ;;  %v603_v16 = vunpack.c.3.s8 %v223_v60 }
  0xb6   :  { %1744 = vmatpush.bf16.msrb.mxu1 %v1463_v6  ;;  %v1527_v17 = vpack.c.bf16 %v1251_v10, %v1247_v9  ;;  %v1051_v18 = vcvt.s32.f32 %v539_v11  ;;  %v663_v19 = vunpack.c.2.s8 %v239_v5  ;;  %v667_v20 = vunpack.c.3.s8 %v239_v5 }
  0xb7   :  { %1757 = vmatpush.bf16.msrb.mxu2 %v1495_v13  ;;  %v1111_v21 = vcvt.s32.f32 %v599_v15  ;;  %v1115_v22 = vcvt.s32.f32 %v603_v16  ;;  %v727_v23 = vunpack.c.2.s8 %v255_v12  ;;  %v731_v24 = vunpack.c.3.s8 %v255_v12 }
  0xb8   :  { %1770 = vmatpush.bf16.msrb.mxu3 %v1527_v17  ;;  %v1427_v25 = vpack.c.bf16 %v1051_v18, %v1047_v14  ;;  %v1175_v26 = vcvt.s32.f32 %v663_v19  ;;  %v1179_v27 = vcvt.s32.f32 %v667_v20  ;;  %v527_v28 = vunpack.c.0.s8 %v207_v49 }
  0xb9   :  { %v1459_v29 = vpack.c.bf16 %v1115_v22, %v1111_v21  ;;  %v1239_v61 = vcvt.s32.f32 %v727_v23  ;;  %v1243_v30 = vcvt.s32.f32 %v731_v24  ;;  %v531_v31 = vunpack.c.1.s8 %v207_v49  ;;  %v152_v21 = vld [vmem:[#allocation6 + $0x50] sm:$0xff] }
  0xba   :  { %1732 = vmatpush.bf16.msrb.mxu0 %v1427_v25  ;;  %v1491_v62 = vpack.c.bf16 %v1179_v27, %v1175_v26  ;;  %v1039_v32 = vcvt.s32.f32 %v527_v28  ;;  %v591_v33 = vunpack.c.0.s8 %v223_v60  ;;  %v595_v34 = vunpack.c.1.s8 %v223_v60  ;;  %v168_v28 = vld [vmem:[#allocation6 + $0xd0] sm:$0xff] }
  0xbb   :  { %1745 = vmatpush.bf16.msrb.mxu1 %v1459_v29  ;;  %v1523_v36 = vpack.c.bf16 %v1243_v30, %v1239_v61  ;;  %v1043_v37 = vcvt.s32.f32 %v531_v31  ;;  %v655_v3 = vunpack.c.0.s8 %v239_v5  ;;  %v659_v38 = vunpack.c.1.s8 %v239_v5  ;;  %v184_v31 = vld [vmem:[#allocation6 + $0x150] sm:$0xff] }
  0xbc   :  { %1758 = vmatpush.bf16.msrb.mxu2 %v1491_v62  ;;  %v1103_v39 = vcvt.s32.f32 %v591_v33  ;;  %v1107_v40 = vcvt.s32.f32 %v595_v34  ;;  %v719_v41 = vunpack.c.0.s8 %v255_v12  ;;  %v723_v42 = vunpack.c.1.s8 %v255_v12 }
  0xbd   :  { %1771 = vmatpush.bf16.msrb.mxu3 %v1523_v36  ;;  %v1423_v43 = vpack.c.bf16 %v1043_v37, %v1039_v32  ;;  %v1167_v44 = vcvt.s32.f32 %v655_v3  ;;  %v1171_v45 = vcvt.s32.f32 %v659_v38  ;;  %v328_v46 = vunpack.c.2.s8 %v156_v35 }
  0xbe   :  { %v1455_v48 = vpack.c.bf16 %v1107_v40, %v1103_v39  ;;  %v1231_v49 = vcvt.s32.f32 %v719_v41  ;;  %v1235_v50 = vcvt.s32.f32 %v723_v42  ;;  %v332_v51 = vunpack.c.3.s8 %v156_v35 }
  0xbf   :  { %1733 = vmatpush.bf16.msrb.mxu0 %v1423_v43  ;;  %v1487_v54 = vpack.c.bf16 %v1171_v45, %v1167_v44  ;;  %v840_v55 = vcvt.s32.f32 %v328_v46  ;;  %v392_v56 = vunpack.c.2.s8 %v172_v8  ;;  %v396_v57 = vunpack.c.3.s8 %v172_v8 }
  0xc0   :  { %1746 = vmatpush.bf16.msrb.mxu1 %v1455_v48  ;;  %v1519_v59 = vpack.c.bf16 %v1235_v50, %v1231_v49  ;;  %v844_v60 = vcvt.s32.f32 %v332_v51  ;;  %v456_v63 = vunpack.c.2.s8 %v188_v47  ;;  %v460_v0 = vunpack.c.3.s8 %v188_v47 }
  0xc1   :  { %1759 = vmatpush.bf16.msrb.mxu2 %v1487_v54  ;;  %v904_v2 = vcvt.s32.f32 %v392_v56  ;;  %v908_v4 = vcvt.s32.f32 %v396_v57  ;;  %v520_v5 = vunpack.c.2.s8 %v204_v52  ;;  %v524_v6 = vunpack.c.3.s8 %v204_v52 }
  0xc2   :  { %1772 = vmatpush.bf16.msrb.mxu3 %v1519_v59  ;;  %v1324_v9 = vpack.c.bf16 %v844_v60, %v840_v55  ;;  %v968_v10 = vcvt.s32.f32 %v456_v63  ;;  %v972_v11 = vcvt.s32.f32 %v460_v0  ;;  %1734 = vmatmul.bf16.vlgmr.msrb.gmra.mxu0 %v3586_v53  ;;  %v320_v12 = vunpack.c.0.s8 %v156_v35  ;;  %v148_v59 = vld [vmem:[#allocation6 + $0x30] sm:$0xff] }
  0xc3   :  { %v1356_v13 = vpack.c.bf16 %v908_v4, %v904_v2  ;;  %v1032_v14 = vcvt.s32.f32 %v520_v5  ;;  %v1036_v15 = vcvt.s32.f32 %v524_v6  ;;  %v324_v16 = vunpack.c.1.s8 %v156_v35  ;;  %1747 = vmatmul.bf16.vlgmr.msrb.gmra.mxu1 %v3588_v58 }
  0xc4   :  { %1778 = vmatpush.bf16.msra.mxu0 %v1324_v9  ;;  %v1388_v17 = vpack.c.bf16 %v972_v11, %v968_v10  ;;  %1760 = vmatmul.bf16.vlgmr.msrb.gmra.mxu2 %v3590_v1  ;;  %v832_v18 = vcvt.s32.f32 %v320_v12  ;;  %v384_v19 = vunpack.c.0.s8 %v172_v8  ;;  %v388_v20 = vunpack.c.1.s8 %v172_v8  ;;  %v164_v10 = vld [vmem:[#allocation6 + $0xb0] sm:$0xff] }
  0xc5   :  { %1791 = vmatpush.bf16.msra.mxu1 %v1356_v13  ;;  %v1420_v22 = vpack.c.bf16 %v1036_v15, %v1032_v14  ;;  %1773 = vmatmul.bf16.vlgmr.msrb.gmra.mxu3 %v3593_v7  ;;  %v836_v53 = vcvt.s32.f32 %v324_v16  ;;  %v448_v23 = vunpack.c.0.s8 %v188_v47  ;;  %v452_v24 = vunpack.c.1.s8 %v188_v47  ;;  %v200_v7 = vld [vmem:[#allocation6 + $0x1d0] sm:$0xff] }
  0xc6   :  { %1804 = vmatpush.bf16.msra.mxu2 %v1388_v17  ;;  %v896_v25 = vcvt.s32.f32 %v384_v19  ;;  %v900_v26 = vcvt.s32.f32 %v388_v20  ;;  %v512_v27 = vunpack.c.0.s8 %v204_v52  ;;  %v516_v58 = vunpack.c.1.s8 %v204_v52  ;;  %v180_v15 = vld [vmem:[#allocation6 + $0x130] sm:$0xff] }
  0xc7   :  { %1817 = vmatpush.bf16.msra.mxu3 %v1420_v22  ;;  %v1320_v29 = vpack.c.bf16 %v836_v53, %v832_v18  ;;  %v960_v1 = vcvt.s32.f32 %v448_v23  ;;  %v964_v61 = vcvt.s32.f32 %v452_v24  ;;  %v312_v30 = vunpack.c.2.s8 %v152_v21  ;;  %v196_v20 = vld [vmem:[#allocation6 + $0x1b0] sm:$0xff] }
  0xc8   :  { %v1352_v62 = vpack.c.bf16 %v900_v26, %v896_v25  ;;  %v1024_v32 = vcvt.s32.f32 %v512_v27  ;;  %v1028_v33 = vcvt.s32.f32 %v516_v58  ;;  %v316_v34 = vunpack.c.3.s8 %v152_v21 }
  0xc9   :  { %1779 = vmatpush.bf16.msra.mxu0 %v1320_v29  ;;  %v1384_v35 = vpack.c.bf16 %v964_v61, %v960_v1  ;;  %v824_v36 = vcvt.s32.f32 %v312_v30  ;;  %v376_v37 = vunpack.c.2.s8 %v168_v28  ;;  %v380_v3 = vunpack.c.3.s8 %v168_v28 }
  0xca   :  { %1792 = vmatpush.bf16.msra.mxu1 %v1352_v62  ;;  %v1416_v38 = vpack.c.bf16 %v1028_v33, %v1024_v32  ;;  %v828_v39 = vcvt.s32.f32 %v316_v34  ;;  %v440_v40 = vunpack.c.2.s8 %v184_v31  ;;  %v444_v41 = vunpack.c.3.s8 %v184_v31 }
  0xcb   :  { %1805 = vmatpush.bf16.msra.mxu2 %v1384_v35  ;;  %v888_v42 = vcvt.s32.f32 %v376_v37  ;;  %v892_v8 = vcvt.s32.f32 %v380_v3  ;;  %v504_v43 = vunpack.c.2.s8 %v200_v7  ;;  %v508_v44 = vunpack.c.3.s8 %v200_v7 }
  0xcc   :  { %1818 = vmatpush.bf16.msra.mxu3 %v1416_v38  ;;  %v1316_v45 = vpack.c.bf16 %v828_v39, %v824_v36  ;;  %v952_v46 = vcvt.s32.f32 %v440_v40  ;;  %v956_v47 = vcvt.s32.f32 %v444_v41  ;;  %v304_v48 = vunpack.c.0.s8 %v152_v21  ;;  %v144_v38 = vld [vmem:[#allocation6 + $0x10] sm:$0xff] }
  0xcd   :  { %v1348_v49 = vpack.c.bf16 %v892_v8, %v888_v42  ;;  %v1016_v50 = vcvt.s32.f32 %v504_v43  ;;  %v1020_v51 = vcvt.s32.f32 %v508_v44  ;;  %v308_v52 = vunpack.c.1.s8 %v152_v21 }
  0xce   :  { %1780 = vmatpush.bf16.msra.mxu0 %v1316_v45  ;;  %v1380_v54 = vpack.c.bf16 %v956_v47, %v952_v46  ;;  %v816_v55 = vcvt.s32.f32 %v304_v48  ;;  %v368_v56 = vunpack.c.0.s8 %v168_v28  ;;  %v372_v57 = vunpack.c.1.s8 %v168_v28  ;;  %v160_v46 = vld [vmem:[#allocation6 + $0x90] sm:$0xff] }
  0xcf   :  { %1793 = vmatpush.bf16.msra.mxu1 %v1348_v49  ;;  %v1412_v60 = vpack.c.bf16 %v1020_v51, %v1016_v50  ;;  %v820_v63 = vcvt.s32.f32 %v308_v52  ;;  %v432_v0 = vunpack.c.0.s8 %v184_v31  ;;  %v436_v2 = vunpack.c.1.s8 %v184_v31  ;;  %v176_v51 = vld [vmem:[#allocation6 + $0x110] sm:$0xff] }
  0xd0   :  { %1806 = vmatpush.bf16.msra.mxu2 %v1380_v54  ;;  %v880_v4 = vcvt.s32.f32 %v368_v56  ;;  %v884_v5 = vcvt.s32.f32 %v372_v57  ;;  %v496_v6 = vunpack.c.0.s8 %v200_v7  ;;  %v500_v9 = vunpack.c.1.s8 %v200_v7  ;;  %v192_v57 = vld [vmem:[#allocation6 + $0x190] sm:$0xff] }
  0xd1   :  { %1819 = vmatpush.bf16.msra.mxu3 %v1412_v60  ;;  %v1312_v11 = vpack.c.bf16 %v820_v63, %v816_v55  ;;  %v944_v12 = vcvt.s32.f32 %v432_v0  ;;  %v948_v13 = vcvt.s32.f32 %v436_v2  ;;  %v296_v14 = vunpack.c.2.s8 %v148_v59 }
  0xd2   :  { %v1344_v16 = vpack.c.bf16 %v884_v5, %v880_v4  ;;  %v1008_v17 = vcvt.s32.f32 %v496_v6  ;;  %v1012_v18 = vcvt.s32.f32 %v500_v9  ;;  %v300_v19 = vunpack.c.3.s8 %v148_v59 }
  0xd3   :  { %1781 = vmatpush.bf16.msra.mxu0 %v1312_v11  ;;  %v1376_v21 = vpack.c.bf16 %v948_v13, %v944_v12  ;;  %v808_v22 = vcvt.s32.f32 %v296_v14  ;;  %v360_v53 = vunpack.c.2.s8 %v164_v10  ;;  %v364_v23 = vunpack.c.3.s8 %v164_v10 }
  0xd4   :  { %1794 = vmatpush.bf16.msra.mxu1 %v1344_v16  ;;  %v1408_v24 = vpack.c.bf16 %v1012_v18, %v1008_v17  ;;  %v812_v25 = vcvt.s32.f32 %v300_v19  ;;  %v424_v26 = vunpack.c.2.s8 %v180_v15  ;;  %v428_v27 = vunpack.c.3.s8 %v180_v15 }
  0xd5   :  { %1807 = vmatpush.bf16.msra.mxu2 %v1376_v21  ;;  %v872_v58 = vcvt.s32.f32 %v360_v53  ;;  %v876_v28 = vcvt.s32.f32 %v364_v23  ;;  %v488_v29 = vunpack.c.2.s8 %v196_v20  ;;  %v492_v1 = vunpack.c.3.s8 %v196_v20 }
  0xd6   :  { %1820 = vmatpush.bf16.msra.mxu3 %v1408_v24  ;;  %v1308_v61 = vpack.c.bf16 %v812_v25, %v808_v22  ;;  %v936_v30 = vcvt.s32.f32 %v424_v26  ;;  %v940_v31 = vcvt.s32.f32 %v428_v27  ;;  %v288_v62 = vunpack.c.0.s8 %v148_v59  ;;  %v220_v24 = vld [vmem:[#allocation6 + $0x270] sm:$0xff] }
  0xd7   :  { %v1340_v32 = vpack.c.bf16 %v876_v28, %v872_v58  ;;  %v1000_v33 = vcvt.s32.f32 %v488_v29  ;;  %v1004_v34 = vcvt.s32.f32 %v492_v1  ;;  %v292_v7 = vunpack.c.1.s8 %v148_v59 }
  0xd8   :  { %1782 = vmatpush.bf16.msra.mxu0 %v1308_v61  ;;  %v1372_v35 = vpack.c.bf16 %v940_v31, %v936_v30  ;;  %v800_v36 = vcvt.s32.f32 %v288_v62  ;;  %v352_v37 = vunpack.c.0.s8 %v164_v10  ;;  %v356_v3 = vunpack.c.1.s8 %v164_v10  ;;  %v236_v30 = vld [vmem:[#allocation6 + $0x2f0] sm:$0xff] }
  0xd9   :  { %1795 = vmatpush.bf16.msra.mxu1 %v1340_v32  ;;  %v1404_v39 = vpack.c.bf16 %v1004_v34, %v1000_v33  ;;  %v804_v40 = vcvt.s32.f32 %v292_v7  ;;  %v416_v41 = vunpack.c.0.s8 %v180_v15  ;;  %v420_v42 = vunpack.c.1.s8 %v180_v15  ;;  %v252_v34 = vld [vmem:[#allocation6 + $0x370] sm:$0xff] }
  0xda   :  { %1808 = vmatpush.bf16.msra.mxu2 %v1372_v35  ;;  %v864_v8 = vcvt.s32.f32 %v352_v37  ;;  %v868_v43 = vcvt.s32.f32 %v356_v3  ;;  %v480_v44 = vunpack.c.0.s8 %v196_v20  ;;  %v484_v45 = vunpack.c.1.s8 %v196_v20  ;;  %v268_v3 = vld [vmem:[#allocation6 + $0x3f0] sm:$0xff] }
  0xdb   :  { %1821 = vmatpush.bf16.msra.mxu3 %v1404_v39  ;;  %v1304_v47 = vpack.c.bf16 %v804_v40, %v800_v36  ;;  %v928_v48 = vcvt.s32.f32 %v416_v41  ;;  %v932_v49 = vcvt.s32.f32 %v420_v42  ;;  %v280_v50 = vunpack.c.2.s8 %v144_v38 }
  0xdc   :  { %v1336_v52 = vpack.c.bf16 %v868_v43, %v864_v8  ;;  %v992_v54 = vcvt.s32.f32 %v480_v44  ;;  %v996_v55 = vcvt.s32.f32 %v484_v45  ;;  %v284_v56 = vunpack.c.3.s8 %v144_v38 }
  0xdd   :  { %1783 = vmatpush.bf16.msra.mxu0 %v1304_v47  ;;  %v1368_v59 = vpack.c.bf16 %v932_v49, %v928_v48  ;;  %v792_v60 = vcvt.s32.f32 %v280_v50  ;;  %v344_v63 = vunpack.c.2.s8 %v160_v46  ;;  %v348_v0 = vunpack.c.3.s8 %v160_v46 }
  0xde   :  { %1796 = vmatpush.bf16.msra.mxu1 %v1336_v52  ;;  %v1400_v2 = vpack.c.bf16 %v996_v55, %v992_v54  ;;  %v796_v4 = vcvt.s32.f32 %v284_v56  ;;  %v408_v5 = vunpack.c.2.s8 %v176_v51  ;;  %v412_v6 = vunpack.c.3.s8 %v176_v51  ;;  %v3606_v54 = vld [vmem:[#allocation1] sm:$0xff] }
  0xdf   :  { %1809 = vmatpush.bf16.msra.mxu2 %v1368_v59  ;;  %v856_v9 = vcvt.s32.f32 %v344_v63  ;;  %v860_v10 = vcvt.s32.f32 %v348_v0  ;;  %v472_v11 = vunpack.c.2.s8 %v192_v57  ;;  %v476_v12 = vunpack.c.3.s8 %v192_v57 }
  0xe0   :  { %1822 = vmatpush.bf16.msra.mxu3 %v1400_v2  ;;  %v1300_v13 = vpack.c.bf16 %v796_v4, %v792_v60  ;;  %v920_v14 = vcvt.s32.f32 %v408_v5  ;;  %v924_v15 = vcvt.s32.f32 %v412_v6  ;;  %v272_v16 = vunpack.c.0.s8 %v144_v38  ;;  %v3609_v60 = vld [vmem:[#allocation1 + $0x9] sm:$0xff]  ;;  %v216_v5 = vld [vmem:[#allocation6 + $0x250] sm:$0xff]  ;;  %v3612_v6 = vld [vmem:[#allocation1 + $0x12] sm:$0xff] }
  0xe1   :  { %v1332_v17 = vpack.c.bf16 %v860_v10, %v856_v9  ;;  %v984_v18 = vcvt.s32.f32 %v472_v11  ;;  %v988_v19 = vcvt.s32.f32 %v476_v12  ;;  %v276_v20 = vunpack.c.1.s8 %v144_v38 }
  0xe2   :  { %1784 = vmatpush.bf16.msra.mxu0 %v1300_v13  ;;  %v1364_v21 = vpack.c.bf16 %v924_v15, %v920_v14  ;;  %v784_v22 = vcvt.s32.f32 %v272_v16  ;;  %v336_v53 = vunpack.c.0.s8 %v160_v46  ;;  %v340_v23 = vunpack.c.1.s8 %v160_v46  ;;  %v3615_v13 = vld [vmem:[#allocation1 + $0x1b] sm:$0xff] }
  0xe3   :  { %1797 = vmatpush.bf16.msra.mxu1 %v1332_v17  ;;  %v1396_v25 = vpack.c.bf16 %v988_v19, %v984_v18  ;;  %v788_v26 = vcvt.s32.f32 %v276_v20  ;;  %v400_v27 = vunpack.c.0.s8 %v176_v51  ;;  %v404_v58 = vunpack.c.1.s8 %v176_v51  ;;  %v232_v18 = vld [vmem:[#allocation6 + $0x2d0] sm:$0xff] }
  0xe4   :  { %1810 = vmatpush.bf16.msra.mxu2 %v1364_v21  ;;  %v848_v28 = vcvt.s32.f32 %v336_v53  ;;  %v852_v29 = vcvt.s32.f32 %v340_v23  ;;  %v464_v1 = vunpack.c.0.s8 %v192_v57  ;;  %v468_v61 = vunpack.c.1.s8 %v192_v57  ;;  %v248_v53 = vld [vmem:[#allocation6 + $0x350] sm:$0xff] }
  0xe5   :  { %1823 = vmatpush.bf16.msra.mxu3 %v1396_v25  ;;  %v1296_v31 = vpack.c.bf16 %v788_v26, %v784_v22  ;;  %v912_v62 = vcvt.s32.f32 %v400_v27  ;;  %v916_v32 = vcvt.s32.f32 %v404_v58  ;;  %v584_v33 = vunpack.c.2.s8 %v220_v24  ;;  %v264_v27 = vld [vmem:[#allocation6 + $0x3d0] sm:$0xff] }
  0xe6   :  { %v1328_v7 = vpack.c.bf16 %v852_v29, %v848_v28  ;;  %v976_v35 = vcvt.s32.f32 %v464_v1  ;;  %v980_v36 = vcvt.s32.f32 %v468_v61  ;;  %v588_v37 = vunpack.c.3.s8 %v220_v24 }
  0xe7   :  { %1785 = vmatpush.bf16.msra.mxu0 %v1296_v31  ;;  %v1360_v38 = vpack.c.bf16 %v916_v32, %v912_v62  ;;  %v1096_v39 = vcvt.s32.f32 %v584_v33  ;;  %v648_v40 = vunpack.c.2.s8 %v236_v30  ;;  %v652_v41 = vunpack.c.3.s8 %v236_v30 }
  0xe8   :  { %1798 = vmatpush.bf16.msra.mxu1 %v1328_v7  ;;  %v1392_v42 = vpack.c.bf16 %v980_v36, %v976_v35  ;;  %v1100_v8 = vcvt.s32.f32 %v588_v37  ;;  %v712_v43 = vunpack.c.2.s8 %v252_v34  ;;  %v716_v44 = vunpack.c.3.s8 %v252_v34 }
  0xe9   :  { %1811 = vmatpush.bf16.msra.mxu2 %v1360_v38  ;;  %v1160_v45 = vcvt.s32.f32 %v648_v40  ;;  %v1164_v46 = vcvt.s32.f32 %v652_v41  ;;  %v776_v47 = vunpack.c.2.s8 %v268_v3  ;;  %v780_v48 = vunpack.c.3.s8 %v268_v3 }
  0xea   :  { %1824 = vmatpush.bf16.msra.mxu3 %v1392_v42  ;;  %v1452_v49 = vpack.c.bf16 %v1100_v8, %v1096_v39  ;;  %v1224_v50 = vcvt.s32.f32 %v712_v43  ;;  %v1228_v51 = vcvt.s32.f32 %v716_v44  ;;  %v576_v52 = vunpack.c.0.s8 %v220_v24  ;;  %1786 = vmatmul.bf16.vlgmr.msra.gmra.mxu0 %v3606_v54 }
  0xeb   :  { %v1484_v55 = vpack.c.bf16 %v1164_v46, %v1160_v45  ;;  %v1288_v56 = vcvt.s32.f32 %v776_v47  ;;  %v1292_v57 = vcvt.s32.f32 %v780_v48  ;;  %v580_v59 = vunpack.c.1.s8 %v220_v24  ;;  %1799 = vmatmul.bf16.vlgmr.msra.gmra.mxu1 %v3609_v60  ;;  %v212_v45 = vld [vmem:[#allocation6 + $0x230] sm:$0xff] }
  0xec   :  { %1830 = vmatpush.bf16.msrb.mxu0 %v1452_v49  ;;  %v1516_v63 = vpack.c.bf16 %v1228_v51, %v1224_v50  ;;  %v1088_v0 = vcvt.s32.f32 %v576_v52  ;;  %v640_v2 = vunpack.c.0.s8 %v236_v30  ;;  %v644_v4 = vunpack.c.1.s8 %v236_v30  ;;  %1812 = vmatmul.bf16.vlgmr.msra.gmra.mxu2 %v3612_v6  ;;  %v3618_v50 = vpop.f32.mrf.mxu0  ;;  %v3620_v51 = vpop.f32.mrf.mxu1 }
  0xed   :  { %1843 = vmatpush.bf16.msrb.mxu1 %v1484_v55  ;;  %v1548_v9 = vpack.c.bf16 %v1292_v57, %v1288_v56  ;;  %v1092_v10 = vcvt.s32.f32 %v580_v59  ;;  %v704_v11 = vunpack.c.0.s8 %v252_v34  ;;  %v708_v12 = vunpack.c.1.s8 %v252_v34  ;;  %1825 = vmatmul.bf16.vlgmr.msra.gmra.mxu3 %v3615_v13  ;;  %v228_v59 = vld [vmem:[#allocation6 + $0x2b0] sm:$0xff] }
  0xee   :  { %1856 = vmatpush.bf16.msrb.mxu2 %v1516_v63  ;;  %v1152_v14 = vcvt.s32.f32 %v640_v2  ;;  %v1156_v15 = vcvt.s32.f32 %v644_v4  ;;  %v768_v16 = vunpack.c.0.s8 %v268_v3  ;;  %v772_v17 = vunpack.c.1.s8 %v268_v3 }
  0xef   :  { %1869 = vmatpush.bf16.msrb.mxu3 %v1548_v9  ;;  %v1448_v19 = vpack.c.bf16 %v1092_v10, %v1088_v0  ;;  %v1216_v20 = vcvt.s32.f32 %v704_v11  ;;  %v1220_v21 = vcvt.s32.f32 %v708_v12  ;;  %v568_v22 = vunpack.c.2.s8 %v216_v5 }
  0xf0   :  { %v1480_v23 = vpack.c.bf16 %v1156_v15, %v1152_v14  ;;  %v1280_v24 = vcvt.s32.f32 %v768_v16  ;;  %v1284_v25 = vcvt.s32.f32 %v772_v17  ;;  %v572_v26 = vunpack.c.3.s8 %v216_v5  ;;  %v260_v14 = vld [vmem:[#allocation6 + $0x3b0] sm:$0xff] }
  0xf1   :  { %1831 = vmatpush.bf16.msrb.mxu0 %v1448_v19  ;;  %v1512_v58 = vpack.c.bf16 %v1220_v21, %v1216_v20  ;;  %v1080_v28 = vcvt.s32.f32 %v568_v22  ;;  %v632_v29 = vunpack.c.2.s8 %v232_v18  ;;  %v636_v1 = vunpack.c.3.s8 %v232_v18 }
  0xf2   :  { %1844 = vmatpush.bf16.msrb.mxu1 %v1480_v23  ;;  %v1544_v61 = vpack.c.bf16 %v1284_v25, %v1280_v24  ;;  %v1084_v30 = vcvt.s32.f32 %v572_v26  ;;  %v696_v31 = vunpack.c.2.s8 %v248_v53  ;;  %v700_v62 = vunpack.c.3.s8 %v248_v53  ;;  %v3622_v26 = vpop.f32.mrf.mxu2 }
  0xf3   :  { %1857 = vmatpush.bf16.msrb.mxu2 %v1512_v58  ;;  %v1144_v32 = vcvt.s32.f32 %v632_v29  ;;  %v1148_v33 = vcvt.s32.f32 %v636_v1  ;;  %v760_v34 = vunpack.c.2.s8 %v264_v27  ;;  %v764_v7 = vunpack.c.3.s8 %v264_v27 }
  0xf4   :  { %1870 = vmatpush.bf16.msrb.mxu3 %v1544_v61  ;;  %v1444_v35 = vpack.c.bf16 %v1084_v30, %v1080_v28  ;;  %v1208_v36 = vcvt.s32.f32 %v696_v31  ;;  %v1212_v37 = vcvt.s32.f32 %v700_v62  ;;  %v560_v3 = vunpack.c.0.s8 %v216_v5 }
  0xf5   :  { %v1476_v38 = vpack.c.bf16 %v1148_v33, %v1144_v32  ;;  %v1272_v39 = vcvt.s32.f32 %v760_v34  ;;  %v1276_v40 = vcvt.s32.f32 %v764_v7  ;;  %v564_v41 = vunpack.c.1.s8 %v216_v5  ;;  %v244_v5 = vld [vmem:[#allocation6 + $0x330] sm:$0xff]  ;;  %v1581_v32 = vpop.f32.mrf.mxu0  ;;  %v1594_v33 = vpop.f32.mrf.mxu1 }
  0xf6   :  { %1832 = vmatpush.bf16.msrb.mxu0 %v1444_v35  ;;  %v1508_v42 = vpack.c.bf16 %v1212_v37, %v1208_v36  ;;  %v1072_v8 = vcvt.s32.f32 %v560_v3  ;;  %v624_v43 = vunpack.c.0.s8 %v232_v18  ;;  %v628_v44 = vunpack.c.1.s8 %v232_v18  ;;  %v208_v37 = vld [vmem:[#allocation6 + $0x210] sm:$0xff] }
  0xf7   :  { %1845 = vmatpush.bf16.msrb.mxu1 %v1476_v38  ;;  %v1540_v46 = vpack.c.bf16 %v1276_v40, %v1272_v39  ;;  %v1076_v47 = vcvt.s32.f32 %v564_v41  ;;  %v688_v48 = vunpack.c.0.s8 %v248_v53  ;;  %v692_v49 = vunpack.c.1.s8 %v248_v53 }
  0xf8   :  { %1858 = vmatpush.bf16.msrb.mxu2 %v1508_v42  ;;  %v1136_v52 = vcvt.s32.f32 %v624_v43  ;;  %v1140_v55 = vcvt.s32.f32 %v628_v44  ;;  %v752_v56 = vunpack.c.0.s8 %v264_v27  ;;  %v756_v57 = vunpack.c.1.s8 %v264_v27  ;;  %v3624_v27 = vpop.f32.mrf.mxu3  ;;  %v224_v44 = vld [vmem:[#allocation6 + $0x290] sm:$0xff] }
  0xf9   :  { %1871 = vmatpush.bf16.msrb.mxu3 %v1540_v46  ;;  %v1440_v63 = vpack.c.bf16 %v1076_v47, %v1072_v8  ;;  %v1200_v0 = vcvt.s32.f32 %v688_v48  ;;  %v1204_v2 = vcvt.s32.f32 %v692_v49  ;;  %v552_v4 = vunpack.c.2.s8 %v212_v45  ;;  %v240_v49 = vld [vmem:[#allocation6 + $0x310] sm:$0xff] }
  0xfa   :  { %v1472_v9 = vpack.c.bf16 %v1140_v55, %v1136_v52  ;;  %v1264_v10 = vcvt.s32.f32 %v752_v56  ;;  %v1268_v11 = vcvt.s32.f32 %v756_v57  ;;  %v556_v12 = vunpack.c.3.s8 %v212_v45 }
  0xfb   :  { %1833 = vmatpush.bf16.msrb.mxu0 %v1440_v63  ;;  %v1504_v15 = vpack.c.bf16 %v1204_v2, %v1200_v0  ;;  %v1064_v16 = vcvt.s32.f32 %v552_v4  ;;  %v616_v17 = vunpack.c.2.s8 %v228_v59  ;;  %v620_v18 = vunpack.c.3.s8 %v228_v59 }
  0xfc   :  { %1846 = vmatpush.bf16.msrb.mxu1 %v1472_v9  ;;  %v1536_v19 = vpack.c.bf16 %v1268_v11, %v1264_v10  ;;  %v1068_v20 = vcvt.s32.f32 %v556_v12  ;;  %v680_v21 = vunpack.c.2.s8 %v244_v5  ;;  %v684_v22 = vunpack.c.3.s8 %v244_v5 }
  0xfd   :  { %1859 = vmatpush.bf16.msrb.mxu2 %v1504_v15  ;;  %v1128_v53 = vcvt.s32.f32 %v616_v17  ;;  %v1132_v23 = vcvt.s32.f32 %v620_v18  ;;  %v744_v24 = vunpack.c.2.s8 %v260_v14  ;;  %v748_v25 = vunpack.c.3.s8 %v260_v14 }
  0xfe   :  { %1872 = vmatpush.bf16.msrb.mxu3 %v1536_v19  ;;  %v1436_v58 = vpack.c.bf16 %v1068_v20, %v1064_v16  ;;  %v1192_v28 = vcvt.s32.f32 %v680_v21  ;;  %v1196_v29 = vcvt.s32.f32 %v684_v22  ;;  %v544_v1 = vunpack.c.0.s8 %v212_v45 }
  0xff   :  { %v1468_v61 = vpack.c.bf16 %v1132_v23, %v1128_v53  ;;  %v1256_v30 = vcvt.s32.f32 %v744_v24  ;;  %v1260_v31 = vcvt.s32.f32 %v748_v25  ;;  %v548_v62 = vunpack.c.1.s8 %v212_v45 }
 0x100   :  { %1834 = vmatpush.bf16.msrb.mxu0 %v1436_v58  ;;  %v1500_v34 = vpack.c.bf16 %v1196_v29, %v1192_v28  ;;  %v1056_v7 = vcvt.s32.f32 %v544_v1  ;;  %v608_v35 = vunpack.c.0.s8 %v228_v59  ;;  %v612_v36 = vunpack.c.1.s8 %v228_v59  ;;  %v256_v59 = vld [vmem:[#allocation6 + $0x390] sm:$0xff]  ;;  %v1620_v9 = vpop.f32.mrf.mxu3 }
 0x101   :  { %1847 = vmatpush.bf16.msrb.mxu1 %v1468_v61  ;;  %v1532_v3 = vpack.c.bf16 %v1260_v31, %v1256_v30  ;;  %v1060_v38 = vcvt.s32.f32 %v548_v62  ;;  %v672_v39 = vunpack.c.0.s8 %v244_v5  ;;  %v676_v40 = vunpack.c.1.s8 %v244_v5  ;;  %v1607_v5 = vpop.f32.mrf.mxu2  ;;  %v3626_v61 = vld [vmem:[#allocation6 + $0x78] sm:$0xff] }
 0x102   :  { %1860 = vmatpush.bf16.msrb.mxu2 %v1500_v34  ;;  %v1120_v41 = vcvt.s32.f32 %v608_v35  ;;  %v1124_v42 = vcvt.s32.f32 %v612_v36  ;;  %v736_v8 = vunpack.c.0.s8 %v260_v14  ;;  %v740_v43 = vunpack.c.1.s8 %v260_v14  ;;  %v3628_v36 = vld [vmem:[#allocation6 + $0xf8] sm:$0xff] }
 0x103   :  { %1873 = vmatpush.bf16.msrb.mxu3 %v1532_v3  ;;  %v1432_v45 = vpack.c.bf16 %v1060_v38, %v1056_v7  ;;  %v1184_v46 = vcvt.s32.f32 %v672_v39  ;;  %v1188_v47 = vcvt.s32.f32 %v676_v40  ;;  %v536_v48 = vunpack.c.2.s8 %v208_v37  ;;  %v3632_v3 = vpop.f32.mrf.mxu1 }
 0x104   :  { %v1464_v52 = vpack.c.bf16 %v1124_v42, %v1120_v41  ;;  %v1248_v55 = vcvt.s32.f32 %v736_v8  ;;  %v1252_v56 = vcvt.s32.f32 %v740_v43  ;;  %v540_v57 = vunpack.c.3.s8 %v208_v37  ;;  %v189_v42 = vld [vmem:[#allocation6 + $0x178] sm:$0xff] }
 0x105   :  { %1835 = vmatpush.bf16.msrb.mxu0 %v1432_v45  ;;  %v1496_v63 = vpack.c.bf16 %v1188_v47, %v1184_v46  ;;  %v1048_v0 = vcvt.s32.f32 %v536_v48  ;;  %v600_v2 = vunpack.c.2.s8 %v224_v44  ;;  %v604_v4 = vunpack.c.3.s8 %v224_v44  ;;  %v3636_v46 = vld [vmem:[#allocation6 + $0x1f8] sm:$0xff] }
 0x106   :  { %1848 = vmatpush.bf16.msrb.mxu1 %v1464_v52  ;;  %v1528_v10 = vpack.c.bf16 %v1252_v56, %v1248_v55  ;;  %v1052_v11 = vcvt.s32.f32 %v540_v57  ;;  %v664_v12 = vunpack.c.2.s8 %v240_v49  ;;  %v668_v14 = vunpack.c.3.s8 %v240_v49 }
 0x107   :  { %1861 = vmatpush.bf16.msrb.mxu2 %v1496_v63  ;;  %v1112_v15 = vcvt.s32.f32 %v600_v2  ;;  %v1116_v16 = vcvt.s32.f32 %v604_v4  ;;  %v728_v17 = vunpack.c.2.s8 %v256_v59  ;;  %v732_v18 = vunpack.c.3.s8 %v256_v59 }
 0x108   :  { %1874 = vmatpush.bf16.msrb.mxu3 %v1528_v10  ;;  %v1428_v19 = vpack.c.bf16 %v1052_v11, %v1048_v0  ;;  %v1176_v20 = vcvt.s32.f32 %v664_v12  ;;  %v1180_v21 = vcvt.s32.f32 %v668_v14  ;;  %v528_v22 = vunpack.c.0.s8 %v208_v37  ;;  %v3644_v9 = vpop.f32.mrf.mxu3 }
 0x109   :  { %v1460_v53 = vpack.c.bf16 %v1116_v16, %v1112_v15  ;;  %v1240_v23 = vcvt.s32.f32 %v728_v17  ;;  %v1244_v24 = vcvt.s32.f32 %v732_v18  ;;  %v532_v25 = vunpack.c.1.s8 %v208_v37  ;;  %v3630_v37 = vpop.f32.mrf.mxu0  ;;  %v3642_v5 = vpop.f32.mrf.mxu2  ;;  %v3648_v15 = vld [vmem:[#allocation1 + $0x24] sm:$0xff] }
 0x10a   :  { %1836 = vmatpush.bf16.msrb.mxu0 %v1428_v19  ;;  %v1492_v58 = vpack.c.bf16 %v1180_v21, %v1176_v20  ;;  %v1040_v28 = vcvt.s32.f32 %v528_v22  ;;  %v592_v29 = vunpack.c.0.s8 %v224_v44  ;;  %v596_v1 = vunpack.c.1.s8 %v224_v44  ;;  %v3652_v20 = vld [vmem:[#allocation1 + $0x2d] sm:$0xff] }
 0x10b   :  { %1849 = vmatpush.bf16.msrb.mxu1 %v1460_v53  ;;  %v1524_v30 = vpack.c.bf16 %v1244_v24, %v1240_v23  ;;  %v1044_v31 = vcvt.s32.f32 %v532_v25  ;;  %v656_v62 = vunpack.c.0.s8 %v240_v49  ;;  %v660_v32 = vunpack.c.1.s8 %v240_v49  ;;  %v1646_v24 = vpop.f32.mrf.mxu1 }
 0x10c   :  { %1862 = vmatpush.bf16.msrb.mxu2 %v1492_v58  ;;  %v1104_v33 = vcvt.s32.f32 %v592_v29  ;;  %v1108_v34 = vcvt.s32.f32 %v596_v1  ;;  %v720_v7 = vunpack.c.0.s8 %v256_v59  ;;  %v724_v35 = vunpack.c.1.s8 %v256_v59  ;;  %v3661_v1 = vld [vmem:[#allocation1 + $0x3f] sm:$0xff] }
 0x10d   :  { %1875 = vmatpush.bf16.msrb.mxu3 %v1524_v30  ;;  %v1424_v38 = vpack.c.bf16 %v1044_v31, %v1040_v28  ;;  %v1168_v39 = vcvt.s32.f32 %v656_v62  ;;  %v1172_v40 = vcvt.s32.f32 %v660_v32  ;;  %v329_v41 = vunpack.c.2.s8 %v3626_v61 }
 0x10e   :  { %v1456_v8 = vpack.c.bf16 %v1108_v34, %v1104_v33  ;;  %v1232_v43 = vcvt.s32.f32 %v720_v7  ;;  %v1236_v44 = vcvt.s32.f32 %v724_v35  ;;  %v333_v45 = vunpack.c.3.s8 %v3626_v61 }
 0x10f   :  { %1837 = vmatpush.bf16.msrb.mxu0 %v1424_v38  ;;  %v1488_v47 = vpack.c.bf16 %v1172_v40, %v1168_v39  ;;  %v841_v48 = vcvt.s32.f32 %v329_v41  ;;  %v393_v49 = vunpack.c.2.s8 %v3628_v36  ;;  %v397_v52 = vunpack.c.3.s8 %v3628_v36  ;;  %v185_v38 = vld [vmem:[#allocation6 + $0x158] sm:$0xff] }
 0x110   :  { %1850 = vmatpush.bf16.msrb.mxu1 %v1456_v8  ;;  %v1520_v55 = vpack.c.bf16 %v1236_v44, %v1232_v43  ;;  %v845_v56 = vcvt.s32.f32 %v333_v45  ;;  %v457_v57 = vunpack.c.2.s8 %v189_v42  ;;  %v461_v59 = vunpack.c.3.s8 %v189_v42  ;;  %v201_v8 = vld [vmem:[#allocation6 + $0x1d8] sm:$0xff] }
 0x111   :  { %1863 = vmatpush.bf16.msrb.mxu2 %v1488_v47  ;;  %v905_v63 = vcvt.s32.f32 %v393_v49  ;;  %v909_v0 = vcvt.s32.f32 %v397_v52  ;;  %v521_v2 = vunpack.c.2.s8 %v3636_v46  ;;  %v525_v4 = vunpack.c.3.s8 %v3636_v46  ;;  %v1633_v23 = vpop.f32.mrf.mxu0  ;;  %v1672_v49 = vpop.f32.mrf.mxu3 }
 0x112   :  { %1876 = vmatpush.bf16.msrb.mxu3 %v1520_v55  ;;  %v1325_v10 = vpack.c.bf16 %v845_v56, %v841_v48  ;;  %v969_v11 = vcvt.s32.f32 %v457_v57  ;;  %v973_v12 = vcvt.s32.f32 %v461_v59  ;;  %v1593_v14 = vadd.f32 %v3620_v51, %v3618_v50  ;;  %1838 = vmatmul.bf16.vlgmr.msrb.gmra.mxu0 %v3648_v15  ;;  %v3658_v51 = vld [vmem:[#allocation1 + $0x36] sm:$0xff]  ;;  %v1659_v48 = vpop.f32.mrf.mxu2  ;;  %v149_v23 = vld [vmem:[#allocation6 + $0x38] sm:$0xff] }
 0x113   :  { %v1357_v16 = vpack.c.bf16 %v909_v0, %v905_v63  ;;  %v1033_v17 = vcvt.s32.f32 %v521_v2  ;;  %v1037_v18 = vcvt.s32.f32 %v525_v4  ;;  %v321_v19 = vunpack.c.0.s8 %v3626_v61  ;;  %1851 = vmatmul.bf16.vlgmr.msrb.gmra.mxu1 %v3652_v20 }
 0x114   :  { %1882 = vmatpush.bf16.msra.mxu0 %v1325_v10  ;;  %v1389_v21 = vpack.c.bf16 %v973_v12, %v969_v11  ;;  %v325_v22 = vunpack.c.1.s8 %v3626_v61  ;;  %v385_v53 = vunpack.c.0.s8 %v3628_v36  ;;  %v389_v50 = vunpack.c.1.s8 %v3628_v36  ;;  %1864 = vmatmul.bf16.vlgmr.msrb.gmra.mxu2 %v3658_v51  ;;  %v153_v61 = vld [vmem:[#allocation6 + $0x58] sm:$0xff] }
 0x115   :  { %1895 = vmatpush.bf16.msra.mxu1 %v1357_v16  ;;  %v1421_v25 = vpack.c.bf16 %v1037_v18, %v1033_v17  ;;  %v833_v58 = vcvt.s32.f32 %v321_v19  ;;  %v449_v28 = vunpack.c.0.s8 %v189_v42  ;;  %v453_v29 = vunpack.c.1.s8 %v189_v42  ;;  %1877 = vmatmul.bf16.vlgmr.msrb.gmra.mxu3 %v3661_v1  ;;  %v169_v36 = vld [vmem:[#allocation6 + $0xd8] sm:$0xff] }
 0x116   :  { %1908 = vmatpush.bf16.msra.mxu2 %v1389_v21  ;;  %v837_v30 = vcvt.s32.f32 %v325_v22  ;;  %v897_v31 = vcvt.s32.f32 %v385_v53  ;;  %v901_v62 = vcvt.s32.f32 %v389_v50  ;;  %v513_v32 = vunpack.c.0.s8 %v3636_v46 }
 0x117   :  { %1921 = vmatpush.bf16.msra.mxu3 %v1421_v25  ;;  %v961_v33 = vcvt.s32.f32 %v449_v28  ;;  %v965_v34 = vcvt.s32.f32 %v453_v29  ;;  %v517_v7 = vunpack.c.1.s8 %v3636_v46  ;;  %v1606_v35 = vadd.f32 %v3622_v26, %v1593_v14  ;;  %v165_v29 = vld [vmem:[#allocation6 + $0xb8] sm:$0xff] }
 0x118   :  { %v1321_v39 = vpack.c.bf16 %v837_v30, %v833_v58  ;;  %v1353_v40 = vpack.c.bf16 %v901_v62, %v897_v31  ;;  %v1025_v41 = vcvt.s32.f32 %v513_v32  ;;  %v313_v42 = vunpack.c.2.s8 %v153_v61 }
 0x119   :  { %v1385_v43 = vpack.c.bf16 %v965_v34, %v961_v33  ;;  %v1029_v44 = vcvt.s32.f32 %v517_v7  ;;  %v3668_v45 = vadd.f32 %v3624_v27, %v1606_v35  ;;  %v317_v47 = vunpack.c.3.s8 %v153_v61  ;;  %v181_v35 = vld [vmem:[#allocation6 + $0x138] sm:$0xff] }
 0x11a   :  { %1883 = vmatpush.bf16.msra.mxu0 %v1321_v39  ;;  %1896 = vmatpush.bf16.msra.mxu1 %v1353_v40  ;;  %v825_v46 = vcvt.s32.f32 %v313_v42  ;;  %v377_v52 = vunpack.c.2.s8 %v169_v36  ;;  %v381_v26 = vunpack.c.3.s8 %v169_v36  ;;  %v441_v55 = vunpack.c.2.s8 %v185_v38  ;;  %v197_v42 = vld [vmem:[#allocation6 + $0x1b8] sm:$0xff] }
 0x11b   :  { %1909 = vmatpush.bf16.msra.mxu2 %v1385_v43  ;;  %v1417_v56 = vpack.c.bf16 %v1029_v44, %v1025_v41  ;;  %v829_v57 = vcvt.s32.f32 %v317_v47  ;;  %v445_v59 = vunpack.c.3.s8 %v185_v38  ;;  %v505_v63 = vunpack.c.2.s8 %v201_v8 }
 0x11c   :  { %v889_v0 = vcvt.s32.f32 %v377_v52  ;;  %v893_v2 = vcvt.s32.f32 %v381_v26  ;;  %v953_v4 = vcvt.s32.f32 %v441_v55  ;;  %v509_v10 = vunpack.c.3.s8 %v201_v8 }
 0x11d   :  { %1922 = vmatpush.bf16.msra.mxu3 %v1417_v56  ;;  %v1317_v27 = vpack.c.bf16 %v829_v57, %v825_v46  ;;  %v957_v11 = vcvt.s32.f32 %v445_v59  ;;  %v1017_v12 = vcvt.s32.f32 %v505_v63  ;;  %v305_v14 = vunpack.c.0.s8 %v153_v61 }
 0x11e   :  { %v1349_v16 = vpack.c.bf16 %v893_v2, %v889_v0  ;;  %v1021_v17 = vcvt.s32.f32 %v509_v10  ;;  %v309_v18 = vunpack.c.1.s8 %v153_v61  ;;  %v369_v19 = vunpack.c.0.s8 %v169_v36 }
 0x11f   :  { %1884 = vmatpush.bf16.msra.mxu0 %v1317_v27  ;;  %v1381_v21 = vpack.c.bf16 %v957_v11, %v953_v4  ;;  %v817_v22 = vcvt.s32.f32 %v305_v14  ;;  %v373_v53 = vunpack.c.1.s8 %v169_v36  ;;  %v433_v50 = vunpack.c.0.s8 %v185_v38 }
 0x120   :  { %1897 = vmatpush.bf16.msra.mxu1 %v1349_v16  ;;  %v1413_v24 = vpack.c.bf16 %v1021_v17, %v1017_v12  ;;  %v821_v25 = vcvt.s32.f32 %v309_v18  ;;  %v881_v58 = vcvt.s32.f32 %v369_v19  ;;  %v437_v28 = vunpack.c.1.s8 %v185_v38 }
 0x121   :  { %1910 = vmatpush.bf16.msra.mxu2 %v1381_v21  ;;  %v885_v30 = vcvt.s32.f32 %v373_v53  ;;  %v945_v31 = vcvt.s32.f32 %v433_v50  ;;  %v497_v62 = vunpack.c.0.s8 %v201_v8  ;;  %v501_v32 = vunpack.c.1.s8 %v201_v8 }
 0x122   :  { %1923 = vmatpush.bf16.msra.mxu3 %v1413_v24  ;;  %v1313_v61 = vpack.c.bf16 %v821_v25, %v817_v22  ;;  %v949_v33 = vcvt.s32.f32 %v437_v28  ;;  %v297_v34 = vunpack.c.2.s8 %v149_v23  ;;  %v301_v7 = vunpack.c.3.s8 %v149_v23  ;;  %v145_v22 = vld [vmem:[#allocation6 + $0x18] sm:$0xff] }
 0x123   :  { %v1345_v36 = vpack.c.bf16 %v885_v30, %v881_v58  ;;  %v1009_v39 = vcvt.s32.f32 %v497_v62  ;;  %v1013_v40 = vcvt.s32.f32 %v501_v32  ;;  %v361_v41 = vunpack.c.2.s8 %v165_v29  ;;  %v161_v24 = vld [vmem:[#allocation6 + $0x98] sm:$0xff] }
 0x124   :  { %1885 = vmatpush.bf16.msra.mxu0 %v1313_v61  ;;  %v1377_v43 = vpack.c.bf16 %v949_v33, %v945_v31  ;;  %v809_v38 = vcvt.s32.f32 %v297_v34  ;;  %v813_v44 = vcvt.s32.f32 %v301_v7  ;;  %v365_v47 = vunpack.c.3.s8 %v165_v29  ;;  %v177_v32 = vld [vmem:[#allocation6 + $0x118] sm:$0xff] }
 0x125   :  { %1898 = vmatpush.bf16.msra.mxu1 %v1345_v36  ;;  %v1409_v48 = vpack.c.bf16 %v1013_v40, %v1009_v39  ;;  %v873_v49 = vcvt.s32.f32 %v361_v41  ;;  %v425_v8 = vunpack.c.2.s8 %v181_v35  ;;  %v429_v46 = vunpack.c.3.s8 %v181_v35  ;;  %v193_v7 = vld [vmem:[#allocation6 + $0x198] sm:$0xff] }
 0x126   :  { %1911 = vmatpush.bf16.msra.mxu2 %v1377_v43  ;;  %v1309_v52 = vpack.c.bf16 %v813_v44, %v809_v38  ;;  %v877_v26 = vcvt.s32.f32 %v365_v47  ;;  %v489_v55 = vunpack.c.2.s8 %v197_v42  ;;  %v493_v56 = vunpack.c.3.s8 %v197_v42 }
 0x127   :  { %1924 = vmatpush.bf16.msra.mxu3 %v1409_v48  ;;  %v937_v57 = vcvt.s32.f32 %v425_v8  ;;  %v941_v59 = vcvt.s32.f32 %v429_v46  ;;  %v1632_v63 = vadd.f32 %v3630_v37, %v3668_v45  ;;  %v289_v0 = vunpack.c.0.s8 %v149_v23 }
 0x128   :  { %1886 = vmatpush.bf16.msra.mxu0 %v1309_v52  ;;  %v1341_v2 = vpack.c.bf16 %v877_v26, %v873_v49  ;;  %v1001_v4 = vcvt.s32.f32 %v489_v55  ;;  %v1005_v10 = vcvt.s32.f32 %v493_v56  ;;  %v293_v27 = vunpack.c.1.s8 %v149_v23 }
 0x129   :  { %v1373_v11 = vpack.c.bf16 %v941_v59, %v937_v57  ;;  %v1645_v12 = vadd.f32 %v3632_v3, %v1632_v63  ;;  %v801_v14 = vcvt.s32.f32 %v289_v0  ;;  %v353_v16 = vunpack.c.0.s8 %v165_v29 }
 0x12a   :  { %1899 = vmatpush.bf16.msra.mxu1 %v1341_v2  ;;  %v1405_v17 = vpack.c.bf16 %v1005_v10, %v1001_v4  ;;  %v805_v18 = vcvt.s32.f32 %v293_v27  ;;  %v357_v19 = vunpack.c.1.s8 %v165_v29  ;;  %v417_v21 = vunpack.c.0.s8 %v181_v35  ;;  %v221_v2 = vld [vmem:[#allocation6 + $0x278] sm:$0xff] }
 0x12b   :  { %1912 = vmatpush.bf16.msra.mxu2 %v1373_v11  ;;  %v865_v53 = vcvt.s32.f32 %v353_v16  ;;  %v421_v37 = vunpack.c.1.s8 %v181_v35  ;;  %v481_v45 = vunpack.c.0.s8 %v197_v42  ;;  %v485_v50 = vunpack.c.1.s8 %v197_v42 }
 0x12c   :  { %1925 = vmatpush.bf16.msra.mxu3 %v1405_v17  ;;  %v1305_v25 = vpack.c.bf16 %v805_v18, %v801_v14  ;;  %v869_v23 = vcvt.s32.f32 %v357_v19  ;;  %v929_v58 = vcvt.s32.f32 %v417_v21  ;;  %v1658_v3 = vadd.f32 %v3642_v5, %v1645_v12  ;;  %v237_v12 = vld [vmem:[#allocation6 + $0x2f8] sm:$0xff] }
 0x12d   :  { %v933_v28 = vcvt.s32.f32 %v421_v37  ;;  %v993_v30 = vcvt.s32.f32 %v481_v45  ;;  %v997_v31 = vcvt.s32.f32 %v485_v50  ;;  %v281_v62 = vunpack.c.2.s8 %v145_v22  ;;  %v253_v19 = vld [vmem:[#allocation6 + $0x378] sm:$0xff] }
 0x12e   :  { %1887 = vmatpush.bf16.msra.mxu0 %v1305_v25  ;;  %v1337_v29 = vpack.c.bf16 %v869_v23, %v865_v53  ;;  %v3675_v61 = vadd.f32 %v3644_v9, %v1658_v3  ;;  %v285_v33 = vunpack.c.3.s8 %v145_v22  ;;  %v345_v34 = vunpack.c.2.s8 %v161_v24  ;;  %v269_v23 = vld [vmem:[#allocation6 + $0x3f8] sm:$0xff] }
 0x12f   :  { %v1369_v35 = vpack.c.bf16 %v933_v28, %v929_v58  ;;  %v1401_v36 = vpack.c.bf16 %v997_v31, %v993_v30  ;;  %v793_v39 = vcvt.s32.f32 %v281_v62  ;;  %v349_v40 = vunpack.c.3.s8 %v161_v24 }
 0x130   :  { %1900 = vmatpush.bf16.msra.mxu1 %v1337_v29  ;;  %v797_v41 = vcvt.s32.f32 %v285_v33  ;;  %v857_v5 = vcvt.s32.f32 %v345_v34  ;;  %v409_v42 = vunpack.c.2.s8 %v177_v32  ;;  %v413_v43 = vunpack.c.3.s8 %v177_v32 }
 0x131   :  { %1913 = vmatpush.bf16.msra.mxu2 %v1369_v35  ;;  %1926 = vmatpush.bf16.msra.mxu3 %v1401_v36  ;;  %v861_v38 = vcvt.s32.f32 %v349_v40  ;;  %v473_v44 = vunpack.c.2.s8 %v193_v7  ;;  %v477_v47 = vunpack.c.3.s8 %v193_v7  ;;  %v273_v48 = vunpack.c.0.s8 %v145_v22 }
 0x132   :  { %v1301_v9 = vpack.c.bf16 %v797_v41, %v793_v39  ;;  %v921_v49 = vcvt.s32.f32 %v409_v42  ;;  %v925_v8 = vcvt.s32.f32 %v413_v43  ;;  %v277_v46 = vunpack.c.1.s8 %v145_v22 }
 0x133   :  { %v1333_v52 = vpack.c.bf16 %v861_v38, %v857_v5  ;;  %v985_v26 = vcvt.s32.f32 %v473_v44  ;;  %v989_v55 = vcvt.s32.f32 %v477_v47  ;;  %v785_v56 = vcvt.s32.f32 %v273_v48 }
 0x134   :  { %1888 = vmatpush.bf16.msra.mxu0 %v1301_v9  ;;  %v1365_v57 = vpack.c.bf16 %v925_v8, %v921_v49  ;;  %v789_v59 = vcvt.s32.f32 %v277_v46  ;;  %v337_v63 = vunpack.c.0.s8 %v161_v24  ;;  %v341_v0 = vunpack.c.1.s8 %v161_v24  ;;  %v217_v49 = vld [vmem:[#allocation6 + $0x258] sm:$0xff] }
 0x135   :  { %1901 = vmatpush.bf16.msra.mxu1 %v1333_v52  ;;  %v1397_v4 = vpack.c.bf16 %v989_v55, %v985_v26  ;;  %v401_v10 = vunpack.c.0.s8 %v177_v32  ;;  %v405_v27 = vunpack.c.1.s8 %v177_v32  ;;  %v465_v11 = vunpack.c.0.s8 %v193_v7  ;;  %v233_v26 = vld [vmem:[#allocation6 + $0x2d8] sm:$0xff]  ;;  %v3681_v55 = vpop.f32.mrf.mxu0 }
 0x136   :  { %1914 = vmatpush.bf16.msra.mxu2 %v1365_v57  ;;  %v1297_v14 = vpack.c.bf16 %v789_v59, %v785_v56  ;;  %v849_v16 = vcvt.s32.f32 %v337_v63  ;;  %v853_v17 = vcvt.s32.f32 %v341_v0  ;;  %v469_v18 = vunpack.c.1.s8 %v193_v7  ;;  %v3683_v56 = vpop.f32.mrf.mxu1 }
 0x137   :  { %1927 = vmatpush.bf16.msra.mxu3 %v1397_v4  ;;  %v913_v21 = vcvt.s32.f32 %v401_v10  ;;  %v917_v22 = vcvt.s32.f32 %v405_v27  ;;  %v977_v53 = vcvt.s32.f32 %v465_v11  ;;  %v585_v37 = vunpack.c.2.s8 %v221_v2  ;;  %v249_v10 = vld [vmem:[#allocation6 + $0x358] sm:$0xff] }
 0x138   :  { %1889 = vmatpush.bf16.msra.mxu0 %v1297_v14  ;;  %v1329_v45 = vpack.c.bf16 %v853_v17, %v849_v16  ;;  %v981_v50 = vcvt.s32.f32 %v469_v18  ;;  %v589_v24 = vunpack.c.3.s8 %v221_v2  ;;  %v649_v25 = vunpack.c.2.s8 %v237_v12  ;;  %v265_v14 = vld [vmem:[#allocation6 + $0x3d8] sm:$0xff] }
 0x139   :  { %v1361_v58 = vpack.c.bf16 %v917_v22, %v913_v21  ;;  %v1097_v3 = vcvt.s32.f32 %v585_v37  ;;  %v653_v28 = vunpack.c.3.s8 %v237_v12  ;;  %v713_v30 = vunpack.c.2.s8 %v253_v19 }
 0x13a   :  { %1902 = vmatpush.bf16.msra.mxu1 %v1329_v45  ;;  %v1393_v31 = vpack.c.bf16 %v981_v50, %v977_v53  ;;  %v1101_v62 = vcvt.s32.f32 %v589_v24  ;;  %v1161_v32 = vcvt.s32.f32 %v649_v25  ;;  %v717_v29 = vunpack.c.3.s8 %v253_v19  ;;  %v3685_v45 = vpop.f32.mrf.mxu2 }
 0x13b   :  { %1915 = vmatpush.bf16.msra.mxu2 %v1361_v58  ;;  %v1165_v33 = vcvt.s32.f32 %v653_v28  ;;  %v1225_v34 = vcvt.s32.f32 %v713_v30  ;;  %v777_v7 = vunpack.c.2.s8 %v269_v23  ;;  %v781_v35 = vunpack.c.3.s8 %v269_v23  ;;  %1890 = vmatmul.bf16.vlgmr.msra.gmra.mxu0 %v3606_v54 }
 0x13c   :  { %1928 = vmatpush.bf16.msra.mxu3 %v1393_v31  ;;  %v1453_v36 = vpack.c.bf16 %v1101_v62, %v1097_v3  ;;  %v1229_v39 = vcvt.s32.f32 %v717_v29  ;;  %v577_v40 = vunpack.c.0.s8 %v221_v2  ;;  %v581_v41 = vunpack.c.1.s8 %v221_v2 }
 0x13d   :  { %v1485_v5 = vpack.c.bf16 %v1165_v33, %v1161_v32  ;;  %v1289_v42 = vcvt.s32.f32 %v777_v7  ;;  %v1293_v43 = vcvt.s32.f32 %v781_v35  ;;  %v641_v38 = vunpack.c.0.s8 %v237_v12  ;;  %1903 = vmatmul.bf16.vlgmr.msra.gmra.mxu1 %v3609_v60  ;;  %v3687_v33 = vpop.f32.mrf.mxu3 }
 0x13e   :  { %1934 = vmatpush.bf16.msrb.mxu0 %v1453_v36  ;;  %v1517_v44 = vpack.c.bf16 %v1229_v39, %v1225_v34  ;;  %v1089_v47 = vcvt.s32.f32 %v577_v40  ;;  %v1093_v48 = vcvt.s32.f32 %v581_v41  ;;  %v645_v9 = vunpack.c.1.s8 %v237_v12  ;;  %1916 = vmatmul.bf16.vlgmr.msra.gmra.mxu2 %v3612_v6  ;;  %v1685_v34 = vpop.f32.mrf.mxu0  ;;  %v213_v40 = vld [vmem:[#allocation6 + $0x238] sm:$0xff]  ;;  %v1698_v41 = vpop.f32.mrf.mxu1 }
 0x13f   :  { %1947 = vmatpush.bf16.msrb.mxu1 %v1485_v5  ;;  %v1549_v54 = vpack.c.bf16 %v1293_v43, %v1289_v42  ;;  %v1153_v8 = vcvt.s32.f32 %v641_v38  ;;  %v705_v46 = vunpack.c.0.s8 %v253_v19  ;;  %v709_v52 = vunpack.c.1.s8 %v253_v19  ;;  %1929 = vmatmul.bf16.vlgmr.msra.gmra.mxu3 %v3615_v13 }
 0x140   :  { %1960 = vmatpush.bf16.msrb.mxu2 %v1517_v44  ;;  %v1449_v60 = vpack.c.bf16 %v1093_v48, %v1089_v47  ;;  %v1157_v57 = vcvt.s32.f32 %v645_v9  ;;  %v769_v59 = vunpack.c.0.s8 %v269_v23  ;;  %v773_v63 = vunpack.c.1.s8 %v269_v23  ;;  %v229_v44 = vld [vmem:[#allocation6 + $0x2b8] sm:$0xff] }
 0x141   :  { %1973 = vmatpush.bf16.msrb.mxu3 %v1549_v54  ;;  %v1217_v6 = vcvt.s32.f32 %v705_v46  ;;  %v1221_v0 = vcvt.s32.f32 %v709_v52  ;;  %v569_v2 = vunpack.c.2.s8 %v217_v49  ;;  %v573_v4 = vunpack.c.3.s8 %v217_v49 }
 0x142   :  { %1935 = vmatpush.bf16.msrb.mxu0 %v1449_v60  ;;  %v1481_v27 = vpack.c.bf16 %v1157_v57, %v1153_v8  ;;  %v1281_v11 = vcvt.s32.f32 %v769_v59  ;;  %v1285_v12 = vcvt.s32.f32 %v773_v63  ;;  %v633_v13 = vunpack.c.2.s8 %v233_v26  ;;  %v245_v60 = vld [vmem:[#allocation6 + $0x338] sm:$0xff] }
 0x143   :  { %v1513_v16 = vpack.c.bf16 %v1221_v0, %v1217_v6  ;;  %v1081_v17 = vcvt.s32.f32 %v569_v2  ;;  %v1085_v18 = vcvt.s32.f32 %v573_v4  ;;  %v637_v19 = vunpack.c.3.s8 %v233_v26  ;;  %v261_v6 = vld [vmem:[#allocation6 + $0x3b8] sm:$0xff]  ;;  %v1711_v0 = vpop.f32.mrf.mxu2 }
 0x144   :  { %1948 = vmatpush.bf16.msrb.mxu1 %v1481_v27  ;;  %v1545_v21 = vpack.c.bf16 %v1285_v12, %v1281_v11  ;;  %v1145_v22 = vcvt.s32.f32 %v633_v13  ;;  %v697_v53 = vunpack.c.2.s8 %v249_v10  ;;  %v701_v37 = vunpack.c.3.s8 %v249_v10 }
 0x145   :  { %1961 = vmatpush.bf16.msrb.mxu2 %v1513_v16  ;;  %v1445_v50 = vpack.c.bf16 %v1085_v18, %v1081_v17  ;;  %v1149_v24 = vcvt.s32.f32 %v637_v19  ;;  %v761_v25 = vunpack.c.2.s8 %v265_v14  ;;  %v765_v23 = vunpack.c.3.s8 %v265_v14 }
 0x146   :  { %1974 = vmatpush.bf16.msrb.mxu3 %v1545_v21  ;;  %v1209_v58 = vcvt.s32.f32 %v697_v53  ;;  %v1213_v3 = vcvt.s32.f32 %v701_v37  ;;  %v561_v28 = vunpack.c.0.s8 %v217_v49  ;;  %v565_v30 = vunpack.c.1.s8 %v217_v49  ;;  %v1724_v21 = vpop.f32.mrf.mxu3 }
 0x147   :  { %1936 = vmatpush.bf16.msrb.mxu0 %v1445_v50  ;;  %v1477_v31 = vpack.c.bf16 %v1149_v24, %v1145_v22  ;;  %v1273_v62 = vcvt.s32.f32 %v761_v25  ;;  %v1277_v32 = vcvt.s32.f32 %v765_v23  ;;  %v625_v29 = vunpack.c.0.s8 %v233_v26  ;;  %v3689_v22 = vpop.f32.mrf.mxu0  ;;  %v3691_v25 = vpop.f32.mrf.mxu1 }
 0x148   :  { %v1509_v7 = vpack.c.bf16 %v1213_v3, %v1209_v58  ;;  %v1073_v35 = vcvt.s32.f32 %v561_v28  ;;  %v1077_v36 = vcvt.s32.f32 %v565_v30  ;;  %v629_v39 = vunpack.c.1.s8 %v233_v26 }
 0x149   :  { %1949 = vmatpush.bf16.msrb.mxu1 %v1477_v31  ;;  %v1541_v5 = vpack.c.bf16 %v1277_v32, %v1273_v62  ;;  %v1137_v42 = vcvt.s32.f32 %v625_v29  ;;  %v689_v43 = vunpack.c.0.s8 %v249_v10  ;;  %v693_v38 = vunpack.c.1.s8 %v249_v10  ;;  %v209_v29 = vld [vmem:[#allocation6 + $0x218] sm:$0xff] }
 0x14a   :  { %1962 = vmatpush.bf16.msrb.mxu2 %v1509_v7  ;;  %v1441_v47 = vpack.c.bf16 %v1077_v36, %v1073_v35  ;;  %v1141_v48 = vcvt.s32.f32 %v629_v39  ;;  %v753_v9 = vunpack.c.0.s8 %v265_v14  ;;  %v757_v49 = vunpack.c.1.s8 %v265_v14  ;;  %v225_v39 = vld [vmem:[#allocation6 + $0x298] sm:$0xff] }
 0x14b   :  { %1975 = vmatpush.bf16.msrb.mxu3 %v1541_v5  ;;  %v1201_v54 = vcvt.s32.f32 %v689_v43  ;;  %v1205_v8 = vcvt.s32.f32 %v693_v38  ;;  %v553_v46 = vunpack.c.2.s8 %v213_v40  ;;  %v557_v52 = vunpack.c.3.s8 %v213_v40  ;;  %v3693_v43 = vpop.f32.mrf.mxu2 }
 0x14c   :  { %1937 = vmatpush.bf16.msrb.mxu0 %v1441_v47  ;;  %v1473_v26 = vpack.c.bf16 %v1141_v48, %v1137_v42  ;;  %v1265_v57 = vcvt.s32.f32 %v753_v9  ;;  %v1269_v59 = vcvt.s32.f32 %v757_v49  ;;  %v617_v63 = vunpack.c.2.s8 %v229_v44 }
 0x14d   :  { %v1505_v2 = vpack.c.bf16 %v1205_v8, %v1201_v54  ;;  %v1065_v4 = vcvt.s32.f32 %v553_v46  ;;  %v1069_v10 = vcvt.s32.f32 %v557_v52  ;;  %v621_v27 = vunpack.c.3.s8 %v229_v44  ;;  %v257_v52 = vld [vmem:[#allocation6 + $0x398] sm:$0xff] }
 0x14e   :  { %1950 = vmatpush.bf16.msrb.mxu1 %v1473_v26  ;;  %v1537_v11 = vpack.c.bf16 %v1269_v59, %v1265_v57  ;;  %v1129_v12 = vcvt.s32.f32 %v617_v63  ;;  %v681_v13 = vunpack.c.2.s8 %v245_v60  ;;  %v685_v14 = vunpack.c.3.s8 %v245_v60  ;;  %v3695_v63 = vpop.f32.mrf.mxu3 }
 0x14f   :  { %1963 = vmatpush.bf16.msrb.mxu2 %v1505_v2  ;;  %v1437_v16 = vpack.c.bf16 %v1069_v10, %v1065_v4  ;;  %v1133_v17 = vcvt.s32.f32 %v621_v27  ;;  %v745_v18 = vunpack.c.2.s8 %v261_v6  ;;  %v749_v19 = vunpack.c.3.s8 %v261_v6  ;;  %v1750_v27 = vpop.f32.mrf.mxu1 }
 0x150   :  { %1976 = vmatpush.bf16.msrb.mxu3 %v1537_v11  ;;  %v1193_v53 = vcvt.s32.f32 %v681_v13  ;;  %v1197_v37 = vcvt.s32.f32 %v685_v14  ;;  %v545_v50 = vunpack.c.0.s8 %v213_v40  ;;  %v549_v24 = vunpack.c.1.s8 %v213_v40 }
 0x151   :  { %1938 = vmatpush.bf16.msrb.mxu0 %v1437_v16  ;;  %v1469_v23 = vpack.c.bf16 %v1133_v17, %v1129_v12  ;;  %v1257_v58 = vcvt.s32.f32 %v745_v18  ;;  %v1261_v3 = vcvt.s32.f32 %v749_v19  ;;  %v609_v28 = vunpack.c.0.s8 %v229_v44 }
 0x152   :  { %v1501_v30 = vpack.c.bf16 %v1197_v37, %v1193_v53  ;;  %v1057_v31 = vcvt.s32.f32 %v545_v50  ;;  %v1061_v62 = vcvt.s32.f32 %v549_v24  ;;  %v613_v32 = vunpack.c.1.s8 %v229_v44  ;;  %v241_v44 = vld [vmem:[#allocation6 + $0x318] sm:$0xff] }
 0x153   :  { %1951 = vmatpush.bf16.msrb.mxu1 %v1469_v23  ;;  %v1533_v34 = vpack.c.bf16 %v1261_v3, %v1257_v58  ;;  %v1121_v7 = vcvt.s32.f32 %v609_v28  ;;  %v673_v35 = vunpack.c.0.s8 %v245_v60  ;;  %v677_v36 = vunpack.c.1.s8 %v245_v60  ;;  %v1763_v28 = vpop.f32.mrf.mxu2 }
 0x154   :  { %1964 = vmatpush.bf16.msrb.mxu2 %v1501_v30  ;;  %v1433_v40 = vpack.c.bf16 %v1061_v62, %v1057_v31  ;;  %v1125_v41 = vcvt.s32.f32 %v613_v32  ;;  %v737_v5 = vunpack.c.0.s8 %v261_v6  ;;  %v741_v42 = vunpack.c.1.s8 %v261_v6  ;;  %v1737_v6 = vpop.f32.mrf.mxu0 }
 0x155   :  { %1977 = vmatpush.bf16.msrb.mxu3 %v1533_v34  ;;  %v1185_v38 = vcvt.s32.f32 %v673_v35  ;;  %v1189_v47 = vcvt.s32.f32 %v677_v36  ;;  %v537_v48 = vunpack.c.2.s8 %v209_v29  ;;  %v541_v9 = vunpack.c.3.s8 %v209_v29 }
 0x156   :  { %1939 = vmatpush.bf16.msrb.mxu0 %v1433_v40  ;;  %v1465_v49 = vpack.c.bf16 %v1125_v41, %v1121_v7  ;;  %v1249_v54 = vcvt.s32.f32 %v737_v5  ;;  %v1253_v8 = vcvt.s32.f32 %v741_v42  ;;  %v601_v46 = vunpack.c.2.s8 %v225_v39  ;;  %v1776_v41 = vpop.f32.mrf.mxu3 }
 0x157   :  { %v1497_v60 = vpack.c.bf16 %v1189_v47, %v1185_v38  ;;  %v1049_v26 = vcvt.s32.f32 %v537_v48  ;;  %v1053_v57 = vcvt.s32.f32 %v541_v9  ;;  %v605_v59 = vunpack.c.3.s8 %v225_v39 }
 0x158   :  { %1952 = vmatpush.bf16.msrb.mxu1 %v1465_v49  ;;  %v1529_v0 = vpack.c.bf16 %v1253_v8, %v1249_v54  ;;  %v1113_v2 = vcvt.s32.f32 %v601_v46  ;;  %v665_v4 = vunpack.c.2.s8 %v241_v44  ;;  %v669_v10 = vunpack.c.3.s8 %v241_v44 }
 0x159   :  { %1965 = vmatpush.bf16.msrb.mxu2 %v1497_v60  ;;  %v1429_v11 = vpack.c.bf16 %v1053_v57, %v1049_v26  ;;  %v1117_v12 = vcvt.s32.f32 %v605_v59  ;;  %v729_v13 = vunpack.c.2.s8 %v257_v52  ;;  %v733_v14 = vunpack.c.3.s8 %v257_v52  ;;  %v2077_v57 = vld [vmem:[#allocation11 + $0xe0] sm:$0xff] }
 0x15a   :  { %1978 = vmatpush.bf16.msrb.mxu3 %v1529_v0  ;;  %v1177_v16 = vcvt.s32.f32 %v665_v4  ;;  %v1181_v17 = vcvt.s32.f32 %v669_v10  ;;  %v1697_v18 = vadd.f32 %v3683_v56, %v3681_v55  ;;  %v529_v19 = vunpack.c.0.s8 %v209_v29  ;;  %v2093_v59 = vld [vmem:[#allocation11 + $0x160] sm:$0xff] }
 0x15b   :  { %1940 = vmatpush.bf16.msrb.mxu0 %v1429_v11  ;;  %v1461_v21 = vpack.c.bf16 %v1117_v12, %v1113_v2  ;;  %v1241_v53 = vcvt.s32.f32 %v729_v13  ;;  %v1245_v37 = vcvt.s32.f32 %v733_v14  ;;  %v533_v50 = vunpack.c.1.s8 %v209_v29  ;;  %v2109_v4 = vld [vmem:[#allocation11 + $0x1e0] sm:$0xff] }
 0x15c   :  { %v1493_v24 = vpack.c.bf16 %v1181_v17, %v1177_v16  ;;  %v1041_v23 = vcvt.s32.f32 %v529_v19  ;;  %v593_v58 = vunpack.c.0.s8 %v225_v39  ;;  %v597_v3 = vunpack.c.1.s8 %v225_v39 }
 0x15d   :  { %1953 = vmatpush.bf16.msrb.mxu1 %v1461_v21  ;;  %v1525_v30 = vpack.c.bf16 %v1245_v37, %v1241_v53  ;;  %v1045_v31 = vcvt.s32.f32 %v533_v50  ;;  %v657_v62 = vunpack.c.0.s8 %v241_v44  ;;  %v661_v32 = vunpack.c.1.s8 %v241_v44 }
 0x15e   :  { %1966 = vmatpush.bf16.msrb.mxu2 %v1493_v24  ;;  %v1105_v34 = vcvt.s32.f32 %v593_v58  ;;  %v1109_v7 = vcvt.s32.f32 %v597_v3  ;;  %v721_v55 = vunpack.c.0.s8 %v257_v52  ;;  %v725_v56 = vunpack.c.1.s8 %v257_v52 }
 0x15f   :  { %1979 = vmatpush.bf16.msrb.mxu3 %v1525_v30  ;;  %v1425_v35 = vpack.c.bf16 %v1045_v31, %v1041_v23  ;;  %v1169_v36 = vcvt.s32.f32 %v657_v62  ;;  %v1173_v40 = vcvt.s32.f32 %v661_v32  ;;  %v1710_v29 = vadd.f32 %v3685_v45, %v1697_v18 }
 0x160   :  { %v1457_v5 = vpack.c.bf16 %v1109_v7, %v1105_v34  ;;  %v1233_v39 = vcvt.s32.f32 %v721_v55  ;;  %v1237_v42 = vcvt.s32.f32 %v725_v56  ;;  %v2233_v0 = vunpack.c.2.s8 %v2077_v57 }
 0x161   :  { %1941 = vmatpush.bf16.msrb.mxu0 %v1425_v35  ;;  %v1489_v38 = vpack.c.bf16 %v1173_v40, %v1169_v36  ;;  %v1723_v47 = vadd.f32 %v3687_v33, %v1710_v29  ;;  %v2237_v2 = vunpack.c.3.s8 %v2077_v57  ;;  %v2297_v10 = vunpack.c.2.s8 %v2093_v59 }
 0x162   :  { %1954 = vmatpush.bf16.msrb.mxu1 %v1457_v5  ;;  %v1521_v48 = vpack.c.bf16 %v1237_v42, %v1233_v39  ;;  %v2301_v27 = vunpack.c.3.s8 %v2093_v59  ;;  %v2365_v11 = vunpack.c.3.s8 %v2109_v4  ;;  %v2489_v14 = vcvt.s32.f32 %v2233_v0 }
 0x163   :  { %1967 = vmatpush.bf16.msrb.mxu2 %v1489_v38  ;;  %v1736_v9 = vadd.f32 %v3689_v22, %v1723_v47  ;;  %v2493_v16 = vcvt.s32.f32 %v2237_v2  ;;  %v2553_v17 = vcvt.s32.f32 %v2297_v10  ;;  %v2225_v3 = vunpack.c.0.s8 %v2077_v57 }
 0x164   :  { %1980 = vmatpush.bf16.msrb.mxu3 %v1521_v48  ;;  %1942 = vmatmul.bf16.vlgmr.msrb.gmra.mxu0 %v3648_v15  ;;  %v2557_v18 = vcvt.s32.f32 %v2301_v27  ;;  %v2621_v21 = vcvt.s32.f32 %v2365_v11  ;;  %v2229_v28 = vunpack.c.1.s8 %v2077_v57  ;;  %v2289_v62 = vunpack.c.0.s8 %v2093_v59  ;;  %v3715_v11 = vld [vmem:[#allocation8] sm:$0xf] }
 0x165   :  { %1955 = vmatmul.bf16.vlgmr.msrb.gmra.mxu1 %v3652_v20  ;;  %v1749_v45 = vadd.f32 %v3691_v25, %v1736_v9  ;;  %v2685_v37 = vpack.c.bf16 %v2493_v16, %v2489_v14  ;;  %v2293_v32 = vunpack.c.1.s8 %v2093_v59  ;;  %v2481_v34 = vcvt.s32.f32 %v2225_v3 }
 0x166   :  { %1968 = vmatmul.bf16.vlgmr.msrb.gmra.mxu2 %v3658_v51  ;;  %v2717_v23 = vpack.c.bf16 %v2557_v18, %v2553_v17  ;;  %v2485_v7 = vcvt.s32.f32 %v2229_v28  ;;  %v2353_v55 = vunpack.c.0.s8 %v2109_v4  ;;  %v2357_v56 = vunpack.c.1.s8 %v2109_v4  ;;  %v2053_v28 = vld [vmem:[#allocation11 + $0x20] sm:$0xff] }
 0x167   :  { %1981 = vmatmul.bf16.vlgmr.msrb.gmra.mxu3 %v3661_v1  ;;  %v1762_v44 = vadd.f32 %v3693_v43, %v1749_v45  ;;  %v1787_v49 = vpop.f32.mrf.mxu0  ;;  %v2061_v43 = vld [vmem:[#allocation11 + $0x60] sm:$0xff]  ;;  %2766 = vmatpush.bf16.msra.mxu1 %v2685_v37  ;;  %v2545_v36 = vcvt.s32.f32 %v2289_v62  ;;  %v2549_v40 = vcvt.s32.f32 %v2293_v32 }
 0x168   :  { %v1800_v33 = vpop.f32.mrf.mxu1  ;;  %v2169_v6 = vunpack.c.2.s8 %v2061_v43  ;;  %v2161_v50 = vunpack.c.0.s8 %v2061_v43  ;;  %v2165_v24 = vunpack.c.1.s8 %v2061_v43  ;;  %2779 = vmatpush.bf16.msra.mxu2 %v2717_v23  ;;  %v2681_v29 = vpack.c.bf16 %v2485_v7, %v2481_v34  ;;  %v2069_v34 = vld [vmem:[#allocation11 + $0xa0] sm:$0xff] }
 0x169   :  { %v1775_v54 = vadd.f32 %v3695_v63, %v1762_v44  ;;  %v1801_v8 = vadd.f32 %v1800_v33, %v1787_v49  ;;  %v2173_v63 = vunpack.c.3.s8 %v2061_v43  ;;  %v2609_v41 = vcvt.s32.f32 %v2353_v55 }
 0x16a   :  { %v2425_v12 = vcvt.s32.f32 %v2169_v6  ;;  %v2417_v30 = vcvt.s32.f32 %v2161_v50  ;;  %v2421_v31 = vcvt.s32.f32 %v2165_v24  ;;  %v2613_v5 = vcvt.s32.f32 %v2357_v56 }
 0x16b   :  { %v1990_v22 = vrot.slane %v1775_v54, 6  ;;  %v2429_v13 = vcvt.s32.f32 %v2173_v63  ;;  %v2713_v39 = vpack.c.bf16 %v2549_v40, %v2545_v36  ;;  %2767 = vmatpush.bf16.msra.mxu1 %v2681_v29  ;;  %v2085_v36 = vld [vmem:[#allocation11 + $0x120] sm:$0xff] }
 0x16c   :  { %v2649_v35 = vpack.c.bf16 %v2421_v31, %v2417_v30  ;;  %v2745_v42 = vpack.c.bf16 %v2613_v5, %v2609_v41  ;;  %v2137_v41 = vunpack.c.2.s8 %v2053_v28  ;;  %v2141_v5 = vunpack.c.3.s8 %v2053_v28 }
 0x16d   :  { %v3711_v15 = vsel %vm1993_vm0, %v3675_v61, %v1990_v22  ;;  %v2361_v61 = vunpack.c.2.s8 %v2109_v4  ;;  %v2653_v53 = vpack.c.bf16 %v2429_v13, %v2425_v12  ;;  %2780 = vmatpush.bf16.msra.mxu2 %v2713_v39  ;;  %v2057_v22 = vld [vmem:[#allocation11 + $0x40] sm:$0xff] }
 0x16e   :  { %v2101_v39 = vld [vmem:[#allocation11 + $0x1a0] sm:$0xff] }
 0x16f   :  { %v1813_v20 = vpop.f32.mrf.mxu2  ;;  %v1789_v46 = vpop.f32.mrf.mxu0  ;;  %v2617_v19 = vcvt.s32.f32 %v2361_v61  ;;  %2753 = vmatpush.bf16.msra.mxu0 %v2653_v53  ;;  %v2149_v53 = vunpack.c.1.s8 %v2057_v22 }
 0x170   :  { %v1814_v25 = vadd.f32 %v1813_v20, %v1801_v8  ;;  %v1826_v52 = vpop.f32.mrf.mxu3  ;;  %v1802_v51 = vpop.f32.mrf.mxu1  ;;  %v2073_v20 = vld [vmem:[#allocation11 + $0xc0] sm:$0xff] }
 0x171   :  { %v2749_v58 = vpack.c.bf16 %v2621_v21, %v2617_v19  ;;  %v2089_v46 = vld [vmem:[#allocation11 + $0x140] sm:$0xff]  ;;  %v2217_v51 = vunpack.c.2.s8 %v2073_v20  ;;  %v2009_v19 = vperm.slane %v3715_v11, 1  ;;  %v2145_v21 = vunpack.c.0.s8 %v2057_v22 }
 0x172   :  { %v1827_v60 = vadd.f32 %v1826_v52, %v1814_v25  ;;  %v2153_v25 = vunpack.c.2.s8 %v2057_v22  ;;  %v2157_v52 = vunpack.c.3.s8 %v2057_v22  ;;  %v2281_v43 = vunpack.c.2.s8 %v2089_v46 }
 0x173   :  { %2792 = vmatpush.bf16.msra.mxu3 %v2749_v58  ;;  %2754 = vmatpush.bf16.msra.mxu0 %v2649_v35  ;;  %v2285_v57 = vunpack.c.3.s8 %v2089_v46  ;;  %v2473_v63 = vcvt.s32.f32 %v2217_v51  ;;  %v2209_v37 = vunpack.c.0.s8 %v2073_v20  ;;  %v2213_v50 = vunpack.c.1.s8 %v2073_v20 }
 0x174   :  { %v2409_v59 = vcvt.s32.f32 %v2153_v25  ;;  %v2413_v6 = vcvt.s32.f32 %v2157_v52  ;;  %v2537_v10 = vcvt.s32.f32 %v2281_v43  ;;  %v2273_v24 = vunpack.c.0.s8 %v2089_v46 }
 0x175   :  { %v2541_v27 = vcvt.s32.f32 %v2285_v57  ;;  %v2277_v23 = vunpack.c.1.s8 %v2089_v46  ;;  %v2401_v30 = vcvt.s32.f32 %v2145_v21  ;;  %v2405_v31 = vcvt.s32.f32 %v2149_v53 }
 0x176   :  { %v2645_v13 = vpack.c.bf16 %v2413_v6, %v2409_v59  ;;  %v2465_v62 = vcvt.s32.f32 %v2209_v37  ;;  %v2469_v32 = vcvt.s32.f32 %v2213_v50  ;;  %v2529_v7 = vcvt.s32.f32 %v2273_v24  ;;  %v3723_v37 = vld [vmem:[#allocation11 + $0x100] sm:$0xff] }
 0x177   :  { %v1815_v1 = vpop.f32.mrf.mxu2  ;;  %2793 = vmatpush.bf16.msra.mxu3 %v2745_v42  ;;  %v2709_v17 = vpack.c.bf16 %v2541_v27, %v2537_v10  ;;  %v2533_v55 = vcvt.s32.f32 %v2277_v23  ;;  %v2641_v40 = vpack.c.bf16 %v2405_v31, %v2401_v30  ;;  %v2329_v22 = vunpack.c.2.s8 %v2101_v39 }
 0x178   :  { %v1828_v26 = vpop.f32.mrf.mxu3  ;;  %v2105_v1 = vld [vmem:[#allocation11 + $0x1c0] sm:$0xff]  ;;  %2755 = vmatpush.bf16.msra.mxu0 %v2645_v13  ;;  %v2673_v29 = vpack.c.bf16 %v2469_v32, %v2465_v62  ;;  %v2129_v51 = vunpack.c.0.s8 %v2053_v28  ;;  %v2133_v57 = vunpack.c.1.s8 %v2053_v28  ;;  %v2193_v6 = vunpack.c.0.s8 %v2069_v34  ;;  %v3728_v28 = vld [vmem:[#allocation9] sm:$0xf] }
 0x179   :  { %v2221_v26 = vunpack.c.3.s8 %v2073_v20  ;;  %v2349_v0 = vunpack.c.3.s8 %v2105_v1  ;;  %2781 = vmatpush.bf16.msra.mxu2 %v2709_v17  ;;  %v2337_v58 = vunpack.c.0.s8 %v2105_v1  ;;  %v2341_v3 = vunpack.c.1.s8 %v2105_v1 }
 0x17a   :  { %v2705_v42 = vpack.c.bf16 %v2533_v55, %v2529_v7  ;;  %v2333_v20 = vunpack.c.3.s8 %v2101_v39  ;;  %v2385_v59 = vcvt.s32.f32 %v2129_v51  ;;  %v2257_v10 = vunpack.c.0.s8 %v2085_v36 }
 0x17b   :  { %v2477_v4 = vcvt.s32.f32 %v2221_v26  ;;  %v2605_v14 = vcvt.s32.f32 %v2349_v0  ;;  %v2593_v56 = vcvt.s32.f32 %v2337_v58  ;;  %v2597_v35 = vcvt.s32.f32 %v2341_v3  ;;  %v3718_v0 = vld [vmem:[#allocation11] sm:$0xff] }
 0x17c   :  { %2756 = vmatpush.bf16.msra.mxu0 %v2641_v40  ;;  %v2585_v26 = vcvt.s32.f32 %v2329_v22  ;;  %v2589_v43 = vcvt.s32.f32 %v2333_v20  ;;  %v2261_v27 = vunpack.c.1.s8 %v2085_v36  ;;  %v2321_v13 = vunpack.c.0.s8 %v2101_v39  ;;  %v3726_v3 = vld [vmem:[#allocation11 + $0x180] sm:$0xff] }
 0x17d   :  { %v2677_v16 = vpack.c.bf16 %v2477_v4, %v2473_v63  ;;  %2782 = vmatpush.bf16.msra.mxu2 %v2705_v42  ;;  %v2197_v63 = vunpack.c.1.s8 %v2069_v34  ;;  %v2389_v4 = vcvt.s32.f32 %v2133_v57  ;;  %v2121_v53 = vunpack.c.2.s8 %v3718_v0 }
 0x17e   :  { %v2517_v21 = vcvt.s32.f32 %v2261_v27  ;;  %v2577_v24 = vcvt.s32.f32 %v2321_v13  ;;  %v2125_v58 = vunpack.c.3.s8 %v3718_v0  ;;  %v2249_v55 = vunpack.c.2.s8 %v3723_v37 }
 0x17f   :  { %2768 = vmatpush.bf16.msra.mxu1 %v2677_v16  ;;  %v3720_v16 = vld [vmem:[#allocation11 + $0x80] sm:$0xff]  ;;  %v2633_v17 = vpack.c.bf16 %v2389_v4, %v2385_v59  ;;  %v2377_v31 = vcvt.s32.f32 %v2121_v53  ;;  %v2313_v40 = vunpack.c.2.s8 %v3726_v3  ;;  %v2245_v59 = vunpack.c.1.s8 %v3723_v37  ;;  %v2094_v53 = vld [vmem:[#allocation11 + $0x168] sm:$0xff] }
 0x180   :  { %v2185_v62 = vunpack.c.2.s8 %v3720_v16  ;;  %v2189_v32 = vunpack.c.3.s8 %v3720_v16  ;;  %v2381_v7 = vcvt.s32.f32 %v2125_v58  ;;  %v2110_v58 = vld [vmem:[#allocation11 + $0x1e8] sm:$0xff] }
 0x183   :  { %2769 = vmatpush.bf16.msra.mxu1 %v2673_v29  ;;  %v2317_v29 = vunpack.c.3.s8 %v3726_v3 }
 0x18f   :  { %v1839_v38 = vpop.f32.mrf.mxu0 }
 0x190   :  { %v1840_v47 = vadd.f32 %v1839_v38, %v1827_v60  ;;  %v1852_v48 = vpop.f32.mrf.mxu1  ;;  %v2345_v60 = vunpack.c.2.s8 %v2105_v1  ;;  %v2737_v38 = vpack.c.bf16 %v2597_v35, %v2593_v56  ;;  %v2253_v56 = vunpack.c.3.s8 %v3723_v37 }
 0x191   :  { %v2441_v35 = vcvt.s32.f32 %v2185_v62 }
 0x192   :  { %v1853_v9 = vadd.f32 %v1852_v48, %v1840_v47  ;;  %v2601_v61 = vcvt.s32.f32 %v2345_v60  ;;  %v2201_v47 = vunpack.c.2.s8 %v2069_v34  ;;  %v2205_v48 = vunpack.c.3.s8 %v2069_v34 }
 0x193   :  { %v2509_v42 = vcvt.s32.f32 %v2253_v56 }
 0x194   :  { %v2741_v18 = vpack.c.bf16 %v2605_v14, %v2601_v61  ;;  %v2449_v61 = vcvt.s32.f32 %v2193_v6  ;;  %v2325_v14 = vunpack.c.1.s8 %v2101_v39  ;;  %v2505_v39 = vcvt.s32.f32 %v2249_v55 }
 0x195   :  { %v2305_v6 = vunpack.c.0.s8 %v3726_v3  ;;  %v2298_v55 = vunpack.c.2.s8 %v2094_v53 }
 0x196   :  { %2794 = vmatpush.bf16.msra.mxu3 %v2741_v18  ;;  %v2513_v18 = vcvt.s32.f32 %v2257_v10  ;;  %v2581_v23 = vcvt.s32.f32 %v2325_v14 }
 0x197   :  { %v1865_v45 = vpop.f32.mrf.mxu2  ;;  %v1841_v44 = vpop.f32.mrf.mxu0 }
 0x198   :  { %v1866_v49 = vadd.f32 %v1865_v45, %v1853_v9  ;;  %v1878_v33 = vpop.f32.mrf.mxu3  ;;  %v1854_v54 = vpop.f32.mrf.mxu1  ;;  %v2393_v9 = vcvt.s32.f32 %v2137_v41  ;;  %v2397_v45 = vcvt.s32.f32 %v2141_v5  ;;  %v2265_v44 = vunpack.c.2.s8 %v2085_v36 }
 0x199   :  { %v2461_v54 = vcvt.s32.f32 %v2205_v48  ;;  %v2697_v30 = vpack.c.bf16 %v2517_v21, %v2513_v18  ;;  %v2729_v34 = vpack.c.bf16 %v2581_v23, %v2577_v24  ;;  %v2023_v41 = vperm.slane %v3728_v28, 1 }
 0x19a   :  { %v3713_v8 = vadd.f32 %v1878_v33, %v1866_v49  ;;  %v2269_v49 = vunpack.c.3.s8 %v2085_v36  ;;  %2795 = vmatpush.bf16.msra.mxu3 %v2737_v38  ;;  %v2457_v33 = vcvt.s32.f32 %v2201_v47  ;;  %v2637_v46 = vpack.c.bf16 %v2397_v45, %v2393_v9 }
 0x19b   :  { %v2521_v25 = vcvt.s32.f32 %v2265_v44  ;;  %v2445_v36 = vcvt.s32.f32 %v2189_v32  ;;  %v2629_v5 = vpack.c.bf16 %v2381_v7, %v2377_v31  ;;  %v2569_v47 = vcvt.s32.f32 %v2313_v40 }
 0x19c   :  { %v2525_v52 = vcvt.s32.f32 %v2269_v49  ;;  %v2669_v1 = vpack.c.bf16 %v2461_v54, %v2457_v33  ;;  %2757 = vmatpush.bf16.msra.mxu0 %v2637_v46  ;;  %v2573_v48 = vcvt.s32.f32 %v2317_v29  ;;  %v2693_v45 = vpack.c.bf16 %v2509_v42, %v2505_v39 }
 0x19d   :  { %v2661_v38 = vpack.c.bf16 %v2445_v36, %v2441_v35  ;;  %v2008_v49 = vperm.slane %v3715_v11, 0  ;;  %v2012_v33 = vrot.slane %v2009_v19, 6  ;;  %v2022_v54 = vperm.slane %v3728_v28, 0 }
 0x19e   :  { %v2701_v60 = vpack.c.bf16 %v2525_v52, %v2521_v25  ;;  %2770 = vmatpush.bf16.msra.mxu1 %v2669_v1  ;;  %v2725_v44 = vpack.c.bf16 %v2573_v48, %v2569_v47  ;;  %v2026_v22 = vrot.slane %v2023_v41, 6  ;;  %v1991_v52 = vrot.slane %v3713_v8, 4 }
 0x19f   :  { %v1867_v2 = vpop.f32.mrf.mxu2  ;;  %v3742_v46 = vsel %vm1993_vm0, %v2008_v49, %v2012_v33  ;;  %v2113_v1 = vunpack.c.0.s8 %v3718_v0  ;;  %v2177_v19 = vunpack.c.0.s8 %v3720_v16  ;;  %v2501_v18 = vcvt.s32.f32 %v2245_v59 }
 0x1a0   :  { %v1880_v12 = vpop.f32.mrf.mxu3  ;;  %v2733_v2 = vpack.c.bf16 %v2589_v43, %v2585_v26  ;;  %2783 = vmatpush.bf16.msra.mxu2 %v2701_v60  ;;  %2758 = vmatpush.bf16.msra.mxu0 %v2633_v17  ;;  %v3745_v25 = vsel %vm1993_vm0, %v2022_v54, %v2026_v22  ;;  %v2117_v26 = vunpack.c.1.s8 %v3718_v0  ;;  %v2181_v43 = vunpack.c.1.s8 %v3720_v16  ;;  %v2078_v0 = vld [vmem:[#allocation11 + $0xe8] sm:$0xff] }
 0x1a1   :  { %v2453_v12 = vcvt.s32.f32 %v2197_v63  ;;  %v2241_v60 = vunpack.c.0.s8 %v3723_v37  ;;  %v2309_v63 = vunpack.c.1.s8 %v3726_v3  ;;  %v2369_v10 = vcvt.s32.f32 %v2113_v1 }
 0x1a2   :  { %2796 = vmatpush.bf16.msra.mxu3 %v2733_v2  ;;  %v2062_v2 = vld [vmem:[#allocation11 + $0x68] sm:$0xff]  ;;  %v2373_v27 = vcvt.s32.f32 %v2117_v26  ;;  %v2561_v21 = vcvt.s32.f32 %v2305_v6  ;;  %v2234_v62 = vunpack.c.2.s8 %v2078_v0  ;;  %v2238_v7 = vunpack.c.3.s8 %v2078_v0 }
 0x1a3   :  { %v2665_v50 = vpack.c.bf16 %v2453_v12, %v2449_v61  ;;  %v2433_v61 = vcvt.s32.f32 %v2177_v19  ;;  %v2437_v12 = vcvt.s32.f32 %v2181_v43  ;;  %v2497_v16 = vcvt.s32.f32 %v2241_v60  ;;  %v2058_v60 = vld [vmem:[#allocation11 + $0x48] sm:$0xff] }
 0x1a4   :  { %2784 = vmatpush.bf16.msra.mxu2 %v2697_v30  ;;  %2759 = vmatpush.bf16.msra.mxu0 %v2629_v5  ;;  %v2565_v24 = vcvt.s32.f32 %v2309_v63  ;;  %v2170_v23 = vunpack.c.2.s8 %v2062_v2  ;;  %v2174_v31 = vunpack.c.3.s8 %v2062_v2  ;;  %v2490_v35 = vcvt.s32.f32 %v2234_v62 }
 0x1a5   :  { %2771 = vmatpush.bf16.msra.mxu1 %v2665_v50  ;;  %v2625_v50 = vpack.c.bf16 %v2373_v27, %v2369_v10  ;;  %v2657_v37 = vpack.c.bf16 %v2437_v12, %v2433_v61  ;;  %v2689_v30 = vpack.c.bf16 %v2501_v18, %v2497_v16  ;;  %v2302_v36 = vunpack.c.3.s8 %v2094_v53 }
 0x1a6   :  { %2797 = vmatpush.bf16.msra.mxu3 %v2729_v34  ;;  %v2721_v32 = vpack.c.bf16 %v2565_v24, %v2561_v21  ;;  %v2426_v34 = vcvt.s32.f32 %v2170_v23  ;;  %v2430_v56 = vcvt.s32.f32 %v2174_v31  ;;  %v2362_v40 = vunpack.c.2.s8 %v2110_v58  ;;  %v2074_v21 = vld [vmem:[#allocation11 + $0xc8] sm:$0xff] }
 0x1a7   :  { %v2494_v29 = vcvt.s32.f32 %v2238_v7  ;;  %v2554_v41 = vcvt.s32.f32 %v2298_v55  ;;  %v2366_v5 = vunpack.c.3.s8 %v2110_v58  ;;  %v2162_v39 = vunpack.c.0.s8 %v2062_v2  ;;  %v2106_v24 = vld [vmem:[#allocation11 + $0x1c8] sm:$0xff] }
 0x1a8   :  { %2785 = vmatpush.bf16.msra.mxu2 %v2693_v45  ;;  %2760 = vmatpush.bf16.msra.mxu0 %v2625_v50  ;;  %v2654_v42 = vpack.c.bf16 %v2430_v56, %v2426_v34  ;;  %v2618_v47 = vcvt.s32.f32 %v2362_v40  ;;  %v2166_v48 = vunpack.c.1.s8 %v2062_v2  ;;  %v2226_v33 = vunpack.c.0.s8 %v2078_v0 }
 0x1a9   :  { %2772 = vmatpush.bf16.msra.mxu1 %v2661_v38  ;;  %v2558_v38 = vcvt.s32.f32 %v2302_v36  ;;  %v2686_v45 = vpack.c.bf16 %v2494_v29, %v2490_v35  ;;  %v2418_v49 = vcvt.s32.f32 %v2162_v39  ;;  %v2290_v1 = vunpack.c.0.s8 %v2094_v53 }
 0x1aa   :  { %2798 = vmatpush.bf16.msra.mxu3 %v2725_v44  ;;  %v2622_v44 = vcvt.s32.f32 %v2366_v5  ;;  %v2482_v19 = vcvt.s32.f32 %v2226_v33  ;;  %v2294_v43 = vunpack.c.1.s8 %v2094_v53  ;;  %v2358_v2 = vunpack.c.1.s8 %v2110_v58 }
 0x1ab   :  { %v2718_v22 = vpack.c.bf16 %v2558_v38, %v2554_v41  ;;  %v2546_v63 = vcvt.s32.f32 %v2290_v1  ;;  %v2011_v10 = vperm.slane %v3715_v11, 3  ;;  %v2024_v16 = vperm.slane %v3728_v28, 2  ;;  %v2070_v1 = vld [vmem:[#allocation11 + $0xa8] sm:$0xff] }
 0x1ac   :  { %2786 = vmatpush.bf16.msra.mxu2 %v2689_v30  ;;  %2805 = vmatpush.bf16.msrb.mxu0 %v2654_v42  ;;  %v2750_v26 = vpack.c.bf16 %v2622_v44, %v2618_v47  ;;  %v2550_v27 = vcvt.s32.f32 %v2294_v43  ;;  %v2025_v18 = vperm.slane %v3728_v28, 3  ;;  %v2222_v34 = vunpack.c.3.s8 %v2074_v21 }
 0x1ad   :  { %2773 = vmatpush.bf16.msra.mxu1 %v2657_v37  ;;  %v2158_v37 = vunpack.c.3.s8 %v2058_v60  ;;  %v2346_v35 = vunpack.c.2.s8 %v2106_v24  ;;  %v2350_v39 = vunpack.c.3.s8 %v2106_v24  ;;  %v2146_v47 = vunpack.c.0.s8 %v2058_v60 }
 0x1ae   :  { %2799 = vmatpush.bf16.msra.mxu3 %v2721_v32  ;;  %v2714_v53 = vpack.c.bf16 %v2550_v27, %v2546_v63  ;;  %v2028_v30 = vrot.slane %v2025_v18, 2  ;;  %v2218_v32 = vunpack.c.2.s8 %v2074_v21  ;;  %v2478_v41 = vcvt.s32.f32 %v2222_v34 }
 0x1af   :  { %v2414_v28 = vcvt.s32.f32 %v2158_v37  ;;  %v2602_v42 = vcvt.s32.f32 %v2346_v35  ;;  %v2606_v44 = vcvt.s32.f32 %v2350_v39 }
 0x1b0   :  { %2831 = vmatpush.bf16.msrb.mxu2 %v2718_v22  ;;  %v2474_v29 = vcvt.s32.f32 %v2218_v32 }
 0x1b1   :  { %2818 = vmatpush.bf16.msrb.mxu1 %v2686_v45 }
 0x1b2   :  { %2844 = vmatpush.bf16.msrb.mxu3 %v2750_v26  ;;  %v2678_v38 = vpack.c.bf16 %v2478_v41, %v2474_v29  ;;  %v2742_v26 = vpack.c.bf16 %v2606_v44, %v2602_v42  ;;  %v2198_v29 = vunpack.c.1.s8 %v2070_v1  ;;  %v2066_v44 = vld [vmem:[#allocation11 + $0x88] sm:$0xff] }
 0x1b4   :  { %2832 = vmatpush.bf16.msrb.mxu2 %v2714_v53 }
 0x1b8   :  { %v1891_v9 = vpop.f32.mrf.mxu0 }
 0x1ba   :  { %v1904_v20 = vpop.f32.mrf.mxu1 }
 0x1bb   :  { %v1905_v51 = vadd.f32 %v1904_v20, %v1891_v9  ;;  %v2422_v20 = vcvt.s32.f32 %v2166_v48  ;;  %v2150_v48 = vunpack.c.1.s8 %v2058_v60 }
 0x1bd   :  { %v2650_v59 = vpack.c.bf16 %v2422_v20, %v2418_v49  ;;  %v2214_v49 = vunpack.c.1.s8 %v2074_v21  ;;  %v2406_v22 = vcvt.s32.f32 %v2150_v48  ;;  %v2454_v48 = vcvt.s32.f32 %v2198_v29 }
 0x1bf   :  { %2806 = vmatpush.bf16.msrb.mxu0 %v2650_v59 }
 0x1c0   :  { %v1893_v57 = vpop.f32.mrf.mxu0 }
 0x1c1   :  { %v1917_v4 = vpop.f32.mrf.mxu2  ;;  %v2354_v57 = vunpack.c.0.s8 %v2110_v58  ;;  %v2027_v58 = vrot.slane %v2024_v16, 4 }
 0x1c2   :  { %v1918_v13 = vadd.f32 %v1917_v4, %v1905_v51  ;;  %v1930_v14 = vpop.f32.mrf.mxu3  ;;  %v1906_v17 = vpop.f32.mrf.mxu1  ;;  %v2230_v51 = vunpack.c.1.s8 %v2078_v0  ;;  %v2010_v4 = vperm.slane %v3715_v11, 2  ;;  %v2614_v0 = vcvt.s32.f32 %v2358_v2  ;;  %v2090_v11 = vld [vmem:[#allocation11 + $0x148] sm:$0xff] }
 0x1c3   :  { %v2610_v61 = vcvt.s32.f32 %v2354_v57  ;;  %v2014_v17 = vrot.slane %v2011_v10, 2  ;;  %v2030_v7 = vsel %vm1995_vm1, %v2027_v58, %v2028_v30  ;;  %v2282_v55 = vunpack.c.2.s8 %v2090_v11  ;;  %v2086_v2 = vld [vmem:[#allocation11 + $0x128] sm:$0xff] }
 0x1c4   :  { %v3756_v3 = vadd.f32 %v1930_v14, %v1918_v13  ;;  %v2486_v6 = vcvt.s32.f32 %v2230_v51  ;;  %v2154_v13 = vunpack.c.2.s8 %v2058_v60  ;;  %v2013_v14 = vrot.slane %v2010_v4, 4 }
 0x1c5   :  { %v2746_v50 = vpack.c.bf16 %v2614_v0, %v2610_v61  ;;  %v2286_v56 = vunpack.c.3.s8 %v2090_v11  ;;  %v3770_v36 = vsel %vm1997_vm2, %v3745_v25, %v2030_v7  ;;  %v2538_v5 = vcvt.s32.f32 %v2282_v55 }
 0x1c6   :  { %v2682_v12 = vpack.c.bf16 %v2486_v6, %v2482_v19  ;;  %v2016_v23 = vsel %vm1995_vm1, %v2013_v14, %v2014_v17  ;;  %v2410_v31 = vcvt.s32.f32 %v2154_v13  ;;  %v2274_v33 = vunpack.c.0.s8 %v2090_v11 }
 0x1c7   :  { %v3765_v62 = vsel %vm1997_vm2, %v3742_v46, %v2016_v23  ;;  %2845 = vmatpush.bf16.msrb.mxu3 %v2746_v50  ;;  %v2542_v46 = vcvt.s32.f32 %v2286_v56  ;;  %v2402_v25 = vcvt.s32.f32 %v2146_v47  ;;  %v2278_v51 = vunpack.c.1.s8 %v2090_v11 }
 0x1c8   :  { %2819 = vmatpush.bf16.msrb.mxu1 %v2682_v12  ;;  %v2646_v40 = vpack.c.bf16 %v2414_v28, %v2410_v31  ;;  %v2470_v19 = vcvt.s32.f32 %v2214_v49  ;;  %v2530_v43 = vcvt.s32.f32 %v2274_v33  ;;  %v2338_v57 = vunpack.c.0.s8 %v2106_v24  ;;  %v2102_v12 = vld [vmem:[#allocation11 + $0x1a8] sm:$0xff] }
 0x1c9   :  { %v1919_v9 = vpop.f32.mrf.mxu2  ;;  %v2710_v45 = vpack.c.bf16 %v2542_v46, %v2538_v5  ;;  %v2642_v59 = vpack.c.bf16 %v2406_v22, %v2402_v25  ;;  %v2534_v6 = vcvt.s32.f32 %v2278_v51  ;;  %v2342_v60 = vunpack.c.1.s8 %v2106_v24  ;;  %v2082_v22 = vld [vmem:[#allocation11 + $0x108] sm:$0xff] }
 0x1ca   :  { %v1932_v54 = vpop.f32.mrf.mxu3  ;;  %2807 = vmatpush.bf16.msrb.mxu0 %v2646_v40  ;;  %v2210_v9 = vunpack.c.0.s8 %v2074_v21  ;;  %v2594_v10 = vcvt.s32.f32 %v2338_v57  ;;  %v2202_v61 = vunpack.c.2.s8 %v2070_v1  ;;  %v2206_v17 = vunpack.c.3.s8 %v2070_v1 }
 0x1cb   :  { %v2054_v54 = vld [vmem:[#allocation11 + $0x28] sm:$0xff]  ;;  %2833 = vmatpush.bf16.msrb.mxu2 %v2710_v45  ;;  %2846 = vmatpush.bf16.msrb.mxu3 %v2742_v26  ;;  %v2706_v0 = vpack.c.bf16 %v2534_v6, %v2530_v43  ;;  %v2598_v13 = vcvt.s32.f32 %v2342_v60  ;;  %v2266_v21 = vunpack.c.2.s8 %v2086_v2  ;;  %v2270_v53 = vunpack.c.3.s8 %v2086_v2 }
 0x1cc   :  { %2820 = vmatpush.bf16.msrb.mxu1 %v2678_v38  ;;  %v2466_v20 = vcvt.s32.f32 %v2210_v9  ;;  %v2138_v63 = vunpack.c.2.s8 %v2054_v54  ;;  %v2142_v27 = vunpack.c.3.s8 %v2054_v54  ;;  %v2458_v18 = vcvt.s32.f32 %v2202_v61  ;;  %v2050_v38 = vld [vmem:[#allocation11 + $0x8] sm:$0xff] }
 0x1cd   :  { %v2738_v50 = vpack.c.bf16 %v2598_v13, %v2594_v10  ;;  %v2462_v37 = vcvt.s32.f32 %v2206_v17  ;;  %v2330_v11 = vunpack.c.2.s8 %v2102_v12  ;;  %v2334_v24 = vunpack.c.3.s8 %v2102_v12 }
 0x1ce   :  { %v2674_v4 = vpack.c.bf16 %v2470_v19, %v2466_v20  ;;  %2808 = vmatpush.bf16.msrb.mxu0 %v2642_v59  ;;  %v2394_v14 = vcvt.s32.f32 %v2138_v63  ;;  %v2398_v16 = vcvt.s32.f32 %v2142_v27  ;;  %v2522_v58 = vcvt.s32.f32 %v2266_v21  ;;  %v2098_v59 = vld [vmem:[#allocation11 + $0x188] sm:$0xff] }
 0x1cf   :  { %2834 = vmatpush.bf16.msrb.mxu2 %v2706_v0  ;;  %v2526_v30 = vcvt.s32.f32 %v2270_v53  ;;  %v2130_v31 = vunpack.c.0.s8 %v2054_v54  ;;  %2847 = vmatpush.bf16.msrb.mxu3 %v2738_v50  ;;  %v2670_v28 = vpack.c.bf16 %v2462_v37, %v2458_v18  ;;  %v2586_v32 = vcvt.s32.f32 %v2330_v11 }
 0x1d0   :  { %2821 = vmatpush.bf16.msrb.mxu1 %v2674_v4  ;;  %v2638_v23 = vpack.c.bf16 %v2398_v16, %v2394_v14  ;;  %v2590_v34 = vcvt.s32.f32 %v2334_v24  ;;  %v2134_v7 = vunpack.c.1.s8 %v2054_v54  ;;  %v2194_v40 = vunpack.c.0.s8 %v2070_v1 }
 0x1d1   :  { %v2702_v56 = vpack.c.bf16 %v2526_v30, %v2522_v58  ;;  %v2386_v35 = vcvt.s32.f32 %v2130_v31  ;;  %v2258_v42 = vunpack.c.0.s8 %v2086_v2  ;;  %v2262_v9 = vunpack.c.1.s8 %v2086_v2 }
 0x1d2   :  { %2809 = vmatpush.bf16.msrb.mxu0 %v2638_v23  ;;  %v2734_v46 = vpack.c.bf16 %v2590_v34, %v2586_v32  ;;  %v2390_v39 = vcvt.s32.f32 %v2134_v7  ;;  %v2450_v47 = vcvt.s32.f32 %v2194_v40  ;;  %v2322_v45 = vunpack.c.0.s8 %v2102_v12  ;;  %v2063_v40 = vld [vmem:[#allocation11 + $0x70] sm:$0xff] }
 0x1d3   :  { %2835 = vmatpush.bf16.msrb.mxu2 %v2702_v56  ;;  %v2514_v54 = vcvt.s32.f32 %v2258_v42  ;;  %v2326_v25 = vunpack.c.1.s8 %v2102_v12  ;;  %v2122_v1 = vunpack.c.2.s8 %v2050_v38  ;;  %v2126_v19 = vunpack.c.3.s8 %v2050_v38 }
 0x1d4   :  { %2822 = vmatpush.bf16.msrb.mxu1 %v2670_v28  ;;  %2848 = vmatpush.bf16.msrb.mxu3 %v2734_v46  ;;  %v2634_v33 = vpack.c.bf16 %v2390_v39, %v2386_v35  ;;  %v2666_v20 = vpack.c.bf16 %v2454_v48, %v2450_v47  ;;  %v2578_v51 = vcvt.s32.f32 %v2322_v45  ;;  %v2186_v43 = vunpack.c.2.s8 %v2066_v44  ;;  %v2079_v48 = vld [vmem:[#allocation11 + $0xf0] sm:$0xff] }
 0x1d5   :  { %v2582_v26 = vcvt.s32.f32 %v2326_v25  ;;  %v2190_v57 = vunpack.c.3.s8 %v2066_v44  ;;  %v2378_v60 = vcvt.s32.f32 %v2122_v1  ;;  %v2250_v63 = vunpack.c.2.s8 %v2082_v22 }
 0x1d6   :  { %2810 = vmatpush.bf16.msrb.mxu0 %v2634_v33  ;;  %v2254_v2 = vunpack.c.3.s8 %v2082_v22  ;;  %v2382_v10 = vcvt.s32.f32 %v2126_v19  ;;  %v2442_v27 = vcvt.s32.f32 %v2186_v43  ;;  %v2314_v17 = vunpack.c.2.s8 %v2098_v59  ;;  %v2095_v33 = vld [vmem:[#allocation11 + $0x170] sm:$0xff] }
 0x1d7   :  { %v2730_v4 = vpack.c.bf16 %v2582_v26, %v2578_v51  ;;  %v2446_v61 = vcvt.s32.f32 %v2190_v57  ;;  %v2506_v13 = vcvt.s32.f32 %v2250_v63  ;;  %v2318_v16 = vunpack.c.3.s8 %v2098_v59  ;;  %v2111_v51 = vld [vmem:[#allocation11 + $0x1f0] sm:$0xff] }
 0x1d8   :  { %2823 = vmatpush.bf16.msrb.mxu1 %v2666_v20  ;;  %v2510_v14 = vcvt.s32.f32 %v2254_v2  ;;  %v2630_v50 = vpack.c.bf16 %v2382_v10, %v2378_v60  ;;  %v2114_v11 = vunpack.c.0.s8 %v2050_v38  ;;  %v2570_v23 = vcvt.s32.f32 %v2314_v17 }
 0x1d9   :  { %2849 = vmatpush.bf16.msrb.mxu3 %v2730_v4  ;;  %v2662_v37 = vpack.c.bf16 %v2446_v61, %v2442_v27  ;;  %v2574_v58 = vcvt.s32.f32 %v2318_v16  ;;  %v2118_v30 = vunpack.c.1.s8 %v2050_v38  ;;  %v2178_v32 = vunpack.c.0.s8 %v2066_v44 }
 0x1da   :  { %v2694_v24 = vpack.c.bf16 %v2510_v14, %v2506_v13  ;;  %2811 = vmatpush.bf16.msrb.mxu0 %v2630_v50  ;;  %v2370_v28 = vcvt.s32.f32 %v2114_v11  ;;  %v2182_v34 = vunpack.c.1.s8 %v2066_v44  ;;  %v2242_v56 = vunpack.c.0.s8 %v2082_v22 }
 0x1db   :  { %v2726_v7 = vpack.c.bf16 %v2574_v58, %v2570_v23  ;;  %v2246_v35 = vunpack.c.1.s8 %v2082_v22  ;;  %v2306_v46 = vunpack.c.0.s8 %v2098_v59  ;;  %v2310_v47 = vunpack.c.1.s8 %v2098_v59 }
 0x1dc   :  { %2824 = vmatpush.bf16.msrb.mxu1 %v2662_v37  ;;  %v2498_v42 = vcvt.s32.f32 %v2242_v56  ;;  %v2239_v19 = vunpack.c.3.s8 %v2079_v48  ;;  %v2299_v59 = vunpack.c.2.s8 %v2095_v33  ;;  %v2363_v2 = vunpack.c.2.s8 %v2111_v51  ;;  %v2059_v37 = vld [vmem:[#allocation11 + $0x50] sm:$0xff] }
 0x1dd   :  { %2850 = vmatpush.bf16.msrb.mxu3 %v2726_v7  ;;  %v2502_v38 = vcvt.s32.f32 %v2246_v35  ;;  %v2562_v44 = vcvt.s32.f32 %v2306_v46  ;;  %v2566_v20 = vcvt.s32.f32 %v2310_v47  ;;  %v2367_v27 = vunpack.c.3.s8 %v2111_v51  ;;  %v2091_v7 = vld [vmem:[#allocation11 + $0x150] sm:$0xff] }
 0x1de   :  { %v3786_v63 = vcvt.s32.f32 %v2239_v19  ;;  %v3790_v4 = vcvt.s32.f32 %v2299_v59  ;;  %v2167_v17 = vunpack.c.1.s8 %v2063_v40  ;;  %v2227_v16 = vunpack.c.0.s8 %v2079_v48 }
 0x1df   :  { %v2690_v22 = vpack.c.bf16 %v2502_v38, %v2498_v42  ;;  %v2722_v43 = vpack.c.bf16 %v2566_v20, %v2562_v44  ;;  %v3800_v14 = vcvt.s32.f32 %v2367_v27  ;;  %v2295_v50 = vunpack.c.1.s8 %v2095_v33 }
 0x1e0   :  { %v3808_v23 = vcvt.s32.f32 %v2227_v16  ;;  %v2355_v58 = vunpack.c.0.s8 %v2111_v51  ;;  %v2155_v35 = vunpack.c.2.s8 %v2059_v37  ;;  %v2287_v44 = vunpack.c.3.s8 %v2091_v7 }
 0x1e1   :  { %v1943_v55 = vpop.f32.mrf.mxu0  ;;  %2851 = vmatpush.bf16.msrb.mxu3 %v2722_v43 }
 0x1e2   :  { %v1944_v41 = vadd.f32 %v1943_v55, %v3756_v3  ;;  %v1956_v5 = vpop.f32.mrf.mxu1  ;;  %v2518_v3 = vcvt.s32.f32 %v2262_v9  ;;  %v2374_v55 = vcvt.s32.f32 %v2118_v30  ;;  %v2075_v30 = vld [vmem:[#allocation11 + $0xd0] sm:$0xff]  ;;  %v3818_v56 = vcvt.s32.f32 %v2355_v58 }
 0x1e3   :  { %v3828_v42 = vcvt.s32.f32 %v2155_v35  ;;  %v2223_v47 = vunpack.c.3.s8 %v2075_v30  ;;  %v3848_v19 = vcvt.s32.f32 %v2287_v44  ;;  %v2055_v58 = vld [vmem:[#allocation11 + $0x30] sm:$0xff] }
 0x1e4   :  { %v1957_v49 = vadd.f32 %v1956_v5, %v1944_v41  ;;  %v2698_v6 = vpack.c.bf16 %v2518_v3, %v2514_v54  ;;  %v2434_v41 = vcvt.s32.f32 %v2178_v32  ;;  %v2438_v5 = vcvt.s32.f32 %v2182_v34 }
 0x1e5   :  { %v2626_v39 = vpack.c.bf16 %v2374_v55, %v2370_v28  ;;  %v2175_v3 = vunpack.c.3.s8 %v2063_v40  ;;  %v3814_v32 = vcvt.s32.f32 %v2295_v50  ;;  %v2359_v34 = vunpack.c.1.s8 %v2111_v51 }
 0x1e6   :  { %2836 = vmatpush.bf16.msrb.mxu2 %v2698_v6  ;;  %v2658_v45 = vpack.c.bf16 %v2438_v5, %v2434_v41  ;;  %v2279_v50 = vunpack.c.1.s8 %v2091_v7 }
 0x1e7   :  { %2812 = vmatpush.bf16.msrb.mxu0 %v2626_v39  ;;  %v3781_v57 = vcvt.s32.f32 %v2175_v3  ;;  %v3826_v46 = vcvt.s32.f32 %v2359_v34  ;;  %v2219_v39 = vunpack.c.2.s8 %v2075_v30 }
 0x1e8   :  { %2825 = vmatpush.bf16.msrb.mxu1 %v2658_v45 }
 0x1e9   :  { %v1969_v12 = vpop.f32.mrf.mxu2  ;;  %v1945_v0 = vpop.f32.mrf.mxu0  ;;  %v3834_v45 = vcvt.s32.f32 %v2219_v39  ;;  %v2103_v39 = vld [vmem:[#allocation11 + $0x1b0] sm:$0xff] }
 0x1ea   :  { %v1970_v18 = vadd.f32 %v1969_v12, %v1957_v49  ;;  %v1982_v21 = vpop.f32.mrf.mxu3  ;;  %v1958_v53 = vpop.f32.mrf.mxu1  ;;  %2837 = vmatpush.bf16.msrb.mxu2 %v2694_v24  ;;  %v2171_v49 = vunpack.c.2.s8 %v2063_v40  ;;  %v3796_v0 = vcvt.s32.f32 %v2363_v2  ;;  %v3806_v24 = vcvt.s32.f32 %v2167_v17 }
 0x1eb   :  { %v2291_v53 = vunpack.c.0.s8 %v2095_v33  ;;  %v2211_v17 = vunpack.c.0.s8 %v2075_v30 }
 0x1ec   :  { %v1983_v31 = vadd.f32 %v1982_v21, %v1970_v18  ;;  %v3779_v8 = vcvt.s32.f32 %v2171_v49  ;;  %v2231_v21 = vunpack.c.1.s8 %v2079_v48  ;;  %v2751_v11 = vpack.c.bf16 %v3800_v14, %v3796_v0 }
 0x1ed   :  { %v3812_v28 = vcvt.s32.f32 %v2291_v53  ;;  %v2275_v53 = vunpack.c.0.s8 %v2091_v7 }
 0x1ee   :  { %v1992_v29 = vrot.slane %v1983_v31, 2  ;;  %2838 = vmatpush.bf16.msrb.mxu2 %v2690_v22  ;;  %v3810_v31 = vcvt.s32.f32 %v2231_v21  ;;  %v3839_v22 = vcvt.s32.f32 %v2223_v47  ;;  %v2215_v21 = vunpack.c.1.s8 %v2075_v30  ;;  %v2071_v30 = vld [vmem:[#allocation11 + $0xb0] sm:$0xff] }
 0x1ef   :  { %v2715_v5 = vpack.c.bf16 %v3814_v32, %v3812_v28  ;;  %v2203_v47 = vunpack.c.2.s8 %v2071_v30 }
 0x1f0   :  { %v1996_v9 = vsel %vm1995_vm1, %v1991_v52, %v1992_v29  ;;  %v2235_v52 = vunpack.c.2.s8 %v2079_v48  ;;  %v3820_v29 = vld [vmem:[#allocation11 + $0x1d0] sm:$0xff]  ;;  %v2683_v41 = vpack.c.bf16 %v3810_v31, %v3808_v23  ;;  %v2283_v48 = vunpack.c.2.s8 %v2091_v7 }
 0x1f1   :  { %v1998_v54 = vsel %vm1997_vm2, %v3711_v15, %v1996_v9  ;;  %v1971_v25 = vpop.f32.mrf.mxu2  ;;  %v2303_v15 = vunpack.c.3.s8 %v2095_v33  ;;  %v2747_v9 = vpack.c.bf16 %v3826_v46, %v3818_v56  ;;  %v2347_v49 = vunpack.c.2.s8 %v3820_v29 }
 0x1f2   :  { %v2019_v1 = vmul.f32 %v3765_v62, %v1998_v54  ;;  %v1984_v26 = vpop.f32.mrf.mxu3  ;;  %v3784_v60 = vcvt.s32.f32 %v2235_v52  ;;  %v2655_v62 = vpack.c.bf16 %v3781_v57, %v3779_v8  ;;  %v3841_v20 = vcvt.s32.f32 %v2283_v48 }
 0x1f3   :  { %v3792_v10 = vcvt.s32.f32 %v2303_v15  ;;  %v2351_v3 = vunpack.c.3.s8 %v3820_v29  ;;  %v3850_v43 = vcvt.s32.f32 %v2347_v49  ;;  %v3878_v56 = vcvt.s32.f32 %v2211_v17 }
 0x1f4   :  { %v2033_v6 = vadd.f32 %v3770_v36, %v2019_v1  ;;  %v2687_v12 = vpack.c.bf16 %v3786_v63, %v3784_v60  ;;  %v2163_v36 = vunpack.c.0.s8 %v2063_v40  ;;  %v2159_v40 = vunpack.c.3.s8 %v2059_v37 }
 0x1f5   :  { %v2719_v13 = vpack.c.bf16 %v3792_v10, %v3790_v4  ;;  %v3858_v2 = vcvt.s32.f32 %v2351_v3  ;;  %v2711_v27 = vpack.c.bf16 %v3848_v19, %v3841_v20  ;;  %v2339_v35 = vunpack.c.0.s8 %v3820_v29 }
 0x1f6   :  { %v2034_v61 = vmax.f32 %v2033_v6, 0.0  ;;  %v3802_v18 = vcvt.s32.f32 %v2163_v36  ;;  %v3830_v38 = vcvt.s32.f32 %v2159_v40  ;;  %v2679_v6 = vpack.c.bf16 %v3839_v22, %v3834_v45 }
 0x1f7   :  { %v2151_v36 = vunpack.c.1.s8 %v2059_v37  ;;  %v2743_v16 = vpack.c.bf16 %v3858_v2, %v3850_v43  ;;  %v2471_v8 = vcvt.s32.f32 %v2215_v21  ;;  %v2531_v57 = vcvt.s32.f32 %v2275_v53 }
 0x1f8   :  { %2036 = vst [vmem:[#allocation1] ss:$4 sm:$0xff] %v2034_v61  ;;  %v2651_v55 = vpack.c.bf16 %v3806_v24, %v3802_v18  ;;  %v2647_v25 = vpack.c.bf16 %v3830_v38, %v3828_v42  ;;  %v2147_v61 = vunpack.c.0.s8 %v2059_v37  ;;  %v2535_v60 = vcvt.s32.f32 %v2279_v50 }
 0x1f9   :  { %v3876_v34 = vcvt.s32.f32 %v2151_v36  ;;  %v2343_v63 = vunpack.c.1.s8 %v3820_v29  ;;  %v2595_v7 = vcvt.s32.f32 %v2339_v35  ;;  %v2139_v40 = vunpack.c.2.s8 %v2055_v58  ;;  %v2067_v36 = vld [vmem:[#allocation11 + $0x90] sm:$0xff] }
 0x1fa   :  { %v3874_v37 = vcvt.s32.f32 %v2147_v61  ;;  %v2143_v46 = vunpack.c.3.s8 %v2055_v58  ;;  %v2675_v4 = vpack.c.bf16 %v2471_v8, %v3878_v56  ;;  %v2707_v10 = vpack.c.bf16 %v2535_v60, %v2531_v57  ;;  %v2099_v56 = vld [vmem:[#allocation11 + $0x190] sm:$0xff] }
 0x1fb   :  { %v3897_v0 = vcvt.s32.f32 %v2139_v40  ;;  %v2459_v45 = vcvt.s32.f32 %v2203_v47  ;;  %v2331_v18 = vunpack.c.2.s8 %v2103_v39  ;;  %v2323_v38 = vunpack.c.0.s8 %v2103_v39 }
 0x1fc   :  { %v3899_v14 = vcvt.s32.f32 %v2143_v46  ;;  %v2315_v46 = vunpack.c.2.s8 %v2099_v56 }
 0x1fd   :  { %v2587_v49 = vcvt.s32.f32 %v2331_v18  ;;  %v2579_v50 = vcvt.s32.f32 %v2323_v38 }
 0x1fe   :  { %v2639_v24 = vpack.c.bf16 %v3899_v14, %v3897_v0  ;;  %v2571_v0 = vcvt.s32.f32 %v2315_v46 }
 0x1ff   :  { %v2037_v33 = vld.sshfl [vmem:[#allocation1] sm:$0xff pattern:$0x73625140]  ;;  %v2038_v54 = vld.sshfl [vmem:[#allocation1 + $0x8] sm:$0xff pattern:$0x73625140] }
 0x200   :  { %v3844_v51 = vpack.c.bf16 %v2037_v33, %v2037_v33  ;;  %v3846_v1 = vpack.c.bf16 %v2038_v54, %v2038_v54  ;;  %v2039_v26 = vld.sshfl [vmem:[#allocation1 + $0x10] sm:$0xff pattern:$0x73625140]  ;;  %v2040_v52 = vld.sshfl [vmem:[#allocation1 + $0x18] sm:$0xff pattern:$0x73625140]  ;;  %v2131_v33 = vunpack.c.0.s8 %v2055_v58  ;;  %v2135_v54 = vunpack.c.1.s8 %v2055_v58 }
 0x201   :  { %v3852_v59 = vpack.c.bf16 %v2039_v26, %v2039_v26  ;;  %v3854_v15 = vpack.c.bf16 %v2040_v52, %v2040_v52  ;;  %v2051_v52 = vld [vmem:[#allocation11 + $0x10] sm:$0xff] }
 0x202   :  { %2761 = vmatmul.bf16.vlgmr.msra.gmra.mxu0 %v3844_v51  ;;  %2774 = vmatmul.bf16.vlgmr.msra.gmra.mxu1 %v3846_v1  ;;  %v2387_v20 = vcvt.s32.f32 %v2131_v33  ;;  %v2391_v3 = vcvt.s32.f32 %v2135_v54  ;;  %v2127_v53 = vunpack.c.3.s8 %v2051_v52  ;;  %v2119_v47 = vunpack.c.1.s8 %v2051_v52 }
 0x203   :  { %2787 = vmatmul.bf16.vlgmr.msra.gmra.mxu2 %v3852_v59  ;;  %2800 = vmatmul.bf16.vlgmr.msra.gmra.mxu3 %v3854_v15 }
 0x204   :  { %2857 = vmatpush.bf16.msra.mxu0 %v2655_v62  ;;  %2870 = vmatpush.bf16.msra.mxu1 %v2687_v12  ;;  %v2087_v62 = vld [vmem:[#allocation11 + $0x130] sm:$0xff]  ;;  %v2643_v12 = vpack.c.bf16 %v3876_v34, %v3874_v37  ;;  %v2635_v17 = vpack.c.bf16 %v2391_v3, %v2387_v20  ;;  %v2187_v37 = vunpack.c.2.s8 %v2067_v36  ;;  %v2191_v34 = vunpack.c.3.s8 %v2067_v36 }
 0x205   :  { %2883 = vmatpush.bf16.msra.mxu2 %v2719_v13  ;;  %2896 = vmatpush.bf16.msra.mxu3 %v2751_v11  ;;  %v2599_v13 = vcvt.s32.f32 %v2343_v63  ;;  %v2207_v11 = vunpack.c.3.s8 %v2071_v30  ;;  %v2267_v29 = vunpack.c.2.s8 %v2087_v62  ;;  %v2271_v44 = vunpack.c.3.s8 %v2087_v62 }
 0x206   :  { %v2259_v26 = vunpack.c.0.s8 %v2087_v62  ;;  %v2263_v61 = vunpack.c.1.s8 %v2087_v62  ;;  %v2383_v8 = vcvt.s32.f32 %v2127_v53  ;;  %v2443_v63 = vcvt.s32.f32 %v2187_v37 }
 0x207   :  { %v2739_v48 = vpack.c.bf16 %v2599_v13, %v2595_v7  ;;  %v2463_v23 = vcvt.s32.f32 %v2207_v11  ;;  %v2523_v31 = vcvt.s32.f32 %v2267_v29  ;;  %v2447_v62 = vcvt.s32.f32 %v2191_v34 }
 0x208   :  { %2858 = vmatpush.bf16.msra.mxu0 %v2651_v55  ;;  %2871 = vmatpush.bf16.msra.mxu1 %v2683_v41  ;;  %v2335_v55 = vunpack.c.3.s8 %v2103_v39  ;;  %v2527_v41 = vcvt.s32.f32 %v2271_v44  ;;  %v2515_v42 = vcvt.s32.f32 %v2259_v26  ;;  %v2115_v13 = vunpack.c.0.s8 %v2051_v52 }
 0x209   :  { %2884 = vmatpush.bf16.msra.mxu2 %v2715_v5  ;;  %2897 = vmatpush.bf16.msra.mxu3 %v2747_v9  ;;  %v2671_v28 = vpack.c.bf16 %v2463_v23, %v2459_v45  ;;  %v2195_v5 = vunpack.c.0.s8 %v2071_v30  ;;  %v2199_v9 = vunpack.c.1.s8 %v2071_v30  ;;  %v2179_v11 = vunpack.c.0.s8 %v2067_v36 }
 0x20a   :  { %v2591_v32 = vcvt.s32.f32 %v2335_v55  ;;  %v2703_v22 = vpack.c.bf16 %v2527_v41, %v2523_v31  ;;  %v2183_v29 = vunpack.c.1.s8 %v2067_v36  ;;  %v2371_v45 = vcvt.s32.f32 %v2115_v13 }
 0x20b   :  { %v2451_v43 = vcvt.s32.f32 %v2195_v5  ;;  %v2455_v2 = vcvt.s32.f32 %v2199_v9  ;;  %v2375_v44 = vcvt.s32.f32 %v2119_v47  ;;  %v2435_v31 = vcvt.s32.f32 %v2179_v11  ;;  %v2096_v5 = vld [vmem:[#allocation11 + $0x178] sm:$0xff] }
 0x20c   :  { %2859 = vmatpush.bf16.msra.mxu0 %v2647_v25  ;;  %2872 = vmatpush.bf16.msra.mxu1 %v2679_v6  ;;  %v2735_v19 = vpack.c.bf16 %v2591_v32, %v2587_v49  ;;  %v2327_v25 = vunpack.c.1.s8 %v2103_v39  ;;  %v2083_v6 = vld [vmem:[#allocation11 + $0x110] sm:$0xff]  ;;  %v2319_v39 = vunpack.c.3.s8 %v2099_v56  ;;  %v2439_v55 = vcvt.s32.f32 %v2183_v29  ;;  %v2080_v49 = vld [vmem:[#allocation11 + $0xf8] sm:$0xff] }
 0x20d   :  { %2885 = vmatpush.bf16.msra.mxu2 %v2711_v27  ;;  %2898 = vmatpush.bf16.msra.mxu3 %v2743_v16  ;;  %v2667_v21 = vpack.c.bf16 %v2455_v2, %v2451_v43  ;;  %v2519_v27 = vcvt.s32.f32 %v2263_v61  ;;  %v2123_v16 = vunpack.c.2.s8 %v2051_v52  ;;  %v2251_v57 = vunpack.c.2.s8 %v2083_v6  ;;  %v2112_v2 = vld [vmem:[#allocation11 + $0x1f8] sm:$0xff] }
 0x20e   :  { %v2583_v58 = vcvt.s32.f32 %v2327_v25  ;;  %v2575_v14 = vcvt.s32.f32 %v2319_v39  ;;  %v2243_v18 = vunpack.c.0.s8 %v2083_v6  ;;  %v2247_v41 = vunpack.c.1.s8 %v2083_v6  ;;  %v2092_v11 = vld [vmem:[#allocation11 + $0x158] sm:$0xff] }
 0x20f   :  { %v2699_v35 = vpack.c.bf16 %v2519_v27, %v2515_v42  ;;  %v2379_v30 = vcvt.s32.f32 %v2123_v16  ;;  %v2507_v40 = vcvt.s32.f32 %v2251_v57  ;;  %v2627_v33 = vpack.c.bf16 %v2375_v44, %v2371_v45 }
 0x210   :  { %2860 = vmatpush.bf16.msra.mxu0 %v2643_v12  ;;  %2873 = vmatpush.bf16.msra.mxu1 %v2675_v4  ;;  %v2731_v60 = vpack.c.bf16 %v2583_v58, %v2579_v50  ;;  %v2255_v12 = vunpack.c.3.s8 %v2083_v6  ;;  %v2663_v4 = vpack.c.bf16 %v2447_v62, %v2443_v63  ;;  %v2727_v23 = vpack.c.bf16 %v2575_v14, %v2571_v0 }
 0x211   :  { %2886 = vmatpush.bf16.msra.mxu2 %v2707_v10  ;;  %2899 = vmatpush.bf16.msra.mxu3 %v2739_v48  ;;  %v2631_v7 = vpack.c.bf16 %v2383_v8, %v2379_v30  ;;  %v2499_v54 = vcvt.s32.f32 %v2243_v18  ;;  %v2311_v32 = vunpack.c.1.s8 %v2099_v56  ;;  %v2659_v9 = vpack.c.bf16 %v2439_v55, %v2435_v31  ;;  %v2108_v55 = vld [vmem:[#allocation11 + $0x1d8] sm:$0xff] }
 0x212   :  { %2813 = vmatmul.bf16.vlgmr.msrb.gmra.mxu0 %v3844_v51  ;;  %2826 = vmatmul.bf16.vlgmr.msrb.gmra.mxu1 %v3846_v1  ;;  %v2511_v10 = vcvt.s32.f32 %v2255_v12  ;;  %v2240_v43 = vunpack.c.3.s8 %v2080_v49  ;;  %v2300_v42 = vunpack.c.2.s8 %v2096_v5  ;;  %v2364_v53 = vunpack.c.2.s8 %v2112_v2 }
 0x213   :  { %2839 = vmatmul.bf16.vlgmr.msrb.gmra.mxu2 %v3852_v59  ;;  %2852 = vmatmul.bf16.vlgmr.msrb.gmra.mxu3 %v3854_v15  ;;  %v2567_v52 = vcvt.s32.f32 %v2311_v32  ;;  %v2368_v50 = vunpack.c.3.s8 %v2112_v2  ;;  %v2228_v8 = vunpack.c.0.s8 %v2080_v49  ;;  %v2232_v57 = vunpack.c.1.s8 %v2080_v49 }
 0x214   :  { %2861 = vmatpush.bf16.msra.mxu0 %v2639_v24  ;;  %2874 = vmatpush.bf16.msra.mxu1 %v2671_v28  ;;  %v2695_v48 = vpack.c.bf16 %v2511_v10, %v2507_v40  ;;  %v2064_v24 = vld [vmem:[#allocation11 + $0x78] sm:$0xff]  ;;  %v2307_v28 = vunpack.c.0.s8 %v2099_v56  ;;  %v2496_v6 = vcvt.s32.f32 %v2240_v43  ;;  %v2556_v16 = vcvt.s32.f32 %v2300_v42 }
 0x215   :  { %2887 = vmatpush.bf16.msra.mxu2 %v2703_v22  ;;  %2900 = vmatpush.bf16.msra.mxu3 %v2735_v19  ;;  %v2503_v22 = vcvt.s32.f32 %v2247_v41  ;;  %v2172_v20 = vunpack.c.2.s8 %v2064_v24  ;;  %v2176_v3 = vunpack.c.3.s8 %v2064_v24  ;;  %v2236_v19 = vunpack.c.2.s8 %v2080_v49  ;;  %v2076_v10 = vld [vmem:[#allocation11 + $0xd8] sm:$0xff] }
 0x216   :  { %v2563_v26 = vcvt.s32.f32 %v2307_v28  ;;  %v2164_v34 = vunpack.c.0.s8 %v2064_v24  ;;  %v2168_v56 = vunpack.c.1.s8 %v2064_v24  ;;  %v2624_v30 = vcvt.s32.f32 %v2368_v50 }
 0x217   :  { %v2691_v61 = vpack.c.bf16 %v2503_v22, %v2499_v54  ;;  %v2428_v36 = vcvt.s32.f32 %v2172_v20  ;;  %v2492_v25 = vcvt.s32.f32 %v2236_v19  ;;  %v2292_v12 = vunpack.c.0.s8 %v2096_v5 }
 0x218   :  { %2862 = vmatpush.bf16.msra.mxu0 %v2635_v17  ;;  %2875 = vmatpush.bf16.msra.mxu1 %v2667_v21  ;;  %v2432_v17 = vcvt.s32.f32 %v2176_v3  ;;  %v2723_v38 = vpack.c.bf16 %v2567_v52, %v2563_v26  ;;  %v2304_v21 = vunpack.c.3.s8 %v2096_v5  ;;  %v2420_v63 = vcvt.s32.f32 %v2164_v34 }
 0x219   :  { %2888 = vmatpush.bf16.msra.mxu2 %v2699_v35  ;;  %2901 = vmatpush.bf16.msra.mxu3 %v2731_v60  ;;  %v2688_v58 = vpack.c.bf16 %v2496_v6, %v2492_v25  ;;  %v2620_v35 = vcvt.s32.f32 %v2364_v53  ;;  %v2424_v62 = vcvt.s32.f32 %v2168_v56  ;;  %v2484_v46 = vcvt.s32.f32 %v2228_v8  ;;  %v2088_v8 = vld [vmem:[#allocation11 + $0x138] sm:$0xff] }
 0x21a   :  { %v2656_v27 = vpack.c.bf16 %v2432_v17, %v2428_v36  ;;  %v2560_v37 = vcvt.s32.f32 %v2304_v21  ;;  %v2488_v39 = vcvt.s32.f32 %v2232_v57  ;;  %v2548_v47 = vcvt.s32.f32 %v2292_v12 }
 0x21b   :  { %v2752_v40 = vpack.c.bf16 %v2624_v30, %v2620_v35  ;;  %v2652_v13 = vpack.c.bf16 %v2424_v62, %v2420_v63  ;;  %v2356_v0 = vunpack.c.0.s8 %v2112_v2  ;;  %v2360_v14 = vunpack.c.1.s8 %v2112_v2 }
 0x21c   :  { %2863 = vmatpush.bf16.msra.mxu0 %v2631_v7  ;;  %2876 = vmatpush.bf16.msra.mxu1 %v2663_v4  ;;  %v2720_v60 = vpack.c.bf16 %v2560_v37, %v2556_v16  ;;  %v2060_v7 = vld [vmem:[#allocation11 + $0x58] sm:$0xff]  ;;  %v2296_v4 = vunpack.c.1.s8 %v2096_v5  ;;  %v2684_v29 = vpack.c.bf16 %v2488_v39, %v2484_v46  ;;  %v2224_v31 = vunpack.c.3.s8 %v2076_v10 }
 0x21d   :  { %2889 = vmatpush.bf16.msra.mxu2 %v2695_v48  ;;  %2902 = vmatpush.bf16.msra.mxu3 %v2727_v23  ;;  %v2156_v45 = vunpack.c.2.s8 %v2060_v7  ;;  %v2160_v44 = vunpack.c.3.s8 %v2060_v7  ;;  %v2612_v18 = vcvt.s32.f32 %v2356_v0  ;;  %v2616_v24 = vcvt.s32.f32 %v2360_v14  ;;  %v2072_v37 = vld [vmem:[#allocation11 + $0xb8] sm:$0xff] }
 0x21e   :  { %v2552_v48 = vcvt.s32.f32 %v2296_v4  ;;  %v2220_v23 = vunpack.c.2.s8 %v2076_v10  ;;  %v2284_v54 = vunpack.c.2.s8 %v2092_v11  ;;  %v2480_v5 = vcvt.s32.f32 %v2224_v31  ;;  %v2104_v39 = vld [vmem:[#allocation11 + $0x1b8] sm:$0xff] }
 0x21f   :  { %v2412_v49 = vcvt.s32.f32 %v2156_v45  ;;  %v2748_v28 = vpack.c.bf16 %v2616_v24, %v2612_v18  ;;  %v2348_v3 = vunpack.c.2.s8 %v2108_v55  ;;  %v2352_v26 = vunpack.c.3.s8 %v2108_v55 }
 0x220   :  { %2864 = vmatpush.bf16.msra.mxu0 %v2627_v33  ;;  %2877 = vmatpush.bf16.msra.mxu1 %v2659_v9  ;;  %v2716_v41 = vpack.c.bf16 %v2552_v48, %v2548_v47  ;;  %v2416_v33 = vcvt.s32.f32 %v2160_v44  ;;  %v2476_v32 = vcvt.s32.f32 %v2220_v23  ;;  %v2288_v9 = vunpack.c.3.s8 %v2092_v11 }
 0x221   :  { %2890 = vmatpush.bf16.msra.mxu2 %v2691_v61  ;;  %2903 = vmatpush.bf16.msra.mxu3 %v2723_v38  ;;  %v2540_v20 = vcvt.s32.f32 %v2284_v54  ;;  %v2148_v43 = vunpack.c.0.s8 %v2060_v7  ;;  %v2152_v2 = vunpack.c.1.s8 %v2060_v7  ;;  %v2604_v61 = vcvt.s32.f32 %v2348_v3 }
 0x222   :  { %v2648_v22 = vpack.c.bf16 %v2416_v33, %v2412_v49  ;;  %v2680_v52 = vpack.c.bf16 %v2480_v5, %v2476_v32  ;;  %v2544_v19 = vcvt.s32.f32 %v2288_v9  ;;  %v2608_v36 = vcvt.s32.f32 %v2352_v26 }
 0x223   :  { %2865 = vmatmul.bf16.vlgmr.msra.gmra.mxu0 %v3844_v51  ;;  %2878 = vmatmul.bf16.vlgmr.msra.gmra.mxu1 %v3846_v1  ;;  %v2212_v17 = vunpack.c.0.s8 %v2076_v10  ;;  %v2216_v42 = vunpack.c.1.s8 %v2076_v10  ;;  %v2404_v25 = vcvt.s32.f32 %v2148_v43  ;;  %v2408_v6 = vcvt.s32.f32 %v2152_v2 }
 0x224   :  { %2909 = vmatpush.bf16.msrb.mxu0 %v2656_v27  ;;  %2922 = vmatpush.bf16.msrb.mxu1 %v2688_v58  ;;  %v2712_v38 = vpack.c.bf16 %v2544_v19, %v2540_v20  ;;  %v2276_v21 = vunpack.c.0.s8 %v2092_v11  ;;  %v2056_v27 = vld [vmem:[#allocation11 + $0x38] sm:$0xff]  ;;  %v2744_v16 = vpack.c.bf16 %v2608_v36, %v2604_v61  ;;  %v2280_v58 = vunpack.c.1.s8 %v2092_v11 }
 0x225   :  { %2935 = vmatpush.bf16.msrb.mxu2 %v2720_v60  ;;  %2948 = vmatpush.bf16.msrb.mxu3 %v2752_v40  ;;  %v2468_v53 = vcvt.s32.f32 %v2212_v17  ;;  %v2472_v50 = vcvt.s32.f32 %v2216_v42  ;;  %v2644_v34 = vpack.c.bf16 %v2408_v6, %v2404_v25  ;;  %v2340_v35 = vunpack.c.0.s8 %v2108_v55  ;;  %v2068_v19 = vld [vmem:[#allocation11 + $0x98] sm:$0xff] }
 0x226   :  { %2891 = vmatmul.bf16.vlgmr.msra.gmra.mxu2 %v3852_v59  ;;  %2904 = vmatmul.bf16.vlgmr.msra.gmra.mxu3 %v3854_v15  ;;  %v2532_v56 = vcvt.s32.f32 %v2276_v21  ;;  %v2344_v30 = vunpack.c.1.s8 %v2108_v55  ;;  %v2536_v60 = vcvt.s32.f32 %v2280_v58  ;;  %v2140_v63 = vunpack.c.2.s8 %v2056_v27  ;;  %v2084_v17 = vld [vmem:[#allocation11 + $0x118] sm:$0xff] }
 0x227   :  { %v2676_v57 = vpack.c.bf16 %v2472_v50, %v2468_v53  ;;  %v2144_v62 = vunpack.c.3.s8 %v2056_v27  ;;  %v2596_v12 = vcvt.s32.f32 %v2340_v35  ;;  %v2204_v40 = vunpack.c.2.s8 %v2072_v37  ;;  %v2100_v50 = vld [vmem:[#allocation11 + $0x198] sm:$0xff] }
 0x228   :  { %2910 = vmatpush.bf16.msrb.mxu0 %v2652_v13  ;;  %2923 = vmatpush.bf16.msrb.mxu1 %v2684_v29  ;;  %v2600_v7 = vcvt.s32.f32 %v2344_v30  ;;  %v2208_v46 = vunpack.c.3.s8 %v2072_v37  ;;  %v2708_v4 = vpack.c.bf16 %v2536_v60, %v2532_v56  ;;  %v2396_v10 = vcvt.s32.f32 %v2140_v63 }
 0x229   :  { %2936 = vmatpush.bf16.msrb.mxu2 %v2716_v41  ;;  %2949 = vmatpush.bf16.msrb.mxu3 %v2748_v28  ;;  %v2400_v13 = vcvt.s32.f32 %v2144_v62  ;;  %v2268_v47 = vunpack.c.2.s8 %v2088_v8  ;;  %v2460_v14 = vcvt.s32.f32 %v2204_v40  ;;  %v2272_v29 = vunpack.c.3.s8 %v2088_v8 }
 0x22a   :  { %v2740_v0 = vpack.c.bf16 %v2600_v7, %v2596_v12  ;;  %v2464_v11 = vcvt.s32.f32 %v2208_v46  ;;  %v2332_v44 = vunpack.c.2.s8 %v2104_v39  ;;  %v2336_v18 = vunpack.c.3.s8 %v2104_v39 }
 0x22b   :  { %v2640_v48 = vpack.c.bf16 %v2400_v13, %v2396_v10  ;;  %v2524_v45 = vcvt.s32.f32 %v2268_v47  ;;  %v2528_v23 = vcvt.s32.f32 %v2272_v29  ;;  %v2132_v31 = vunpack.c.0.s8 %v2056_v27 }
 0x22c   :  { %2911 = vmatpush.bf16.msrb.mxu0 %v2648_v22  ;;  %2924 = vmatpush.bf16.msrb.mxu1 %v2680_v52  ;;  %v2672_v24 = vpack.c.bf16 %v2464_v11, %v2460_v14  ;;  %v2136_v55 = vunpack.c.1.s8 %v2056_v27  ;;  %v2588_v41 = vcvt.s32.f32 %v2332_v44  ;;  %v2592_v49 = vcvt.s32.f32 %v2336_v18  ;;  %v2052_v22 = vld [vmem:[#allocation11 + $0x18] sm:$0xff] }
 0x22d   :  { %2937 = vmatpush.bf16.msrb.mxu2 %v2712_v38  ;;  %2950 = vmatpush.bf16.msrb.mxu3 %v2744_v16  ;;  %v2196_v33 = vunpack.c.0.s8 %v2072_v37  ;;  %v2200_v54 = vunpack.c.1.s8 %v2072_v37  ;;  %v2704_v28 = vpack.c.bf16 %v2528_v23, %v2524_v45  ;;  %v2388_v32 = vcvt.s32.f32 %v2132_v31 }
 0x22e   :  { %v2392_v5 = vcvt.s32.f32 %v2136_v55  ;;  %v2260_v9 = vunpack.c.0.s8 %v2088_v8  ;;  %v2736_v20 = vpack.c.bf16 %v2592_v49, %v2588_v41  ;;  %v2264_v52 = vunpack.c.1.s8 %v2088_v8  ;;  %v2999_v49 = vld [vmem:[#allocation14 + $0x10] sm:$0xff] }
 0x22f   :  { %v2452_v3 = vcvt.s32.f32 %v2196_v33  ;;  %v2456_v26 = vcvt.s32.f32 %v2200_v54  ;;  %v2324_v61 = vunpack.c.0.s8 %v2104_v39  ;;  %v2328_v36 = vunpack.c.1.s8 %v2104_v39 }
 0x230   :  { %2912 = vmatpush.bf16.msrb.mxu0 %v2644_v34  ;;  %2925 = vmatpush.bf16.msrb.mxu1 %v2676_v57  ;;  %v2636_v43 = vpack.c.bf16 %v2392_v5, %v2388_v32  ;;  %v2516_v2 = vcvt.s32.f32 %v2260_v9  ;;  %v2520_v38 = vcvt.s32.f32 %v2264_v52  ;;  %v2124_v25 = vunpack.c.2.s8 %v2052_v22 }
 0x231   :  { %2938 = vmatpush.bf16.msrb.mxu2 %v2708_v4  ;;  %2951 = vmatpush.bf16.msrb.mxu3 %v2740_v0  ;;  %v2668_v42 = vpack.c.bf16 %v2456_v26, %v2452_v3  ;;  %v2128_v6 = vunpack.c.3.s8 %v2052_v22  ;;  %v2580_v21 = vcvt.s32.f32 %v2324_v61  ;;  %v2584_v27 = vcvt.s32.f32 %v2328_v36 }
 0x232   :  { %v2188_v16 = vunpack.c.2.s8 %v2068_v19  ;;  %v2192_v53 = vunpack.c.3.s8 %v2068_v19  ;;  %v2700_v58 = vpack.c.bf16 %v2520_v38, %v2516_v2  ;;  %v2380_v37 = vcvt.s32.f32 %v2124_v25 }
 0x233   :  { %v2384_v34 = vcvt.s32.f32 %v2128_v6  ;;  %v2252_v56 = vunpack.c.2.s8 %v2084_v17  ;;  %v2732_v35 = vpack.c.bf16 %v2584_v27, %v2580_v21  ;;  %v2256_v57 = vunpack.c.3.s8 %v2084_v17 }
 0x234   :  { %2913 = vmatpush.bf16.msrb.mxu0 %v2640_v48  ;;  %2926 = vmatpush.bf16.msrb.mxu1 %v2672_v24  ;;  %v2444_v30 = vcvt.s32.f32 %v2188_v16  ;;  %v2448_v8 = vcvt.s32.f32 %v2192_v53  ;;  %v2316_v62 = vunpack.c.2.s8 %v2100_v50  ;;  %v2320_v12 = vunpack.c.3.s8 %v2100_v50  ;;  %v3000_v48 = vld [vmem:[#allocation14 + $0x18] sm:$0xff]  ;;  %v2998_v16 = vld [vmem:[#allocation14 + $0x8] sm:$0xff] }
 0x235   :  { %2939 = vmatpush.bf16.msrb.mxu2 %v2704_v28  ;;  %2952 = vmatpush.bf16.msrb.mxu3 %v2736_v20  ;;  %v2632_v60 = vpack.c.bf16 %v2384_v34, %v2380_v37  ;;  %v2508_v63 = vcvt.s32.f32 %v2252_v56  ;;  %v2512_v40 = vcvt.s32.f32 %v2256_v57  ;;  %v2116_v46 = vunpack.c.0.s8 %v2052_v22  ;;  %v3004_v53 = vld [vmem:[#allocation14 + $0x38] sm:$0xff] }
 0x236   :  { %v2664_v7 = vpack.c.bf16 %v2448_v8, %v2444_v30  ;;  %v2120_v39 = vunpack.c.1.s8 %v2052_v22  ;;  %v2572_v4 = vcvt.s32.f32 %v2316_v62  ;;  %v2576_v10 = vcvt.s32.f32 %v2320_v12 }
 0x237   :  { %v2180_v13 = vunpack.c.0.s8 %v2068_v19  ;;  %v2184_v47 = vunpack.c.1.s8 %v2068_v19  ;;  %v2696_v0 = vpack.c.bf16 %v2512_v40, %v2508_v63  ;;  %v2372_v14 = vcvt.s32.f32 %v2116_v46 }
 0x238   :  { %2914 = vmatpush.bf16.msrb.mxu0 %v2636_v43  ;;  %2927 = vmatpush.bf16.msrb.mxu1 %v2668_v42  ;;  %v2376_v11 = vcvt.s32.f32 %v2120_v39  ;;  %v2244_v29 = vunpack.c.0.s8 %v2084_v17  ;;  %v2728_v45 = vpack.c.bf16 %v2576_v10, %v2572_v4  ;;  %v2248_v24 = vunpack.c.1.s8 %v2084_v17  ;;  %v2997_v4 = vld [vmem:[#allocation14] sm:$0xff]  ;;  %v3003_v10 = vld [vmem:[#allocation14 + $0x30] sm:$0xff] }
 0x239   :  { %2940 = vmatpush.bf16.msrb.mxu2 %v2700_v58  ;;  %2953 = vmatpush.bf16.msrb.mxu3 %v2732_v35  ;;  %v2436_v44 = vcvt.s32.f32 %v2180_v13  ;;  %v2440_v18 = vcvt.s32.f32 %v2184_v47  ;;  %v2308_v55 = vunpack.c.0.s8 %v2100_v50  ;;  %v2312_v41 = vunpack.c.1.s8 %v2100_v50 }
 0x23a   :  { %v2628_v23 = vpack.c.bf16 %v2376_v11, %v2372_v14  ;;  %v2500_v31 = vcvt.s32.f32 %v2244_v29  ;;  %v2504_v54 = vcvt.s32.f32 %v2248_v24  ;;  %v3027_v28 = vunpack.c.2.s8 %v3000_v48 }
 0x23b   :  { %v2660_v33 = vpack.c.bf16 %v2440_v18, %v2436_v44  ;;  %v3028_v32 = vunpack.c.3.s8 %v3000_v48  ;;  %v2564_v5 = vcvt.s32.f32 %v2308_v55  ;;  %v2568_v9 = vcvt.s32.f32 %v2312_v41  ;;  %v3008_v55 = vld [vmem:[#allocation14 + $0x58] sm:$0xff] }
 0x23c   :  { %2915 = vmatpush.bf16.msrb.mxu0 %v2632_v60  ;;  %2928 = vmatpush.bf16.msrb.mxu1 %v2664_v7  ;;  %v3025_v22 = vunpack.c.0.s8 %v3000_v48  ;;  %v3026_v20 = vunpack.c.1.s8 %v3000_v48  ;;  %v2692_v3 = vpack.c.bf16 %v2504_v54, %v2500_v31  ;;  %v3091_v26 = vcvt.s32.f32 %v3027_v28  ;;  %v3002_v31 = vld [vmem:[#allocation14 + $0x28] sm:$0xff] }
 0x23d   :  { %2941 = vmatpush.bf16.msrb.mxu2 %v2696_v0  ;;  %2954 = vmatpush.bf16.msrb.mxu3 %v2728_v45  ;;  %v3092_v52 = vcvt.s32.f32 %v3028_v32  ;;  %v3023_v19 = vunpack.c.2.s8 %v2999_v49  ;;  %v2724_v43 = vpack.c.bf16 %v2568_v9, %v2564_v5  ;;  %v3024_v36 = vunpack.c.3.s8 %v2999_v49 }
 0x23e   :  { %v3089_v2 = vcvt.s32.f32 %v3025_v22  ;;  %v3090_v61 = vcvt.s32.f32 %v3026_v20  ;;  %v3021_v21 = vunpack.c.0.s8 %v2999_v49  ;;  %v3022_v27 = vunpack.c.1.s8 %v2999_v49 }
 0x23f   :  { %v3148_v17 = vpack.c.bf16 %v3092_v52, %v3091_v26  ;;  %v3087_v38 = vcvt.s32.f32 %v3023_v19  ;;  %v3088_v25 = vcvt.s32.f32 %v3024_v36  ;;  %v3020_v50 = vunpack.c.3.s8 %v2998_v16 }
 0x240   :  { %2916 = vmatpush.bf16.msrb.mxu0 %v2628_v23  ;;  %2929 = vmatpush.bf16.msrb.mxu1 %v2660_v33  ;;  %v3147_v42 = vpack.c.bf16 %v3090_v61, %v3089_v2  ;;  %v3043_v58 = vunpack.c.2.s8 %v3004_v53  ;;  %v3044_v37 = vunpack.c.3.s8 %v3004_v53  ;;  %v3086_v34 = vcvt.s32.f32 %v3022_v27 }
 0x241   :  { %2942 = vmatpush.bf16.msrb.mxu2 %v2692_v3  ;;  %2955 = vmatpush.bf16.msrb.mxu3 %v2724_v43  ;;  %v3146_v6 = vpack.c.bf16 %v3088_v25, %v3087_v38  ;;  %v3084_v35 = vcvt.s32.f32 %v3020_v50  ;;  %v3017_v60 = vunpack.c.0.s8 %v2998_v16  ;;  %v3018_v63 = vunpack.c.1.s8 %v2998_v16 }
 0x242   :  { %v3107_v30 = vcvt.s32.f32 %v3043_v58  ;;  %v3108_v8 = vcvt.s32.f32 %v3044_v37  ;;  %v3041_v62 = vunpack.c.0.s8 %v3004_v53  ;;  %v3042_v12 = vunpack.c.1.s8 %v3004_v53 }
 0x243   :  { %2917 = vmatmul.bf16.vlgmr.msrb.gmra.mxu0 %v3844_v51  ;;  %2930 = vmatmul.bf16.vlgmr.msrb.gmra.mxu1 %v3846_v1  ;;  %v3019_v51 = vunpack.c.2.s8 %v2998_v16  ;;  %v3085_v1 = vcvt.s32.f32 %v3021_v21  ;;  %v3081_v7 = vcvt.s32.f32 %v3017_v60  ;;  %v3082_v40 = vcvt.s32.f32 %v3018_v63 }
 0x244   :  { %3173 = vmatpush.bf16.msra.mxu0 %v3148_v17  ;;  %2943 = vmatmul.bf16.vlgmr.msrb.gmra.mxu2 %v3852_v59  ;;  %v3156_v57 = vpack.c.bf16 %v3108_v8, %v3107_v30  ;;  %v3105_v46 = vcvt.s32.f32 %v3041_v62  ;;  %v3106_v39 = vcvt.s32.f32 %v3042_v12  ;;  %v3015_v0 = vunpack.c.2.s8 %v2997_v4 }
 0x245   :  { %2956 = vmatmul.bf16.vlgmr.msrb.gmra.mxu3 %v3854_v15  ;;  %v3083_v56 = vcvt.s32.f32 %v3019_v51  ;;  %v3145_v59 = vpack.c.bf16 %v3086_v34, %v3085_v1  ;;  %v3143_v13 = vpack.c.bf16 %v3082_v40, %v3081_v7  ;;  %v3016_v14 = vunpack.c.3.s8 %v2997_v4  ;;  %v3001_v1 = vld [vmem:[#allocation14 + $0x20] sm:$0xff]  ;;  %v3007_v34 = vld [vmem:[#allocation14 + $0x50] sm:$0xff]  ;;  %v3006_v40 = vld [vmem:[#allocation14 + $0x48] sm:$0xff] }
 0x246   :  { %3186 = vmatpush.bf16.msra.mxu1 %v3156_v57  ;;  %v3155_v47 = vpack.c.bf16 %v3106_v39, %v3105_v46  ;;  %v3039_v11 = vunpack.c.2.s8 %v3003_v10  ;;  %v3040_v29 = vunpack.c.3.s8 %v3003_v10  ;;  %v3013_v48 = vunpack.c.0.s8 %v2997_v4  ;;  %v3924_v46 = vld [vmem:[%s3950_s5] sm:$0xf] }
 0x247   :  { %v3144_v15 = vpack.c.bf16 %v3084_v35, %v3083_v56  ;;  %v3014_v45 = vunpack.c.1.s8 %v2997_v4  ;;  %v3079_v44 = vcvt.s32.f32 %v3015_v0  ;;  %v3080_v18 = vcvt.s32.f32 %v3016_v14 }
 0x248   :  { %3174 = vmatpush.bf16.msra.mxu0 %v3147_v42  ;;  %v3037_v24 = vunpack.c.0.s8 %v3003_v10  ;;  %v3038_v23 = vunpack.c.1.s8 %v3003_v10  ;;  %v3103_v41 = vcvt.s32.f32 %v3039_v11  ;;  %v3104_v49 = vcvt.s32.f32 %v3040_v29 }
 0x249   :  { %v3077_v33 = vcvt.s32.f32 %v3013_v48  ;;  %v3078_v54 = vcvt.s32.f32 %v3014_v45  ;;  %v3142_v28 = vpack.c.bf16 %v3080_v18, %v3079_v44  ;;  %v3035_v9 = vunpack.c.2.s8 %v3002_v31  ;;  %v3926_v45 = vld [vmem:[#allocation12] sm:$0xf] }
 0x24a   :  { %3187 = vmatpush.bf16.msra.mxu1 %v3155_v47  ;;  %v3101_v32 = vcvt.s32.f32 %v3037_v24  ;;  %v3102_v5 = vcvt.s32.f32 %v3038_v23  ;;  %v3154_v22 = vpack.c.bf16 %v3104_v49, %v3103_v41  ;;  %v3036_v20 = vunpack.c.3.s8 %v3002_v31 }
 0x24b   :  { %v3059_v3 = vunpack.c.2.s8 %v3008_v55  ;;  %v3141_v26 = vpack.c.bf16 %v3078_v54, %v3077_v33  ;;  %v3060_v52 = vunpack.c.3.s8 %v3008_v55  ;;  %v3099_v43 = vcvt.s32.f32 %v3035_v9 }
 0x24c   :  { %3175 = vmatpush.bf16.msra.mxu0 %v3146_v6  ;;  %v3153_v19 = vpack.c.bf16 %v3102_v5, %v3101_v32  ;;  %v3100_v2 = vcvt.s32.f32 %v3036_v20  ;;  %v3033_v38 = vunpack.c.0.s8 %v3002_v31  ;;  %v3034_v25 = vunpack.c.1.s8 %v3002_v31 }
 0x24d   :  { %v3123_v61 = vcvt.s32.f32 %v3059_v3  ;;  %v3124_v36 = vcvt.s32.f32 %v3060_v52  ;;  %v3057_v6 = vunpack.c.0.s8 %v3008_v55  ;;  %v3058_v21 = vunpack.c.1.s8 %v3008_v55 }
 0x24e   :  { %3188 = vmatpush.bf16.msra.mxu1 %v3154_v22  ;;  %v3152_v42 = vpack.c.bf16 %v3100_v2, %v3099_v43  ;;  %v3097_v53 = vcvt.s32.f32 %v3033_v38  ;;  %v3098_v51 = vcvt.s32.f32 %v3034_v25  ;;  %v3031_v30 = vunpack.c.2.s8 %v3001_v1 }
 0x24f   :  { %v3164_v17 = vpack.c.bf16 %v3124_v36, %v3123_v61  ;;  %v3121_v50 = vcvt.s32.f32 %v3057_v6  ;;  %v3122_v58 = vcvt.s32.f32 %v3058_v21  ;;  %v3032_v8 = vunpack.c.3.s8 %v3001_v1 }
 0x250   :  { %3176 = vmatpush.bf16.msra.mxu0 %v3145_v59  ;;  %v3151_v56 = vpack.c.bf16 %v3098_v51, %v3097_v53  ;;  %v3055_v59 = vunpack.c.2.s8 %v3007_v34  ;;  %v3056_v57 = vunpack.c.3.s8 %v3007_v34  ;;  %v3030_v60 = vunpack.c.1.s8 %v3001_v1  ;;  %v3012_v51 = vld [vmem:[#allocation14 + $0x78] sm:$0xff] }
 0x251   :  { %3199 = vmatpush.bf16.msra.mxu2 %v3164_v17  ;;  %v3163_v35 = vpack.c.bf16 %v3122_v58, %v3121_v50  ;;  %v3095_v63 = vcvt.s32.f32 %v3031_v30  ;;  %v3096_v62 = vcvt.s32.f32 %v3032_v8  ;;  %v3053_v12 = vunpack.c.0.s8 %v3007_v34  ;;  %v3005_v17 = vld [vmem:[#allocation14 + $0x40] sm:$0xff]  ;;  %v3011_v30 = vld [vmem:[#allocation14 + $0x70] sm:$0xff] }
 0x252   :  { %3189 = vmatpush.bf16.msra.mxu1 %v3153_v19  ;;  %v3054_v7 = vunpack.c.1.s8 %v3007_v34  ;;  %v3119_v39 = vcvt.s32.f32 %v3055_v59  ;;  %v3120_v4 = vcvt.s32.f32 %v3056_v57  ;;  %v3051_v11 = vunpack.c.2.s8 %v3006_v40 }
 0x253   :  { %v3150_v47 = vpack.c.bf16 %v3096_v62, %v3095_v63  ;;  %v3117_v0 = vcvt.s32.f32 %v3053_v12  ;;  %v3052_v18 = vunpack.c.3.s8 %v3006_v40  ;;  %v2963_v23 = vperm.slane %v3924_v46, 0 }
 0x254   :  { %3177 = vmatpush.bf16.msra.mxu0 %v3144_v15  ;;  %v3029_v15 = vunpack.c.0.s8 %v3001_v1  ;;  %v3118_v14 = vcvt.s32.f32 %v3054_v7  ;;  %v3162_v44 = vpack.c.bf16 %v3120_v4, %v3119_v39  ;;  %v3115_v33 = vcvt.s32.f32 %v3051_v11 }
 0x255   :  { %3200 = vmatpush.bf16.msra.mxu2 %v3163_v35  ;;  %v3116_v54 = vcvt.s32.f32 %v3052_v18  ;;  %v2977_v32 = vperm.slane %v3926_v45, 0  ;;  %v3049_v20 = vunpack.c.0.s8 %v3006_v40  ;;  %v3050_v3 = vunpack.c.1.s8 %v3006_v40 }
 0x256   :  { %3190 = vmatpush.bf16.msra.mxu1 %v3152_v42  ;;  %v3093_v10 = vcvt.s32.f32 %v3029_v15  ;;  %v3161_v49 = vpack.c.bf16 %v3118_v14, %v3117_v0  ;;  %v3047_v25 = vunpack.c.2.s8 %v3005_v17  ;;  %v3048_v6 = vunpack.c.3.s8 %v3005_v17 }
 0x257   :  { %v3160_v9 = vpack.c.bf16 %v3116_v54, %v3115_v33  ;;  %v3113_v61 = vcvt.s32.f32 %v3049_v20  ;;  %v3114_v36 = vcvt.s32.f32 %v3050_v3  ;;  %v3046_v53 = vunpack.c.1.s8 %v3005_v17 }
 0x258   :  { %3178 = vmatpush.bf16.msra.mxu0 %v3143_v13  ;;  %v3094_v13 = vcvt.s32.f32 %v3030_v60  ;;  %v3111_v21 = vcvt.s32.f32 %v3047_v25  ;;  %v3075_v58 = vunpack.c.2.s8 %v3012_v51  ;;  %v3073_v35 = vunpack.c.0.s8 %v3012_v51 }
 0x259   :  { %3201 = vmatpush.bf16.msra.mxu2 %v3162_v44  ;;  %v3159_v38 = vpack.c.bf16 %v3114_v36, %v3113_v61  ;;  %v3074_v60 = vunpack.c.1.s8 %v3012_v51  ;;  %v3071_v63 = vunpack.c.2.s8 %v3011_v30  ;;  %v2964_v12 = vperm.slane %v3924_v46, 1 }
 0x25a   :  { %3191 = vmatpush.bf16.msra.mxu1 %v3151_v56  ;;  %v3149_v41 = vpack.c.bf16 %v3094_v13, %v3093_v10  ;;  %v3110_v56 = vcvt.s32.f32 %v3046_v53  ;;  %v3139_v57 = vcvt.s32.f32 %v3075_v58  ;;  %v3137_v39 = vcvt.s32.f32 %v3073_v35 }
 0x25b   :  { %v3072_v4 = vunpack.c.3.s8 %v3011_v30  ;;  %v2978_v14 = vperm.slane %v3926_v45, 1  ;;  %v3069_v54 = vunpack.c.0.s8 %v3011_v30  ;;  %v2965_v61 = vperm.slane %v3924_v46, 2 }
 0x25c   :  { %3179 = vmatpush.bf16.msra.mxu0 %v3142_v28 }
 0x25d   :  { %3202 = vmatpush.bf16.msra.mxu2 %v3161_v49 }
 0x25e   :  { %3192 = vmatpush.bf16.msra.mxu1 %v3150_v47  ;;  %v3138_v47 = vcvt.s32.f32 %v3074_v60 }
 0x260   :  { %3180 = vmatpush.bf16.msra.mxu0 %v3141_v26  ;;  %v3171_v11 = vpack.c.bf16 %v3138_v47, %v3137_v39 }
 0x261   :  { %3203 = vmatpush.bf16.msra.mxu2 %v3160_v9  ;;  %v3010_v9 = vld [vmem:[#allocation14 + $0x68] sm:$0xff] }
 0x262   :  { %3193 = vmatpush.bf16.msra.mxu1 %v3149_v41  ;;  %v3067_v20 = vunpack.c.2.s8 %v3010_v9  ;;  %v3068_v3 = vunpack.c.3.s8 %v3010_v9  ;;  %v3065_v25 = vunpack.c.0.s8 %v3010_v9 }
 0x265   :  { %3204 = vmatpush.bf16.msra.mxu2 %v3159_v38 }
 0x27f   :  { %v2762_v27 = vpop.f32.mrf.mxu0  ;;  %v2775_v16 = vpop.f32.mrf.mxu1 }
 0x280   :  { %v2776_v37 = vadd.f32 %v2775_v16, %v2762_v27  ;;  %v3112_v27 = vcvt.s32.f32 %v3048_v6  ;;  %v3045_v16 = vunpack.c.0.s8 %v3005_v17  ;;  %v3066_v6 = vunpack.c.1.s8 %v3010_v9 }
 0x282   :  { %v3158_v1 = vpack.c.bf16 %v3112_v27, %v3111_v21  ;;  %v3109_v34 = vcvt.s32.f32 %v3045_v16  ;;  %v2979_v27 = vperm.slane %v3926_v45, 2  ;;  %v3129_v16 = vcvt.s32.f32 %v3065_v25 }
 0x283   :  { %v3130_v53 = vcvt.s32.f32 %v3066_v6 }
 0x284   :  { %3205 = vmatpush.bf16.msra.mxu2 %v3158_v1  ;;  %v3157_v10 = vpack.c.bf16 %v3110_v56, %v3109_v34 }
 0x285   :  { %v3167_v58 = vpack.c.bf16 %v3130_v53, %v3129_v16 }
 0x286   :  { %v2788_v29 = vpop.f32.mrf.mxu2  ;;  %v2801_v48 = vpop.f32.mrf.mxu3 }
 0x287   :  { %v2789_v24 = vadd.f32 %v2788_v29, %v2776_v37  ;;  %v2764_v31 = vpop.f32.mrf.mxu0  ;;  %v2777_v55 = vpop.f32.mrf.mxu1  ;;  %v3076_v37 = vunpack.c.3.s8 %v3012_v51  ;;  %v3135_v29 = vcvt.s32.f32 %v3071_v63  ;;  %v3009_v51 = vld [vmem:[#allocation14 + $0x60] sm:$0xff] }
 0x288   :  { %3206 = vmatpush.bf16.msra.mxu2 %v3157_v10  ;;  %v3064_v1 = vunpack.c.3.s8 %v3009_v51  ;;  %v3062_v60 = vunpack.c.1.s8 %v3009_v51 }
 0x289   :  { %v2802_v28 = vadd.f32 %v2801_v48, %v2789_v24  ;;  %v3140_v15 = vcvt.s32.f32 %v3076_v37  ;;  %v3136_v48 = vcvt.s32.f32 %v3072_v4  ;;  %v3063_v37 = vunpack.c.2.s8 %v3009_v51 }
 0x28a   :  { %v3128_v35 = vcvt.s32.f32 %v3064_v1 }
 0x28b   :  { %v2971_v5 = vmul.f32 %v2963_v23, %v2802_v28  ;;  %v3172_v13 = vpack.c.bf16 %v3140_v15, %v3139_v57  ;;  %v3170_v31 = vpack.c.bf16 %v3136_v48, %v3135_v29  ;;  %v3070_v28 = vunpack.c.1.s8 %v3011_v30 }
 0x28c   :  { %v3127_v56 = vcvt.s32.f32 %v3063_v37  ;;  %v3061_v15 = vunpack.c.0.s8 %v3009_v51  ;;  %v2980_v48 = vperm.slane %v3926_v45, 3 }
 0x28d   :  { %v2985_v22 = vadd.f32 %v2977_v32, %v2971_v5  ;;  %3212 = vmatpush.bf16.msra.mxu3 %v3172_v13  ;;  %v3133_v32 = vcvt.s32.f32 %v3069_v54  ;;  %v3134_v5 = vcvt.s32.f32 %v3070_v28 }
 0x28e   :  { %v2790_v26 = vpop.f32.mrf.mxu2  ;;  %v2803_v52 = vpop.f32.mrf.mxu3  ;;  %v3166_v57 = vpack.c.bf16 %v3128_v35, %v3127_v56 }
 0x28f   :  { %v2989_v19 = vmax.f32 %v2985_v22, 0.0  ;;  %v2814_v43 = vpop.f32.mrf.mxu0  ;;  %v2827_v2 = vpop.f32.mrf.mxu1  ;;  %v3169_v22 = vpack.c.bf16 %v3134_v5, %v3133_v32  ;;  %v3131_v52 = vcvt.s32.f32 %v3067_v20  ;;  %v3269_v20 = vld [vmem:[%s3954_s9] ss:$0 sm:$0xff] }
 0x290   :  { %v2828_v50 = vadd.f32 %v2827_v2, %v2814_v43 }
 0x291   :  { %v2993_v42 = vpack.c.bf16 %v2989_v19, %v2989_v19  ;;  %3213 = vmatpush.bf16.msra.mxu3 %v3171_v11  ;;  %v3132_v19 = vcvt.s32.f32 %v3068_v3  ;;  %v2966_v11 = vperm.slane %v3924_v46, 3  ;;  %v3268_v46 = vld [vmem:[%s3953_s8] ss:$0 sm:$0xff] }
 0x293   :  { %3181 = vmatmul.bf16.vlgmr.msra.gmra.mxu0 %v2993_v42  ;;  %v3168_v38 = vpack.c.bf16 %v3132_v19, %v3131_v52 }
 0x295   :  { %3214 = vmatpush.bf16.msra.mxu3 %v3170_v31 }
 0x296   :  { %v2840_v8 = vpop.f32.mrf.mxu2  ;;  %v2853_v59 = vpop.f32.mrf.mxu3 }
 0x297   :  { %v2841_v62 = vadd.f32 %v2840_v8, %v2828_v50  ;;  %v2816_v7 = vpop.f32.mrf.mxu0  ;;  %v2829_v40 = vpop.f32.mrf.mxu1 }
 0x299   :  { %v2854_v0 = vadd.f32 %v2853_v59, %v2841_v62  ;;  %3215 = vmatpush.bf16.msra.mxu3 %v3169_v22  ;;  %v3125_v62 = vcvt.s32.f32 %v3061_v15 }
 0x29b   :  { %v2972_v44 = vmul.f32 %v2964_v12, %v2854_v0  ;;  %v3126_v12 = vcvt.s32.f32 %v3062_v60 }
 0x29d   :  { %v2986_v18 = vadd.f32 %v2978_v14, %v2972_v44  ;;  %3216 = vmatpush.bf16.msra.mxu3 %v3168_v38  ;;  %v3165_v7 = vpack.c.bf16 %v3126_v12, %v3125_v62 }
 0x29e   :  { %v2842_v24 = vpop.f32.mrf.mxu2  ;;  %v2855_v23 = vpop.f32.mrf.mxu3 }
 0x29f   :  { %v2990_v55 = vmax.f32 %v2986_v18, 0.0 }
 0x2a0   :  { %v2866_v41 = vpop.f32.mrf.mxu0  ;;  %v2879_v33 = vpop.f32.mrf.mxu1 }
 0x2a1   :  { %v2994_v49 = vpack.c.bf16 %v2990_v55, %v2990_v55  ;;  %v2880_v26 = vadd.f32 %v2879_v33, %v2866_v41  ;;  %3217 = vmatpush.bf16.msra.mxu3 %v3167_v58 }
 0x2a3   :  { %3194 = vmatmul.bf16.vlgmr.msra.gmra.mxu1 %v2994_v49 }
 0x2a5   :  { %3218 = vmatpush.bf16.msra.mxu3 %v3166_v57 }
 0x2a8   :  { %v2868_v17 = vpop.f32.mrf.mxu0  ;;  %v2881_v42 = vpop.f32.mrf.mxu1 }
 0x2a9   :  { %v2892_v43 = vpop.f32.mrf.mxu2  ;;  %v2905_v2 = vpop.f32.mrf.mxu3  ;;  %3219 = vmatpush.bf16.msra.mxu3 %v3165_v7 }
 0x2aa   :  { %v2893_v36 = vadd.f32 %v2892_v43, %v2880_v26 }
 0x2ac   :  { %v2906_v21 = vadd.f32 %v2905_v2, %v2893_v36 }
 0x2ae   :  { %v2973_v50 = vmul.f32 %v2965_v61, %v2906_v21 }
 0x2b0   :  { %v2987_v34 = vadd.f32 %v2979_v27, %v2973_v50 }
 0x2b1   :  { %v2894_v30 = vpop.f32.mrf.mxu2  ;;  %v2907_v8 = vpop.f32.mrf.mxu3 }
 0x2b2   :  { %v2991_v59 = vmax.f32 %v2987_v34, 0.0 }
 0x2b4   :  { %v2995_v63 = vpack.c.bf16 %v2991_v59, %v2991_v59 }
 0x2b6   :  { %3207 = vmatmul.bf16.vlgmr.msra.gmra.mxu2 %v2995_v63 }
 0x2c0   :  { %v2918_v40 = vpop.f32.mrf.mxu0  ;;  %v2931_v39 = vpop.f32.mrf.mxu1 }
 0x2c1   :  { %v2932_v4 = vadd.f32 %v2931_v39, %v2918_v40 }
 0x2c7   :  { %v2944_v13 = vpop.f32.mrf.mxu2 }
 0x2c8   :  { %v2920_v10 = vpop.f32.mrf.mxu0  ;;  %v2933_v47 = vpop.f32.mrf.mxu1  ;;  %v2945_v0 = vadd.f32 %v2944_v13, %v2932_v4 }
 0x2c9   :  { %v2957_v14 = vpop.f32.mrf.mxu3 }
 0x2ca   :  { %v2958_v29 = vadd.f32 %v2957_v14, %v2945_v0 }
 0x2cc   :  { %v2974_v44 = vmul.f32 %v2966_v11, %v2958_v29 }
 0x2ce   :  { %v2988_v18 = vadd.f32 %v2980_v48, %v2974_v44 }
 0x2cf   :  { %v2946_v24 = vpop.f32.mrf.mxu2 }
 0x2d0   :  { %v2992_v23 = vmax.f32 %v2988_v18, 0.0 }
 0x2d1   :  { %v2959_v31 = vpop.f32.mrf.mxu3 }
 0x2d2   :  { %v2996_v55 = vpack.c.bf16 %v2992_v23, %v2992_v23 }
 0x2d4   :  { %3220 = vmatmul.bf16.vlgmr.msra.gmra.mxu3 %v2996_v55 }
 0x310   :  { %v3182_v41 = vpop.f32.mrf.mxu0 }
 0x318   :  { %v3184_v49 = vpop.f32.mrf.mxu0 }
 0x320   :  { %v3195_v33 = vpop.f32.mrf.mxu1 }
 0x321   :  { %v3196_v5 = vadd.f32 %v3195_v33, %v3182_v41 }
 0x328   :  { %v3197_v54 = vpop.f32.mrf.mxu1 }
 0x339   :  { %v3208_v28 = vpop.f32.mrf.mxu2 }
 0x33a   :  { %v3209_v9 = vadd.f32 %v3208_v28, %v3196_v5 }
 0x341   :  { %v3210_v32 = vpop.f32.mrf.mxu2 }
 0x357   :  { %v3221_v45 = vpop.f32.mrf.mxu3 }
 0x358   :  { %v3222_v22 = vadd.f32 %v3221_v45, %v3209_v9 }
 0x35a   :  { %v3229_v3 = vmul.f32 %v3268_v46, %v3222_v22 }
 0x35c   :  { %v3234_v26 = vadd.f32 %v3269_v20, %v3229_v3 }
 0x35e   :  { %3235 = vst [vmem:[#allocation15] sm:$0x3] %v3234_v26 }
 0x35f   :  { %v3223_v52 = vpop.f32.mrf.mxu3  ;;  %3246 = dma.vmem_to_hbm [thread:$0]  %s3242_s29, 32, %s3244_s12, [#allocation5]  }
 0x360   :  { %3478 = dma.done.wait [#allocation5], 32  }
 0x361   :  { %3479 = vsyncadd [#allocation5], 4294967264 }
 0x362   :  { %3251 = vsyncpa [#allocation4], 1 }
 0x363   :  { %3252 = vsyncpa [#allocation7], 1 }
 0x364   :  { %3253 = vsyncpa [#allocation10], 1 }
 0x365   :  { %3254 = vsyncpa [#allocation13], 1 }
 0x366   :  { %3255 = vsyncpa [#allocation5], 1 }

// kernel: tpu_custom_call.1
= control target key start
LH: loop header
LB: loop body
LE: loop exit
PB: predicated region body
PF: predicated region fallthrough
CT: control target
= control target key end

     0   :  { %15 = vsyncpa [#allocation4], 0  ;;  %s3945_s0 = inlined_call_operand.hbm [shape: bf16[2,1024], index: 0, kind: input, shape index: {}]   ;;  %s3946_s1 = inlined_call_operand.hbm [shape: s8[1024,512], index: 1, kind: input, shape index: {}]   ;;  %s3947_s2 = inlined_call_operand.hbm [shape: f32[1,512], index: 2, kind: input, shape index: {}]   ;;  %s3948_s3 = inlined_call_operand.hbm [shape: f32[1,512], index: 3, kind: input, shape index: {}]   ;;  %s3949_s4 = inlined_call_operand.hbm [shape: s8[512,512], index: 4, kind: input, shape index: {}]   ;;  %s3950_s5 = inlined_call_operand.vmem [shape: f32[1,512], index: 5, kind: input, shape index: {}]   ;;  %s3951_s6 = inlined_call_operand.hbm [shape: f32[1,512], index: 6, kind: input, shape index: {}]   ;;  %s3952_s7 = inlined_call_operand.hbm [shape: s8[512,128], index: 7, kind: input, shape index: {}]   ;;  %s3953_s8 = inlined_call_operand.vmem [shape: f32[1,128], index: 8, kind: input, shape index: {}]   ;;  %s3954_s9 = inlined_call_operand.vmem [shape: f32[1,128], index: 9, kind: input, shape index: {}]   ;;  %s3955_s10 = inlined_call_operand.hbm [shape: f32[2,128], index: 10, kind: output, shape index: {}]  }
   0x1   :  { %16 = vsyncpa [#allocation7], 0 }
   0x2   :  { %17 = vsyncpa [#allocation10], 0 }
   0x3   :  { %18 = vsyncpa [#allocation13], 0  ;;  %s35_s15 = sshll.u32 %s3946_s1, 4  ;;  %s36_s15 = int_to_ptr.hbm [resolvable:$true] %s35_s15 }
   0x4   :  { %19 = vsyncpa [#allocation5], 0  ;;  %s3480_s16 = smov [#allocation6]   ;;  %s60_s20 = sshll.u32 %s3948_s3, 4  ;;  %s61_s20 = int_to_ptr.hbm [resolvable:$true] %s60_s20 }
   0x5   :  { %s37_s17 = sshll.u32 %s3480_s16, 4  ;;  %s3481_s21 = smov 512   ;;  %s38_s17 = int_to_ptr.vmem [resolvable:$true] %s37_s17 }
   0x6   :  { %s3482_s22 = smov 32   ;;  %s3483_s23 = smov [#allocation9]  }
   0x7   :  { %43 = dma.hbm_to_vmem [thread:$0]  %s36_s15, 16384, %s38_s17, [#allocation7], %s3481_s21, %s3481_s21, %s3482_s22  }
   0x8   :  { %s62_s24 = sshll.u32 %s3483_s23, 4  ;;  %s86_s26 = sshll.u32 %s3951_s6, 4  ;;  %s63_s24 = int_to_ptr.vmem [resolvable:$true] %s62_s24  ;;  %s87_s26 = int_to_ptr.hbm [resolvable:$true] %s86_s26 }
   0x9   :  { %65 = dma.hbm_to_vmem [thread:$0]  %s61_s20, 64, %s63_s24, [#allocation10]  }
   0xa   :  { %s25_s3 = sshll.u32 %s3945_s0, 4  ;;  %s3484_s29 = smov [#allocation12]   ;;  %s26_s3 = int_to_ptr.hbm [resolvable:$true] %s25_s3 }
   0xb   :  { %s88_s30 = sshll.u32 %s3484_s29, 4  ;;  %s3485_s11 = smov [#allocation3]   ;;  %s89_s30 = int_to_ptr.vmem [resolvable:$true] %s88_s30 }
   0xc   :  { %91 = dma.hbm_to_vmem [thread:$0]  %s87_s26, 64, %s89_s30, [#allocation13]  }
   0xd   :  { %s27_s12 = sshll.u32 %s3485_s11, 4  ;;  %s49_s15 = sshll.u32 %s3947_s2, 4  ;;  %s28_s12 = int_to_ptr.vmem [resolvable:$true] %s27_s12  ;;  %s50_s15 = int_to_ptr.hbm [resolvable:$true] %s49_s15 }
   0xe   :  { %30 = dma.hbm_to_vmem [thread:$0]  %s26_s3, 128, %s28_s12, [#allocation4]  }
   0xf   :  { %s70_s17 = sshll.u32 %s3949_s4, 4  ;;  %s3486_s18 = smov [#allocation8]   ;;  %s71_s17 = int_to_ptr.hbm [resolvable:$true] %s70_s17 }
  0x10   :  { %s51_s0 = sshll.u32 %s3486_s18, 4  ;;  %s3487_s19 = smov [#allocation11]   ;;  %s52_s0 = int_to_ptr.vmem [resolvable:$true] %s51_s0 }
  0x11   :  { %54 = dma.hbm_to_vmem [thread:$0]  %s50_s15, 64, %s52_s0, [#allocation7]  }
  0x12   :  { %s72_s20 = sshll.u32 %s3487_s19, 4  ;;  %s96_s25 = sshll.u32 %s3952_s7, 4  ;;  %s73_s20 = int_to_ptr.vmem [resolvable:$true] %s72_s20  ;;  %s97_s25 = int_to_ptr.hbm [resolvable:$true] %s96_s25 }
  0x13   :  { %78 = dma.hbm_to_vmem [thread:$0]  %s71_s17, 8192, %s73_s20, [#allocation10], %s3481_s21, %s3481_s21, %s3482_s22  }
  0x14   :  { %s3488_s2 = smov [#allocation14]   ;;  %s3489_s4 = smov 128  }
  0x15   :  { %s98_s1 = sshll.u32 %s3488_s2, 4  ;;  %s3490_s26 = smov 8   ;;  %s99_s1 = int_to_ptr.vmem [resolvable:$true] %s98_s1 }
  0x16   :  { %104 = dma.hbm_to_vmem [thread:$0]  %s97_s25, 2048, %s99_s1, [#allocation13], %s3489_s4, %s3489_s4, %s3490_s26  }
  0x17   :  { %3470 = dma.done.wait [#allocation4], 128  }
  0x18   :  { %3471 = vsyncadd [#allocation4], 4294967168 }
  0x19   :  { %3472 = dma.done.wait [#allocation7], 16448  }
  0x1a   :  { %3473 = vsyncadd [#allocation7], 4294950848 }
  0x1b   :  { %3474 = dma.done.wait [#allocation10], 8256  }
  0x1c   :  { %3475 = vsyncadd [#allocation10], 4294959040 }
  0x1d   :  { %3476 = dma.done.wait [#allocation13], 2112  }
  0x1e   :  { %3477 = vsyncadd [#allocation13], 4294965184  ;;  %v154_v0 = vld [vmem:[#allocation6 + $0x60] sm:$0xff]  ;;  %vm1993_vm0 = vcmask 1041408   ;;  %vm1995_vm1 = vcmask 1045508   ;;  %vm1997_vm2 = vcmask 1043456  }
  0x1f   :  { %v170_v1 = vld [vmem:[#allocation6 + $0xe0] sm:$0xff]  ;;  %v326_v3 = vunpack.c.2.s8 %v154_v0  ;;  %v330_v4 = vunpack.c.3.s8 %v154_v0  ;;  %v318_v22 = vunpack.c.0.s8 %v154_v0  ;;  %v322_v23 = vunpack.c.1.s8 %v154_v0  ;;  %s3491_s3 = smov [#allocation15]   ;;  %s3243_s12 = sshll.u32 %s3955_s10, 4  ;;  %s3244_s12 = int_to_ptr.hbm [resolvable:$true] %s3243_s12 }
  0x20   :  { %v186_v2 = vld [vmem:[#allocation6 + $0x160] sm:$0xff]  ;;  %v390_v5 = vunpack.c.2.s8 %v170_v1  ;;  %v394_v6 = vunpack.c.3.s8 %v170_v1  ;;  %v382_v26 = vunpack.c.0.s8 %v170_v1  ;;  %v386_v27 = vunpack.c.1.s8 %v170_v1  ;;  %s3241_s29 = sshll.u32 %s3491_s3, 4  ;;  %s3242_s29 = int_to_ptr.vmem [resolvable:$true] %s3241_s29 }
  0x21   :  { %v202_v7 = vld [vmem:[#allocation6 + $0x1e0] sm:$0xff]  ;;  %v454_v8 = vunpack.c.2.s8 %v186_v2  ;;  %v458_v9 = vunpack.c.3.s8 %v186_v2  ;;  %v838_v12 = vcvt.s32.f32 %v326_v3  ;;  %v842_v13 = vcvt.s32.f32 %v330_v4 }
  0x22   :  { %v518_v10 = vunpack.c.2.s8 %v202_v7  ;;  %v522_v11 = vunpack.c.3.s8 %v202_v7  ;;  %v902_v14 = vcvt.s32.f32 %v390_v5  ;;  %v906_v15 = vcvt.s32.f32 %v394_v6  ;;  %v150_v28 = vld [vmem:[#allocation6 + $0x40] sm:$0xff] }
  0x23   :  { %v966_v16 = vcvt.s32.f32 %v454_v8  ;;  %v970_v17 = vcvt.s32.f32 %v458_v9  ;;  %v1322_v20 = vpack.c.bf16 %v842_v13, %v838_v12  ;;  %v830_v29 = vcvt.s32.f32 %v318_v22  ;;  %v166_v37 = vld [vmem:[#allocation6 + $0xc0] sm:$0xff] }
  0x24   :  { %v1030_v18 = vcvt.s32.f32 %v518_v10  ;;  %v1034_v19 = vcvt.s32.f32 %v522_v11  ;;  %v1354_v21 = vpack.c.bf16 %v906_v15, %v902_v14  ;;  %v834_v30 = vcvt.s32.f32 %v322_v23  ;;  %v182_v42 = vld [vmem:[#allocation6 + $0x140] sm:$0xff] }
  0x25   :  { %v1386_v24 = vpack.c.bf16 %v970_v17, %v966_v16  ;;  %1570 = vmatpush.bf16.msra.mxu0 %v1322_v20  ;;  %v446_v31 = vunpack.c.0.s8 %v186_v2  ;;  %v450_v32 = vunpack.c.1.s8 %v186_v2  ;;  %v894_v33 = vcvt.s32.f32 %v382_v26  ;;  %v198_v47 = vld [vmem:[#allocation6 + $0x1c0] sm:$0xff] }
  0x26   :  { %v1418_v25 = vpack.c.bf16 %v1034_v19, %v1030_v18  ;;  %1583 = vmatpush.bf16.msra.mxu1 %v1354_v21  ;;  %v898_v34 = vcvt.s32.f32 %v386_v27  ;;  %v510_v35 = vunpack.c.0.s8 %v202_v7  ;;  %v514_v36 = vunpack.c.1.s8 %v202_v7  ;;  %v146_v8 = vld [vmem:[#allocation6 + $0x20] sm:$0xff] }
  0x27   :  { %1596 = vmatpush.bf16.msra.mxu2 %v1386_v24  ;;  %v1318_v38 = vpack.c.bf16 %v834_v30, %v830_v29  ;;  %v958_v39 = vcvt.s32.f32 %v446_v31  ;;  %v962_v40 = vcvt.s32.f32 %v450_v32  ;;  %v310_v41 = vunpack.c.2.s8 %v150_v28  ;;  %v162_v17 = vld [vmem:[#allocation6 + $0xa0] sm:$0xff] }
  0x28   :  { %1609 = vmatpush.bf16.msra.mxu3 %v1418_v25  ;;  %v1350_v43 = vpack.c.bf16 %v898_v34, %v894_v33  ;;  %v1022_v44 = vcvt.s32.f32 %v510_v35  ;;  %v1026_v45 = vcvt.s32.f32 %v514_v36  ;;  %v314_v46 = vunpack.c.3.s8 %v150_v28  ;;  %v178_v22 = vld [vmem:[#allocation6 + $0x120] sm:$0xff] }
  0x29   :  { %1571 = vmatpush.bf16.msra.mxu0 %v1318_v38  ;;  %v1382_v48 = vpack.c.bf16 %v962_v40, %v958_v39  ;;  %v822_v49 = vcvt.s32.f32 %v310_v41  ;;  %v374_v50 = vunpack.c.2.s8 %v166_v37  ;;  %v378_v51 = vunpack.c.3.s8 %v166_v37  ;;  %v194_v27 = vld [vmem:[#allocation6 + $0x1a0] sm:$0xff] }
  0x2a   :  { %1584 = vmatpush.bf16.msra.mxu1 %v1350_v43  ;;  %v1414_v52 = vpack.c.bf16 %v1026_v45, %v1022_v44  ;;  %v826_v53 = vcvt.s32.f32 %v314_v46  ;;  %v438_v54 = vunpack.c.2.s8 %v182_v42  ;;  %v442_v55 = vunpack.c.3.s8 %v182_v42 }
  0x2b   :  { %1597 = vmatpush.bf16.msra.mxu2 %v1382_v48  ;;  %v886_v56 = vcvt.s32.f32 %v374_v50  ;;  %v890_v57 = vcvt.s32.f32 %v378_v51  ;;  %v502_v58 = vunpack.c.2.s8 %v198_v47  ;;  %v506_v59 = vunpack.c.3.s8 %v198_v47 }
  0x2c   :  { %1610 = vmatpush.bf16.msra.mxu3 %v1414_v52  ;;  %v1314_v60 = vpack.c.bf16 %v826_v53, %v822_v49  ;;  %v950_v61 = vcvt.s32.f32 %v438_v54  ;;  %v954_v62 = vcvt.s32.f32 %v442_v55  ;;  %v302_v63 = vunpack.c.0.s8 %v150_v28  ;;  %v142_v52 = vld [vmem:[#allocation6] sm:$0xff] }
  0x2d   :  { %v1346_v0 = vpack.c.bf16 %v890_v57, %v886_v56  ;;  %v1014_v1 = vcvt.s32.f32 %v502_v58  ;;  %v1018_v2 = vcvt.s32.f32 %v506_v59  ;;  %v306_v3 = vunpack.c.1.s8 %v150_v28 }
  0x2e   :  { %1572 = vmatpush.bf16.msra.mxu0 %v1314_v60  ;;  %v1378_v4 = vpack.c.bf16 %v954_v62, %v950_v61  ;;  %v814_v5 = vcvt.s32.f32 %v302_v63  ;;  %v366_v6 = vunpack.c.0.s8 %v166_v37  ;;  %v370_v7 = vunpack.c.1.s8 %v166_v37  ;;  %v158_v61 = vld [vmem:[#allocation6 + $0x80] sm:$0xff] }
  0x2f   :  { %1585 = vmatpush.bf16.msra.mxu1 %v1346_v0  ;;  %v1410_v9 = vpack.c.bf16 %v1018_v2, %v1014_v1  ;;  %v818_v10 = vcvt.s32.f32 %v306_v3  ;;  %v430_v11 = vunpack.c.0.s8 %v182_v42  ;;  %v434_v12 = vunpack.c.1.s8 %v182_v42  ;;  %v174_v2 = vld [vmem:[#allocation6 + $0x100] sm:$0xff] }
  0x30   :  { %1598 = vmatpush.bf16.msra.mxu2 %v1378_v4  ;;  %v878_v13 = vcvt.s32.f32 %v366_v6  ;;  %v882_v14 = vcvt.s32.f32 %v370_v7  ;;  %v494_v15 = vunpack.c.0.s8 %v198_v47  ;;  %v498_v16 = vunpack.c.1.s8 %v198_v47  ;;  %v190_v7 = vld [vmem:[#allocation6 + $0x180] sm:$0xff] }
  0x31   :  { %1611 = vmatpush.bf16.msra.mxu3 %v1410_v9  ;;  %v1310_v18 = vpack.c.bf16 %v818_v10, %v814_v5  ;;  %v942_v19 = vcvt.s32.f32 %v430_v11  ;;  %v946_v20 = vcvt.s32.f32 %v434_v12  ;;  %v294_v21 = vunpack.c.2.s8 %v146_v8  ;;  %v1551_v12 = vld [vmem:[#allocation3] sm:$0xff] }
  0x32   :  { %v1342_v23 = vpack.c.bf16 %v882_v14, %v878_v13  ;;  %v1006_v24 = vcvt.s32.f32 %v494_v15  ;;  %v1010_v25 = vcvt.s32.f32 %v498_v16  ;;  %v298_v26 = vunpack.c.3.s8 %v146_v8  ;;  %1553 = vst [vmem:[#allocation1] ss:$9 sm:$0xff] %v1551_v12 }
  0x33   :  { %1573 = vmatpush.bf16.msra.mxu0 %v1310_v18  ;;  %v1374_v28 = vpack.c.bf16 %v946_v20, %v942_v19  ;;  %v806_v29 = vcvt.s32.f32 %v294_v21  ;;  %v358_v30 = vunpack.c.2.s8 %v162_v17  ;;  %v362_v31 = vunpack.c.3.s8 %v162_v17 }
  0x34   :  { %1586 = vmatpush.bf16.msra.mxu1 %v1342_v23  ;;  %v1406_v32 = vpack.c.bf16 %v1010_v25, %v1006_v24  ;;  %v810_v33 = vcvt.s32.f32 %v298_v26  ;;  %v422_v34 = vunpack.c.2.s8 %v178_v22  ;;  %v426_v35 = vunpack.c.3.s8 %v178_v22 }
  0x35   :  { %1599 = vmatpush.bf16.msra.mxu2 %v1374_v28  ;;  %v870_v36 = vcvt.s32.f32 %v358_v30  ;;  %v874_v37 = vcvt.s32.f32 %v362_v31  ;;  %v486_v38 = vunpack.c.2.s8 %v194_v27  ;;  %v490_v39 = vunpack.c.3.s8 %v194_v27 }
  0x36   :  { %1612 = vmatpush.bf16.msra.mxu3 %v1406_v32  ;;  %v1306_v40 = vpack.c.bf16 %v810_v33, %v806_v29  ;;  %v934_v41 = vcvt.s32.f32 %v422_v34  ;;  %v938_v42 = vcvt.s32.f32 %v426_v35  ;;  %v286_v43 = vunpack.c.0.s8 %v146_v8  ;;  %v218_v33 = vld [vmem:[#allocation6 + $0x260] sm:$0xff] }
  0x37   :  { %v1338_v44 = vpack.c.bf16 %v874_v37, %v870_v36  ;;  %v998_v45 = vcvt.s32.f32 %v486_v38  ;;  %v1002_v46 = vcvt.s32.f32 %v490_v39  ;;  %v290_v47 = vunpack.c.1.s8 %v146_v8 }
  0x38   :  { %1574 = vmatpush.bf16.msra.mxu0 %v1306_v40  ;;  %v1370_v48 = vpack.c.bf16 %v938_v42, %v934_v41  ;;  %v798_v49 = vcvt.s32.f32 %v286_v43  ;;  %v350_v50 = vunpack.c.0.s8 %v162_v17  ;;  %v354_v51 = vunpack.c.1.s8 %v162_v17  ;;  %v234_v42 = vld [vmem:[#allocation6 + $0x2e0] sm:$0xff] }
  0x39   :  { %1587 = vmatpush.bf16.msra.mxu1 %v1338_v44  ;;  %v1402_v53 = vpack.c.bf16 %v1002_v46, %v998_v45  ;;  %v802_v54 = vcvt.s32.f32 %v290_v47  ;;  %v414_v55 = vunpack.c.0.s8 %v178_v22  ;;  %v418_v56 = vunpack.c.1.s8 %v178_v22  ;;  %v250_v47 = vld [vmem:[#allocation6 + $0x360] sm:$0xff] }
  0x3a   :  { %1600 = vmatpush.bf16.msra.mxu2 %v1370_v48  ;;  %v862_v57 = vcvt.s32.f32 %v350_v50  ;;  %v866_v58 = vcvt.s32.f32 %v354_v51  ;;  %v478_v59 = vunpack.c.0.s8 %v194_v27  ;;  %v482_v60 = vunpack.c.1.s8 %v194_v27 }
  0x3b   :  { %1613 = vmatpush.bf16.msra.mxu3 %v1402_v53  ;;  %v1302_v62 = vpack.c.bf16 %v802_v54, %v798_v49  ;;  %v926_v63 = vcvt.s32.f32 %v414_v55  ;;  %v930_v0 = vcvt.s32.f32 %v418_v56  ;;  %v278_v1 = vunpack.c.2.s8 %v142_v52 }
  0x3c   :  { %v1334_v3 = vpack.c.bf16 %v866_v58, %v862_v57  ;;  %v990_v4 = vcvt.s32.f32 %v478_v59  ;;  %v994_v5 = vcvt.s32.f32 %v482_v60  ;;  %v282_v6 = vunpack.c.3.s8 %v142_v52 }
  0x3d   :  { %1575 = vmatpush.bf16.msra.mxu0 %v1302_v62  ;;  %v1366_v8 = vpack.c.bf16 %v930_v0, %v926_v63  ;;  %v790_v9 = vcvt.s32.f32 %v278_v1  ;;  %v342_v10 = vunpack.c.2.s8 %v158_v61  ;;  %v346_v11 = vunpack.c.3.s8 %v158_v61  ;;  %v3576_v62 = vld [vmem:[#allocation1 + $0x9] sm:$0xff] }
  0x3e   :  { %1588 = vmatpush.bf16.msra.mxu1 %v1334_v3  ;;  %v1398_v13 = vpack.c.bf16 %v994_v5, %v990_v4  ;;  %v794_v14 = vcvt.s32.f32 %v282_v6  ;;  %v406_v15 = vunpack.c.2.s8 %v174_v2  ;;  %v410_v16 = vunpack.c.3.s8 %v174_v2  ;;  %v3578_v3 = vld [vmem:[#allocation1 + $0x12] sm:$0xff] }
  0x3f   :  { %1601 = vmatpush.bf16.msra.mxu2 %v1366_v8  ;;  %v854_v17 = vcvt.s32.f32 %v342_v10  ;;  %v858_v18 = vcvt.s32.f32 %v346_v11  ;;  %v470_v19 = vunpack.c.2.s8 %v190_v7  ;;  %v474_v20 = vunpack.c.3.s8 %v190_v7  ;;  %v3581_v8 = vld [vmem:[#allocation1 + $0x1b] sm:$0xff] }
  0x40   :  { %1614 = vmatpush.bf16.msra.mxu3 %v1398_v13  ;;  %v1298_v21 = vpack.c.bf16 %v794_v14, %v790_v9  ;;  %v918_v22 = vcvt.s32.f32 %v406_v15  ;;  %v922_v23 = vcvt.s32.f32 %v410_v16  ;;  %v270_v24 = vunpack.c.0.s8 %v142_v52 }
  0x41   :  { %v1330_v25 = vpack.c.bf16 %v858_v18, %v854_v17  ;;  %v982_v26 = vcvt.s32.f32 %v470_v19  ;;  %v986_v27 = vcvt.s32.f32 %v474_v20  ;;  %v274_v28 = vunpack.c.1.s8 %v142_v52  ;;  %v266_v52 = vld [vmem:[#allocation6 + $0x3e0] sm:$0xff] }
  0x42   :  { %1576 = vmatpush.bf16.msra.mxu0 %v1298_v21  ;;  %v1362_v29 = vpack.c.bf16 %v922_v23, %v918_v22  ;;  %v782_v30 = vcvt.s32.f32 %v270_v24  ;;  %v334_v31 = vunpack.c.0.s8 %v158_v61  ;;  %v338_v32 = vunpack.c.1.s8 %v158_v61  ;;  %v3574_v61 = vld [vmem:[#allocation1] sm:$0xff]  ;;  %v214_v17 = vld [vmem:[#allocation6 + $0x240] sm:$0xff] }
  0x43   :  { %1589 = vmatpush.bf16.msra.mxu1 %v1330_v25  ;;  %v1394_v34 = vpack.c.bf16 %v986_v27, %v982_v26  ;;  %v786_v35 = vcvt.s32.f32 %v274_v28  ;;  %v398_v36 = vunpack.c.0.s8 %v174_v2  ;;  %v402_v37 = vunpack.c.1.s8 %v174_v2  ;;  %v230_v26 = vld [vmem:[#allocation6 + $0x2c0] sm:$0xff] }
  0x44   :  { %1602 = vmatpush.bf16.msra.mxu2 %v1362_v29  ;;  %v846_v38 = vcvt.s32.f32 %v334_v31  ;;  %v850_v39 = vcvt.s32.f32 %v338_v32  ;;  %v462_v40 = vunpack.c.0.s8 %v190_v7  ;;  %v466_v41 = vunpack.c.1.s8 %v190_v7  ;;  %v246_v31 = vld [vmem:[#allocation6 + $0x340] sm:$0xff] }
  0x45   :  { %1615 = vmatpush.bf16.msra.mxu3 %v1394_v34  ;;  %v1294_v43 = vpack.c.bf16 %v786_v35, %v782_v30  ;;  %v910_v44 = vcvt.s32.f32 %v398_v36  ;;  %v914_v45 = vcvt.s32.f32 %v402_v37  ;;  %v582_v46 = vunpack.c.2.s8 %v218_v33  ;;  %v262_v36 = vld [vmem:[#allocation6 + $0x3c0] sm:$0xff] }
  0x46   :  { %v1326_v48 = vpack.c.bf16 %v850_v39, %v846_v38  ;;  %v974_v49 = vcvt.s32.f32 %v462_v40  ;;  %v978_v50 = vcvt.s32.f32 %v466_v41  ;;  %v586_v51 = vunpack.c.3.s8 %v218_v33 }
  0x47   :  { %1577 = vmatpush.bf16.msra.mxu0 %v1294_v43  ;;  %v1358_v53 = vpack.c.bf16 %v914_v45, %v910_v44  ;;  %v1094_v54 = vcvt.s32.f32 %v582_v46  ;;  %v646_v55 = vunpack.c.2.s8 %v234_v42  ;;  %v650_v56 = vunpack.c.3.s8 %v234_v42 }
  0x48   :  { %1590 = vmatpush.bf16.msra.mxu1 %v1326_v48  ;;  %v1390_v57 = vpack.c.bf16 %v978_v50, %v974_v49  ;;  %v1098_v58 = vcvt.s32.f32 %v586_v51  ;;  %v710_v59 = vunpack.c.2.s8 %v250_v47  ;;  %v714_v60 = vunpack.c.3.s8 %v250_v47 }
  0x49   :  { %1603 = vmatpush.bf16.msra.mxu2 %v1358_v53  ;;  %v1158_v63 = vcvt.s32.f32 %v646_v55  ;;  %v1162_v0 = vcvt.s32.f32 %v650_v56  ;;  %v774_v1 = vunpack.c.2.s8 %v266_v52  ;;  %v778_v2 = vunpack.c.3.s8 %v266_v52 }
  0x4a   :  { %1616 = vmatpush.bf16.msra.mxu3 %v1390_v57  ;;  %v1450_v4 = vpack.c.bf16 %v1098_v58, %v1094_v54  ;;  %v1222_v5 = vcvt.s32.f32 %v710_v59  ;;  %v1226_v6 = vcvt.s32.f32 %v714_v60  ;;  %v574_v7 = vunpack.c.0.s8 %v218_v33  ;;  %1578 = vmatmul.bf16.vlgmr.msra.gmra.mxu0 %v3574_v61 }
  0x4b   :  { %v1482_v9 = vpack.c.bf16 %v1162_v0, %v1158_v63  ;;  %v1286_v10 = vcvt.s32.f32 %v774_v1  ;;  %v1290_v11 = vcvt.s32.f32 %v778_v2  ;;  %v578_v12 = vunpack.c.1.s8 %v218_v33  ;;  %1591 = vmatmul.bf16.vlgmr.msra.gmra.mxu1 %v3576_v62  ;;  %v210_v63 = vld [vmem:[#allocation6 + $0x220] sm:$0xff] }
  0x4c   :  { %1622 = vmatpush.bf16.msrb.mxu0 %v1450_v4  ;;  %v1514_v13 = vpack.c.bf16 %v1226_v6, %v1222_v5  ;;  %v1086_v14 = vcvt.s32.f32 %v574_v7  ;;  %v638_v15 = vunpack.c.0.s8 %v234_v42  ;;  %v642_v16 = vunpack.c.1.s8 %v234_v42  ;;  %1604 = vmatmul.bf16.vlgmr.msra.gmra.mxu2 %v3578_v3 }
  0x4d   :  { %1635 = vmatpush.bf16.msrb.mxu1 %v1482_v9  ;;  %v1546_v18 = vpack.c.bf16 %v1290_v11, %v1286_v10  ;;  %v1090_v19 = vcvt.s32.f32 %v578_v12  ;;  %v702_v20 = vunpack.c.0.s8 %v250_v47  ;;  %v706_v21 = vunpack.c.1.s8 %v250_v47  ;;  %1617 = vmatmul.bf16.vlgmr.msra.gmra.mxu3 %v3581_v8  ;;  %v226_v10 = vld [vmem:[#allocation6 + $0x2a0] sm:$0xff] }
  0x4e   :  { %1648 = vmatpush.bf16.msrb.mxu2 %v1514_v13  ;;  %v1150_v22 = vcvt.s32.f32 %v638_v15  ;;  %v1154_v23 = vcvt.s32.f32 %v642_v16  ;;  %v766_v24 = vunpack.c.0.s8 %v266_v52  ;;  %v770_v25 = vunpack.c.1.s8 %v266_v52  ;;  %v242_v15 = vld [vmem:[#allocation6 + $0x320] sm:$0xff] }
  0x4f   :  { %1661 = vmatpush.bf16.msrb.mxu3 %v1546_v18  ;;  %v1446_v27 = vpack.c.bf16 %v1090_v19, %v1086_v14  ;;  %v1214_v28 = vcvt.s32.f32 %v702_v20  ;;  %v1218_v29 = vcvt.s32.f32 %v706_v21  ;;  %v566_v30 = vunpack.c.2.s8 %v214_v17  ;;  %v258_v20 = vld [vmem:[#allocation6 + $0x3a0] sm:$0xff] }
  0x50   :  { %v1478_v32 = vpack.c.bf16 %v1154_v23, %v1150_v22  ;;  %v1278_v33 = vcvt.s32.f32 %v766_v24  ;;  %v1282_v34 = vcvt.s32.f32 %v770_v25  ;;  %v570_v35 = vunpack.c.3.s8 %v214_v17 }
  0x51   :  { %1623 = vmatpush.bf16.msrb.mxu0 %v1446_v27  ;;  %v1510_v37 = vpack.c.bf16 %v1218_v29, %v1214_v28  ;;  %v1078_v38 = vcvt.s32.f32 %v566_v30  ;;  %v630_v39 = vunpack.c.2.s8 %v230_v26  ;;  %v634_v40 = vunpack.c.3.s8 %v230_v26 }
  0x52   :  { %1636 = vmatpush.bf16.msrb.mxu1 %v1478_v32  ;;  %v1542_v41 = vpack.c.bf16 %v1282_v34, %v1278_v33  ;;  %v1082_v42 = vcvt.s32.f32 %v570_v35  ;;  %v694_v43 = vunpack.c.2.s8 %v246_v31  ;;  %v698_v44 = vunpack.c.3.s8 %v246_v31 }
  0x53   :  { %1649 = vmatpush.bf16.msrb.mxu2 %v1510_v37  ;;  %v1142_v45 = vcvt.s32.f32 %v630_v39  ;;  %v1146_v46 = vcvt.s32.f32 %v634_v40  ;;  %v758_v47 = vunpack.c.2.s8 %v262_v36  ;;  %v762_v48 = vunpack.c.3.s8 %v262_v36 }
  0x54   :  { %1662 = vmatpush.bf16.msrb.mxu3 %v1542_v41  ;;  %v1442_v49 = vpack.c.bf16 %v1082_v42, %v1078_v38  ;;  %v1206_v50 = vcvt.s32.f32 %v694_v43  ;;  %v1210_v51 = vcvt.s32.f32 %v698_v44  ;;  %v558_v52 = vunpack.c.0.s8 %v214_v17 }
  0x55   :  { %v1474_v53 = vpack.c.bf16 %v1146_v46, %v1142_v45  ;;  %v1270_v54 = vcvt.s32.f32 %v758_v47  ;;  %v1274_v55 = vcvt.s32.f32 %v762_v48  ;;  %v562_v56 = vunpack.c.1.s8 %v214_v17  ;;  %v206_v45 = vld [vmem:[#allocation6 + $0x200] sm:$0xff] }
  0x56   :  { %1624 = vmatpush.bf16.msrb.mxu0 %v1442_v49  ;;  %v1506_v57 = vpack.c.bf16 %v1210_v51, %v1206_v50  ;;  %v1070_v58 = vcvt.s32.f32 %v558_v52  ;;  %v622_v59 = vunpack.c.0.s8 %v230_v26  ;;  %v626_v60 = vunpack.c.1.s8 %v230_v26 }
  0x57   :  { %1637 = vmatpush.bf16.msrb.mxu1 %v1474_v53  ;;  %v1538_v0 = vpack.c.bf16 %v1274_v55, %v1270_v54  ;;  %v1074_v1 = vcvt.s32.f32 %v562_v56  ;;  %v686_v2 = vunpack.c.0.s8 %v246_v31  ;;  %v690_v4 = vunpack.c.1.s8 %v246_v31  ;;  %v222_v54 = vld [vmem:[#allocation6 + $0x280] sm:$0xff] }
  0x58   :  { %1650 = vmatpush.bf16.msrb.mxu2 %v1506_v57  ;;  %v1134_v5 = vcvt.s32.f32 %v622_v59  ;;  %v1138_v6 = vcvt.s32.f32 %v626_v60  ;;  %v750_v7 = vunpack.c.0.s8 %v262_v36  ;;  %v754_v9 = vunpack.c.1.s8 %v262_v36  ;;  %v238_v59 = vld [vmem:[#allocation6 + $0x300] sm:$0xff] }
  0x59   :  { %1663 = vmatpush.bf16.msrb.mxu3 %v1538_v0  ;;  %v1438_v11 = vpack.c.bf16 %v1074_v1, %v1070_v58  ;;  %v1198_v12 = vcvt.s32.f32 %v686_v2  ;;  %v1202_v13 = vcvt.s32.f32 %v690_v4  ;;  %v550_v14 = vunpack.c.2.s8 %v210_v63  ;;  %v254_v2 = vld [vmem:[#allocation6 + $0x380] sm:$0xff] }
  0x5a   :  { %v1470_v16 = vpack.c.bf16 %v1138_v6, %v1134_v5  ;;  %v1262_v17 = vcvt.s32.f32 %v750_v7  ;;  %v1266_v18 = vcvt.s32.f32 %v754_v9  ;;  %v554_v19 = vunpack.c.3.s8 %v210_v63 }
  0x5b   :  { %1625 = vmatpush.bf16.msrb.mxu0 %v1438_v11  ;;  %v1502_v21 = vpack.c.bf16 %v1202_v13, %v1198_v12  ;;  %v1062_v22 = vcvt.s32.f32 %v550_v14  ;;  %v614_v23 = vunpack.c.2.s8 %v226_v10  ;;  %v618_v24 = vunpack.c.3.s8 %v226_v10 }
  0x5c   :  { %1638 = vmatpush.bf16.msrb.mxu1 %v1470_v16  ;;  %v1534_v25 = vpack.c.bf16 %v1266_v18, %v1262_v17  ;;  %v1066_v26 = vcvt.s32.f32 %v554_v19  ;;  %v678_v27 = vunpack.c.2.s8 %v242_v15  ;;  %v682_v28 = vunpack.c.3.s8 %v242_v15 }
  0x5d   :  { %1651 = vmatpush.bf16.msrb.mxu2 %v1502_v21  ;;  %v1126_v29 = vcvt.s32.f32 %v614_v23  ;;  %v1130_v30 = vcvt.s32.f32 %v618_v24  ;;  %v742_v31 = vunpack.c.2.s8 %v258_v20  ;;  %v746_v32 = vunpack.c.3.s8 %v258_v20 }
  0x5e   :  { %1664 = vmatpush.bf16.msrb.mxu3 %v1534_v25  ;;  %v1434_v33 = vpack.c.bf16 %v1066_v26, %v1062_v22  ;;  %v1190_v34 = vcvt.s32.f32 %v678_v27  ;;  %v1194_v35 = vcvt.s32.f32 %v682_v28  ;;  %v542_v36 = vunpack.c.0.s8 %v210_v63 }
  0x5f   :  { %v1466_v37 = vpack.c.bf16 %v1130_v30, %v1126_v29  ;;  %v1254_v38 = vcvt.s32.f32 %v742_v31  ;;  %v1258_v39 = vcvt.s32.f32 %v746_v32  ;;  %v546_v40 = vunpack.c.1.s8 %v210_v63  ;;  %v155_v29 = vld [vmem:[#allocation6 + $0x68] sm:$0xff] }
  0x60   :  { %1626 = vmatpush.bf16.msrb.mxu0 %v1434_v33  ;;  %v1498_v41 = vpack.c.bf16 %v1194_v35, %v1190_v34  ;;  %v1054_v42 = vcvt.s32.f32 %v542_v36  ;;  %v606_v43 = vunpack.c.0.s8 %v226_v10  ;;  %v610_v44 = vunpack.c.1.s8 %v226_v10 }
  0x61   :  { %1639 = vmatpush.bf16.msrb.mxu1 %v1466_v37  ;;  %v1530_v46 = vpack.c.bf16 %v1258_v39, %v1254_v38  ;;  %v1058_v47 = vcvt.s32.f32 %v546_v40  ;;  %v670_v48 = vunpack.c.0.s8 %v242_v15  ;;  %v674_v49 = vunpack.c.1.s8 %v242_v15  ;;  %v171_v38 = vld [vmem:[#allocation6 + $0xe8] sm:$0xff] }
  0x62   :  { %1652 = vmatpush.bf16.msrb.mxu2 %v1498_v41  ;;  %v1118_v50 = vcvt.s32.f32 %v606_v43  ;;  %v1122_v51 = vcvt.s32.f32 %v610_v44  ;;  %v734_v52 = vunpack.c.0.s8 %v258_v20  ;;  %v738_v53 = vunpack.c.1.s8 %v258_v20  ;;  %v187_v43 = vld [vmem:[#allocation6 + $0x168] sm:$0xff] }
  0x63   :  { %1665 = vmatpush.bf16.msrb.mxu3 %v1530_v46  ;;  %v1430_v55 = vpack.c.bf16 %v1058_v47, %v1054_v42  ;;  %v1182_v56 = vcvt.s32.f32 %v670_v48  ;;  %v1186_v57 = vcvt.s32.f32 %v674_v49  ;;  %v534_v58 = vunpack.c.2.s8 %v206_v45  ;;  %v203_v48 = vld [vmem:[#allocation6 + $0x1e8] sm:$0xff] }
  0x64   :  { %v1462_v60 = vpack.c.bf16 %v1122_v51, %v1118_v50  ;;  %v1246_v63 = vcvt.s32.f32 %v734_v52  ;;  %v1250_v0 = vcvt.s32.f32 %v738_v53  ;;  %v538_v1 = vunpack.c.3.s8 %v206_v45  ;;  %v3586_v53 = vld [vmem:[#allocation1 + $0x24] sm:$0xff] }
  0x65   :  { %1627 = vmatpush.bf16.msrb.mxu0 %v1430_v55  ;;  %v1494_v4 = vpack.c.bf16 %v1186_v57, %v1182_v56  ;;  %v1046_v5 = vcvt.s32.f32 %v534_v58  ;;  %v598_v6 = vunpack.c.2.s8 %v222_v54  ;;  %v602_v7 = vunpack.c.3.s8 %v222_v54  ;;  %v3588_v58 = vld [vmem:[#allocation1 + $0x2d] sm:$0xff] }
  0x66   :  { %1640 = vmatpush.bf16.msrb.mxu1 %v1462_v60  ;;  %v1526_v9 = vpack.c.bf16 %v1250_v0, %v1246_v63  ;;  %v1050_v10 = vcvt.s32.f32 %v538_v1  ;;  %v662_v11 = vunpack.c.2.s8 %v238_v59  ;;  %v666_v12 = vunpack.c.3.s8 %v238_v59  ;;  %v3590_v1 = vld [vmem:[#allocation1 + $0x36] sm:$0xff] }
  0x67   :  { %1653 = vmatpush.bf16.msrb.mxu2 %v1494_v4  ;;  %v1110_v13 = vcvt.s32.f32 %v598_v6  ;;  %v1114_v14 = vcvt.s32.f32 %v602_v7  ;;  %v726_v15 = vunpack.c.2.s8 %v254_v2  ;;  %v730_v16 = vunpack.c.3.s8 %v254_v2  ;;  %v3593_v7 = vld [vmem:[#allocation1 + $0x3f] sm:$0xff] }
  0x68   :  { %1666 = vmatpush.bf16.msrb.mxu3 %v1526_v9  ;;  %v1426_v17 = vpack.c.bf16 %v1050_v10, %v1046_v5  ;;  %v1174_v18 = vcvt.s32.f32 %v662_v11  ;;  %v1178_v19 = vcvt.s32.f32 %v666_v12  ;;  %v526_v20 = vunpack.c.0.s8 %v206_v45 }
  0x69   :  { %v1458_v21 = vpack.c.bf16 %v1114_v14, %v1110_v13  ;;  %v1238_v22 = vcvt.s32.f32 %v726_v15  ;;  %v1242_v23 = vcvt.s32.f32 %v730_v16  ;;  %v530_v24 = vunpack.c.1.s8 %v206_v45 }
  0x6a   :  { %1628 = vmatpush.bf16.msrb.mxu0 %v1426_v17  ;;  %v1490_v25 = vpack.c.bf16 %v1178_v19, %v1174_v18  ;;  %v1038_v26 = vcvt.s32.f32 %v526_v20  ;;  %v590_v27 = vunpack.c.0.s8 %v222_v54  ;;  %v594_v28 = vunpack.c.1.s8 %v222_v54  ;;  %v151_v17 = vld [vmem:[#allocation6 + $0x48] sm:$0xff] }
  0x6b   :  { %1641 = vmatpush.bf16.msrb.mxu1 %v1458_v21  ;;  %v1522_v30 = vpack.c.bf16 %v1242_v23, %v1238_v22  ;;  %v1042_v31 = vcvt.s32.f32 %v530_v24  ;;  %v654_v32 = vunpack.c.0.s8 %v238_v59  ;;  %v658_v33 = vunpack.c.1.s8 %v238_v59 }
  0x6c   :  { %1654 = vmatpush.bf16.msrb.mxu2 %v1490_v25  ;;  %v1102_v34 = vcvt.s32.f32 %v590_v27  ;;  %v1106_v35 = vcvt.s32.f32 %v594_v28  ;;  %v718_v36 = vunpack.c.0.s8 %v254_v2  ;;  %v722_v37 = vunpack.c.1.s8 %v254_v2 }
  0x6d   :  { %1667 = vmatpush.bf16.msrb.mxu3 %v1522_v30  ;;  %v1422_v39 = vpack.c.bf16 %v1042_v31, %v1038_v26  ;;  %v1166_v40 = vcvt.s32.f32 %v654_v32  ;;  %v1170_v41 = vcvt.s32.f32 %v658_v33  ;;  %v327_v42 = vunpack.c.2.s8 %v155_v29  ;;  %v167_v26 = vld [vmem:[#allocation6 + $0xc8] sm:$0xff] }
  0x6e   :  { %v1454_v44 = vpack.c.bf16 %v1106_v35, %v1102_v34  ;;  %v1230_v45 = vcvt.s32.f32 %v718_v36  ;;  %v1234_v46 = vcvt.s32.f32 %v722_v37  ;;  %v331_v47 = vunpack.c.3.s8 %v155_v29  ;;  %v183_v31 = vld [vmem:[#allocation6 + $0x148] sm:$0xff] }
  0x6f   :  { %1629 = vmatpush.bf16.msrb.mxu0 %v1422_v39  ;;  %v1486_v49 = vpack.c.bf16 %v1170_v41, %v1166_v40  ;;  %v839_v50 = vcvt.s32.f32 %v327_v42  ;;  %v391_v51 = vunpack.c.2.s8 %v171_v38  ;;  %v395_v52 = vunpack.c.3.s8 %v171_v38  ;;  %v199_v36 = vld [vmem:[#allocation6 + $0x1c8] sm:$0xff] }
  0x70   :  { %1642 = vmatpush.bf16.msrb.mxu1 %v1454_v44  ;;  %v1518_v54 = vpack.c.bf16 %v1234_v46, %v1230_v45  ;;  %v843_v55 = vcvt.s32.f32 %v331_v47  ;;  %v455_v56 = vunpack.c.2.s8 %v187_v43  ;;  %v459_v57 = vunpack.c.3.s8 %v187_v43 }
  0x71   :  { %1655 = vmatpush.bf16.msrb.mxu2 %v1486_v49  ;;  %v903_v59 = vcvt.s32.f32 %v391_v51  ;;  %v907_v60 = vcvt.s32.f32 %v395_v52  ;;  %v519_v63 = vunpack.c.2.s8 %v203_v48  ;;  %v523_v0 = vunpack.c.3.s8 %v203_v48 }
  0x72   :  { %1668 = vmatpush.bf16.msrb.mxu3 %v1518_v54  ;;  %v1323_v2 = vpack.c.bf16 %v843_v55, %v839_v50  ;;  %v967_v4 = vcvt.s32.f32 %v455_v56  ;;  %v971_v5 = vcvt.s32.f32 %v459_v57  ;;  %v319_v6 = vunpack.c.0.s8 %v155_v29  ;;  %1630 = vmatmul.bf16.vlgmr.msrb.gmra.mxu0 %v3586_v53 }
  0x73   :  { %v1355_v9 = vpack.c.bf16 %v907_v60, %v903_v59  ;;  %v1031_v10 = vcvt.s32.f32 %v519_v63  ;;  %v1035_v11 = vcvt.s32.f32 %v523_v0  ;;  %v323_v12 = vunpack.c.1.s8 %v155_v29  ;;  %1643 = vmatmul.bf16.vlgmr.msrb.gmra.mxu1 %v3588_v58 }
  0x74   :  { %1674 = vmatpush.bf16.msra.mxu0 %v1323_v2  ;;  %v1387_v13 = vpack.c.bf16 %v971_v5, %v967_v4  ;;  %v831_v14 = vcvt.s32.f32 %v319_v6  ;;  %v383_v15 = vunpack.c.0.s8 %v171_v38  ;;  %v387_v16 = vunpack.c.1.s8 %v171_v38  ;;  %1656 = vmatmul.bf16.vlgmr.msrb.gmra.mxu2 %v3590_v1  ;;  %v147_v2 = vld [vmem:[#allocation6 + $0x28] sm:$0xff] }
  0x75   :  { %1687 = vmatpush.bf16.msra.mxu1 %v1355_v9  ;;  %v1419_v18 = vpack.c.bf16 %v1035_v11, %v1031_v10  ;;  %v835_v19 = vcvt.s32.f32 %v323_v12  ;;  %v447_v20 = vunpack.c.0.s8 %v187_v43  ;;  %v451_v21 = vunpack.c.1.s8 %v187_v43  ;;  %1669 = vmatmul.bf16.vlgmr.msrb.gmra.mxu3 %v3593_v7 }
  0x76   :  { %1700 = vmatpush.bf16.msra.mxu2 %v1387_v13  ;;  %v895_v22 = vcvt.s32.f32 %v383_v15  ;;  %v899_v23 = vcvt.s32.f32 %v387_v16  ;;  %v511_v24 = vunpack.c.0.s8 %v203_v48  ;;  %v515_v25 = vunpack.c.1.s8 %v203_v48 }
  0x77   :  { %1713 = vmatpush.bf16.msra.mxu3 %v1419_v18  ;;  %v1319_v27 = vpack.c.bf16 %v835_v19, %v831_v14  ;;  %v959_v28 = vcvt.s32.f32 %v447_v20  ;;  %v963_v29 = vcvt.s32.f32 %v451_v21  ;;  %v311_v30 = vunpack.c.2.s8 %v151_v17  ;;  %v163_v14 = vld [vmem:[#allocation6 + $0xa8] sm:$0xff] }
  0x78   :  { %v1351_v32 = vpack.c.bf16 %v899_v23, %v895_v22  ;;  %v1023_v33 = vcvt.s32.f32 %v511_v24  ;;  %v1027_v34 = vcvt.s32.f32 %v515_v25  ;;  %v315_v35 = vunpack.c.3.s8 %v151_v17  ;;  %v179_v19 = vld [vmem:[#allocation6 + $0x128] sm:$0xff] }
  0x79   :  { %1675 = vmatpush.bf16.msra.mxu0 %v1319_v27  ;;  %v1383_v37 = vpack.c.bf16 %v963_v29, %v959_v28  ;;  %v823_v38 = vcvt.s32.f32 %v311_v30  ;;  %v375_v39 = vunpack.c.2.s8 %v167_v26  ;;  %v379_v40 = vunpack.c.3.s8 %v167_v26  ;;  %v195_v24 = vld [vmem:[#allocation6 + $0x1a8] sm:$0xff] }
  0x7a   :  { %1688 = vmatpush.bf16.msra.mxu1 %v1351_v32  ;;  %v1415_v41 = vpack.c.bf16 %v1027_v34, %v1023_v33  ;;  %v827_v42 = vcvt.s32.f32 %v315_v35  ;;  %v439_v43 = vunpack.c.2.s8 %v183_v31  ;;  %v443_v44 = vunpack.c.3.s8 %v183_v31 }
  0x7b   :  { %1701 = vmatpush.bf16.msra.mxu2 %v1383_v37  ;;  %v887_v45 = vcvt.s32.f32 %v375_v39  ;;  %v891_v46 = vcvt.s32.f32 %v379_v40  ;;  %v503_v47 = vunpack.c.2.s8 %v199_v36  ;;  %v507_v48 = vunpack.c.3.s8 %v199_v36 }
  0x7c   :  { %1714 = vmatpush.bf16.msra.mxu3 %v1415_v41  ;;  %v1315_v49 = vpack.c.bf16 %v827_v42, %v823_v38  ;;  %v951_v50 = vcvt.s32.f32 %v439_v43  ;;  %v955_v51 = vcvt.s32.f32 %v443_v44  ;;  %v303_v52 = vunpack.c.0.s8 %v151_v17 }
  0x7d   :  { %v1347_v54 = vpack.c.bf16 %v891_v46, %v887_v45  ;;  %v1015_v55 = vcvt.s32.f32 %v503_v47  ;;  %v1019_v56 = vcvt.s32.f32 %v507_v48  ;;  %v307_v57 = vunpack.c.1.s8 %v151_v17 }
  0x7e   :  { %1676 = vmatpush.bf16.msra.mxu0 %v1315_v49  ;;  %v1379_v59 = vpack.c.bf16 %v955_v51, %v951_v50  ;;  %v815_v60 = vcvt.s32.f32 %v303_v52  ;;  %v367_v63 = vunpack.c.0.s8 %v167_v26  ;;  %v371_v0 = vunpack.c.1.s8 %v167_v26  ;;  %v143_v49 = vld [vmem:[#allocation6 + $0x8] sm:$0xff] }
  0x7f   :  { %1689 = vmatpush.bf16.msra.mxu1 %v1347_v54  ;;  %v1411_v4 = vpack.c.bf16 %v1019_v56, %v1015_v55  ;;  %v819_v5 = vcvt.s32.f32 %v307_v57  ;;  %v431_v6 = vunpack.c.0.s8 %v183_v31  ;;  %v435_v9 = vunpack.c.1.s8 %v183_v31 }
  0x80   :  { %1702 = vmatpush.bf16.msra.mxu2 %v1379_v59  ;;  %v879_v10 = vcvt.s32.f32 %v367_v63  ;;  %v883_v11 = vcvt.s32.f32 %v371_v0  ;;  %v495_v12 = vunpack.c.0.s8 %v199_v36  ;;  %v499_v13 = vunpack.c.1.s8 %v199_v36 }
  0x81   :  { %1715 = vmatpush.bf16.msra.mxu3 %v1411_v4  ;;  %v1311_v15 = vpack.c.bf16 %v819_v5, %v815_v60  ;;  %v943_v16 = vcvt.s32.f32 %v431_v6  ;;  %v947_v17 = vcvt.s32.f32 %v435_v9  ;;  %v295_v18 = vunpack.c.2.s8 %v147_v2  ;;  %v159_v60 = vld [vmem:[#allocation6 + $0x88] sm:$0xff] }
  0x82   :  { %v1343_v20 = vpack.c.bf16 %v883_v11, %v879_v10  ;;  %v1007_v21 = vcvt.s32.f32 %v495_v12  ;;  %v1011_v22 = vcvt.s32.f32 %v499_v13  ;;  %v299_v23 = vunpack.c.3.s8 %v147_v2  ;;  %v175_v5 = vld [vmem:[#allocation6 + $0x108] sm:$0xff] }
  0x83   :  { %1677 = vmatpush.bf16.msra.mxu0 %v1311_v15  ;;  %v1375_v25 = vpack.c.bf16 %v947_v17, %v943_v16  ;;  %v807_v26 = vcvt.s32.f32 %v295_v18  ;;  %v359_v27 = vunpack.c.2.s8 %v163_v14  ;;  %v363_v28 = vunpack.c.3.s8 %v163_v14  ;;  %v191_v12 = vld [vmem:[#allocation6 + $0x188] sm:$0xff] }
  0x84   :  { %1690 = vmatpush.bf16.msra.mxu1 %v1343_v20  ;;  %v1407_v29 = vpack.c.bf16 %v1011_v22, %v1007_v21  ;;  %v811_v30 = vcvt.s32.f32 %v299_v23  ;;  %v423_v31 = vunpack.c.2.s8 %v179_v19  ;;  %v427_v32 = vunpack.c.3.s8 %v179_v19 }
  0x85   :  { %1703 = vmatpush.bf16.msra.mxu2 %v1375_v25  ;;  %v871_v33 = vcvt.s32.f32 %v359_v27  ;;  %v875_v34 = vcvt.s32.f32 %v363_v28  ;;  %v487_v35 = vunpack.c.2.s8 %v195_v24  ;;  %v491_v36 = vunpack.c.3.s8 %v195_v24 }
  0x86   :  { %1716 = vmatpush.bf16.msra.mxu3 %v1407_v29  ;;  %v1307_v37 = vpack.c.bf16 %v811_v30, %v807_v26  ;;  %v935_v38 = vcvt.s32.f32 %v423_v31  ;;  %v939_v39 = vcvt.s32.f32 %v427_v32  ;;  %v287_v40 = vunpack.c.0.s8 %v147_v2 }
  0x87   :  { %v1339_v41 = vpack.c.bf16 %v875_v34, %v871_v33  ;;  %v999_v42 = vcvt.s32.f32 %v487_v35  ;;  %v1003_v43 = vcvt.s32.f32 %v491_v36  ;;  %v291_v44 = vunpack.c.1.s8 %v147_v2 }
  0x88   :  { %1678 = vmatpush.bf16.msra.mxu0 %v1307_v37  ;;  %v1371_v45 = vpack.c.bf16 %v939_v39, %v935_v38  ;;  %v799_v46 = vcvt.s32.f32 %v287_v40  ;;  %v351_v47 = vunpack.c.0.s8 %v163_v14  ;;  %v355_v48 = vunpack.c.1.s8 %v163_v14  ;;  %v219_v37 = vld [vmem:[#allocation6 + $0x268] sm:$0xff] }
  0x89   :  { %1691 = vmatpush.bf16.msra.mxu1 %v1339_v41  ;;  %v1403_v50 = vpack.c.bf16 %v1003_v43, %v999_v42  ;;  %v803_v51 = vcvt.s32.f32 %v291_v44  ;;  %v415_v52 = vunpack.c.0.s8 %v179_v19  ;;  %v419_v54 = vunpack.c.1.s8 %v179_v19 }
  0x8a   :  { %1704 = vmatpush.bf16.msra.mxu2 %v1371_v45  ;;  %v863_v55 = vcvt.s32.f32 %v351_v47  ;;  %v867_v56 = vcvt.s32.f32 %v355_v48  ;;  %v479_v57 = vunpack.c.0.s8 %v195_v24  ;;  %v483_v59 = vunpack.c.1.s8 %v195_v24 }
  0x8b   :  { %1717 = vmatpush.bf16.msra.mxu3 %v1403_v50  ;;  %v1303_v63 = vpack.c.bf16 %v803_v51, %v799_v46  ;;  %v927_v0 = vcvt.s32.f32 %v415_v52  ;;  %v931_v2 = vcvt.s32.f32 %v419_v54  ;;  %v279_v4 = vunpack.c.2.s8 %v143_v49  ;;  %v235_v46 = vld [vmem:[#allocation6 + $0x2e8] sm:$0xff] }
  0x8c   :  { %v1335_v6 = vpack.c.bf16 %v867_v56, %v863_v55  ;;  %v991_v9 = vcvt.s32.f32 %v479_v57  ;;  %v995_v10 = vcvt.s32.f32 %v483_v59  ;;  %v283_v11 = vunpack.c.3.s8 %v143_v49  ;;  %v251_v51 = vld [vmem:[#allocation6 + $0x368] sm:$0xff] }
  0x8d   :  { %1679 = vmatpush.bf16.msra.mxu0 %v1303_v63  ;;  %v1367_v13 = vpack.c.bf16 %v931_v2, %v927_v0  ;;  %v791_v14 = vcvt.s32.f32 %v279_v4  ;;  %v343_v15 = vunpack.c.2.s8 %v159_v60  ;;  %v347_v16 = vunpack.c.3.s8 %v159_v60  ;;  %v267_v57 = vld [vmem:[#allocation6 + $0x3e8] sm:$0xff] }
  0x8e   :  { %1692 = vmatpush.bf16.msra.mxu1 %v1335_v6  ;;  %v1399_v17 = vpack.c.bf16 %v995_v10, %v991_v9  ;;  %v795_v18 = vcvt.s32.f32 %v283_v11  ;;  %v407_v19 = vunpack.c.2.s8 %v175_v5  ;;  %v411_v20 = vunpack.c.3.s8 %v175_v5 }
  0x8f   :  { %1705 = vmatpush.bf16.msra.mxu2 %v1367_v13  ;;  %v855_v21 = vcvt.s32.f32 %v343_v15  ;;  %v859_v22 = vcvt.s32.f32 %v347_v16  ;;  %v471_v23 = vunpack.c.2.s8 %v191_v12  ;;  %v475_v24 = vunpack.c.3.s8 %v191_v12 }
  0x90   :  { %1718 = vmatpush.bf16.msra.mxu3 %v1399_v17  ;;  %v1299_v25 = vpack.c.bf16 %v795_v18, %v791_v14  ;;  %v919_v26 = vcvt.s32.f32 %v407_v19  ;;  %v923_v27 = vcvt.s32.f32 %v411_v20  ;;  %v271_v28 = vunpack.c.0.s8 %v143_v49 }
  0x91   :  { %v1331_v29 = vpack.c.bf16 %v859_v22, %v855_v21  ;;  %v983_v30 = vcvt.s32.f32 %v471_v23  ;;  %v987_v31 = vcvt.s32.f32 %v475_v24  ;;  %v275_v32 = vunpack.c.1.s8 %v143_v49 }
  0x92   :  { %1680 = vmatpush.bf16.msra.mxu0 %v1299_v25  ;;  %v1363_v33 = vpack.c.bf16 %v923_v27, %v919_v26  ;;  %v783_v34 = vcvt.s32.f32 %v271_v28  ;;  %v335_v35 = vunpack.c.0.s8 %v159_v60  ;;  %v339_v36 = vunpack.c.1.s8 %v159_v60  ;;  %v215_v25 = vld [vmem:[#allocation6 + $0x248] sm:$0xff] }
  0x93   :  { %1693 = vmatpush.bf16.msra.mxu1 %v1331_v29  ;;  %v1395_v38 = vpack.c.bf16 %v987_v31, %v983_v30  ;;  %v787_v39 = vcvt.s32.f32 %v275_v32  ;;  %v399_v40 = vunpack.c.0.s8 %v175_v5  ;;  %v403_v41 = vunpack.c.1.s8 %v175_v5  ;;  %v231_v32 = vld [vmem:[#allocation6 + $0x2c8] sm:$0xff] }
  0x94   :  { %1706 = vmatpush.bf16.msra.mxu2 %v1363_v33  ;;  %v847_v42 = vcvt.s32.f32 %v335_v35  ;;  %v851_v43 = vcvt.s32.f32 %v339_v36  ;;  %v463_v44 = vunpack.c.0.s8 %v191_v12  ;;  %v467_v45 = vunpack.c.1.s8 %v191_v12 }
  0x95   :  { %1719 = vmatpush.bf16.msra.mxu3 %v1395_v38  ;;  %v1295_v47 = vpack.c.bf16 %v787_v39, %v783_v34  ;;  %v911_v48 = vcvt.s32.f32 %v399_v40  ;;  %v915_v49 = vcvt.s32.f32 %v403_v41  ;;  %v583_v50 = vunpack.c.2.s8 %v219_v37  ;;  %v263_v41 = vld [vmem:[#allocation6 + $0x3c8] sm:$0xff] }
  0x96   :  { %v1327_v52 = vpack.c.bf16 %v851_v43, %v847_v42  ;;  %v975_v54 = vcvt.s32.f32 %v463_v44  ;;  %v979_v55 = vcvt.s32.f32 %v467_v45  ;;  %v587_v56 = vunpack.c.3.s8 %v219_v37 }
  0x97   :  { %1681 = vmatpush.bf16.msra.mxu0 %v1295_v47  ;;  %v1359_v59 = vpack.c.bf16 %v915_v49, %v911_v48  ;;  %v1095_v60 = vcvt.s32.f32 %v583_v50  ;;  %v647_v63 = vunpack.c.2.s8 %v235_v46  ;;  %v651_v0 = vunpack.c.3.s8 %v235_v46 }
  0x98   :  { %1694 = vmatpush.bf16.msra.mxu1 %v1327_v52  ;;  %v1391_v2 = vpack.c.bf16 %v979_v55, %v975_v54  ;;  %v1099_v4 = vcvt.s32.f32 %v587_v56  ;;  %v711_v5 = vunpack.c.2.s8 %v251_v51  ;;  %v715_v6 = vunpack.c.3.s8 %v251_v51 }
  0x99   :  { %1707 = vmatpush.bf16.msra.mxu2 %v1359_v59  ;;  %v1159_v9 = vcvt.s32.f32 %v647_v63  ;;  %v1163_v10 = vcvt.s32.f32 %v651_v0  ;;  %v775_v11 = vunpack.c.2.s8 %v267_v57  ;;  %v779_v12 = vunpack.c.3.s8 %v267_v57 }
  0x9a   :  { %1720 = vmatpush.bf16.msra.mxu3 %v1391_v2  ;;  %v1451_v13 = vpack.c.bf16 %v1099_v4, %v1095_v60  ;;  %v1223_v14 = vcvt.s32.f32 %v711_v5  ;;  %v1227_v15 = vcvt.s32.f32 %v715_v6  ;;  %v575_v16 = vunpack.c.0.s8 %v219_v37  ;;  %1682 = vmatmul.bf16.vlgmr.msra.gmra.mxu0 %v3574_v61 }
  0x9b   :  { %v1483_v17 = vpack.c.bf16 %v1163_v10, %v1159_v9  ;;  %v1287_v18 = vcvt.s32.f32 %v775_v11  ;;  %v1291_v19 = vcvt.s32.f32 %v779_v12  ;;  %v579_v20 = vunpack.c.1.s8 %v219_v37  ;;  %1695 = vmatmul.bf16.vlgmr.msra.gmra.mxu1 %v3576_v62  ;;  %v247_v37 = vld [vmem:[#allocation6 + $0x348] sm:$0xff] }
  0x9c   :  { %1726 = vmatpush.bf16.msrb.mxu0 %v1451_v13  ;;  %v1515_v21 = vpack.c.bf16 %v1227_v15, %v1223_v14  ;;  %v1087_v22 = vcvt.s32.f32 %v575_v16  ;;  %v639_v23 = vunpack.c.0.s8 %v235_v46  ;;  %v643_v24 = vunpack.c.1.s8 %v235_v46  ;;  %1708 = vmatmul.bf16.vlgmr.msra.gmra.mxu2 %v3578_v3  ;;  %v211_v9 = vld [vmem:[#allocation6 + $0x228] sm:$0xff] }
  0x9d   :  { %1739 = vmatpush.bf16.msrb.mxu1 %v1483_v17  ;;  %v1547_v26 = vpack.c.bf16 %v1291_v19, %v1287_v18  ;;  %v1091_v27 = vcvt.s32.f32 %v579_v20  ;;  %v703_v28 = vunpack.c.0.s8 %v251_v51  ;;  %v707_v29 = vunpack.c.1.s8 %v251_v51  ;;  %1721 = vmatmul.bf16.vlgmr.msra.gmra.mxu3 %v3581_v8  ;;  %v227_v18 = vld [vmem:[#allocation6 + $0x2a8] sm:$0xff] }
  0x9e   :  { %1752 = vmatpush.bf16.msrb.mxu2 %v1515_v21  ;;  %v1151_v61 = vcvt.s32.f32 %v639_v23  ;;  %v1155_v30 = vcvt.s32.f32 %v643_v24  ;;  %v767_v31 = vunpack.c.0.s8 %v267_v57  ;;  %v771_v62 = vunpack.c.1.s8 %v267_v57  ;;  %v243_v23 = vld [vmem:[#allocation6 + $0x328] sm:$0xff] }
  0x9f   :  { %1765 = vmatpush.bf16.msrb.mxu3 %v1547_v26  ;;  %v1447_v33 = vpack.c.bf16 %v1091_v27, %v1087_v22  ;;  %v1215_v34 = vcvt.s32.f32 %v703_v28  ;;  %v1219_v35 = vcvt.s32.f32 %v707_v29  ;;  %v567_v36 = vunpack.c.2.s8 %v215_v25  ;;  %v259_v28 = vld [vmem:[#allocation6 + $0x3a8] sm:$0xff] }
  0xa0   :  { %v1479_v3 = vpack.c.bf16 %v1155_v30, %v1151_v61  ;;  %v1279_v38 = vcvt.s32.f32 %v767_v31  ;;  %v1283_v39 = vcvt.s32.f32 %v771_v62  ;;  %v571_v40 = vunpack.c.3.s8 %v215_v25 }
  0xa1   :  { %1727 = vmatpush.bf16.msrb.mxu0 %v1447_v33  ;;  %v1511_v42 = vpack.c.bf16 %v1219_v35, %v1215_v34  ;;  %v1079_v8 = vcvt.s32.f32 %v567_v36  ;;  %v631_v43 = vunpack.c.2.s8 %v231_v32  ;;  %v635_v44 = vunpack.c.3.s8 %v231_v32 }
  0xa2   :  { %1740 = vmatpush.bf16.msrb.mxu1 %v1479_v3  ;;  %v1543_v45 = vpack.c.bf16 %v1283_v39, %v1279_v38  ;;  %v1083_v46 = vcvt.s32.f32 %v571_v40  ;;  %v695_v47 = vunpack.c.2.s8 %v247_v37  ;;  %v699_v48 = vunpack.c.3.s8 %v247_v37 }
  0xa3   :  { %1753 = vmatpush.bf16.msrb.mxu2 %v1511_v42  ;;  %v1143_v49 = vcvt.s32.f32 %v631_v43  ;;  %v1147_v50 = vcvt.s32.f32 %v635_v44  ;;  %v759_v51 = vunpack.c.2.s8 %v263_v41  ;;  %v763_v52 = vunpack.c.3.s8 %v263_v41 }
  0xa4   :  { %1766 = vmatpush.bf16.msrb.mxu3 %v1543_v45  ;;  %v1443_v54 = vpack.c.bf16 %v1083_v46, %v1079_v8  ;;  %v1207_v55 = vcvt.s32.f32 %v695_v47  ;;  %v1211_v56 = vcvt.s32.f32 %v699_v48  ;;  %v559_v57 = vunpack.c.0.s8 %v215_v25 }
  0xa5   :  { %v1475_v59 = vpack.c.bf16 %v1147_v50, %v1143_v49  ;;  %v1271_v60 = vcvt.s32.f32 %v759_v51  ;;  %v1275_v63 = vcvt.s32.f32 %v763_v52  ;;  %v563_v0 = vunpack.c.1.s8 %v215_v25  ;;  %v207_v49 = vld [vmem:[#allocation6 + $0x208] sm:$0xff] }
  0xa6   :  { %1728 = vmatpush.bf16.msrb.mxu0 %v1443_v54  ;;  %v1507_v2 = vpack.c.bf16 %v1211_v56, %v1207_v55  ;;  %v1071_v4 = vcvt.s32.f32 %v559_v57  ;;  %v623_v5 = vunpack.c.0.s8 %v231_v32  ;;  %v627_v6 = vunpack.c.1.s8 %v231_v32 }
  0xa7   :  { %1741 = vmatpush.bf16.msrb.mxu1 %v1475_v59  ;;  %v1539_v10 = vpack.c.bf16 %v1275_v63, %v1271_v60  ;;  %v1075_v11 = vcvt.s32.f32 %v563_v0  ;;  %v687_v12 = vunpack.c.0.s8 %v247_v37  ;;  %v691_v13 = vunpack.c.1.s8 %v247_v37  ;;  %v223_v60 = vld [vmem:[#allocation6 + $0x288] sm:$0xff] }
  0xa8   :  { %1754 = vmatpush.bf16.msrb.mxu2 %v1507_v2  ;;  %v1135_v14 = vcvt.s32.f32 %v623_v5  ;;  %v1139_v15 = vcvt.s32.f32 %v627_v6  ;;  %v751_v16 = vunpack.c.0.s8 %v263_v41  ;;  %v755_v17 = vunpack.c.1.s8 %v263_v41  ;;  %v239_v5 = vld [vmem:[#allocation6 + $0x308] sm:$0xff] }
  0xa9   :  { %1767 = vmatpush.bf16.msrb.mxu3 %v1539_v10  ;;  %v1439_v19 = vpack.c.bf16 %v1075_v11, %v1071_v4  ;;  %v1199_v20 = vcvt.s32.f32 %v687_v12  ;;  %v1203_v21 = vcvt.s32.f32 %v691_v13  ;;  %v551_v22 = vunpack.c.2.s8 %v211_v9  ;;  %v255_v12 = vld [vmem:[#allocation6 + $0x388] sm:$0xff] }
  0xaa   :  { %v1471_v24 = vpack.c.bf16 %v1139_v15, %v1135_v14  ;;  %v1263_v25 = vcvt.s32.f32 %v751_v16  ;;  %v1267_v26 = vcvt.s32.f32 %v755_v17  ;;  %v555_v27 = vunpack.c.3.s8 %v211_v9 }
  0xab   :  { %1729 = vmatpush.bf16.msrb.mxu0 %v1439_v19  ;;  %v1503_v29 = vpack.c.bf16 %v1203_v21, %v1199_v20  ;;  %v1063_v61 = vcvt.s32.f32 %v551_v22  ;;  %v615_v30 = vunpack.c.2.s8 %v227_v18  ;;  %v619_v31 = vunpack.c.3.s8 %v227_v18 }
  0xac   :  { %1742 = vmatpush.bf16.msrb.mxu1 %v1471_v24  ;;  %v1535_v62 = vpack.c.bf16 %v1267_v26, %v1263_v25  ;;  %v1067_v32 = vcvt.s32.f32 %v555_v27  ;;  %v679_v33 = vunpack.c.2.s8 %v243_v23  ;;  %v683_v34 = vunpack.c.3.s8 %v243_v23 }
  0xad   :  { %1755 = vmatpush.bf16.msrb.mxu2 %v1503_v29  ;;  %v1127_v35 = vcvt.s32.f32 %v615_v30  ;;  %v1131_v36 = vcvt.s32.f32 %v619_v31  ;;  %v743_v37 = vunpack.c.2.s8 %v259_v28  ;;  %v747_v3 = vunpack.c.3.s8 %v259_v28 }
  0xae   :  { %1768 = vmatpush.bf16.msrb.mxu3 %v1535_v62  ;;  %v1435_v38 = vpack.c.bf16 %v1067_v32, %v1063_v61  ;;  %v1191_v39 = vcvt.s32.f32 %v679_v33  ;;  %v1195_v40 = vcvt.s32.f32 %v683_v34  ;;  %v543_v41 = vunpack.c.0.s8 %v211_v9 }
  0xaf   :  { %v1467_v42 = vpack.c.bf16 %v1131_v36, %v1127_v35  ;;  %v1255_v8 = vcvt.s32.f32 %v743_v37  ;;  %v1259_v43 = vcvt.s32.f32 %v747_v3  ;;  %v547_v44 = vunpack.c.1.s8 %v211_v9  ;;  %v156_v35 = vld [vmem:[#allocation6 + $0x70] sm:$0xff] }
  0xb0   :  { %1730 = vmatpush.bf16.msrb.mxu0 %v1435_v38  ;;  %v1499_v45 = vpack.c.bf16 %v1195_v40, %v1191_v39  ;;  %v1055_v46 = vcvt.s32.f32 %v543_v41  ;;  %v607_v47 = vunpack.c.0.s8 %v227_v18  ;;  %v611_v48 = vunpack.c.1.s8 %v227_v18 }
  0xb1   :  { %1743 = vmatpush.bf16.msrb.mxu1 %v1467_v42  ;;  %v1531_v50 = vpack.c.bf16 %v1259_v43, %v1255_v8  ;;  %v1059_v51 = vcvt.s32.f32 %v547_v44  ;;  %v671_v52 = vunpack.c.0.s8 %v243_v23  ;;  %v675_v54 = vunpack.c.1.s8 %v243_v23  ;;  %v172_v8 = vld [vmem:[#allocation6 + $0xf0] sm:$0xff] }
  0xb2   :  { %1756 = vmatpush.bf16.msrb.mxu2 %v1499_v45  ;;  %v1119_v55 = vcvt.s32.f32 %v607_v47  ;;  %v1123_v56 = vcvt.s32.f32 %v611_v48  ;;  %v735_v57 = vunpack.c.0.s8 %v259_v28  ;;  %v739_v59 = vunpack.c.1.s8 %v259_v28  ;;  %v188_v47 = vld [vmem:[#allocation6 + $0x170] sm:$0xff] }
  0xb3   :  { %1769 = vmatpush.bf16.msrb.mxu3 %v1531_v50  ;;  %v1431_v63 = vpack.c.bf16 %v1059_v51, %v1055_v46  ;;  %v1183_v0 = vcvt.s32.f32 %v671_v52  ;;  %v1187_v2 = vcvt.s32.f32 %v675_v54  ;;  %v535_v4 = vunpack.c.2.s8 %v207_v49  ;;  %v204_v52 = vld [vmem:[#allocation6 + $0x1f0] sm:$0xff] }
  0xb4   :  { %v1463_v6 = vpack.c.bf16 %v1123_v56, %v1119_v55  ;;  %v1247_v9 = vcvt.s32.f32 %v735_v57  ;;  %v1251_v10 = vcvt.s32.f32 %v739_v59  ;;  %v539_v11 = vunpack.c.3.s8 %v207_v49 }
  0xb5   :  { %1731 = vmatpush.bf16.msrb.mxu0 %v1431_v63  ;;  %v1495_v13 = vpack.c.bf16 %v1187_v2, %v1183_v0  ;;  %v1047_v14 = vcvt.s32.f32 %v535_v4  ;;  %v599_v15 = vunpack.c.2.s8 %v223_v60  ;;  %v603_v16 = vunpack.c.3.s8 %v223_v60 }
  0xb6   :  { %1744 = vmatpush.bf16.msrb.mxu1 %v1463_v6  ;;  %v1527_v17 = vpack.c.bf16 %v1251_v10, %v1247_v9  ;;  %v1051_v18 = vcvt.s32.f32 %v539_v11  ;;  %v663_v19 = vunpack.c.2.s8 %v239_v5  ;;  %v667_v20 = vunpack.c.3.s8 %v239_v5 }
  0xb7   :  { %1757 = vmatpush.bf16.msrb.mxu2 %v1495_v13  ;;  %v1111_v21 = vcvt.s32.f32 %v599_v15  ;;  %v1115_v22 = vcvt.s32.f32 %v603_v16  ;;  %v727_v23 = vunpack.c.2.s8 %v255_v12  ;;  %v731_v24 = vunpack.c.3.s8 %v255_v12 }
  0xb8   :  { %1770 = vmatpush.bf16.msrb.mxu3 %v1527_v17  ;;  %v1427_v25 = vpack.c.bf16 %v1051_v18, %v1047_v14  ;;  %v1175_v26 = vcvt.s32.f32 %v663_v19  ;;  %v1179_v27 = vcvt.s32.f32 %v667_v20  ;;  %v527_v28 = vunpack.c.0.s8 %v207_v49 }
  0xb9   :  { %v1459_v29 = vpack.c.bf16 %v1115_v22, %v1111_v21  ;;  %v1239_v61 = vcvt.s32.f32 %v727_v23  ;;  %v1243_v30 = vcvt.s32.f32 %v731_v24  ;;  %v531_v31 = vunpack.c.1.s8 %v207_v49  ;;  %v152_v21 = vld [vmem:[#allocation6 + $0x50] sm:$0xff] }
  0xba   :  { %1732 = vmatpush.bf16.msrb.mxu0 %v1427_v25  ;;  %v1491_v62 = vpack.c.bf16 %v1179_v27, %v1175_v26  ;;  %v1039_v32 = vcvt.s32.f32 %v527_v28  ;;  %v591_v33 = vunpack.c.0.s8 %v223_v60  ;;  %v595_v34 = vunpack.c.1.s8 %v223_v60  ;;  %v168_v28 = vld [vmem:[#allocation6 + $0xd0] sm:$0xff] }
  0xbb   :  { %1745 = vmatpush.bf16.msrb.mxu1 %v1459_v29  ;;  %v1523_v36 = vpack.c.bf16 %v1243_v30, %v1239_v61  ;;  %v1043_v37 = vcvt.s32.f32 %v531_v31  ;;  %v655_v3 = vunpack.c.0.s8 %v239_v5  ;;  %v659_v38 = vunpack.c.1.s8 %v239_v5  ;;  %v184_v31 = vld [vmem:[#allocation6 + $0x150] sm:$0xff] }
  0xbc   :  { %1758 = vmatpush.bf16.msrb.mxu2 %v1491_v62  ;;  %v1103_v39 = vcvt.s32.f32 %v591_v33  ;;  %v1107_v40 = vcvt.s32.f32 %v595_v34  ;;  %v719_v41 = vunpack.c.0.s8 %v255_v12  ;;  %v723_v42 = vunpack.c.1.s8 %v255_v12 }
  0xbd   :  { %1771 = vmatpush.bf16.msrb.mxu3 %v1523_v36  ;;  %v1423_v43 = vpack.c.bf16 %v1043_v37, %v1039_v32  ;;  %v1167_v44 = vcvt.s32.f32 %v655_v3  ;;  %v1171_v45 = vcvt.s32.f32 %v659_v38  ;;  %v328_v46 = vunpack.c.2.s8 %v156_v35 }
  0xbe   :  { %v1455_v48 = vpack.c.bf16 %v1107_v40, %v1103_v39  ;;  %v1231_v49 = vcvt.s32.f32 %v719_v41  ;;  %v1235_v50 = vcvt.s32.f32 %v723_v42  ;;  %v332_v51 = vunpack.c.3.s8 %v156_v35 }
  0xbf   :  { %1733 = vmatpush.bf16.msrb.mxu0 %v1423_v43  ;;  %v1487_v54 = vpack.c.bf16 %v1171_v45, %v1167_v44  ;;  %v840_v55 = vcvt.s32.f32 %v328_v46  ;;  %v392_v56 = vunpack.c.2.s8 %v172_v8  ;;  %v396_v57 = vunpack.c.3.s8 %v172_v8 }
  0xc0   :  { %1746 = vmatpush.bf16.msrb.mxu1 %v1455_v48  ;;  %v1519_v59 = vpack.c.bf16 %v1235_v50, %v1231_v49  ;;  %v844_v60 = vcvt.s32.f32 %v332_v51  ;;  %v456_v63 = vunpack.c.2.s8 %v188_v47  ;;  %v460_v0 = vunpack.c.3.s8 %v188_v47 }
  0xc1   :  { %1759 = vmatpush.bf16.msrb.mxu2 %v1487_v54  ;;  %v904_v2 = vcvt.s32.f32 %v392_v56  ;;  %v908_v4 = vcvt.s32.f32 %v396_v57  ;;  %v520_v5 = vunpack.c.2.s8 %v204_v52  ;;  %v524_v6 = vunpack.c.3.s8 %v204_v52 }
  0xc2   :  { %1772 = vmatpush.bf16.msrb.mxu3 %v1519_v59  ;;  %v1324_v9 = vpack.c.bf16 %v844_v60, %v840_v55  ;;  %v968_v10 = vcvt.s32.f32 %v456_v63  ;;  %v972_v11 = vcvt.s32.f32 %v460_v0  ;;  %1734 = vmatmul.bf16.vlgmr.msrb.gmra.mxu0 %v3586_v53  ;;  %v320_v12 = vunpack.c.0.s8 %v156_v35  ;;  %v148_v59 = vld [vmem:[#allocation6 + $0x30] sm:$0xff] }
  0xc3   :  { %v1356_v13 = vpack.c.bf16 %v908_v4, %v904_v2  ;;  %v1032_v14 = vcvt.s32.f32 %v520_v5  ;;  %v1036_v15 = vcvt.s32.f32 %v524_v6  ;;  %v324_v16 = vunpack.c.1.s8 %v156_v35  ;;  %1747 = vmatmul.bf16.vlgmr.msrb.gmra.mxu1 %v3588_v58 }
  0xc4   :  { %1778 = vmatpush.bf16.msra.mxu0 %v1324_v9  ;;  %v1388_v17 = vpack.c.bf16 %v972_v11, %v968_v10  ;;  %1760 = vmatmul.bf16.vlgmr.msrb.gmra.mxu2 %v3590_v1  ;;  %v832_v18 = vcvt.s32.f32 %v320_v12  ;;  %v384_v19 = vunpack.c.0.s8 %v172_v8  ;;  %v388_v20 = vunpack.c.1.s8 %v172_v8  ;;  %v164_v10 = vld [vmem:[#allocation6 + $0xb0] sm:$0xff] }
  0xc5   :  { %1791 = vmatpush.bf16.msra.mxu1 %v1356_v13  ;;  %v1420_v22 = vpack.c.bf16 %v1036_v15, %v1032_v14  ;;  %1773 = vmatmul.bf16.vlgmr.msrb.gmra.mxu3 %v3593_v7  ;;  %v836_v53 = vcvt.s32.f32 %v324_v16  ;;  %v448_v23 = vunpack.c.0.s8 %v188_v47  ;;  %v452_v24 = vunpack.c.1.s8 %v188_v47  ;;  %v200_v7 = vld [vmem:[#allocation6 + $0x1d0] sm:$0xff] }
  0xc6   :  { %1804 = vmatpush.bf16.msra.mxu2 %v1388_v17  ;;  %v896_v25 = vcvt.s32.f32 %v384_v19  ;;  %v900_v26 = vcvt.s32.f32 %v388_v20  ;;  %v512_v27 = vunpack.c.0.s8 %v204_v52  ;;  %v516_v58 = vunpack.c.1.s8 %v204_v52  ;;  %v180_v15 = vld [vmem:[#allocation6 + $0x130] sm:$0xff] }
  0xc7   :  { %1817 = vmatpush.bf16.msra.mxu3 %v1420_v22  ;;  %v1320_v29 = vpack.c.bf16 %v836_v53, %v832_v18  ;;  %v960_v1 = vcvt.s32.f32 %v448_v23  ;;  %v964_v61 = vcvt.s32.f32 %v452_v24  ;;  %v312_v30 = vunpack.c.2.s8 %v152_v21  ;;  %v196_v20 = vld [vmem:[#allocation6 + $0x1b0] sm:$0xff] }
  0xc8   :  { %v1352_v62 = vpack.c.bf16 %v900_v26, %v896_v25  ;;  %v1024_v32 = vcvt.s32.f32 %v512_v27  ;;  %v1028_v33 = vcvt.s32.f32 %v516_v58  ;;  %v316_v34 = vunpack.c.3.s8 %v152_v21 }
  0xc9   :  { %1779 = vmatpush.bf16.msra.mxu0 %v1320_v29  ;;  %v1384_v35 = vpack.c.bf16 %v964_v61, %v960_v1  ;;  %v824_v36 = vcvt.s32.f32 %v312_v30  ;;  %v376_v37 = vunpack.c.2.s8 %v168_v28  ;;  %v380_v3 = vunpack.c.3.s8 %v168_v28 }
  0xca   :  { %1792 = vmatpush.bf16.msra.mxu1 %v1352_v62  ;;  %v1416_v38 = vpack.c.bf16 %v1028_v33, %v1024_v32  ;;  %v828_v39 = vcvt.s32.f32 %v316_v34  ;;  %v440_v40 = vunpack.c.2.s8 %v184_v31  ;;  %v444_v41 = vunpack.c.3.s8 %v184_v31 }
  0xcb   :  { %1805 = vmatpush.bf16.msra.mxu2 %v1384_v35  ;;  %v888_v42 = vcvt.s32.f32 %v376_v37  ;;  %v892_v8 = vcvt.s32.f32 %v380_v3  ;;  %v504_v43 = vunpack.c.2.s8 %v200_v7  ;;  %v508_v44 = vunpack.c.3.s8 %v200_v7 }
  0xcc   :  { %1818 = vmatpush.bf16.msra.mxu3 %v1416_v38  ;;  %v1316_v45 = vpack.c.bf16 %v828_v39, %v824_v36  ;;  %v952_v46 = vcvt.s32.f32 %v440_v40  ;;  %v956_v47 = vcvt.s32.f32 %v444_v41  ;;  %v304_v48 = vunpack.c.0.s8 %v152_v21  ;;  %v144_v38 = vld [vmem:[#allocation6 + $0x10] sm:$0xff] }
  0xcd   :  { %v1348_v49 = vpack.c.bf16 %v892_v8, %v888_v42  ;;  %v1016_v50 = vcvt.s32.f32 %v504_v43  ;;  %v1020_v51 = vcvt.s32.f32 %v508_v44  ;;  %v308_v52 = vunpack.c.1.s8 %v152_v21 }
  0xce   :  { %1780 = vmatpush.bf16.msra.mxu0 %v1316_v45  ;;  %v1380_v54 = vpack.c.bf16 %v956_v47, %v952_v46  ;;  %v816_v55 = vcvt.s32.f32 %v304_v48  ;;  %v368_v56 = vunpack.c.0.s8 %v168_v28  ;;  %v372_v57 = vunpack.c.1.s8 %v168_v28  ;;  %v160_v46 = vld [vmem:[#allocation6 + $0x90] sm:$0xff] }
  0xcf   :  { %1793 = vmatpush.bf16.msra.mxu1 %v1348_v49  ;;  %v1412_v60 = vpack.c.bf16 %v1020_v51, %v1016_v50  ;;  %v820_v63 = vcvt.s32.f32 %v308_v52  ;;  %v432_v0 = vunpack.c.0.s8 %v184_v31  ;;  %v436_v2 = vunpack.c.1.s8 %v184_v31  ;;  %v176_v51 = vld [vmem:[#allocation6 + $0x110] sm:$0xff] }
  0xd0   :  { %1806 = vmatpush.bf16.msra.mxu2 %v1380_v54  ;;  %v880_v4 = vcvt.s32.f32 %v368_v56  ;;  %v884_v5 = vcvt.s32.f32 %v372_v57  ;;  %v496_v6 = vunpack.c.0.s8 %v200_v7  ;;  %v500_v9 = vunpack.c.1.s8 %v200_v7  ;;  %v192_v57 = vld [vmem:[#allocation6 + $0x190] sm:$0xff] }
  0xd1   :  { %1819 = vmatpush.bf16.msra.mxu3 %v1412_v60  ;;  %v1312_v11 = vpack.c.bf16 %v820_v63, %v816_v55  ;;  %v944_v12 = vcvt.s32.f32 %v432_v0  ;;  %v948_v13 = vcvt.s32.f32 %v436_v2  ;;  %v296_v14 = vunpack.c.2.s8 %v148_v59 }
  0xd2   :  { %v1344_v16 = vpack.c.bf16 %v884_v5, %v880_v4  ;;  %v1008_v17 = vcvt.s32.f32 %v496_v6  ;;  %v1012_v18 = vcvt.s32.f32 %v500_v9  ;;  %v300_v19 = vunpack.c.3.s8 %v148_v59 }
  0xd3   :  { %1781 = vmatpush.bf16.msra.mxu0 %v1312_v11  ;;  %v1376_v21 = vpack.c.bf16 %v948_v13, %v944_v12  ;;  %v808_v22 = vcvt.s32.f32 %v296_v14  ;;  %v360_v53 = vunpack.c.2.s8 %v164_v10  ;;  %v364_v23 = vunpack.c.3.s8 %v164_v10 }
  0xd4   :  { %1794 = vmatpush.bf16.msra.mxu1 %v1344_v16  ;;  %v1408_v24 = vpack.c.bf16 %v1012_v18, %v1008_v17  ;;  %v812_v25 = vcvt.s32.f32 %v300_v19  ;;  %v424_v26 = vunpack.c.2.s8 %v180_v15  ;;  %v428_v27 = vunpack.c.3.s8 %v180_v15 }
  0xd5   :  { %1807 = vmatpush.bf16.msra.mxu2 %v1376_v21  ;;  %v872_v58 = vcvt.s32.f32 %v360_v53  ;;  %v876_v28 = vcvt.s32.f32 %v364_v23  ;;  %v488_v29 = vunpack.c.2.s8 %v196_v20  ;;  %v492_v1 = vunpack.c.3.s8 %v196_v20 }
  0xd6   :  { %1820 = vmatpush.bf16.msra.mxu3 %v1408_v24  ;;  %v1308_v61 = vpack.c.bf16 %v812_v25, %v808_v22  ;;  %v936_v30 = vcvt.s32.f32 %v424_v26  ;;  %v940_v31 = vcvt.s32.f32 %v428_v27  ;;  %v288_v62 = vunpack.c.0.s8 %v148_v59  ;;  %v220_v24 = vld [vmem:[#allocation6 + $0x270] sm:$0xff] }
  0xd7   :  { %v1340_v32 = vpack.c.bf16 %v876_v28, %v872_v58  ;;  %v1000_v33 = vcvt.s32.f32 %v488_v29  ;;  %v1004_v34 = vcvt.s32.f32 %v492_v1  ;;  %v292_v7 = vunpack.c.1.s8 %v148_v59 }
  0xd8   :  { %1782 = vmatpush.bf16.msra.mxu0 %v1308_v61  ;;  %v1372_v35 = vpack.c.bf16 %v940_v31, %v936_v30  ;;  %v800_v36 = vcvt.s32.f32 %v288_v62  ;;  %v352_v37 = vunpack.c.0.s8 %v164_v10  ;;  %v356_v3 = vunpack.c.1.s8 %v164_v10  ;;  %v236_v30 = vld [vmem:[#allocation6 + $0x2f0] sm:$0xff] }
  0xd9   :  { %1795 = vmatpush.bf16.msra.mxu1 %v1340_v32  ;;  %v1404_v39 = vpack.c.bf16 %v1004_v34, %v1000_v33  ;;  %v804_v40 = vcvt.s32.f32 %v292_v7  ;;  %v416_v41 = vunpack.c.0.s8 %v180_v15  ;;  %v420_v42 = vunpack.c.1.s8 %v180_v15  ;;  %v252_v34 = vld [vmem:[#allocation6 + $0x370] sm:$0xff] }
  0xda   :  { %1808 = vmatpush.bf16.msra.mxu2 %v1372_v35  ;;  %v864_v8 = vcvt.s32.f32 %v352_v37  ;;  %v868_v43 = vcvt.s32.f32 %v356_v3  ;;  %v480_v44 = vunpack.c.0.s8 %v196_v20  ;;  %v484_v45 = vunpack.c.1.s8 %v196_v20  ;;  %v268_v3 = vld [vmem:[#allocation6 + $0x3f0] sm:$0xff] }
  0xdb   :  { %1821 = vmatpush.bf16.msra.mxu3 %v1404_v39  ;;  %v1304_v47 = vpack.c.bf16 %v804_v40, %v800_v36  ;;  %v928_v48 = vcvt.s32.f32 %v416_v41  ;;  %v932_v49 = vcvt.s32.f32 %v420_v42  ;;  %v280_v50 = vunpack.c.2.s8 %v144_v38 }
  0xdc   :  { %v1336_v52 = vpack.c.bf16 %v868_v43, %v864_v8  ;;  %v992_v54 = vcvt.s32.f32 %v480_v44  ;;  %v996_v55 = vcvt.s32.f32 %v484_v45  ;;  %v284_v56 = vunpack.c.3.s8 %v144_v38 }
  0xdd   :  { %1783 = vmatpush.bf16.msra.mxu0 %v1304_v47  ;;  %v1368_v59 = vpack.c.bf16 %v932_v49, %v928_v48  ;;  %v792_v60 = vcvt.s32.f32 %v280_v50  ;;  %v344_v63 = vunpack.c.2.s8 %v160_v46  ;;  %v348_v0 = vunpack.c.3.s8 %v160_v46 }
  0xde   :  { %1796 = vmatpush.bf16.msra.mxu1 %v1336_v52  ;;  %v1400_v2 = vpack.c.bf16 %v996_v55, %v992_v54  ;;  %v796_v4 = vcvt.s32.f32 %v284_v56  ;;  %v408_v5 = vunpack.c.2.s8 %v176_v51  ;;  %v412_v6 = vunpack.c.3.s8 %v176_v51  ;;  %v3606_v54 = vld [vmem:[#allocation1] sm:$0xff] }
  0xdf   :  { %1809 = vmatpush.bf16.msra.mxu2 %v1368_v59  ;;  %v856_v9 = vcvt.s32.f32 %v344_v63  ;;  %v860_v10 = vcvt.s32.f32 %v348_v0  ;;  %v472_v11 = vunpack.c.2.s8 %v192_v57  ;;  %v476_v12 = vunpack.c.3.s8 %v192_v57 }
  0xe0   :  { %1822 = vmatpush.bf16.msra.mxu3 %v1400_v2  ;;  %v1300_v13 = vpack.c.bf16 %v796_v4, %v792_v60  ;;  %v920_v14 = vcvt.s32.f32 %v408_v5  ;;  %v924_v15 = vcvt.s32.f32 %v412_v6  ;;  %v272_v16 = vunpack.c.0.s8 %v144_v38  ;;  %v3609_v60 = vld [vmem:[#allocation1 + $0x9] sm:$0xff]  ;;  %v216_v5 = vld [vmem:[#allocation6 + $0x250] sm:$0xff]  ;;  %v3612_v6 = vld [vmem:[#allocation1 + $0x12] sm:$0xff] }
  0xe1   :  { %v1332_v17 = vpack.c.bf16 %v860_v10, %v856_v9  ;;  %v984_v18 = vcvt.s32.f32 %v472_v11  ;;  %v988_v19 = vcvt.s32.f32 %v476_v12  ;;  %v276_v20 = vunpack.c.1.s8 %v144_v38 }
  0xe2   :  { %1784 = vmatpush.bf16.msra.mxu0 %v1300_v13  ;;  %v1364_v21 = vpack.c.bf16 %v924_v15, %v920_v14  ;;  %v784_v22 = vcvt.s32.f32 %v272_v16  ;;  %v336_v53 = vunpack.c.0.s8 %v160_v46  ;;  %v340_v23 = vunpack.c.1.s8 %v160_v46  ;;  %v3615_v13 = vld [vmem:[#allocation1 + $0x1b] sm:$0xff] }
  0xe3   :  { %1797 = vmatpush.bf16.msra.mxu1 %v1332_v17  ;;  %v1396_v25 = vpack.c.bf16 %v988_v19, %v984_v18  ;;  %v788_v26 = vcvt.s32.f32 %v276_v20  ;;  %v400_v27 = vunpack.c.0.s8 %v176_v51  ;;  %v404_v58 = vunpack.c.1.s8 %v176_v51  ;;  %v232_v18 = vld [vmem:[#allocation6 + $0x2d0] sm:$0xff] }
  0xe4   :  { %1810 = vmatpush.bf16.msra.mxu2 %v1364_v21  ;;  %v848_v28 = vcvt.s32.f32 %v336_v53  ;;  %v852_v29 = vcvt.s32.f32 %v340_v23  ;;  %v464_v1 = vunpack.c.0.s8 %v192_v57  ;;  %v468_v61 = vunpack.c.1.s8 %v192_v57  ;;  %v248_v53 = vld [vmem:[#allocation6 + $0x350] sm:$0xff] }
  0xe5   :  { %1823 = vmatpush.bf16.msra.mxu3 %v1396_v25  ;;  %v1296_v31 = vpack.c.bf16 %v788_v26, %v784_v22  ;;  %v912_v62 = vcvt.s32.f32 %v400_v27  ;;  %v916_v32 = vcvt.s32.f32 %v404_v58  ;;  %v584_v33 = vunpack.c.2.s8 %v220_v24  ;;  %v264_v27 = vld [vmem:[#allocation6 + $0x3d0] sm:$0xff] }
  0xe6   :  { %v1328_v7 = vpack.c.bf16 %v852_v29, %v848_v28  ;;  %v976_v35 = vcvt.s32.f32 %v464_v1  ;;  %v980_v36 = vcvt.s32.f32 %v468_v61  ;;  %v588_v37 = vunpack.c.3.s8 %v220_v24 }
  0xe7   :  { %1785 = vmatpush.bf16.msra.mxu0 %v1296_v31  ;;  %v1360_v38 = vpack.c.bf16 %v916_v32, %v912_v62  ;;  %v1096_v39 = vcvt.s32.f32 %v584_v33  ;;  %v648_v40 = vunpack.c.2.s8 %v236_v30  ;;  %v652_v41 = vunpack.c.3.s8 %v236_v30 }
  0xe8   :  { %1798 = vmatpush.bf16.msra.mxu1 %v1328_v7  ;;  %v1392_v42 = vpack.c.bf16 %v980_v36, %v976_v35  ;;  %v1100_v8 = vcvt.s32.f32 %v588_v37  ;;  %v712_v43 = vunpack.c.2.s8 %v252_v34  ;;  %v716_v44 = vunpack.c.3.s8 %v252_v34 }
  0xe9   :  { %1811 = vmatpush.bf16.msra.mxu2 %v1360_v38  ;;  %v1160_v45 = vcvt.s32.f32 %v648_v40  ;;  %v1164_v46 = vcvt.s32.f32 %v652_v41  ;;  %v776_v47 = vunpack.c.2.s8 %v268_v3  ;;  %v780_v48 = vunpack.c.3.s8 %v268_v3 }
  0xea   :  { %1824 = vmatpush.bf16.msra.mxu3 %v1392_v42  ;;  %v1452_v49 = vpack.c.bf16 %v1100_v8, %v1096_v39  ;;  %v1224_v50 = vcvt.s32.f32 %v712_v43  ;;  %v1228_v51 = vcvt.s32.f32 %v716_v44  ;;  %v576_v52 = vunpack.c.0.s8 %v220_v24  ;;  %1786 = vmatmul.bf16.vlgmr.msra.gmra.mxu0 %v3606_v54 }
  0xeb   :  { %v1484_v55 = vpack.c.bf16 %v1164_v46, %v1160_v45  ;;  %v1288_v56 = vcvt.s32.f32 %v776_v47  ;;  %v1292_v57 = vcvt.s32.f32 %v780_v48  ;;  %v580_v59 = vunpack.c.1.s8 %v220_v24  ;;  %1799 = vmatmul.bf16.vlgmr.msra.gmra.mxu1 %v3609_v60  ;;  %v212_v45 = vld [vmem:[#allocation6 + $0x230] sm:$0xff] }
  0xec   :  { %1830 = vmatpush.bf16.msrb.mxu0 %v1452_v49  ;;  %v1516_v63 = vpack.c.bf16 %v1228_v51, %v1224_v50  ;;  %v1088_v0 = vcvt.s32.f32 %v576_v52  ;;  %v640_v2 = vunpack.c.0.s8 %v236_v30  ;;  %v644_v4 = vunpack.c.1.s8 %v236_v30  ;;  %1812 = vmatmul.bf16.vlgmr.msra.gmra.mxu2 %v3612_v6  ;;  %v3618_v50 = vpop.f32.mrf.mxu0  ;;  %v3620_v51 = vpop.f32.mrf.mxu1 }
  0xed   :  { %1843 = vmatpush.bf16.msrb.mxu1 %v1484_v55  ;;  %v1548_v9 = vpack.c.bf16 %v1292_v57, %v1288_v56  ;;  %v1092_v10 = vcvt.s32.f32 %v580_v59  ;;  %v704_v11 = vunpack.c.0.s8 %v252_v34  ;;  %v708_v12 = vunpack.c.1.s8 %v252_v34  ;;  %1825 = vmatmul.bf16.vlgmr.msra.gmra.mxu3 %v3615_v13  ;;  %v228_v59 = vld [vmem:[#allocation6 + $0x2b0] sm:$0xff] }
  0xee   :  { %1856 = vmatpush.bf16.msrb.mxu2 %v1516_v63  ;;  %v1152_v14 = vcvt.s32.f32 %v640_v2  ;;  %v1156_v15 = vcvt.s32.f32 %v644_v4  ;;  %v768_v16 = vunpack.c.0.s8 %v268_v3  ;;  %v772_v17 = vunpack.c.1.s8 %v268_v3 }
  0xef   :  { %1869 = vmatpush.bf16.msrb.mxu3 %v1548_v9  ;;  %v1448_v19 = vpack.c.bf16 %v1092_v10, %v1088_v0  ;;  %v1216_v20 = vcvt.s32.f32 %v704_v11  ;;  %v1220_v21 = vcvt.s32.f32 %v708_v12  ;;  %v568_v22 = vunpack.c.2.s8 %v216_v5 }
  0xf0   :  { %v1480_v23 = vpack.c.bf16 %v1156_v15, %v1152_v14  ;;  %v1280_v24 = vcvt.s32.f32 %v768_v16  ;;  %v1284_v25 = vcvt.s32.f32 %v772_v17  ;;  %v572_v26 = vunpack.c.3.s8 %v216_v5  ;;  %v260_v14 = vld [vmem:[#allocation6 + $0x3b0] sm:$0xff] }
  0xf1   :  { %1831 = vmatpush.bf16.msrb.mxu0 %v1448_v19  ;;  %v1512_v58 = vpack.c.bf16 %v1220_v21, %v1216_v20  ;;  %v1080_v28 = vcvt.s32.f32 %v568_v22  ;;  %v632_v29 = vunpack.c.2.s8 %v232_v18  ;;  %v636_v1 = vunpack.c.3.s8 %v232_v18 }
  0xf2   :  { %1844 = vmatpush.bf16.msrb.mxu1 %v1480_v23  ;;  %v1544_v61 = vpack.c.bf16 %v1284_v25, %v1280_v24  ;;  %v1084_v30 = vcvt.s32.f32 %v572_v26  ;;  %v696_v31 = vunpack.c.2.s8 %v248_v53  ;;  %v700_v62 = vunpack.c.3.s8 %v248_v53  ;;  %v3622_v26 = vpop.f32.mrf.mxu2 }
  0xf3   :  { %1857 = vmatpush.bf16.msrb.mxu2 %v1512_v58  ;;  %v1144_v32 = vcvt.s32.f32 %v632_v29  ;;  %v1148_v33 = vcvt.s32.f32 %v636_v1  ;;  %v760_v34 = vunpack.c.2.s8 %v264_v27  ;;  %v764_v7 = vunpack.c.3.s8 %v264_v27 }
  0xf4   :  { %1870 = vmatpush.bf16.msrb.mxu3 %v1544_v61  ;;  %v1444_v35 = vpack.c.bf16 %v1084_v30, %v1080_v28  ;;  %v1208_v36 = vcvt.s32.f32 %v696_v31  ;;  %v1212_v37 = vcvt.s32.f32 %v700_v62  ;;  %v560_v3 = vunpack.c.0.s8 %v216_v5 }
  0xf5   :  { %v1476_v38 = vpack.c.bf16 %v1148_v33, %v1144_v32  ;;  %v1272_v39 = vcvt.s32.f32 %v760_v34  ;;  %v1276_v40 = vcvt.s32.f32 %v764_v7  ;;  %v564_v41 = vunpack.c.1.s8 %v216_v5  ;;  %v244_v5 = vld [vmem:[#allocation6 + $0x330] sm:$0xff]  ;;  %v1581_v32 = vpop.f32.mrf.mxu0  ;;  %v1594_v33 = vpop.f32.mrf.mxu1 }
  0xf6   :  { %1832 = vmatpush.bf16.msrb.mxu0 %v1444_v35  ;;  %v1508_v42 = vpack.c.bf16 %v1212_v37, %v1208_v36  ;;  %v1072_v8 = vcvt.s32.f32 %v560_v3  ;;  %v624_v43 = vunpack.c.0.s8 %v232_v18  ;;  %v628_v44 = vunpack.c.1.s8 %v232_v18  ;;  %v208_v37 = vld [vmem:[#allocation6 + $0x210] sm:$0xff] }
  0xf7   :  { %1845 = vmatpush.bf16.msrb.mxu1 %v1476_v38  ;;  %v1540_v46 = vpack.c.bf16 %v1276_v40, %v1272_v39  ;;  %v1076_v47 = vcvt.s32.f32 %v564_v41  ;;  %v688_v48 = vunpack.c.0.s8 %v248_v53  ;;  %v692_v49 = vunpack.c.1.s8 %v248_v53 }
  0xf8   :  { %1858 = vmatpush.bf16.msrb.mxu2 %v1508_v42  ;;  %v1136_v52 = vcvt.s32.f32 %v624_v43  ;;  %v1140_v55 = vcvt.s32.f32 %v628_v44  ;;  %v752_v56 = vunpack.c.0.s8 %v264_v27  ;;  %v756_v57 = vunpack.c.1.s8 %v264_v27  ;;  %v3624_v27 = vpop.f32.mrf.mxu3  ;;  %v224_v44 = vld [vmem:[#allocation6 + $0x290] sm:$0xff] }
  0xf9   :  { %1871 = vmatpush.bf16.msrb.mxu3 %v1540_v46  ;;  %v1440_v63 = vpack.c.bf16 %v1076_v47, %v1072_v8  ;;  %v1200_v0 = vcvt.s32.f32 %v688_v48  ;;  %v1204_v2 = vcvt.s32.f32 %v692_v49  ;;  %v552_v4 = vunpack.c.2.s8 %v212_v45  ;;  %v240_v49 = vld [vmem:[#allocation6 + $0x310] sm:$0xff] }
  0xfa   :  { %v1472_v9 = vpack.c.bf16 %v1140_v55, %v1136_v52  ;;  %v1264_v10 = vcvt.s32.f32 %v752_v56  ;;  %v1268_v11 = vcvt.s32.f32 %v756_v57  ;;  %v556_v12 = vunpack.c.3.s8 %v212_v45 }
  0xfb   :  { %1833 = vmatpush.bf16.msrb.mxu0 %v1440_v63  ;;  %v1504_v15 = vpack.c.bf16 %v1204_v2, %v1200_v0  ;;  %v1064_v16 = vcvt.s32.f32 %v552_v4  ;;  %v616_v17 = vunpack.c.2.s8 %v228_v59  ;;  %v620_v18 = vunpack.c.3.s8 %v228_v59 }
  0xfc   :  { %1846 = vmatpush.bf16.msrb.mxu1 %v1472_v9  ;;  %v1536_v19 = vpack.c.bf16 %v1268_v11, %v1264_v10  ;;  %v1068_v20 = vcvt.s32.f32 %v556_v12  ;;  %v680_v21 = vunpack.c.2.s8 %v244_v5  ;;  %v684_v22 = vunpack.c.3.s8 %v244_v5 }
  0xfd   :  { %1859 = vmatpush.bf16.msrb.mxu2 %v1504_v15  ;;  %v1128_v53 = vcvt.s32.f32 %v616_v17  ;;  %v1132_v23 = vcvt.s32.f32 %v620_v18  ;;  %v744_v24 = vunpack.c.2.s8 %v260_v14  ;;  %v748_v25 = vunpack.c.3.s8 %v260_v14 }
  0xfe   :  { %1872 = vmatpush.bf16.msrb.mxu3 %v1536_v19  ;;  %v1436_v58 = vpack.c.bf16 %v1068_v20, %v1064_v16  ;;  %v1192_v28 = vcvt.s32.f32 %v680_v21  ;;  %v1196_v29 = vcvt.s32.f32 %v684_v22  ;;  %v544_v1 = vunpack.c.0.s8 %v212_v45 }
  0xff   :  { %v1468_v61 = vpack.c.bf16 %v1132_v23, %v1128_v53  ;;  %v1256_v30 = vcvt.s32.f32 %v744_v24  ;;  %v1260_v31 = vcvt.s32.f32 %v748_v25  ;;  %v548_v62 = vunpack.c.1.s8 %v212_v45 }
 0x100   :  { %1834 = vmatpush.bf16.msrb.mxu0 %v1436_v58  ;;  %v1500_v34 = vpack.c.bf16 %v1196_v29, %v1192_v28  ;;  %v1056_v7 = vcvt.s32.f32 %v544_v1  ;;  %v608_v35 = vunpack.c.0.s8 %v228_v59  ;;  %v612_v36 = vunpack.c.1.s8 %v228_v59  ;;  %v256_v59 = vld [vmem:[#allocation6 + $0x390] sm:$0xff]  ;;  %v1620_v9 = vpop.f32.mrf.mxu3 }
 0x101   :  { %1847 = vmatpush.bf16.msrb.mxu1 %v1468_v61  ;;  %v1532_v3 = vpack.c.bf16 %v1260_v31, %v1256_v30  ;;  %v1060_v38 = vcvt.s32.f32 %v548_v62  ;;  %v672_v39 = vunpack.c.0.s8 %v244_v5  ;;  %v676_v40 = vunpack.c.1.s8 %v244_v5  ;;  %v1607_v5 = vpop.f32.mrf.mxu2  ;;  %v3626_v61 = vld [vmem:[#allocation6 + $0x78] sm:$0xff] }
 0x102   :  { %1860 = vmatpush.bf16.msrb.mxu2 %v1500_v34  ;;  %v1120_v41 = vcvt.s32.f32 %v608_v35  ;;  %v1124_v42 = vcvt.s32.f32 %v612_v36  ;;  %v736_v8 = vunpack.c.0.s8 %v260_v14  ;;  %v740_v43 = vunpack.c.1.s8 %v260_v14  ;;  %v3628_v36 = vld [vmem:[#allocation6 + $0xf8] sm:$0xff] }
 0x103   :  { %1873 = vmatpush.bf16.msrb.mxu3 %v1532_v3  ;;  %v1432_v45 = vpack.c.bf16 %v1060_v38, %v1056_v7  ;;  %v1184_v46 = vcvt.s32.f32 %v672_v39  ;;  %v1188_v47 = vcvt.s32.f32 %v676_v40  ;;  %v536_v48 = vunpack.c.2.s8 %v208_v37  ;;  %v3632_v3 = vpop.f32.mrf.mxu1 }
 0x104   :  { %v1464_v52 = vpack.c.bf16 %v1124_v42, %v1120_v41  ;;  %v1248_v55 = vcvt.s32.f32 %v736_v8  ;;  %v1252_v56 = vcvt.s32.f32 %v740_v43  ;;  %v540_v57 = vunpack.c.3.s8 %v208_v37  ;;  %v189_v42 = vld [vmem:[#allocation6 + $0x178] sm:$0xff] }
 0x105   :  { %1835 = vmatpush.bf16.msrb.mxu0 %v1432_v45  ;;  %v1496_v63 = vpack.c.bf16 %v1188_v47, %v1184_v46  ;;  %v1048_v0 = vcvt.s32.f32 %v536_v48  ;;  %v600_v2 = vunpack.c.2.s8 %v224_v44  ;;  %v604_v4 = vunpack.c.3.s8 %v224_v44  ;;  %v3636_v46 = vld [vmem:[#allocation6 + $0x1f8] sm:$0xff] }
 0x106   :  { %1848 = vmatpush.bf16.msrb.mxu1 %v1464_v52  ;;  %v1528_v10 = vpack.c.bf16 %v1252_v56, %v1248_v55  ;;  %v1052_v11 = vcvt.s32.f32 %v540_v57  ;;  %v664_v12 = vunpack.c.2.s8 %v240_v49  ;;  %v668_v14 = vunpack.c.3.s8 %v240_v49 }
 0x107   :  { %1861 = vmatpush.bf16.msrb.mxu2 %v1496_v63  ;;  %v1112_v15 = vcvt.s32.f32 %v600_v2  ;;  %v1116_v16 = vcvt.s32.f32 %v604_v4  ;;  %v728_v17 = vunpack.c.2.s8 %v256_v59  ;;  %v732_v18 = vunpack.c.3.s8 %v256_v59 }
 0x108   :  { %1874 = vmatpush.bf16.msrb.mxu3 %v1528_v10  ;;  %v1428_v19 = vpack.c.bf16 %v1052_v11, %v1048_v0  ;;  %v1176_v20 = vcvt.s32.f32 %v664_v12  ;;  %v1180_v21 = vcvt.s32.f32 %v668_v14  ;;  %v528_v22 = vunpack.c.0.s8 %v208_v37  ;;  %v3644_v9 = vpop.f32.mrf.mxu3 }
 0x109   :  { %v1460_v53 = vpack.c.bf16 %v1116_v16, %v1112_v15  ;;  %v1240_v23 = vcvt.s32.f32 %v728_v17  ;;  %v1244_v24 = vcvt.s32.f32 %v732_v18  ;;  %v532_v25 = vunpack.c.1.s8 %v208_v37  ;;  %v3630_v37 = vpop.f32.mrf.mxu0  ;;  %v3642_v5 = vpop.f32.mrf.mxu2  ;;  %v3648_v15 = vld [vmem:[#allocation1 + $0x24] sm:$0xff] }
 0x10a   :  { %1836 = vmatpush.bf16.msrb.mxu0 %v1428_v19  ;;  %v1492_v58 = vpack.c.bf16 %v1180_v21, %v1176_v20  ;;  %v1040_v28 = vcvt.s32.f32 %v528_v22  ;;  %v592_v29 = vunpack.c.0.s8 %v224_v44  ;;  %v596_v1 = vunpack.c.1.s8 %v224_v44  ;;  %v3652_v20 = vld [vmem:[#allocation1 + $0x2d] sm:$0xff] }
 0x10b   :  { %1849 = vmatpush.bf16.msrb.mxu1 %v1460_v53  ;;  %v1524_v30 = vpack.c.bf16 %v1244_v24, %v1240_v23  ;;  %v1044_v31 = vcvt.s32.f32 %v532_v25  ;;  %v656_v62 = vunpack.c.0.s8 %v240_v49  ;;  %v660_v32 = vunpack.c.1.s8 %v240_v49  ;;  %v1646_v24 = vpop.f32.mrf.mxu1 }
 0x10c   :  { %1862 = vmatpush.bf16.msrb.mxu2 %v1492_v58  ;;  %v1104_v33 = vcvt.s32.f32 %v592_v29  ;;  %v1108_v34 = vcvt.s32.f32 %v596_v1  ;;  %v720_v7 = vunpack.c.0.s8 %v256_v59  ;;  %v724_v35 = vunpack.c.1.s8 %v256_v59  ;;  %v3661_v1 = vld [vmem:[#allocation1 + $0x3f] sm:$0xff] }
 0x10d   :  { %1875 = vmatpush.bf16.msrb.mxu3 %v1524_v30  ;;  %v1424_v38 = vpack.c.bf16 %v1044_v31, %v1040_v28  ;;  %v1168_v39 = vcvt.s32.f32 %v656_v62  ;;  %v1172_v40 = vcvt.s32.f32 %v660_v32  ;;  %v329_v41 = vunpack.c.2.s8 %v3626_v61 }
 0x10e   :  { %v1456_v8 = vpack.c.bf16 %v1108_v34, %v1104_v33  ;;  %v1232_v43 = vcvt.s32.f32 %v720_v7  ;;  %v1236_v44 = vcvt.s32.f32 %v724_v35  ;;  %v333_v45 = vunpack.c.3.s8 %v3626_v61 }
 0x10f   :  { %1837 = vmatpush.bf16.msrb.mxu0 %v1424_v38  ;;  %v1488_v47 = vpack.c.bf16 %v1172_v40, %v1168_v39  ;;  %v841_v48 = vcvt.s32.f32 %v329_v41  ;;  %v393_v49 = vunpack.c.2.s8 %v3628_v36  ;;  %v397_v52 = vunpack.c.3.s8 %v3628_v36  ;;  %v185_v38 = vld [vmem:[#allocation6 + $0x158] sm:$0xff] }
 0x110   :  { %1850 = vmatpush.bf16.msrb.mxu1 %v1456_v8  ;;  %v1520_v55 = vpack.c.bf16 %v1236_v44, %v1232_v43  ;;  %v845_v56 = vcvt.s32.f32 %v333_v45  ;;  %v457_v57 = vunpack.c.2.s8 %v189_v42  ;;  %v461_v59 = vunpack.c.3.s8 %v189_v42  ;;  %v201_v8 = vld [vmem:[#allocation6 + $0x1d8] sm:$0xff] }
 0x111   :  { %1863 = vmatpush.bf16.msrb.mxu2 %v1488_v47  ;;  %v905_v63 = vcvt.s32.f32 %v393_v49  ;;  %v909_v0 = vcvt.s32.f32 %v397_v52  ;;  %v521_v2 = vunpack.c.2.s8 %v3636_v46  ;;  %v525_v4 = vunpack.c.3.s8 %v3636_v46  ;;  %v1633_v23 = vpop.f32.mrf.mxu0  ;;  %v1672_v49 = vpop.f32.mrf.mxu3 }
 0x112   :  { %1876 = vmatpush.bf16.msrb.mxu3 %v1520_v55  ;;  %v1325_v10 = vpack.c.bf16 %v845_v56, %v841_v48  ;;  %v969_v11 = vcvt.s32.f32 %v457_v57  ;;  %v973_v12 = vcvt.s32.f32 %v461_v59  ;;  %v1593_v14 = vadd.f32 %v3620_v51, %v3618_v50  ;;  %1838 = vmatmul.bf16.vlgmr.msrb.gmra.mxu0 %v3648_v15  ;;  %v3658_v51 = vld [vmem:[#allocation1 + $0x36] sm:$0xff]  ;;  %v1659_v48 = vpop.f32.mrf.mxu2  ;;  %v149_v23 = vld [vmem:[#allocation6 + $0x38] sm:$0xff] }
 0x113   :  { %v1357_v16 = vpack.c.bf16 %v909_v0, %v905_v63  ;;  %v1033_v17 = vcvt.s32.f32 %v521_v2  ;;  %v1037_v18 = vcvt.s32.f32 %v525_v4  ;;  %v321_v19 = vunpack.c.0.s8 %v3626_v61  ;;  %1851 = vmatmul.bf16.vlgmr.msrb.gmra.mxu1 %v3652_v20 }
 0x114   :  { %1882 = vmatpush.bf16.msra.mxu0 %v1325_v10  ;;  %v1389_v21 = vpack.c.bf16 %v973_v12, %v969_v11  ;;  %v325_v22 = vunpack.c.1.s8 %v3626_v61  ;;  %v385_v53 = vunpack.c.0.s8 %v3628_v36  ;;  %v389_v50 = vunpack.c.1.s8 %v3628_v36  ;;  %1864 = vmatmul.bf16.vlgmr.msrb.gmra.mxu2 %v3658_v51  ;;  %v153_v61 = vld [vmem:[#allocation6 + $0x58] sm:$0xff] }
 0x115   :  { %1895 = vmatpush.bf16.msra.mxu1 %v1357_v16  ;;  %v1421_v25 = vpack.c.bf16 %v1037_v18, %v1033_v17  ;;  %v833_v58 = vcvt.s32.f32 %v321_v19  ;;  %v449_v28 = vunpack.c.0.s8 %v189_v42  ;;  %v453_v29 = vunpack.c.1.s8 %v189_v42  ;;  %1877 = vmatmul.bf16.vlgmr.msrb.gmra.mxu3 %v3661_v1  ;;  %v169_v36 = vld [vmem:[#allocation6 + $0xd8] sm:$0xff] }
 0x116   :  { %1908 = vmatpush.bf16.msra.mxu2 %v1389_v21  ;;  %v837_v30 = vcvt.s32.f32 %v325_v22  ;;  %v897_v31 = vcvt.s32.f32 %v385_v53  ;;  %v901_v62 = vcvt.s32.f32 %v389_v50  ;;  %v513_v32 = vunpack.c.0.s8 %v3636_v46 }
 0x117   :  { %1921 = vmatpush.bf16.msra.mxu3 %v1421_v25  ;;  %v961_v33 = vcvt.s32.f32 %v449_v28  ;;  %v965_v34 = vcvt.s32.f32 %v453_v29  ;;  %v517_v7 = vunpack.c.1.s8 %v3636_v46  ;;  %v1606_v35 = vadd.f32 %v3622_v26, %v1593_v14  ;;  %v165_v29 = vld [vmem:[#allocation6 + $0xb8] sm:$0xff] }
 0x118   :  { %v1321_v39 = vpack.c.bf16 %v837_v30, %v833_v58  ;;  %v1353_v40 = vpack.c.bf16 %v901_v62, %v897_v31  ;;  %v1025_v41 = vcvt.s32.f32 %v513_v32  ;;  %v313_v42 = vunpack.c.2.s8 %v153_v61 }
 0x119   :  { %v1385_v43 = vpack.c.bf16 %v965_v34, %v961_v33  ;;  %v1029_v44 = vcvt.s32.f32 %v517_v7  ;;  %v3668_v45 = vadd.f32 %v3624_v27, %v1606_v35  ;;  %v317_v47 = vunpack.c.3.s8 %v153_v61  ;;  %v181_v35 = vld [vmem:[#allocation6 + $0x138] sm:$0xff] }
 0x11a   :  { %1883 = vmatpush.bf16.msra.mxu0 %v1321_v39  ;;  %1896 = vmatpush.bf16.msra.mxu1 %v1353_v40  ;;  %v825_v46 = vcvt.s32.f32 %v313_v42  ;;  %v377_v52 = vunpack.c.2.s8 %v169_v36  ;;  %v381_v26 = vunpack.c.3.s8 %v169_v36  ;;  %v441_v55 = vunpack.c.2.s8 %v185_v38  ;;  %v197_v42 = vld [vmem:[#allocation6 + $0x1b8] sm:$0xff] }
 0x11b   :  { %1909 = vmatpush.bf16.msra.mxu2 %v1385_v43  ;;  %v1417_v56 = vpack.c.bf16 %v1029_v44, %v1025_v41  ;;  %v829_v57 = vcvt.s32.f32 %v317_v47  ;;  %v445_v59 = vunpack.c.3.s8 %v185_v38  ;;  %v505_v63 = vunpack.c.2.s8 %v201_v8 }
 0x11c   :  { %v889_v0 = vcvt.s32.f32 %v377_v52  ;;  %v893_v2 = vcvt.s32.f32 %v381_v26  ;;  %v953_v4 = vcvt.s32.f32 %v441_v55  ;;  %v509_v10 = vunpack.c.3.s8 %v201_v8 }
 0x11d   :  { %1922 = vmatpush.bf16.msra.mxu3 %v1417_v56  ;;  %v1317_v27 = vpack.c.bf16 %v829_v57, %v825_v46  ;;  %v957_v11 = vcvt.s32.f32 %v445_v59  ;;  %v1017_v12 = vcvt.s32.f32 %v505_v63  ;;  %v305_v14 = vunpack.c.0.s8 %v153_v61 }
 0x11e   :  { %v1349_v16 = vpack.c.bf16 %v893_v2, %v889_v0  ;;  %v1021_v17 = vcvt.s32.f32 %v509_v10  ;;  %v309_v18 = vunpack.c.1.s8 %v153_v61  ;;  %v369_v19 = vunpack.c.0.s8 %v169_v36 }
 0x11f   :  { %1884 = vmatpush.bf16.msra.mxu0 %v1317_v27  ;;  %v1381_v21 = vpack.c.bf16 %v957_v11, %v953_v4  ;;  %v817_v22 = vcvt.s32.f32 %v305_v14  ;;  %v373_v53 = vunpack.c.1.s8 %v169_v36  ;;  %v433_v50 = vunpack.c.0.s8 %v185_v38 }
 0x120   :  { %1897 = vmatpush.bf16.msra.mxu1 %v1349_v16  ;;  %v1413_v24 = vpack.c.bf16 %v1021_v17, %v1017_v12  ;;  %v821_v25 = vcvt.s32.f32 %v309_v18  ;;  %v881_v58 = vcvt.s32.f32 %v369_v19  ;;  %v437_v28 = vunpack.c.1.s8 %v185_v38 }
 0x121   :  { %1910 = vmatpush.bf16.msra.mxu2 %v1381_v21  ;;  %v885_v30 = vcvt.s32.f32 %v373_v53  ;;  %v945_v31 = vcvt.s32.f32 %v433_v50  ;;  %v497_v62 = vunpack.c.0.s8 %v201_v8  ;;  %v501_v32 = vunpack.c.1.s8 %v201_v8 }
 0x122   :  { %1923 = vmatpush.bf16.msra.mxu3 %v1413_v24  ;;  %v1313_v61 = vpack.c.bf16 %v821_v25, %v817_v22  ;;  %v949_v33 = vcvt.s32.f32 %v437_v28  ;;  %v297_v34 = vunpack.c.2.s8 %v149_v23  ;;  %v301_v7 = vunpack.c.3.s8 %v149_v23  ;;  %v145_v22 = vld [vmem:[#allocation6 + $0x18] sm:$0xff] }
 0x123   :  { %v1345_v36 = vpack.c.bf16 %v885_v30, %v881_v58  ;;  %v1009_v39 = vcvt.s32.f32 %v497_v62  ;;  %v1013_v40 = vcvt.s32.f32 %v501_v32  ;;  %v361_v41 = vunpack.c.2.s8 %v165_v29  ;;  %v161_v24 = vld [vmem:[#allocation6 + $0x98] sm:$0xff] }
 0x124   :  { %1885 = vmatpush.bf16.msra.mxu0 %v1313_v61  ;;  %v1377_v43 = vpack.c.bf16 %v949_v33, %v945_v31  ;;  %v809_v38 = vcvt.s32.f32 %v297_v34  ;;  %v813_v44 = vcvt.s32.f32 %v301_v7  ;;  %v365_v47 = vunpack.c.3.s8 %v165_v29  ;;  %v177_v32 = vld [vmem:[#allocation6 + $0x118] sm:$0xff] }
 0x125   :  { %1898 = vmatpush.bf16.msra.mxu1 %v1345_v36  ;;  %v1409_v48 = vpack.c.bf16 %v1013_v40, %v1009_v39  ;;  %v873_v49 = vcvt.s32.f32 %v361_v41  ;;  %v425_v8 = vunpack.c.2.s8 %v181_v35  ;;  %v429_v46 = vunpack.c.3.s8 %v181_v35  ;;  %v193_v7 = vld [vmem:[#allocation6 + $0x198] sm:$0xff] }
 0x126   :  { %1911 = vmatpush.bf16.msra.mxu2 %v1377_v43  ;;  %v1309_v52 = vpack.c.bf16 %v813_v44, %v809_v38  ;;  %v877_v26 = vcvt.s32.f32 %v365_v47  ;;  %v489_v55 = vunpack.c.2.s8 %v197_v42  ;;  %v493_v56 = vunpack.c.3.s8 %v197_v42 }
 0x127   :  { %1924 = vmatpush.bf16.msra.mxu3 %v1409_v48  ;;  %v937_v57 = vcvt.s32.f32 %v425_v8  ;;  %v941_v59 = vcvt.s32.f32 %v429_v46  ;;  %v1632_v63 = vadd.f32 %v3630_v37, %v3668_v45  ;;  %v289_v0 = vunpack.c.0.s8 %v149_v23 }
 0x128   :  { %1886 = vmatpush.bf16.msra.mxu0 %v1309_v52  ;;  %v1341_v2 = vpack.c.bf16 %v877_v26, %v873_v49  ;;  %v1001_v4 = vcvt.s32.f32 %v489_v55  ;;  %v1005_v10 = vcvt.s32.f32 %v493_v56  ;;  %v293_v27 = vunpack.c.1.s8 %v149_v23 }
 0x129   :  { %v1373_v11 = vpack.c.bf16 %v941_v59, %v937_v57  ;;  %v1645_v12 = vadd.f32 %v3632_v3, %v1632_v63  ;;  %v801_v14 = vcvt.s32.f32 %v289_v0  ;;  %v353_v16 = vunpack.c.0.s8 %v165_v29 }
 0x12a   :  { %1899 = vmatpush.bf16.msra.mxu1 %v1341_v2  ;;  %v1405_v17 = vpack.c.bf16 %v1005_v10, %v1001_v4  ;;  %v805_v18 = vcvt.s32.f32 %v293_v27  ;;  %v357_v19 = vunpack.c.1.s8 %v165_v29  ;;  %v417_v21 = vunpack.c.0.s8 %v181_v35  ;;  %v221_v2 = vld [vmem:[#allocation6 + $0x278] sm:$0xff] }
 0x12b   :  { %1912 = vmatpush.bf16.msra.mxu2 %v1373_v11  ;;  %v865_v53 = vcvt.s32.f32 %v353_v16  ;;  %v421_v37 = vunpack.c.1.s8 %v181_v35  ;;  %v481_v45 = vunpack.c.0.s8 %v197_v42  ;;  %v485_v50 = vunpack.c.1.s8 %v197_v42 }
 0x12c   :  { %1925 = vmatpush.bf16.msra.mxu3 %v1405_v17  ;;  %v1305_v25 = vpack.c.bf16 %v805_v18, %v801_v14  ;;  %v869_v23 = vcvt.s32.f32 %v357_v19  ;;  %v929_v58 = vcvt.s32.f32 %v417_v21  ;;  %v1658_v3 = vadd.f32 %v3642_v5, %v1645_v12  ;;  %v237_v12 = vld [vmem:[#allocation6 + $0x2f8] sm:$0xff] }
 0x12d   :  { %v933_v28 = vcvt.s32.f32 %v421_v37  ;;  %v993_v30 = vcvt.s32.f32 %v481_v45  ;;  %v997_v31 = vcvt.s32.f32 %v485_v50  ;;  %v281_v62 = vunpack.c.2.s8 %v145_v22  ;;  %v253_v19 = vld [vmem:[#allocation6 + $0x378] sm:$0xff] }
 0x12e   :  { %1887 = vmatpush.bf16.msra.mxu0 %v1305_v25  ;;  %v1337_v29 = vpack.c.bf16 %v869_v23, %v865_v53  ;;  %v3675_v61 = vadd.f32 %v3644_v9, %v1658_v3  ;;  %v285_v33 = vunpack.c.3.s8 %v145_v22  ;;  %v345_v34 = vunpack.c.2.s8 %v161_v24  ;;  %v269_v23 = vld [vmem:[#allocation6 + $0x3f8] sm:$0xff] }
 0x12f   :  { %v1369_v35 = vpack.c.bf16 %v933_v28, %v929_v58  ;;  %v1401_v36 = vpack.c.bf16 %v997_v31, %v993_v30  ;;  %v793_v39 = vcvt.s32.f32 %v281_v62  ;;  %v349_v40 = vunpack.c.3.s8 %v161_v24 }
 0x130   :  { %1900 = vmatpush.bf16.msra.mxu1 %v1337_v29  ;;  %v797_v41 = vcvt.s32.f32 %v285_v33  ;;  %v857_v5 = vcvt.s32.f32 %v345_v34  ;;  %v409_v42 = vunpack.c.2.s8 %v177_v32  ;;  %v413_v43 = vunpack.c.3.s8 %v177_v32 }
 0x131   :  { %1913 = vmatpush.bf16.msra.mxu2 %v1369_v35  ;;  %1926 = vmatpush.bf16.msra.mxu3 %v1401_v36  ;;  %v861_v38 = vcvt.s32.f32 %v349_v40  ;;  %v473_v44 = vunpack.c.2.s8 %v193_v7  ;;  %v477_v47 = vunpack.c.3.s8 %v193_v7  ;;  %v273_v48 = vunpack.c.0.s8 %v145_v22 }
 0x132   :  { %v1301_v9 = vpack.c.bf16 %v797_v41, %v793_v39  ;;  %v921_v49 = vcvt.s32.f32 %v409_v42  ;;  %v925_v8 = vcvt.s32.f32 %v413_v43  ;;  %v277_v46 = vunpack.c.1.s8 %v145_v22 }
 0x133   :  { %v1333_v52 = vpack.c.bf16 %v861_v38, %v857_v5  ;;  %v985_v26 = vcvt.s32.f32 %v473_v44  ;;  %v989_v55 = vcvt.s32.f32 %v477_v47  ;;  %v785_v56 = vcvt.s32.f32 %v273_v48 }
 0x134   :  { %1888 = vmatpush.bf16.msra.mxu0 %v1301_v9  ;;  %v1365_v57 = vpack.c.bf16 %v925_v8, %v921_v49  ;;  %v789_v59 = vcvt.s32.f32 %v277_v46  ;;  %v337_v63 = vunpack.c.0.s8 %v161_v24  ;;  %v341_v0 = vunpack.c.1.s8 %v161_v24  ;;  %v217_v49 = vld [vmem:[#allocation6 + $0x258] sm:$0xff] }
 0x135   :  { %1901 = vmatpush.bf16.msra.mxu1 %v1333_v52  ;;  %v1397_v4 = vpack.c.bf16 %v989_v55, %v985_v26  ;;  %v401_v10 = vunpack.c.0.s8 %v177_v32  ;;  %v405_v27 = vunpack.c.1.s8 %v177_v32  ;;  %v465_v11 = vunpack.c.0.s8 %v193_v7  ;;  %v233_v26 = vld [vmem:[#allocation6 + $0x2d8] sm:$0xff]  ;;  %v3681_v55 = vpop.f32.mrf.mxu0 }
 0x136   :  { %1914 = vmatpush.bf16.msra.mxu2 %v1365_v57  ;;  %v1297_v14 = vpack.c.bf16 %v789_v59, %v785_v56  ;;  %v849_v16 = vcvt.s32.f32 %v337_v63  ;;  %v853_v17 = vcvt.s32.f32 %v341_v0  ;;  %v469_v18 = vunpack.c.1.s8 %v193_v7  ;;  %v3683_v56 = vpop.f32.mrf.mxu1 }
 0x137   :  { %1927 = vmatpush.bf16.msra.mxu3 %v1397_v4  ;;  %v913_v21 = vcvt.s32.f32 %v401_v10  ;;  %v917_v22 = vcvt.s32.f32 %v405_v27  ;;  %v977_v53 = vcvt.s32.f32 %v465_v11  ;;  %v585_v37 = vunpack.c.2.s8 %v221_v2  ;;  %v249_v10 = vld [vmem:[#allocation6 + $0x358] sm:$0xff] }
 0x138   :  { %1889 = vmatpush.bf16.msra.mxu0 %v1297_v14  ;;  %v1329_v45 = vpack.c.bf16 %v853_v17, %v849_v16  ;;  %v981_v50 = vcvt.s32.f32 %v469_v18  ;;  %v589_v24 = vunpack.c.3.s8 %v221_v2  ;;  %v649_v25 = vunpack.c.2.s8 %v237_v12  ;;  %v265_v14 = vld [vmem:[#allocation6 + $0x3d8] sm:$0xff] }
 0x139   :  { %v1361_v58 = vpack.c.bf16 %v917_v22, %v913_v21  ;;  %v1097_v3 = vcvt.s32.f32 %v585_v37  ;;  %v653_v28 = vunpack.c.3.s8 %v237_v12  ;;  %v713_v30 = vunpack.c.2.s8 %v253_v19 }
 0x13a   :  { %1902 = vmatpush.bf16.msra.mxu1 %v1329_v45  ;;  %v1393_v31 = vpack.c.bf16 %v981_v50, %v977_v53  ;;  %v1101_v62 = vcvt.s32.f32 %v589_v24  ;;  %v1161_v32 = vcvt.s32.f32 %v649_v25  ;;  %v717_v29 = vunpack.c.3.s8 %v253_v19  ;;  %v3685_v45 = vpop.f32.mrf.mxu2 }
 0x13b   :  { %1915 = vmatpush.bf16.msra.mxu2 %v1361_v58  ;;  %v1165_v33 = vcvt.s32.f32 %v653_v28  ;;  %v1225_v34 = vcvt.s32.f32 %v713_v30  ;;  %v777_v7 = vunpack.c.2.s8 %v269_v23  ;;  %v781_v35 = vunpack.c.3.s8 %v269_v23  ;;  %1890 = vmatmul.bf16.vlgmr.msra.gmra.mxu0 %v3606_v54 }
 0x13c   :  { %1928 = vmatpush.bf16.msra.mxu3 %v1393_v31  ;;  %v1453_v36 = vpack.c.bf16 %v1101_v62, %v1097_v3  ;;  %v1229_v39 = vcvt.s32.f32 %v717_v29  ;;  %v577_v40 = vunpack.c.0.s8 %v221_v2  ;;  %v581_v41 = vunpack.c.1.s8 %v221_v2 }
 0x13d   :  { %v1485_v5 = vpack.c.bf16 %v1165_v33, %v1161_v32  ;;  %v1289_v42 = vcvt.s32.f32 %v777_v7  ;;  %v1293_v43 = vcvt.s32.f32 %v781_v35  ;;  %v641_v38 = vunpack.c.0.s8 %v237_v12  ;;  %1903 = vmatmul.bf16.vlgmr.msra.gmra.mxu1 %v3609_v60  ;;  %v3687_v33 = vpop.f32.mrf.mxu3 }
 0x13e   :  { %1934 = vmatpush.bf16.msrb.mxu0 %v1453_v36  ;;  %v1517_v44 = vpack.c.bf16 %v1229_v39, %v1225_v34  ;;  %v1089_v47 = vcvt.s32.f32 %v577_v40  ;;  %v1093_v48 = vcvt.s32.f32 %v581_v41  ;;  %v645_v9 = vunpack.c.1.s8 %v237_v12  ;;  %1916 = vmatmul.bf16.vlgmr.msra.gmra.mxu2 %v3612_v6  ;;  %v1685_v34 = vpop.f32.mrf.mxu0  ;;  %v213_v40 = vld [vmem:[#allocation6 + $0x238] sm:$0xff]  ;;  %v1698_v41 = vpop.f32.mrf.mxu1 }
 0x13f   :  { %1947 = vmatpush.bf16.msrb.mxu1 %v1485_v5  ;;  %v1549_v54 = vpack.c.bf16 %v1293_v43, %v1289_v42  ;;  %v1153_v8 = vcvt.s32.f32 %v641_v38  ;;  %v705_v46 = vunpack.c.0.s8 %v253_v19  ;;  %v709_v52 = vunpack.c.1.s8 %v253_v19  ;;  %1929 = vmatmul.bf16.vlgmr.msra.gmra.mxu3 %v3615_v13 }
 0x140   :  { %1960 = vmatpush.bf16.msrb.mxu2 %v1517_v44  ;;  %v1449_v60 = vpack.c.bf16 %v1093_v48, %v1089_v47  ;;  %v1157_v57 = vcvt.s32.f32 %v645_v9  ;;  %v769_v59 = vunpack.c.0.s8 %v269_v23  ;;  %v773_v63 = vunpack.c.1.s8 %v269_v23  ;;  %v229_v44 = vld [vmem:[#allocation6 + $0x2b8] sm:$0xff] }
 0x141   :  { %1973 = vmatpush.bf16.msrb.mxu3 %v1549_v54  ;;  %v1217_v6 = vcvt.s32.f32 %v705_v46  ;;  %v1221_v0 = vcvt.s32.f32 %v709_v52  ;;  %v569_v2 = vunpack.c.2.s8 %v217_v49  ;;  %v573_v4 = vunpack.c.3.s8 %v217_v49 }
 0x142   :  { %1935 = vmatpush.bf16.msrb.mxu0 %v1449_v60  ;;  %v1481_v27 = vpack.c.bf16 %v1157_v57, %v1153_v8  ;;  %v1281_v11 = vcvt.s32.f32 %v769_v59  ;;  %v1285_v12 = vcvt.s32.f32 %v773_v63  ;;  %v633_v13 = vunpack.c.2.s8 %v233_v26  ;;  %v245_v60 = vld [vmem:[#allocation6 + $0x338] sm:$0xff] }
 0x143   :  { %v1513_v16 = vpack.c.bf16 %v1221_v0, %v1217_v6  ;;  %v1081_v17 = vcvt.s32.f32 %v569_v2  ;;  %v1085_v18 = vcvt.s32.f32 %v573_v4  ;;  %v637_v19 = vunpack.c.3.s8 %v233_v26  ;;  %v261_v6 = vld [vmem:[#allocation6 + $0x3b8] sm:$0xff]  ;;  %v1711_v0 = vpop.f32.mrf.mxu2 }
 0x144   :  { %1948 = vmatpush.bf16.msrb.mxu1 %v1481_v27  ;;  %v1545_v21 = vpack.c.bf16 %v1285_v12, %v1281_v11  ;;  %v1145_v22 = vcvt.s32.f32 %v633_v13  ;;  %v697_v53 = vunpack.c.2.s8 %v249_v10  ;;  %v701_v37 = vunpack.c.3.s8 %v249_v10 }
 0x145   :  { %1961 = vmatpush.bf16.msrb.mxu2 %v1513_v16  ;;  %v1445_v50 = vpack.c.bf16 %v1085_v18, %v1081_v17  ;;  %v1149_v24 = vcvt.s32.f32 %v637_v19  ;;  %v761_v25 = vunpack.c.2.s8 %v265_v14  ;;  %v765_v23 = vunpack.c.3.s8 %v265_v14 }
 0x146   :  { %1974 = vmatpush.bf16.msrb.mxu3 %v1545_v21  ;;  %v1209_v58 = vcvt.s32.f32 %v697_v53  ;;  %v1213_v3 = vcvt.s32.f32 %v701_v37  ;;  %v561_v28 = vunpack.c.0.s8 %v217_v49  ;;  %v565_v30 = vunpack.c.1.s8 %v217_v49  ;;  %v1724_v21 = vpop.f32.mrf.mxu3 }
 0x147   :  { %1936 = vmatpush.bf16.msrb.mxu0 %v1445_v50  ;;  %v1477_v31 = vpack.c.bf16 %v1149_v24, %v1145_v22  ;;  %v1273_v62 = vcvt.s32.f32 %v761_v25  ;;  %v1277_v32 = vcvt.s32.f32 %v765_v23  ;;  %v625_v29 = vunpack.c.0.s8 %v233_v26  ;;  %v3689_v22 = vpop.f32.mrf.mxu0  ;;  %v3691_v25 = vpop.f32.mrf.mxu1 }
 0x148   :  { %v1509_v7 = vpack.c.bf16 %v1213_v3, %v1209_v58  ;;  %v1073_v35 = vcvt.s32.f32 %v561_v28  ;;  %v1077_v36 = vcvt.s32.f32 %v565_v30  ;;  %v629_v39 = vunpack.c.1.s8 %v233_v26 }
 0x149   :  { %1949 = vmatpush.bf16.msrb.mxu1 %v1477_v31  ;;  %v1541_v5 = vpack.c.bf16 %v1277_v32, %v1273_v62  ;;  %v1137_v42 = vcvt.s32.f32 %v625_v29  ;;  %v689_v43 = vunpack.c.0.s8 %v249_v10  ;;  %v693_v38 = vunpack.c.1.s8 %v249_v10  ;;  %v209_v29 = vld [vmem:[#allocation6 + $0x218] sm:$0xff] }
 0x14a   :  { %1962 = vmatpush.bf16.msrb.mxu2 %v1509_v7  ;;  %v1441_v47 = vpack.c.bf16 %v1077_v36, %v1073_v35  ;;  %v1141_v48 = vcvt.s32.f32 %v629_v39  ;;  %v753_v9 = vunpack.c.0.s8 %v265_v14  ;;  %v757_v49 = vunpack.c.1.s8 %v265_v14  ;;  %v225_v39 = vld [vmem:[#allocation6 + $0x298] sm:$0xff] }
 0x14b   :  { %1975 = vmatpush.bf16.msrb.mxu3 %v1541_v5  ;;  %v1201_v54 = vcvt.s32.f32 %v689_v43  ;;  %v1205_v8 = vcvt.s32.f32 %v693_v38  ;;  %v553_v46 = vunpack.c.2.s8 %v213_v40  ;;  %v557_v52 = vunpack.c.3.s8 %v213_v40  ;;  %v3693_v43 = vpop.f32.mrf.mxu2 }
 0x14c   :  { %1937 = vmatpush.bf16.msrb.mxu0 %v1441_v47  ;;  %v1473_v26 = vpack.c.bf16 %v1141_v48, %v1137_v42  ;;  %v1265_v57 = vcvt.s32.f32 %v753_v9  ;;  %v1269_v59 = vcvt.s32.f32 %v757_v49  ;;  %v617_v63 = vunpack.c.2.s8 %v229_v44 }
 0x14d   :  { %v1505_v2 = vpack.c.bf16 %v1205_v8, %v1201_v54  ;;  %v1065_v4 = vcvt.s32.f32 %v553_v46  ;;  %v1069_v10 = vcvt.s32.f32 %v557_v52  ;;  %v621_v27 = vunpack.c.3.s8 %v229_v44  ;;  %v257_v52 = vld [vmem:[#allocation6 + $0x398] sm:$0xff] }
 0x14e   :  { %1950 = vmatpush.bf16.msrb.mxu1 %v1473_v26  ;;  %v1537_v11 = vpack.c.bf16 %v1269_v59, %v1265_v57  ;;  %v1129_v12 = vcvt.s32.f32 %v617_v63  ;;  %v681_v13 = vunpack.c.2.s8 %v245_v60  ;;  %v685_v14 = vunpack.c.3.s8 %v245_v60  ;;  %v3695_v63 = vpop.f32.mrf.mxu3 }
 0x14f   :  { %1963 = vmatpush.bf16.msrb.mxu2 %v1505_v2  ;;  %v1437_v16 = vpack.c.bf16 %v1069_v10, %v1065_v4  ;;  %v1133_v17 = vcvt.s32.f32 %v621_v27  ;;  %v745_v18 = vunpack.c.2.s8 %v261_v6  ;;  %v749_v19 = vunpack.c.3.s8 %v261_v6  ;;  %v1750_v27 = vpop.f32.mrf.mxu1 }
 0x150   :  { %1976 = vmatpush.bf16.msrb.mxu3 %v1537_v11  ;;  %v1193_v53 = vcvt.s32.f32 %v681_v13  ;;  %v1197_v37 = vcvt.s32.f32 %v685_v14  ;;  %v545_v50 = vunpack.c.0.s8 %v213_v40  ;;  %v549_v24 = vunpack.c.1.s8 %v213_v40 }
 0x151   :  { %1938 = vmatpush.bf16.msrb.mxu0 %v1437_v16  ;;  %v1469_v23 = vpack.c.bf16 %v1133_v17, %v1129_v12  ;;  %v1257_v58 = vcvt.s32.f32 %v745_v18  ;;  %v1261_v3 = vcvt.s32.f32 %v749_v19  ;;  %v609_v28 = vunpack.c.0.s8 %v229_v44 }
 0x152   :  { %v1501_v30 = vpack.c.bf16 %v1197_v37, %v1193_v53  ;;  %v1057_v31 = vcvt.s32.f32 %v545_v50  ;;  %v1061_v62 = vcvt.s32.f32 %v549_v24  ;;  %v613_v32 = vunpack.c.1.s8 %v229_v44  ;;  %v241_v44 = vld [vmem:[#allocation6 + $0x318] sm:$0xff] }
 0x153   :  { %1951 = vmatpush.bf16.msrb.mxu1 %v1469_v23  ;;  %v1533_v34 = vpack.c.bf16 %v1261_v3, %v1257_v58  ;;  %v1121_v7 = vcvt.s32.f32 %v609_v28  ;;  %v673_v35 = vunpack.c.0.s8 %v245_v60  ;;  %v677_v36 = vunpack.c.1.s8 %v245_v60  ;;  %v1763_v28 = vpop.f32.mrf.mxu2 }
 0x154   :  { %1964 = vmatpush.bf16.msrb.mxu2 %v1501_v30  ;;  %v1433_v40 = vpack.c.bf16 %v1061_v62, %v1057_v31  ;;  %v1125_v41 = vcvt.s32.f32 %v613_v32  ;;  %v737_v5 = vunpack.c.0.s8 %v261_v6  ;;  %v741_v42 = vunpack.c.1.s8 %v261_v6  ;;  %v1737_v6 = vpop.f32.mrf.mxu0 }
 0x155   :  { %1977 = vmatpush.bf16.msrb.mxu3 %v1533_v34  ;;  %v1185_v38 = vcvt.s32.f32 %v673_v35  ;;  %v1189_v47 = vcvt.s32.f32 %v677_v36  ;;  %v537_v48 = vunpack.c.2.s8 %v209_v29  ;;  %v541_v9 = vunpack.c.3.s8 %v209_v29 }
 0x156   :  { %1939 = vmatpush.bf16.msrb.mxu0 %v1433_v40  ;;  %v1465_v49 = vpack.c.bf16 %v1125_v41, %v1121_v7  ;;  %v1249_v54 = vcvt.s32.f32 %v737_v5  ;;  %v1253_v8 = vcvt.s32.f32 %v741_v42  ;;  %v601_v46 = vunpack.c.2.s8 %v225_v39  ;;  %v1776_v41 = vpop.f32.mrf.mxu3 }
 0x157   :  { %v1497_v60 = vpack.c.bf16 %v1189_v47, %v1185_v38  ;;  %v1049_v26 = vcvt.s32.f32 %v537_v48  ;;  %v1053_v57 = vcvt.s32.f32 %v541_v9  ;;  %v605_v59 = vunpack.c.3.s8 %v225_v39 }
 0x158   :  { %1952 = vmatpush.bf16.msrb.mxu1 %v1465_v49  ;;  %v1529_v0 = vpack.c.bf16 %v1253_v8, %v1249_v54  ;;  %v1113_v2 = vcvt.s32.f32 %v601_v46  ;;  %v665_v4 = vunpack.c.2.s8 %v241_v44  ;;  %v669_v10 = vunpack.c.3.s8 %v241_v44 }
 0x159   :  { %1965 = vmatpush.bf16.msrb.mxu2 %v1497_v60  ;;  %v1429_v11 = vpack.c.bf16 %v1053_v57, %v1049_v26  ;;  %v1117_v12 = vcvt.s32.f32 %v605_v59  ;;  %v729_v13 = vunpack.c.2.s8 %v257_v52  ;;  %v733_v14 = vunpack.c.3.s8 %v257_v52  ;;  %v2077_v57 = vld [vmem:[#allocation11 + $0xe0] sm:$0xff] }
 0x15a   :  { %1978 = vmatpush.bf16.msrb.mxu3 %v1529_v0  ;;  %v1177_v16 = vcvt.s32.f32 %v665_v4  ;;  %v1181_v17 = vcvt.s32.f32 %v669_v10  ;;  %v1697_v18 = vadd.f32 %v3683_v56, %v3681_v55  ;;  %v529_v19 = vunpack.c.0.s8 %v209_v29  ;;  %v2093_v59 = vld [vmem:[#allocation11 + $0x160] sm:$0xff] }
 0x15b   :  { %1940 = vmatpush.bf16.msrb.mxu0 %v1429_v11  ;;  %v1461_v21 = vpack.c.bf16 %v1117_v12, %v1113_v2  ;;  %v1241_v53 = vcvt.s32.f32 %v729_v13  ;;  %v1245_v37 = vcvt.s32.f32 %v733_v14  ;;  %v533_v50 = vunpack.c.1.s8 %v209_v29  ;;  %v2109_v4 = vld [vmem:[#allocation11 + $0x1e0] sm:$0xff] }
 0x15c   :  { %v1493_v24 = vpack.c.bf16 %v1181_v17, %v1177_v16  ;;  %v1041_v23 = vcvt.s32.f32 %v529_v19  ;;  %v593_v58 = vunpack.c.0.s8 %v225_v39  ;;  %v597_v3 = vunpack.c.1.s8 %v225_v39 }
 0x15d   :  { %1953 = vmatpush.bf16.msrb.mxu1 %v1461_v21  ;;  %v1525_v30 = vpack.c.bf16 %v1245_v37, %v1241_v53  ;;  %v1045_v31 = vcvt.s32.f32 %v533_v50  ;;  %v657_v62 = vunpack.c.0.s8 %v241_v44  ;;  %v661_v32 = vunpack.c.1.s8 %v241_v44 }
 0x15e   :  { %1966 = vmatpush.bf16.msrb.mxu2 %v1493_v24  ;;  %v1105_v34 = vcvt.s32.f32 %v593_v58  ;;  %v1109_v7 = vcvt.s32.f32 %v597_v3  ;;  %v721_v55 = vunpack.c.0.s8 %v257_v52  ;;  %v725_v56 = vunpack.c.1.s8 %v257_v52 }
 0x15f   :  { %1979 = vmatpush.bf16.msrb.mxu3 %v1525_v30  ;;  %v1425_v35 = vpack.c.bf16 %v1045_v31, %v1041_v23  ;;  %v1169_v36 = vcvt.s32.f32 %v657_v62  ;;  %v1173_v40 = vcvt.s32.f32 %v661_v32  ;;  %v1710_v29 = vadd.f32 %v3685_v45, %v1697_v18 }
 0x160   :  { %v1457_v5 = vpack.c.bf16 %v1109_v7, %v1105_v34  ;;  %v1233_v39 = vcvt.s32.f32 %v721_v55  ;;  %v1237_v42 = vcvt.s32.f32 %v725_v56  ;;  %v2233_v0 = vunpack.c.2.s8 %v2077_v57 }
 0x161   :  { %1941 = vmatpush.bf16.msrb.mxu0 %v1425_v35  ;;  %v1489_v38 = vpack.c.bf16 %v1173_v40, %v1169_v36  ;;  %v1723_v47 = vadd.f32 %v3687_v33, %v1710_v29  ;;  %v2237_v2 = vunpack.c.3.s8 %v2077_v57  ;;  %v2297_v10 = vunpack.c.2.s8 %v2093_v59 }
 0x162   :  { %1954 = vmatpush.bf16.msrb.mxu1 %v1457_v5  ;;  %v1521_v48 = vpack.c.bf16 %v1237_v42, %v1233_v39  ;;  %v2301_v27 = vunpack.c.3.s8 %v2093_v59  ;;  %v2365_v11 = vunpack.c.3.s8 %v2109_v4  ;;  %v2489_v14 = vcvt.s32.f32 %v2233_v0 }
 0x163   :  { %1967 = vmatpush.bf16.msrb.mxu2 %v1489_v38  ;;  %v1736_v9 = vadd.f32 %v3689_v22, %v1723_v47  ;;  %v2493_v16 = vcvt.s32.f32 %v2237_v2  ;;  %v2553_v17 = vcvt.s32.f32 %v2297_v10  ;;  %v2225_v3 = vunpack.c.0.s8 %v2077_v57 }
 0x164   :  { %1980 = vmatpush.bf16.msrb.mxu3 %v1521_v48  ;;  %1942 = vmatmul.bf16.vlgmr.msrb.gmra.mxu0 %v3648_v15  ;;  %v2557_v18 = vcvt.s32.f32 %v2301_v27  ;;  %v2621_v21 = vcvt.s32.f32 %v2365_v11  ;;  %v2229_v28 = vunpack.c.1.s8 %v2077_v57  ;;  %v2289_v62 = vunpack.c.0.s8 %v2093_v59  ;;  %v3715_v11 = vld [vmem:[#allocation8] sm:$0xf] }
 0x165   :  { %1955 = vmatmul.bf16.vlgmr.msrb.gmra.mxu1 %v3652_v20  ;;  %v1749_v45 = vadd.f32 %v3691_v25, %v1736_v9  ;;  %v2685_v37 = vpack.c.bf16 %v2493_v16, %v2489_v14  ;;  %v2293_v32 = vunpack.c.1.s8 %v2093_v59  ;;  %v2481_v34 = vcvt.s32.f32 %v2225_v3 }
 0x166   :  { %1968 = vmatmul.bf16.vlgmr.msrb.gmra.mxu2 %v3658_v51  ;;  %v2717_v23 = vpack.c.bf16 %v2557_v18, %v2553_v17  ;;  %v2485_v7 = vcvt.s32.f32 %v2229_v28  ;;  %v2353_v55 = vunpack.c.0.s8 %v2109_v4  ;;  %v2357_v56 = vunpack.c.1.s8 %v2109_v4  ;;  %v2053_v28 = vld [vmem:[#allocation11 + $0x20] sm:$0xff] }
 0x167   :  { %1981 = vmatmul.bf16.vlgmr.msrb.gmra.mxu3 %v3661_v1  ;;  %v1762_v44 = vadd.f32 %v3693_v43, %v1749_v45  ;;  %v1787_v49 = vpop.f32.mrf.mxu0  ;;  %v2061_v43 = vld [vmem:[#allocation11 + $0x60] sm:$0xff]  ;;  %2766 = vmatpush.bf16.msra.mxu1 %v2685_v37  ;;  %v2545_v36 = vcvt.s32.f32 %v2289_v62  ;;  %v2549_v40 = vcvt.s32.f32 %v2293_v32 }
 0x168   :  { %v1800_v33 = vpop.f32.mrf.mxu1  ;;  %v2169_v6 = vunpack.c.2.s8 %v2061_v43  ;;  %v2161_v50 = vunpack.c.0.s8 %v2061_v43  ;;  %v2165_v24 = vunpack.c.1.s8 %v2061_v43  ;;  %2779 = vmatpush.bf16.msra.mxu2 %v2717_v23  ;;  %v2681_v29 = vpack.c.bf16 %v2485_v7, %v2481_v34  ;;  %v2069_v34 = vld [vmem:[#allocation11 + $0xa0] sm:$0xff] }
 0x169   :  { %v1775_v54 = vadd.f32 %v3695_v63, %v1762_v44  ;;  %v1801_v8 = vadd.f32 %v1800_v33, %v1787_v49  ;;  %v2173_v63 = vunpack.c.3.s8 %v2061_v43  ;;  %v2609_v41 = vcvt.s32.f32 %v2353_v55 }
 0x16a   :  { %v2425_v12 = vcvt.s32.f32 %v2169_v6  ;;  %v2417_v30 = vcvt.s32.f32 %v2161_v50  ;;  %v2421_v31 = vcvt.s32.f32 %v2165_v24  ;;  %v2613_v5 = vcvt.s32.f32 %v2357_v56 }
 0x16b   :  { %v1990_v22 = vrot.slane %v1775_v54, 6  ;;  %v2429_v13 = vcvt.s32.f32 %v2173_v63  ;;  %v2713_v39 = vpack.c.bf16 %v2549_v40, %v2545_v36  ;;  %2767 = vmatpush.bf16.msra.mxu1 %v2681_v29  ;;  %v2085_v36 = vld [vmem:[#allocation11 + $0x120] sm:$0xff] }
 0x16c   :  { %v2649_v35 = vpack.c.bf16 %v2421_v31, %v2417_v30  ;;  %v2745_v42 = vpack.c.bf16 %v2613_v5, %v2609_v41  ;;  %v2137_v41 = vunpack.c.2.s8 %v2053_v28  ;;  %v2141_v5 = vunpack.c.3.s8 %v2053_v28 }
 0x16d   :  { %v3711_v15 = vsel %vm1993_vm0, %v3675_v61, %v1990_v22  ;;  %v2361_v61 = vunpack.c.2.s8 %v2109_v4  ;;  %v2653_v53 = vpack.c.bf16 %v2429_v13, %v2425_v12  ;;  %2780 = vmatpush.bf16.msra.mxu2 %v2713_v39  ;;  %v2057_v22 = vld [vmem:[#allocation11 + $0x40] sm:$0xff] }
 0x16e   :  { %v2101_v39 = vld [vmem:[#allocation11 + $0x1a0] sm:$0xff] }
 0x16f   :  { %v1813_v20 = vpop.f32.mrf.mxu2  ;;  %v1789_v46 = vpop.f32.mrf.mxu0  ;;  %v2617_v19 = vcvt.s32.f32 %v2361_v61  ;;  %2753 = vmatpush.bf16.msra.mxu0 %v2653_v53  ;;  %v2149_v53 = vunpack.c.1.s8 %v2057_v22 }
 0x170   :  { %v1814_v25 = vadd.f32 %v1813_v20, %v1801_v8  ;;  %v1826_v52 = vpop.f32.mrf.mxu3  ;;  %v1802_v51 = vpop.f32.mrf.mxu1  ;;  %v2073_v20 = vld [vmem:[#allocation11 + $0xc0] sm:$0xff] }
 0x171   :  { %v2749_v58 = vpack.c.bf16 %v2621_v21, %v2617_v19  ;;  %v2089_v46 = vld [vmem:[#allocation11 + $0x140] sm:$0xff]  ;;  %v2217_v51 = vunpack.c.2.s8 %v2073_v20  ;;  %v2009_v19 = vperm.slane %v3715_v11, 1  ;;  %v2145_v21 = vunpack.c.0.s8 %v2057_v22 }
 0x172   :  { %v1827_v60 = vadd.f32 %v1826_v52, %v1814_v25  ;;  %v2153_v25 = vunpack.c.2.s8 %v2057_v22  ;;  %v2157_v52 = vunpack.c.3.s8 %v2057_v22  ;;  %v2281_v43 = vunpack.c.2.s8 %v2089_v46 }
 0x173   :  { %2792 = vmatpush.bf16.msra.mxu3 %v2749_v58  ;;  %2754 = vmatpush.bf16.msra.mxu0 %v2649_v35  ;;  %v2285_v57 = vunpack.c.3.s8 %v2089_v46  ;;  %v2473_v63 = vcvt.s32.f32 %v2217_v51  ;;  %v2209_v37 = vunpack.c.0.s8 %v2073_v20  ;;  %v2213_v50 = vunpack.c.1.s8 %v2073_v20 }
 0x174   :  { %v2409_v59 = vcvt.s32.f32 %v2153_v25  ;;  %v2413_v6 = vcvt.s32.f32 %v2157_v52  ;;  %v2537_v10 = vcvt.s32.f32 %v2281_v43  ;;  %v2273_v24 = vunpack.c.0.s8 %v2089_v46 }
 0x175   :  { %v2541_v27 = vcvt.s32.f32 %v2285_v57  ;;  %v2277_v23 = vunpack.c.1.s8 %v2089_v46  ;;  %v2401_v30 = vcvt.s32.f32 %v2145_v21  ;;  %v2405_v31 = vcvt.s32.f32 %v2149_v53 }
 0x176   :  { %v2645_v13 = vpack.c.bf16 %v2413_v6, %v2409_v59  ;;  %v2465_v62 = vcvt.s32.f32 %v2209_v37  ;;  %v2469_v32 = vcvt.s32.f32 %v2213_v50  ;;  %v2529_v7 = vcvt.s32.f32 %v2273_v24  ;;  %v3723_v37 = vld [vmem:[#allocation11 + $0x100] sm:$0xff] }
 0x177   :  { %v1815_v1 = vpop.f32.mrf.mxu2  ;;  %2793 = vmatpush.bf16.msra.mxu3 %v2745_v42  ;;  %v2709_v17 = vpack.c.bf16 %v2541_v27, %v2537_v10  ;;  %v2533_v55 = vcvt.s32.f32 %v2277_v23  ;;  %v2641_v40 = vpack.c.bf16 %v2405_v31, %v2401_v30  ;;  %v2329_v22 = vunpack.c.2.s8 %v2101_v39 }
 0x178   :  { %v1828_v26 = vpop.f32.mrf.mxu3  ;;  %v2105_v1 = vld [vmem:[#allocation11 + $0x1c0] sm:$0xff]  ;;  %2755 = vmatpush.bf16.msra.mxu0 %v2645_v13  ;;  %v2673_v29 = vpack.c.bf16 %v2469_v32, %v2465_v62  ;;  %v2129_v51 = vunpack.c.0.s8 %v2053_v28  ;;  %v2133_v57 = vunpack.c.1.s8 %v2053_v28  ;;  %v2193_v6 = vunpack.c.0.s8 %v2069_v34  ;;  %v3728_v28 = vld [vmem:[#allocation9] sm:$0xf] }
 0x179   :  { %v2221_v26 = vunpack.c.3.s8 %v2073_v20  ;;  %v2349_v0 = vunpack.c.3.s8 %v2105_v1  ;;  %2781 = vmatpush.bf16.msra.mxu2 %v2709_v17  ;;  %v2337_v58 = vunpack.c.0.s8 %v2105_v1  ;;  %v2341_v3 = vunpack.c.1.s8 %v2105_v1 }
 0x17a   :  { %v2705_v42 = vpack.c.bf16 %v2533_v55, %v2529_v7  ;;  %v2333_v20 = vunpack.c.3.s8 %v2101_v39  ;;  %v2385_v59 = vcvt.s32.f32 %v2129_v51  ;;  %v2257_v10 = vunpack.c.0.s8 %v2085_v36 }
 0x17b   :  { %v2477_v4 = vcvt.s32.f32 %v2221_v26  ;;  %v2605_v14 = vcvt.s32.f32 %v2349_v0  ;;  %v2593_v56 = vcvt.s32.f32 %v2337_v58  ;;  %v2597_v35 = vcvt.s32.f32 %v2341_v3  ;;  %v3718_v0 = vld [vmem:[#allocation11] sm:$0xff] }
 0x17c   :  { %2756 = vmatpush.bf16.msra.mxu0 %v2641_v40  ;;  %v2585_v26 = vcvt.s32.f32 %v2329_v22  ;;  %v2589_v43 = vcvt.s32.f32 %v2333_v20  ;;  %v2261_v27 = vunpack.c.1.s8 %v2085_v36  ;;  %v2321_v13 = vunpack.c.0.s8 %v2101_v39  ;;  %v3726_v3 = vld [vmem:[#allocation11 + $0x180] sm:$0xff] }
 0x17d   :  { %v2677_v16 = vpack.c.bf16 %v2477_v4, %v2473_v63  ;;  %2782 = vmatpush.bf16.msra.mxu2 %v2705_v42  ;;  %v2197_v63 = vunpack.c.1.s8 %v2069_v34  ;;  %v2389_v4 = vcvt.s32.f32 %v2133_v57  ;;  %v2121_v53 = vunpack.c.2.s8 %v3718_v0 }
 0x17e   :  { %v2517_v21 = vcvt.s32.f32 %v2261_v27  ;;  %v2577_v24 = vcvt.s32.f32 %v2321_v13  ;;  %v2125_v58 = vunpack.c.3.s8 %v3718_v0  ;;  %v2249_v55 = vunpack.c.2.s8 %v3723_v37 }
 0x17f   :  { %2768 = vmatpush.bf16.msra.mxu1 %v2677_v16  ;;  %v3720_v16 = vld [vmem:[#allocation11 + $0x80] sm:$0xff]  ;;  %v2633_v17 = vpack.c.bf16 %v2389_v4, %v2385_v59  ;;  %v2377_v31 = vcvt.s32.f32 %v2121_v53  ;;  %v2313_v40 = vunpack.c.2.s8 %v3726_v3  ;;  %v2245_v59 = vunpack.c.1.s8 %v3723_v37  ;;  %v2094_v53 = vld [vmem:[#allocation11 + $0x168] sm:$0xff] }
 0x180   :  { %v2185_v62 = vunpack.c.2.s8 %v3720_v16  ;;  %v2189_v32 = vunpack.c.3.s8 %v3720_v16  ;;  %v2381_v7 = vcvt.s32.f32 %v2125_v58  ;;  %v2110_v58 = vld [vmem:[#allocation11 + $0x1e8] sm:$0xff] }
 0x183   :  { %2769 = vmatpush.bf16.msra.mxu1 %v2673_v29  ;;  %v2317_v29 = vunpack.c.3.s8 %v3726_v3 }
 0x18f   :  { %v1839_v38 = vpop.f32.mrf.mxu0 }
 0x190   :  { %v1840_v47 = vadd.f32 %v1839_v38, %v1827_v60  ;;  %v1852_v48 = vpop.f32.mrf.mxu1  ;;  %v2345_v60 = vunpack.c.2.s8 %v2105_v1  ;;  %v2737_v38 = vpack.c.bf16 %v2597_v35, %v2593_v56  ;;  %v2253_v56 = vunpack.c.3.s8 %v3723_v37 }
 0x191   :  { %v2441_v35 = vcvt.s32.f32 %v2185_v62 }
 0x192   :  { %v1853_v9 = vadd.f32 %v1852_v48, %v1840_v47  ;;  %v2601_v61 = vcvt.s32.f32 %v2345_v60  ;;  %v2201_v47 = vunpack.c.2.s8 %v2069_v34  ;;  %v2205_v48 = vunpack.c.3.s8 %v2069_v34 }
 0x193   :  { %v2509_v42 = vcvt.s32.f32 %v2253_v56 }
 0x194   :  { %v2741_v18 = vpack.c.bf16 %v2605_v14, %v2601_v61  ;;  %v2449_v61 = vcvt.s32.f32 %v2193_v6  ;;  %v2325_v14 = vunpack.c.1.s8 %v2101_v39  ;;  %v2505_v39 = vcvt.s32.f32 %v2249_v55 }
 0x195   :  { %v2305_v6 = vunpack.c.0.s8 %v3726_v3  ;;  %v2298_v55 = vunpack.c.2.s8 %v2094_v53 }
 0x196   :  { %2794 = vmatpush.bf16.msra.mxu3 %v2741_v18  ;;  %v2513_v18 = vcvt.s32.f32 %v2257_v10  ;;  %v2581_v23 = vcvt.s32.f32 %v2325_v14 }
 0x197   :  { %v1865_v45 = vpop.f32.mrf.mxu2  ;;  %v1841_v44 = vpop.f32.mrf.mxu0 }
 0x198   :  { %v1866_v49 = vadd.f32 %v1865_v45, %v1853_v9  ;;  %v1878_v33 = vpop.f32.mrf.mxu3  ;;  %v1854_v54 = vpop.f32.mrf.mxu1  ;;  %v2393_v9 = vcvt.s32.f32 %v2137_v41  ;;  %v2397_v45 = vcvt.s32.f32 %v2141_v5  ;;  %v2265_v44 = vunpack.c.2.s8 %v2085_v36 }
 0x199   :  { %v2461_v54 = vcvt.s32.f32 %v2205_v48  ;;  %v2697_v30 = vpack.c.bf16 %v2517_v21, %v2513_v18  ;;  %v2729_v34 = vpack.c.bf16 %v2581_v23, %v2577_v24  ;;  %v2023_v41 = vperm.slane %v3728_v28, 1 }
 0x19a   :  { %v3713_v8 = vadd.f32 %v1878_v33, %v1866_v49  ;;  %v2269_v49 = vunpack.c.3.s8 %v2085_v36  ;;  %2795 = vmatpush.bf16.msra.mxu3 %v2737_v38  ;;  %v2457_v33 = vcvt.s32.f32 %v2201_v47  ;;  %v2637_v46 = vpack.c.bf16 %v2397_v45, %v2393_v9 }
 0x19b   :  { %v2521_v25 = vcvt.s32.f32 %v2265_v44  ;;  %v2445_v36 = vcvt.s32.f32 %v2189_v32  ;;  %v2629_v5 = vpack.c.bf16 %v2381_v7, %v2377_v31  ;;  %v2569_v47 = vcvt.s32.f32 %v2313_v40 }
 0x19c   :  { %v2525_v52 = vcvt.s32.f32 %v2269_v49  ;;  %v2669_v1 = vpack.c.bf16 %v2461_v54, %v2457_v33  ;;  %2757 = vmatpush.bf16.msra.mxu0 %v2637_v46  ;;  %v2573_v48 = vcvt.s32.f32 %v2317_v29  ;;  %v2693_v45 = vpack.c.bf16 %v2509_v42, %v2505_v39 }
 0x19d   :  { %v2661_v38 = vpack.c.bf16 %v2445_v36, %v2441_v35  ;;  %v2008_v49 = vperm.slane %v3715_v11, 0  ;;  %v2012_v33 = vrot.slane %v2009_v19, 6  ;;  %v2022_v54 = vperm.slane %v3728_v28, 0 }
 0x19e   :  { %v2701_v60 = vpack.c.bf16 %v2525_v52, %v2521_v25  ;;  %2770 = vmatpush.bf16.msra.mxu1 %v2669_v1  ;;  %v2725_v44 = vpack.c.bf16 %v2573_v48, %v2569_v47  ;;  %v2026_v22 = vrot.slane %v2023_v41, 6  ;;  %v1991_v52 = vrot.slane %v3713_v8, 4 }
 0x19f   :  { %v1867_v2 = vpop.f32.mrf.mxu2  ;;  %v3742_v46 = vsel %vm1993_vm0, %v2008_v49, %v2012_v33  ;;  %v2113_v1 = vunpack.c.0.s8 %v3718_v0  ;;  %v2177_v19 = vunpack.c.0.s8 %v3720_v16  ;;  %v2501_v18 = vcvt.s32.f32 %v2245_v59 }
 0x1a0   :  { %v1880_v12 = vpop.f32.mrf.mxu3  ;;  %v2733_v2 = vpack.c.bf16 %v2589_v43, %v2585_v26  ;;  %2783 = vmatpush.bf16.msra.mxu2 %v2701_v60  ;;  %2758 = vmatpush.bf16.msra.mxu0 %v2633_v17  ;;  %v3745_v25 = vsel %vm1993_vm0, %v2022_v54, %v2026_v22  ;;  %v2117_v26 = vunpack.c.1.s8 %v3718_v0  ;;  %v2181_v43 = vunpack.c.1.s8 %v3720_v16  ;;  %v2078_v0 = vld [vmem:[#allocation11 + $0xe8] sm:$0xff] }
 0x1a1   :  { %v2453_v12 = vcvt.s32.f32 %v2197_v63  ;;  %v2241_v60 = vunpack.c.0.s8 %v3723_v37  ;;  %v2309_v63 = vunpack.c.1.s8 %v3726_v3  ;;  %v2369_v10 = vcvt.s32.f32 %v2113_v1 }
 0x1a2   :  { %2796 = vmatpush.bf16.msra.mxu3 %v2733_v2  ;;  %v2062_v2 = vld [vmem:[#allocation11 + $0x68] sm:$0xff]  ;;  %v2373_v27 = vcvt.s32.f32 %v2117_v26  ;;  %v2561_v21 = vcvt.s32.f32 %v2305_v6  ;;  %v2234_v62 = vunpack.c.2.s8 %v2078_v0  ;;  %v2238_v7 = vunpack.c.3.s8 %v2078_v0 }
 0x1a3   :  { %v2665_v50 = vpack.c.bf16 %v2453_v12, %v2449_v61  ;;  %v2433_v61 = vcvt.s32.f32 %v2177_v19  ;;  %v2437_v12 = vcvt.s32.f32 %v2181_v43  ;;  %v2497_v16 = vcvt.s32.f32 %v2241_v60  ;;  %v2058_v60 = vld [vmem:[#allocation11 + $0x48] sm:$0xff] }
 0x1a4   :  { %2784 = vmatpush.bf16.msra.mxu2 %v2697_v30  ;;  %2759 = vmatpush.bf16.msra.mxu0 %v2629_v5  ;;  %v2565_v24 = vcvt.s32.f32 %v2309_v63  ;;  %v2170_v23 = vunpack.c.2.s8 %v2062_v2  ;;  %v2174_v31 = vunpack.c.3.s8 %v2062_v2  ;;  %v2490_v35 = vcvt.s32.f32 %v2234_v62 }
 0x1a5   :  { %2771 = vmatpush.bf16.msra.mxu1 %v2665_v50  ;;  %v2625_v50 = vpack.c.bf16 %v2373_v27, %v2369_v10  ;;  %v2657_v37 = vpack.c.bf16 %v2437_v12, %v2433_v61  ;;  %v2689_v30 = vpack.c.bf16 %v2501_v18, %v2497_v16  ;;  %v2302_v36 = vunpack.c.3.s8 %v2094_v53 }
 0x1a6   :  { %2797 = vmatpush.bf16.msra.mxu3 %v2729_v34  ;;  %v2721_v32 = vpack.c.bf16 %v2565_v24, %v2561_v21  ;;  %v2426_v34 = vcvt.s32.f32 %v2170_v23  ;;  %v2430_v56 = vcvt.s32.f32 %v2174_v31  ;;  %v2362_v40 = vunpack.c.2.s8 %v2110_v58  ;;  %v2074_v21 = vld [vmem:[#allocation11 + $0xc8] sm:$0xff] }
 0x1a7   :  { %v2494_v29 = vcvt.s32.f32 %v2238_v7  ;;  %v2554_v41 = vcvt.s32.f32 %v2298_v55  ;;  %v2366_v5 = vunpack.c.3.s8 %v2110_v58  ;;  %v2162_v39 = vunpack.c.0.s8 %v2062_v2  ;;  %v2106_v24 = vld [vmem:[#allocation11 + $0x1c8] sm:$0xff] }
 0x1a8   :  { %2785 = vmatpush.bf16.msra.mxu2 %v2693_v45  ;;  %2760 = vmatpush.bf16.msra.mxu0 %v2625_v50  ;;  %v2654_v42 = vpack.c.bf16 %v2430_v56, %v2426_v34  ;;  %v2618_v47 = vcvt.s32.f32 %v2362_v40  ;;  %v2166_v48 = vunpack.c.1.s8 %v2062_v2  ;;  %v2226_v33 = vunpack.c.0.s8 %v2078_v0 }
 0x1a9   :  { %2772 = vmatpush.bf16.msra.mxu1 %v2661_v38  ;;  %v2558_v38 = vcvt.s32.f32 %v2302_v36  ;;  %v2686_v45 = vpack.c.bf16 %v2494_v29, %v2490_v35  ;;  %v2418_v49 = vcvt.s32.f32 %v2162_v39  ;;  %v2290_v1 = vunpack.c.0.s8 %v2094_v53 }
 0x1aa   :  { %2798 = vmatpush.bf16.msra.mxu3 %v2725_v44  ;;  %v2622_v44 = vcvt.s32.f32 %v2366_v5  ;;  %v2482_v19 = vcvt.s32.f32 %v2226_v33  ;;  %v2294_v43 = vunpack.c.1.s8 %v2094_v53  ;;  %v2358_v2 = vunpack.c.1.s8 %v2110_v58 }
 0x1ab   :  { %v2718_v22 = vpack.c.bf16 %v2558_v38, %v2554_v41  ;;  %v2546_v63 = vcvt.s32.f32 %v2290_v1  ;;  %v2011_v10 = vperm.slane %v3715_v11, 3  ;;  %v2024_v16 = vperm.slane %v3728_v28, 2  ;;  %v2070_v1 = vld [vmem:[#allocation11 + $0xa8] sm:$0xff] }
 0x1ac   :  { %2786 = vmatpush.bf16.msra.mxu2 %v2689_v30  ;;  %2805 = vmatpush.bf16.msrb.mxu0 %v2654_v42  ;;  %v2750_v26 = vpack.c.bf16 %v2622_v44, %v2618_v47  ;;  %v2550_v27 = vcvt.s32.f32 %v2294_v43  ;;  %v2025_v18 = vperm.slane %v3728_v28, 3  ;;  %v2222_v34 = vunpack.c.3.s8 %v2074_v21 }
 0x1ad   :  { %2773 = vmatpush.bf16.msra.mxu1 %v2657_v37  ;;  %v2158_v37 = vunpack.c.3.s8 %v2058_v60  ;;  %v2346_v35 = vunpack.c.2.s8 %v2106_v24  ;;  %v2350_v39 = vunpack.c.3.s8 %v2106_v24  ;;  %v2146_v47 = vunpack.c.0.s8 %v2058_v60 }
 0x1ae   :  { %2799 = vmatpush.bf16.msra.mxu3 %v2721_v32  ;;  %v2714_v53 = vpack.c.bf16 %v2550_v27, %v2546_v63  ;;  %v2028_v30 = vrot.slane %v2025_v18, 2  ;;  %v2218_v32 = vunpack.c.2.s8 %v2074_v21  ;;  %v2478_v41 = vcvt.s32.f32 %v2222_v34 }
 0x1af   :  { %v2414_v28 = vcvt.s32.f32 %v2158_v37  ;;  %v2602_v42 = vcvt.s32.f32 %v2346_v35  ;;  %v2606_v44 = vcvt.s32.f32 %v2350_v39 }
 0x1b0   :  { %2831 = vmatpush.bf16.msrb.mxu2 %v2718_v22  ;;  %v2474_v29 = vcvt.s32.f32 %v2218_v32 }
 0x1b1   :  { %2818 = vmatpush.bf16.msrb.mxu1 %v2686_v45 }
 0x1b2   :  { %2844 = vmatpush.bf16.msrb.mxu3 %v2750_v26  ;;  %v2678_v38 = vpack.c.bf16 %v2478_v41, %v2474_v29  ;;  %v2742_v26 = vpack.c.bf16 %v2606_v44, %v2602_v42  ;;  %v2198_v29 = vunpack.c.1.s8 %v2070_v1  ;;  %v2066_v44 = vld [vmem:[#allocation11 + $0x88] sm:$0xff] }
 0x1b4   :  { %2832 = vmatpush.bf16.msrb.mxu2 %v2714_v53 }
 0x1b8   :  { %v1891_v9 = vpop.f32.mrf.mxu0 }
 0x1ba   :  { %v1904_v20 = vpop.f32.mrf.mxu1 }
 0x1bb   :  { %v1905_v51 = vadd.f32 %v1904_v20, %v1891_v9  ;;  %v2422_v20 = vcvt.s32.f32 %v2166_v48  ;;  %v2150_v48 = vunpack.c.1.s8 %v2058_v60 }
 0x1bd   :  { %v2650_v59 = vpack.c.bf16 %v2422_v20, %v2418_v49  ;;  %v2214_v49 = vunpack.c.1.s8 %v2074_v21  ;;  %v2406_v22 = vcvt.s32.f32 %v2150_v48  ;;  %v2454_v48 = vcvt.s32.f32 %v2198_v29 }
 0x1bf   :  { %2806 = vmatpush.bf16.msrb.mxu0 %v2650_v59 }
 0x1c0   :  { %v1893_v57 = vpop.f32.mrf.mxu0 }
 0x1c1   :  { %v1917_v4 = vpop.f32.mrf.mxu2  ;;  %v2354_v57 = vunpack.c.0.s8 %v2110_v58  ;;  %v2027_v58 = vrot.slane %v2024_v16, 4 }
 0x1c2   :  { %v1918_v13 = vadd.f32 %v1917_v4, %v1905_v51  ;;  %v1930_v14 = vpop.f32.mrf.mxu3  ;;  %v1906_v17 = vpop.f32.mrf.mxu1  ;;  %v2230_v51 = vunpack.c.1.s8 %v2078_v0  ;;  %v2010_v4 = vperm.slane %v3715_v11, 2  ;;  %v2614_v0 = vcvt.s32.f32 %v2358_v2  ;;  %v2090_v11 = vld [vmem:[#allocation11 + $0x148] sm:$0xff] }
 0x1c3   :  { %v2610_v61 = vcvt.s32.f32 %v2354_v57  ;;  %v2014_v17 = vrot.slane %v2011_v10, 2  ;;  %v2030_v7 = vsel %vm1995_vm1, %v2027_v58, %v2028_v30  ;;  %v2282_v55 = vunpack.c.2.s8 %v2090_v11  ;;  %v2086_v2 = vld [vmem:[#allocation11 + $0x128] sm:$0xff] }
 0x1c4   :  { %v3756_v3 = vadd.f32 %v1930_v14, %v1918_v13  ;;  %v2486_v6 = vcvt.s32.f32 %v2230_v51  ;;  %v2154_v13 = vunpack.c.2.s8 %v2058_v60  ;;  %v2013_v14 = vrot.slane %v2010_v4, 4 }
 0x1c5   :  { %v2746_v50 = vpack.c.bf16 %v2614_v0, %v2610_v61  ;;  %v2286_v56 = vunpack.c.3.s8 %v2090_v11  ;;  %v3770_v36 = vsel %vm1997_vm2, %v3745_v25, %v2030_v7  ;;  %v2538_v5 = vcvt.s32.f32 %v2282_v55 }
 0x1c6   :  { %v2682_v12 = vpack.c.bf16 %v2486_v6, %v2482_v19  ;;  %v2016_v23 = vsel %vm1995_vm1, %v2013_v14, %v2014_v17  ;;  %v2410_v31 = vcvt.s32.f32 %v2154_v13  ;;  %v2274_v33 = vunpack.c.0.s8 %v2090_v11 }
 0x1c7   :  { %v3765_v62 = vsel %vm1997_vm2, %v3742_v46, %v2016_v23  ;;  %2845 = vmatpush.bf16.msrb.mxu3 %v2746_v50  ;;  %v2542_v46 = vcvt.s32.f32 %v2286_v56  ;;  %v2402_v25 = vcvt.s32.f32 %v2146_v47  ;;  %v2278_v51 = vunpack.c.1.s8 %v2090_v11 }
 0x1c8   :  { %2819 = vmatpush.bf16.msrb.mxu1 %v2682_v12  ;;  %v2646_v40 = vpack.c.bf16 %v2414_v28, %v2410_v31  ;;  %v2470_v19 = vcvt.s32.f32 %v2214_v49  ;;  %v2530_v43 = vcvt.s32.f32 %v2274_v33  ;;  %v2338_v57 = vunpack.c.0.s8 %v2106_v24  ;;  %v2102_v12 = vld [vmem:[#allocation11 + $0x1a8] sm:$0xff] }
 0x1c9   :  { %v1919_v9 = vpop.f32.mrf.mxu2  ;;  %v2710_v45 = vpack.c.bf16 %v2542_v46, %v2538_v5  ;;  %v2642_v59 = vpack.c.bf16 %v2406_v22, %v2402_v25  ;;  %v2534_v6 = vcvt.s32.f32 %v2278_v51  ;;  %v2342_v60 = vunpack.c.1.s8 %v2106_v24  ;;  %v2082_v22 = vld [vmem:[#allocation11 + $0x108] sm:$0xff] }
 0x1ca   :  { %v1932_v54 = vpop.f32.mrf.mxu3  ;;  %2807 = vmatpush.bf16.msrb.mxu0 %v2646_v40  ;;  %v2210_v9 = vunpack.c.0.s8 %v2074_v21  ;;  %v2594_v10 = vcvt.s32.f32 %v2338_v57  ;;  %v2202_v61 = vunpack.c.2.s8 %v2070_v1  ;;  %v2206_v17 = vunpack.c.3.s8 %v2070_v1 }
 0x1cb   :  { %v2054_v54 = vld [vmem:[#allocation11 + $0x28] sm:$0xff]  ;;  %2833 = vmatpush.bf16.msrb.mxu2 %v2710_v45  ;;  %2846 = vmatpush.bf16.msrb.mxu3 %v2742_v26  ;;  %v2706_v0 = vpack.c.bf16 %v2534_v6, %v2530_v43  ;;  %v2598_v13 = vcvt.s32.f32 %v2342_v60  ;;  %v2266_v21 = vunpack.c.2.s8 %v2086_v2  ;;  %v2270_v53 = vunpack.c.3.s8 %v2086_v2 }
 0x1cc   :  { %2820 = vmatpush.bf16.msrb.mxu1 %v2678_v38  ;;  %v2466_v20 = vcvt.s32.f32 %v2210_v9  ;;  %v2138_v63 = vunpack.c.2.s8 %v2054_v54  ;;  %v2142_v27 = vunpack.c.3.s8 %v2054_v54  ;;  %v2458_v18 = vcvt.s32.f32 %v2202_v61  ;;  %v2050_v38 = vld [vmem:[#allocation11 + $0x8] sm:$0xff] }
 0x1cd   :  { %v2738_v50 = vpack.c.bf16 %v2598_v13, %v2594_v10  ;;  %v2462_v37 = vcvt.s32.f32 %v2206_v17  ;;  %v2330_v11 = vunpack.c.2.s8 %v2102_v12  ;;  %v2334_v24 = vunpack.c.3.s8 %v2102_v12 }
 0x1ce   :  { %v2674_v4 = vpack.c.bf16 %v2470_v19, %v2466_v20  ;;  %2808 = vmatpush.bf16.msrb.mxu0 %v2642_v59  ;;  %v2394_v14 = vcvt.s32.f32 %v2138_v63  ;;  %v2398_v16 = vcvt.s32.f32 %v2142_v27  ;;  %v2522_v58 = vcvt.s32.f32 %v2266_v21  ;;  %v2098_v59 = vld [vmem:[#allocation11 + $0x188] sm:$0xff] }
 0x1cf   :  { %2834 = vmatpush.bf16.msrb.mxu2 %v2706_v0  ;;  %v2526_v30 = vcvt.s32.f32 %v2270_v53  ;;  %v2130_v31 = vunpack.c.0.s8 %v2054_v54  ;;  %2847 = vmatpush.bf16.msrb.mxu3 %v2738_v50  ;;  %v2670_v28 = vpack.c.bf16 %v2462_v37, %v2458_v18  ;;  %v2586_v32 = vcvt.s32.f32 %v2330_v11 }
 0x1d0   :  { %2821 = vmatpush.bf16.msrb.mxu1 %v2674_v4  ;;  %v2638_v23 = vpack.c.bf16 %v2398_v16, %v2394_v14  ;;  %v2590_v34 = vcvt.s32.f32 %v2334_v24  ;;  %v2134_v7 = vunpack.c.1.s8 %v2054_v54  ;;  %v2194_v40 = vunpack.c.0.s8 %v2070_v1 }
 0x1d1   :  { %v2702_v56 = vpack.c.bf16 %v2526_v30, %v2522_v58  ;;  %v2386_v35 = vcvt.s32.f32 %v2130_v31  ;;  %v2258_v42 = vunpack.c.0.s8 %v2086_v2  ;;  %v2262_v9 = vunpack.c.1.s8 %v2086_v2 }
 0x1d2   :  { %2809 = vmatpush.bf16.msrb.mxu0 %v2638_v23  ;;  %v2734_v46 = vpack.c.bf16 %v2590_v34, %v2586_v32  ;;  %v2390_v39 = vcvt.s32.f32 %v2134_v7  ;;  %v2450_v47 = vcvt.s32.f32 %v2194_v40  ;;  %v2322_v45 = vunpack.c.0.s8 %v2102_v12  ;;  %v2063_v40 = vld [vmem:[#allocation11 + $0x70] sm:$0xff] }
 0x1d3   :  { %2835 = vmatpush.bf16.msrb.mxu2 %v2702_v56  ;;  %v2514_v54 = vcvt.s32.f32 %v2258_v42  ;;  %v2326_v25 = vunpack.c.1.s8 %v2102_v12  ;;  %v2122_v1 = vunpack.c.2.s8 %v2050_v38  ;;  %v2126_v19 = vunpack.c.3.s8 %v2050_v38 }
 0x1d4   :  { %2822 = vmatpush.bf16.msrb.mxu1 %v2670_v28  ;;  %2848 = vmatpush.bf16.msrb.mxu3 %v2734_v46  ;;  %v2634_v33 = vpack.c.bf16 %v2390_v39, %v2386_v35  ;;  %v2666_v20 = vpack.c.bf16 %v2454_v48, %v2450_v47  ;;  %v2578_v51 = vcvt.s32.f32 %v2322_v45  ;;  %v2186_v43 = vunpack.c.2.s8 %v2066_v44  ;;  %v2079_v48 = vld [vmem:[#allocation11 + $0xf0] sm:$0xff] }
 0x1d5   :  { %v2582_v26 = vcvt.s32.f32 %v2326_v25  ;;  %v2190_v57 = vunpack.c.3.s8 %v2066_v44  ;;  %v2378_v60 = vcvt.s32.f32 %v2122_v1  ;;  %v2250_v63 = vunpack.c.2.s8 %v2082_v22 }
 0x1d6   :  { %2810 = vmatpush.bf16.msrb.mxu0 %v2634_v33  ;;  %v2254_v2 = vunpack.c.3.s8 %v2082_v22  ;;  %v2382_v10 = vcvt.s32.f32 %v2126_v19  ;;  %v2442_v27 = vcvt.s32.f32 %v2186_v43  ;;  %v2314_v17 = vunpack.c.2.s8 %v2098_v59  ;;  %v2095_v33 = vld [vmem:[#allocation11 + $0x170] sm:$0xff] }
 0x1d7   :  { %v2730_v4 = vpack.c.bf16 %v2582_v26, %v2578_v51  ;;  %v2446_v61 = vcvt.s32.f32 %v2190_v57  ;;  %v2506_v13 = vcvt.s32.f32 %v2250_v63  ;;  %v2318_v16 = vunpack.c.3.s8 %v2098_v59  ;;  %v2111_v51 = vld [vmem:[#allocation11 + $0x1f0] sm:$0xff] }
 0x1d8   :  { %2823 = vmatpush.bf16.msrb.mxu1 %v2666_v20  ;;  %v2510_v14 = vcvt.s32.f32 %v2254_v2  ;;  %v2630_v50 = vpack.c.bf16 %v2382_v10, %v2378_v60  ;;  %v2114_v11 = vunpack.c.0.s8 %v2050_v38  ;;  %v2570_v23 = vcvt.s32.f32 %v2314_v17 }
 0x1d9   :  { %2849 = vmatpush.bf16.msrb.mxu3 %v2730_v4  ;;  %v2662_v37 = vpack.c.bf16 %v2446_v61, %v2442_v27  ;;  %v2574_v58 = vcvt.s32.f32 %v2318_v16  ;;  %v2118_v30 = vunpack.c.1.s8 %v2050_v38  ;;  %v2178_v32 = vunpack.c.0.s8 %v2066_v44 }
 0x1da   :  { %v2694_v24 = vpack.c.bf16 %v2510_v14, %v2506_v13  ;;  %2811 = vmatpush.bf16.msrb.mxu0 %v2630_v50  ;;  %v2370_v28 = vcvt.s32.f32 %v2114_v11  ;;  %v2182_v34 = vunpack.c.1.s8 %v2066_v44  ;;  %v2242_v56 = vunpack.c.0.s8 %v2082_v22 }
 0x1db   :  { %v2726_v7 = vpack.c.bf16 %v2574_v58, %v2570_v23  ;;  %v2246_v35 = vunpack.c.1.s8 %v2082_v22  ;;  %v2306_v46 = vunpack.c.0.s8 %v2098_v59  ;;  %v2310_v47 = vunpack.c.1.s8 %v2098_v59 }
 0x1dc   :  { %2824 = vmatpush.bf16.msrb.mxu1 %v2662_v37  ;;  %v2498_v42 = vcvt.s32.f32 %v2242_v56  ;;  %v2239_v19 = vunpack.c.3.s8 %v2079_v48  ;;  %v2299_v59 = vunpack.c.2.s8 %v2095_v33  ;;  %v2363_v2 = vunpack.c.2.s8 %v2111_v51  ;;  %v2059_v37 = vld [vmem:[#allocation11 + $0x50] sm:$0xff] }
 0x1dd   :  { %2850 = vmatpush.bf16.msrb.mxu3 %v2726_v7  ;;  %v2502_v38 = vcvt.s32.f32 %v2246_v35  ;;  %v2562_v44 = vcvt.s32.f32 %v2306_v46  ;;  %v2566_v20 = vcvt.s32.f32 %v2310_v47  ;;  %v2367_v27 = vunpack.c.3.s8 %v2111_v51  ;;  %v2091_v7 = vld [vmem:[#allocation11 + $0x150] sm:$0xff] }
 0x1de   :  { %v3786_v63 = vcvt.s32.f32 %v2239_v19  ;;  %v3790_v4 = vcvt.s32.f32 %v2299_v59  ;;  %v2167_v17 = vunpack.c.1.s8 %v2063_v40  ;;  %v2227_v16 = vunpack.c.0.s8 %v2079_v48 }
 0x1df   :  { %v2690_v22 = vpack.c.bf16 %v2502_v38, %v2498_v42  ;;  %v2722_v43 = vpack.c.bf16 %v2566_v20, %v2562_v44  ;;  %v3800_v14 = vcvt.s32.f32 %v2367_v27  ;;  %v2295_v50 = vunpack.c.1.s8 %v2095_v33 }
 0x1e0   :  { %v3808_v23 = vcvt.s32.f32 %v2227_v16  ;;  %v2355_v58 = vunpack.c.0.s8 %v2111_v51  ;;  %v2155_v35 = vunpack.c.2.s8 %v2059_v37  ;;  %v2287_v44 = vunpack.c.3.s8 %v2091_v7 }
 0x1e1   :  { %v1943_v55 = vpop.f32.mrf.mxu0  ;;  %2851 = vmatpush.bf16.msrb.mxu3 %v2722_v43 }
 0x1e2   :  { %v1944_v41 = vadd.f32 %v1943_v55, %v3756_v3  ;;  %v1956_v5 = vpop.f32.mrf.mxu1  ;;  %v2518_v3 = vcvt.s32.f32 %v2262_v9  ;;  %v2374_v55 = vcvt.s32.f32 %v2118_v30  ;;  %v2075_v30 = vld [vmem:[#allocation11 + $0xd0] sm:$0xff]  ;;  %v3818_v56 = vcvt.s32.f32 %v2355_v58 }
 0x1e3   :  { %v3828_v42 = vcvt.s32.f32 %v2155_v35  ;;  %v2223_v47 = vunpack.c.3.s8 %v2075_v30  ;;  %v3848_v19 = vcvt.s32.f32 %v2287_v44  ;;  %v2055_v58 = vld [vmem:[#allocation11 + $0x30] sm:$0xff] }
 0x1e4   :  { %v1957_v49 = vadd.f32 %v1956_v5, %v1944_v41  ;;  %v2698_v6 = vpack.c.bf16 %v2518_v3, %v2514_v54  ;;  %v2434_v41 = vcvt.s32.f32 %v2178_v32  ;;  %v2438_v5 = vcvt.s32.f32 %v2182_v34 }
 0x1e5   :  { %v2626_v39 = vpack.c.bf16 %v2374_v55, %v2370_v28  ;;  %v2175_v3 = vunpack.c.3.s8 %v2063_v40  ;;  %v3814_v32 = vcvt.s32.f32 %v2295_v50  ;;  %v2359_v34 = vunpack.c.1.s8 %v2111_v51 }
 0x1e6   :  { %2836 = vmatpush.bf16.msrb.mxu2 %v2698_v6  ;;  %v2658_v45 = vpack.c.bf16 %v2438_v5, %v2434_v41  ;;  %v2279_v50 = vunpack.c.1.s8 %v2091_v7 }
 0x1e7   :  { %2812 = vmatpush.bf16.msrb.mxu0 %v2626_v39  ;;  %v3781_v57 = vcvt.s32.f32 %v2175_v3  ;;  %v3826_v46 = vcvt.s32.f32 %v2359_v34  ;;  %v2219_v39 = vunpack.c.2.s8 %v2075_v30 }
 0x1e8   :  { %2825 = vmatpush.bf16.msrb.mxu1 %v2658_v45 }
 0x1e9   :  { %v1969_v12 = vpop.f32.mrf.mxu2  ;;  %v1945_v0 = vpop.f32.mrf.mxu0  ;;  %v3834_v45 = vcvt.s32.f32 %v2219_v39  ;;  %v2103_v39 = vld [vmem:[#allocation11 + $0x1b0] sm:$0xff] }
 0x1ea   :  { %v1970_v18 = vadd.f32 %v1969_v12, %v1957_v49  ;;  %v1982_v21 = vpop.f32.mrf.mxu3  ;;  %v1958_v53 = vpop.f32.mrf.mxu1  ;;  %2837 = vmatpush.bf16.msrb.mxu2 %v2694_v24  ;;  %v2171_v49 = vunpack.c.2.s8 %v2063_v40  ;;  %v3796_v0 = vcvt.s32.f32 %v2363_v2  ;;  %v3806_v24 = vcvt.s32.f32 %v2167_v17 }
 0x1eb   :  { %v2291_v53 = vunpack.c.0.s8 %v2095_v33  ;;  %v2211_v17 = vunpack.c.0.s8 %v2075_v30 }
 0x1ec   :  { %v1983_v31 = vadd.f32 %v1982_v21, %v1970_v18  ;;  %v3779_v8 = vcvt.s32.f32 %v2171_v49  ;;  %v2231_v21 = vunpack.c.1.s8 %v2079_v48  ;;  %v2751_v11 = vpack.c.bf16 %v3800_v14, %v3796_v0 }
 0x1ed   :  { %v3812_v28 = vcvt.s32.f32 %v2291_v53  ;;  %v2275_v53 = vunpack.c.0.s8 %v2091_v7 }
 0x1ee   :  { %v1992_v29 = vrot.slane %v1983_v31, 2  ;;  %2838 = vmatpush.bf16.msrb.mxu2 %v2690_v22  ;;  %v3810_v31 = vcvt.s32.f32 %v2231_v21  ;;  %v3839_v22 = vcvt.s32.f32 %v2223_v47  ;;  %v2215_v21 = vunpack.c.1.s8 %v2075_v30  ;;  %v2071_v30 = vld [vmem:[#allocation11 + $0xb0] sm:$0xff] }
 0x1ef   :  { %v2715_v5 = vpack.c.bf16 %v3814_v32, %v3812_v28  ;;  %v2203_v47 = vunpack.c.2.s8 %v2071_v30 }
 0x1f0   :  { %v1996_v9 = vsel %vm1995_vm1, %v1991_v52, %v1992_v29  ;;  %v2235_v52 = vunpack.c.2.s8 %v2079_v48  ;;  %v3820_v29 = vld [vmem:[#allocation11 + $0x1d0] sm:$0xff]  ;;  %v2683_v41 = vpack.c.bf16 %v3810_v31, %v3808_v23  ;;  %v2283_v48 = vunpack.c.2.s8 %v2091_v7 }
 0x1f1   :  { %v1998_v54 = vsel %vm1997_vm2, %v3711_v15, %v1996_v9  ;;  %v1971_v25 = vpop.f32.mrf.mxu2  ;;  %v2303_v15 = vunpack.c.3.s8 %v2095_v33  ;;  %v2747_v9 = vpack.c.bf16 %v3826_v46, %v3818_v56  ;;  %v2347_v49 = vunpack.c.2.s8 %v3820_v29 }
 0x1f2   :  { %v2019_v1 = vmul.f32 %v3765_v62, %v1998_v54  ;;  %v1984_v26 = vpop.f32.mrf.mxu3  ;;  %v3784_v60 = vcvt.s32.f32 %v2235_v52  ;;  %v2655_v62 = vpack.c.bf16 %v3781_v57, %v3779_v8  ;;  %v3841_v20 = vcvt.s32.f32 %v2283_v48 }
 0x1f3   :  { %v3792_v10 = vcvt.s32.f32 %v2303_v15  ;;  %v2351_v3 = vunpack.c.3.s8 %v3820_v29  ;;  %v3850_v43 = vcvt.s32.f32 %v2347_v49  ;;  %v3878_v56 = vcvt.s32.f32 %v2211_v17 }
 0x1f4   :  { %v2033_v6 = vadd.f32 %v3770_v36, %v2019_v1  ;;  %v2687_v12 = vpack.c.bf16 %v3786_v63, %v3784_v60  ;;  %v2163_v36 = vunpack.c.0.s8 %v2063_v40  ;;  %v2159_v40 = vunpack.c.3.s8 %v2059_v37 }
 0x1f5   :  { %v2719_v13 = vpack.c.bf16 %v3792_v10, %v3790_v4  ;;  %v3858_v2 = vcvt.s32.f32 %v2351_v3  ;;  %v2711_v27 = vpack.c.bf16 %v3848_v19, %v3841_v20  ;;  %v2339_v35 = vunpack.c.0.s8 %v3820_v29 }
 0x1f6   :  { %v2034_v61 = vmax.f32 %v2033_v6, 0.0  ;;  %v3802_v18 = vcvt.s32.f32 %v2163_v36  ;;  %v3830_v38 = vcvt.s32.f32 %v2159_v40  ;;  %v2679_v6 = vpack.c.bf16 %v3839_v22, %v3834_v45 }
 0x1f7   :  { %v2151_v36 = vunpack.c.1.s8 %v2059_v37  ;;  %v2743_v16 = vpack.c.bf16 %v3858_v2, %v3850_v43  ;;  %v2471_v8 = vcvt.s32.f32 %v2215_v21  ;;  %v2531_v57 = vcvt.s32.f32 %v2275_v53 }
 0x1f8   :  { %2036 = vst [vmem:[#allocation1] ss:$4 sm:$0xff] %v2034_v61  ;;  %v2651_v55 = vpack.c.bf16 %v3806_v24, %v3802_v18  ;;  %v2647_v25 = vpack.c.bf16 %v3830_v38, %v3828_v42  ;;  %v2147_v61 = vunpack.c.0.s8 %v2059_v37  ;;  %v2535_v60 = vcvt.s32.f32 %v2279_v50 }
 0x1f9   :  { %v3876_v34 = vcvt.s32.f32 %v2151_v36  ;;  %v2343_v63 = vunpack.c.1.s8 %v3820_v29  ;;  %v2595_v7 = vcvt.s32.f32 %v2339_v35  ;;  %v2139_v40 = vunpack.c.2.s8 %v2055_v58  ;;  %v2067_v36 = vld [vmem:[#allocation11 + $0x90] sm:$0xff] }
 0x1fa   :  { %v3874_v37 = vcvt.s32.f32 %v2147_v61  ;;  %v2143_v46 = vunpack.c.3.s8 %v2055_v58  ;;  %v2675_v4 = vpack.c.bf16 %v2471_v8, %v3878_v56  ;;  %v2707_v10 = vpack.c.bf16 %v2535_v60, %v2531_v57  ;;  %v2099_v56 = vld [vmem:[#allocation11 + $0x190] sm:$0xff] }
 0x1fb   :  { %v3897_v0 = vcvt.s32.f32 %v2139_v40  ;;  %v2459_v45 = vcvt.s32.f32 %v2203_v47  ;;  %v2331_v18 = vunpack.c.2.s8 %v2103_v39  ;;  %v2323_v38 = vunpack.c.0.s8 %v2103_v39 }
 0x1fc   :  { %v3899_v14 = vcvt.s32.f32 %v2143_v46  ;;  %v2315_v46 = vunpack.c.2.s8 %v2099_v56 }
 0x1fd   :  { %v2587_v49 = vcvt.s32.f32 %v2331_v18  ;;  %v2579_v50 = vcvt.s32.f32 %v2323_v38 }
 0x1fe   :  { %v2639_v24 = vpack.c.bf16 %v3899_v14, %v3897_v0  ;;  %v2571_v0 = vcvt.s32.f32 %v2315_v46 }
 0x1ff   :  { %v2037_v33 = vld.sshfl [vmem:[#allocation1] sm:$0xff pattern:$0x73625140]  ;;  %v2038_v54 = vld.sshfl [vmem:[#allocation1 + $0x8] sm:$0xff pattern:$0x73625140] }
 0x200   :  { %v3844_v51 = vpack.c.bf16 %v2037_v33, %v2037_v33  ;;  %v3846_v1 = vpack.c.bf16 %v2038_v54, %v2038_v54  ;;  %v2039_v26 = vld.sshfl [vmem:[#allocation1 + $0x10] sm:$0xff pattern:$0x73625140]  ;;  %v2040_v52 = vld.sshfl [vmem:[#allocation1 + $0x18] sm:$0xff pattern:$0x73625140]  ;;  %v2131_v33 = vunpack.c.0.s8 %v2055_v58  ;;  %v2135_v54 = vunpack.c.1.s8 %v2055_v58 }
 0x201   :  { %v3852_v59 = vpack.c.bf16 %v2039_v26, %v2039_v26  ;;  %v3854_v15 = vpack.c.bf16 %v2040_v52, %v2040_v52  ;;  %v2051_v52 = vld [vmem:[#allocation11 + $0x10] sm:$0xff] }
 0x202   :  { %2761 = vmatmul.bf16.vlgmr.msra.gmra.mxu0 %v3844_v51  ;;  %2774 = vmatmul.bf16.vlgmr.msra.gmra.mxu1 %v3846_v1  ;;  %v2387_v20 = vcvt.s32.f32 %v2131_v33  ;;  %v2391_v3 = vcvt.s32.f32 %v2135_v54  ;;  %v2127_v53 = vunpack.c.3.s8 %v2051_v52  ;;  %v2119_v47 = vunpack.c.1.s8 %v2051_v52 }
 0x203   :  { %2787 = vmatmul.bf16.vlgmr.msra.gmra.mxu2 %v3852_v59  ;;  %2800 = vmatmul.bf16.vlgmr.msra.gmra.mxu3 %v3854_v15 }
 0x204   :  { %2857 = vmatpush.bf16.msra.mxu0 %v2655_v62  ;;  %2870 = vmatpush.bf16.msra.mxu1 %v2687_v12  ;;  %v2087_v62 = vld [vmem:[#allocation11 + $0x130] sm:$0xff]  ;;  %v2643_v12 = vpack.c.bf16 %v3876_v34, %v3874_v37  ;;  %v2635_v17 = vpack.c.bf16 %v2391_v3, %v2387_v20  ;;  %v2187_v37 = vunpack.c.2.s8 %v2067_v36  ;;  %v2191_v34 = vunpack.c.3.s8 %v2067_v36 }
 0x205   :  { %2883 = vmatpush.bf16.msra.mxu2 %v2719_v13  ;;  %2896 = vmatpush.bf16.msra.mxu3 %v2751_v11  ;;  %v2599_v13 = vcvt.s32.f32 %v2343_v63  ;;  %v2207_v11 = vunpack.c.3.s8 %v2071_v30  ;;  %v2267_v29 = vunpack.c.2.s8 %v2087_v62  ;;  %v2271_v44 = vunpack.c.3.s8 %v2087_v62 }
 0x206   :  { %v2259_v26 = vunpack.c.0.s8 %v2087_v62  ;;  %v2263_v61 = vunpack.c.1.s8 %v2087_v62  ;;  %v2383_v8 = vcvt.s32.f32 %v2127_v53  ;;  %v2443_v63 = vcvt.s32.f32 %v2187_v37 }
 0x207   :  { %v2739_v48 = vpack.c.bf16 %v2599_v13, %v2595_v7  ;;  %v2463_v23 = vcvt.s32.f32 %v2207_v11  ;;  %v2523_v31 = vcvt.s32.f32 %v2267_v29  ;;  %v2447_v62 = vcvt.s32.f32 %v2191_v34 }
 0x208   :  { %2858 = vmatpush.bf16.msra.mxu0 %v2651_v55  ;;  %2871 = vmatpush.bf16.msra.mxu1 %v2683_v41  ;;  %v2335_v55 = vunpack.c.3.s8 %v2103_v39  ;;  %v2527_v41 = vcvt.s32.f32 %v2271_v44  ;;  %v2515_v42 = vcvt.s32.f32 %v2259_v26  ;;  %v2115_v13 = vunpack.c.0.s8 %v2051_v52 }
 0x209   :  { %2884 = vmatpush.bf16.msra.mxu2 %v2715_v5  ;;  %2897 = vmatpush.bf16.msra.mxu3 %v2747_v9  ;;  %v2671_v28 = vpack.c.bf16 %v2463_v23, %v2459_v45  ;;  %v2195_v5 = vunpack.c.0.s8 %v2071_v30  ;;  %v2199_v9 = vunpack.c.1.s8 %v2071_v30  ;;  %v2179_v11 = vunpack.c.0.s8 %v2067_v36 }
 0x20a   :  { %v2591_v32 = vcvt.s32.f32 %v2335_v55  ;;  %v2703_v22 = vpack.c.bf16 %v2527_v41, %v2523_v31  ;;  %v2183_v29 = vunpack.c.1.s8 %v2067_v36  ;;  %v2371_v45 = vcvt.s32.f32 %v2115_v13 }
 0x20b   :  { %v2451_v43 = vcvt.s32.f32 %v2195_v5  ;;  %v2455_v2 = vcvt.s32.f32 %v2199_v9  ;;  %v2375_v44 = vcvt.s32.f32 %v2119_v47  ;;  %v2435_v31 = vcvt.s32.f32 %v2179_v11  ;;  %v2096_v5 = vld [vmem:[#allocation11 + $0x178] sm:$0xff] }
 0x20c   :  { %2859 = vmatpush.bf16.msra.mxu0 %v2647_v25  ;;  %2872 = vmatpush.bf16.msra.mxu1 %v2679_v6  ;;  %v2735_v19 = vpack.c.bf16 %v2591_v32, %v2587_v49  ;;  %v2327_v25 = vunpack.c.1.s8 %v2103_v39  ;;  %v2083_v6 = vld [vmem:[#allocation11 + $0x110] sm:$0xff]  ;;  %v2319_v39 = vunpack.c.3.s8 %v2099_v56  ;;  %v2439_v55 = vcvt.s32.f32 %v2183_v29  ;;  %v2080_v49 = vld [vmem:[#allocation11 + $0xf8] sm:$0xff] }
 0x20d   :  { %2885 = vmatpush.bf16.msra.mxu2 %v2711_v27  ;;  %2898 = vmatpush.bf16.msra.mxu3 %v2743_v16  ;;  %v2667_v21 = vpack.c.bf16 %v2455_v2, %v2451_v43  ;;  %v2519_v27 = vcvt.s32.f32 %v2263_v61  ;;  %v2123_v16 = vunpack.c.2.s8 %v2051_v52  ;;  %v2251_v57 = vunpack.c.2.s8 %v2083_v6  ;;  %v2112_v2 = vld [vmem:[#allocation11 + $0x1f8] sm:$0xff] }
 0x20e   :  { %v2583_v58 = vcvt.s32.f32 %v2327_v25  ;;  %v2575_v14 = vcvt.s32.f32 %v2319_v39  ;;  %v2243_v18 = vunpack.c.0.s8 %v2083_v6  ;;  %v2247_v41 = vunpack.c.1.s8 %v2083_v6  ;;  %v2092_v11 = vld [vmem:[#allocation11 + $0x158] sm:$0xff] }
 0x20f   :  { %v2699_v35 = vpack.c.bf16 %v2519_v27, %v2515_v42  ;;  %v2379_v30 = vcvt.s32.f32 %v2123_v16  ;;  %v2507_v40 = vcvt.s32.f32 %v2251_v57  ;;  %v2627_v33 = vpack.c.bf16 %v2375_v44, %v2371_v45 }
 0x210   :  { %2860 = vmatpush.bf16.msra.mxu0 %v2643_v12  ;;  %2873 = vmatpush.bf16.msra.mxu1 %v2675_v4  ;;  %v2731_v60 = vpack.c.bf16 %v2583_v58, %v2579_v50  ;;  %v2255_v12 = vunpack.c.3.s8 %v2083_v6  ;;  %v2663_v4 = vpack.c.bf16 %v2447_v62, %v2443_v63  ;;  %v2727_v23 = vpack.c.bf16 %v2575_v14, %v2571_v0 }
 0x211   :  { %2886 = vmatpush.bf16.msra.mxu2 %v2707_v10  ;;  %2899 = vmatpush.bf16.msra.mxu3 %v2739_v48  ;;  %v2631_v7 = vpack.c.bf16 %v2383_v8, %v2379_v30  ;;  %v2499_v54 = vcvt.s32.f32 %v2243_v18  ;;  %v2311_v32 = vunpack.c.1.s8 %v2099_v56  ;;  %v2659_v9 = vpack.c.bf16 %v2439_v55, %v2435_v31  ;;  %v2108_v55 = vld [vmem:[#allocation11 + $0x1d8] sm:$0xff] }
 0x212   :  { %2813 = vmatmul.bf16.vlgmr.msrb.gmra.mxu0 %v3844_v51  ;;  %2826 = vmatmul.bf16.vlgmr.msrb.gmra.mxu1 %v3846_v1  ;;  %v2511_v10 = vcvt.s32.f32 %v2255_v12  ;;  %v2240_v43 = vunpack.c.3.s8 %v2080_v49  ;;  %v2300_v42 = vunpack.c.2.s8 %v2096_v5  ;;  %v2364_v53 = vunpack.c.2.s8 %v2112_v2 }
 0x213   :  { %2839 = vmatmul.bf16.vlgmr.msrb.gmra.mxu2 %v3852_v59  ;;  %2852 = vmatmul.bf16.vlgmr.msrb.gmra.mxu3 %v3854_v15  ;;  %v2567_v52 = vcvt.s32.f32 %v2311_v32  ;;  %v2368_v50 = vunpack.c.3.s8 %v2112_v2  ;;  %v2228_v8 = vunpack.c.0.s8 %v2080_v49  ;;  %v2232_v57 = vunpack.c.1.s8 %v2080_v49 }
 0x214   :  { %2861 = vmatpush.bf16.msra.mxu0 %v2639_v24  ;;  %2874 = vmatpush.bf16.msra.mxu1 %v2671_v28  ;;  %v2695_v48 = vpack.c.bf16 %v2511_v10, %v2507_v40  ;;  %v2064_v24 = vld [vmem:[#allocation11 + $0x78] sm:$0xff]  ;;  %v2307_v28 = vunpack.c.0.s8 %v2099_v56  ;;  %v2496_v6 = vcvt.s32.f32 %v2240_v43  ;;  %v2556_v16 = vcvt.s32.f32 %v2300_v42 }
 0x215   :  { %2887 = vmatpush.bf16.msra.mxu2 %v2703_v22  ;;  %2900 = vmatpush.bf16.msra.mxu3 %v2735_v19  ;;  %v2503_v22 = vcvt.s32.f32 %v2247_v41  ;;  %v2172_v20 = vunpack.c.2.s8 %v2064_v24  ;;  %v2176_v3 = vunpack.c.3.s8 %v2064_v24  ;;  %v2236_v19 = vunpack.c.2.s8 %v2080_v49  ;;  %v2076_v10 = vld [vmem:[#allocation11 + $0xd8] sm:$0xff] }
 0x216   :  { %v2563_v26 = vcvt.s32.f32 %v2307_v28  ;;  %v2164_v34 = vunpack.c.0.s8 %v2064_v24  ;;  %v2168_v56 = vunpack.c.1.s8 %v2064_v24  ;;  %v2624_v30 = vcvt.s32.f32 %v2368_v50 }
 0x217   :  { %v2691_v61 = vpack.c.bf16 %v2503_v22, %v2499_v54  ;;  %v2428_v36 = vcvt.s32.f32 %v2172_v20  ;;  %v2492_v25 = vcvt.s32.f32 %v2236_v19  ;;  %v2292_v12 = vunpack.c.0.s8 %v2096_v5 }
 0x218   :  { %2862 = vmatpush.bf16.msra.mxu0 %v2635_v17  ;;  %2875 = vmatpush.bf16.msra.mxu1 %v2667_v21  ;;  %v2432_v17 = vcvt.s32.f32 %v2176_v3  ;;  %v2723_v38 = vpack.c.bf16 %v2567_v52, %v2563_v26  ;;  %v2304_v21 = vunpack.c.3.s8 %v2096_v5  ;;  %v2420_v63 = vcvt.s32.f32 %v2164_v34 }
 0x219   :  { %2888 = vmatpush.bf16.msra.mxu2 %v2699_v35  ;;  %2901 = vmatpush.bf16.msra.mxu3 %v2731_v60  ;;  %v2688_v58 = vpack.c.bf16 %v2496_v6, %v2492_v25  ;;  %v2620_v35 = vcvt.s32.f32 %v2364_v53  ;;  %v2424_v62 = vcvt.s32.f32 %v2168_v56  ;;  %v2484_v46 = vcvt.s32.f32 %v2228_v8  ;;  %v2088_v8 = vld [vmem:[#allocation11 + $0x138] sm:$0xff] }
 0x21a   :  { %v2656_v27 = vpack.c.bf16 %v2432_v17, %v2428_v36  ;;  %v2560_v37 = vcvt.s32.f32 %v2304_v21  ;;  %v2488_v39 = vcvt.s32.f32 %v2232_v57  ;;  %v2548_v47 = vcvt.s32.f32 %v2292_v12 }
 0x21b   :  { %v2752_v40 = vpack.c.bf16 %v2624_v30, %v2620_v35  ;;  %v2652_v13 = vpack.c.bf16 %v2424_v62, %v2420_v63  ;;  %v2356_v0 = vunpack.c.0.s8 %v2112_v2  ;;  %v2360_v14 = vunpack.c.1.s8 %v2112_v2 }
 0x21c   :  { %2863 = vmatpush.bf16.msra.mxu0 %v2631_v7  ;;  %2876 = vmatpush.bf16.msra.mxu1 %v2663_v4  ;;  %v2720_v60 = vpack.c.bf16 %v2560_v37, %v2556_v16  ;;  %v2060_v7 = vld [vmem:[#allocation11 + $0x58] sm:$0xff]  ;;  %v2296_v4 = vunpack.c.1.s8 %v2096_v5  ;;  %v2684_v29 = vpack.c.bf16 %v2488_v39, %v2484_v46  ;;  %v2224_v31 = vunpack.c.3.s8 %v2076_v10 }
 0x21d   :  { %2889 = vmatpush.bf16.msra.mxu2 %v2695_v48  ;;  %2902 = vmatpush.bf16.msra.mxu3 %v2727_v23  ;;  %v2156_v45 = vunpack.c.2.s8 %v2060_v7  ;;  %v2160_v44 = vunpack.c.3.s8 %v2060_v7  ;;  %v2612_v18 = vcvt.s32.f32 %v2356_v0  ;;  %v2616_v24 = vcvt.s32.f32 %v2360_v14  ;;  %v2072_v37 = vld [vmem:[#allocation11 + $0xb8] sm:$0xff] }
 0x21e   :  { %v2552_v48 = vcvt.s32.f32 %v2296_v4  ;;  %v2220_v23 = vunpack.c.2.s8 %v2076_v10  ;;  %v2284_v54 = vunpack.c.2.s8 %v2092_v11  ;;  %v2480_v5 = vcvt.s32.f32 %v2224_v31  ;;  %v2104_v39 = vld [vmem:[#allocation11 + $0x1b8] sm:$0xff] }
 0x21f   :  { %v2412_v49 = vcvt.s32.f32 %v2156_v45  ;;  %v2748_v28 = vpack.c.bf16 %v2616_v24, %v2612_v18  ;;  %v2348_v3 = vunpack.c.2.s8 %v2108_v55  ;;  %v2352_v26 = vunpack.c.3.s8 %v2108_v55 }
 0x220   :  { %2864 = vmatpush.bf16.msra.mxu0 %v2627_v33  ;;  %2877 = vmatpush.bf16.msra.mxu1 %v2659_v9  ;;  %v2716_v41 = vpack.c.bf16 %v2552_v48, %v2548_v47  ;;  %v2416_v33 = vcvt.s32.f32 %v2160_v44  ;;  %v2476_v32 = vcvt.s32.f32 %v2220_v23  ;;  %v2288_v9 = vunpack.c.3.s8 %v2092_v11 }
 0x221   :  { %2890 = vmatpush.bf16.msra.mxu2 %v2691_v61  ;;  %2903 = vmatpush.bf16.msra.mxu3 %v2723_v38  ;;  %v2540_v20 = vcvt.s32.f32 %v2284_v54  ;;  %v2148_v43 = vunpack.c.0.s8 %v2060_v7  ;;  %v2152_v2 = vunpack.c.1.s8 %v2060_v7  ;;  %v2604_v61 = vcvt.s32.f32 %v2348_v3 }
 0x222   :  { %v2648_v22 = vpack.c.bf16 %v2416_v33, %v2412_v49  ;;  %v2680_v52 = vpack.c.bf16 %v2480_v5, %v2476_v32  ;;  %v2544_v19 = vcvt.s32.f32 %v2288_v9  ;;  %v2608_v36 = vcvt.s32.f32 %v2352_v26 }
 0x223   :  { %2865 = vmatmul.bf16.vlgmr.msra.gmra.mxu0 %v3844_v51  ;;  %2878 = vmatmul.bf16.vlgmr.msra.gmra.mxu1 %v3846_v1  ;;  %v2212_v17 = vunpack.c.0.s8 %v2076_v10  ;;  %v2216_v42 = vunpack.c.1.s8 %v2076_v10  ;;  %v2404_v25 = vcvt.s32.f32 %v2148_v43  ;;  %v2408_v6 = vcvt.s32.f32 %v2152_v2 }
 0x224   :  { %2909 = vmatpush.bf16.msrb.mxu0 %v2656_v27  ;;  %2922 = vmatpush.bf16.msrb.mxu1 %v2688_v58  ;;  %v2712_v38 = vpack.c.bf16 %v2544_v19, %v2540_v20  ;;  %v2276_v21 = vunpack.c.0.s8 %v2092_v11  ;;  %v2056_v27 = vld [vmem:[#allocation11 + $0x38] sm:$0xff]  ;;  %v2744_v16 = vpack.c.bf16 %v2608_v36, %v2604_v61  ;;  %v2280_v58 = vunpack.c.1.s8 %v2092_v11 }
 0x225   :  { %2935 = vmatpush.bf16.msrb.mxu2 %v2720_v60  ;;  %2948 = vmatpush.bf16.msrb.mxu3 %v2752_v40  ;;  %v2468_v53 = vcvt.s32.f32 %v2212_v17  ;;  %v2472_v50 = vcvt.s32.f32 %v2216_v42  ;;  %v2644_v34 = vpack.c.bf16 %v2408_v6, %v2404_v25  ;;  %v2340_v35 = vunpack.c.0.s8 %v2108_v55  ;;  %v2068_v19 = vld [vmem:[#allocation11 + $0x98] sm:$0xff] }
 0x226   :  { %2891 = vmatmul.bf16.vlgmr.msra.gmra.mxu2 %v3852_v59  ;;  %2904 = vmatmul.bf16.vlgmr.msra.gmra.mxu3 %v3854_v15  ;;  %v2532_v56 = vcvt.s32.f32 %v2276_v21  ;;  %v2344_v30 = vunpack.c.1.s8 %v2108_v55  ;;  %v2536_v60 = vcvt.s32.f32 %v2280_v58  ;;  %v2140_v63 = vunpack.c.2.s8 %v2056_v27  ;;  %v2084_v17 = vld [vmem:[#allocation11 + $0x118] sm:$0xff] }
 0x227   :  { %v2676_v57 = vpack.c.bf16 %v2472_v50, %v2468_v53  ;;  %v2144_v62 = vunpack.c.3.s8 %v2056_v27  ;;  %v2596_v12 = vcvt.s32.f32 %v2340_v35  ;;  %v2204_v40 = vunpack.c.2.s8 %v2072_v37  ;;  %v2100_v50 = vld [vmem:[#allocation11 + $0x198] sm:$0xff] }
 0x228   :  { %2910 = vmatpush.bf16.msrb.mxu0 %v2652_v13  ;;  %2923 = vmatpush.bf16.msrb.mxu1 %v2684_v29  ;;  %v2600_v7 = vcvt.s32.f32 %v2344_v30  ;;  %v2208_v46 = vunpack.c.3.s8 %v2072_v37  ;;  %v2708_v4 = vpack.c.bf16 %v2536_v60, %v2532_v56  ;;  %v2396_v10 = vcvt.s32.f32 %v2140_v63 }
 0x229   :  { %2936 = vmatpush.bf16.msrb.mxu2 %v2716_v41  ;;  %2949 = vmatpush.bf16.msrb.mxu3 %v2748_v28  ;;  %v2400_v13 = vcvt.s32.f32 %v2144_v62  ;;  %v2268_v47 = vunpack.c.2.s8 %v2088_v8  ;;  %v2460_v14 = vcvt.s32.f32 %v2204_v40  ;;  %v2272_v29 = vunpack.c.3.s8 %v2088_v8 }
 0x22a   :  { %v2740_v0 = vpack.c.bf16 %v2600_v7, %v2596_v12  ;;  %v2464_v11 = vcvt.s32.f32 %v2208_v46  ;;  %v2332_v44 = vunpack.c.2.s8 %v2104_v39  ;;  %v2336_v18 = vunpack.c.3.s8 %v2104_v39 }
 0x22b   :  { %v2640_v48 = vpack.c.bf16 %v2400_v13, %v2396_v10  ;;  %v2524_v45 = vcvt.s32.f32 %v2268_v47  ;;  %v2528_v23 = vcvt.s32.f32 %v2272_v29  ;;  %v2132_v31 = vunpack.c.0.s8 %v2056_v27 }
 0x22c   :  { %2911 = vmatpush.bf16.msrb.mxu0 %v2648_v22  ;;  %2924 = vmatpush.bf16.msrb.mxu1 %v2680_v52  ;;  %v2672_v24 = vpack.c.bf16 %v2464_v11, %v2460_v14  ;;  %v2136_v55 = vunpack.c.1.s8 %v2056_v27  ;;  %v2588_v41 = vcvt.s32.f32 %v2332_v44  ;;  %v2592_v49 = vcvt.s32.f32 %v2336_v18  ;;  %v2052_v22 = vld [vmem:[#allocation11 + $0x18] sm:$0xff] }
 0x22d   :  { %2937 = vmatpush.bf16.msrb.mxu2 %v2712_v38  ;;  %2950 = vmatpush.bf16.msrb.mxu3 %v2744_v16  ;;  %v2196_v33 = vunpack.c.0.s8 %v2072_v37  ;;  %v2200_v54 = vunpack.c.1.s8 %v2072_v37  ;;  %v2704_v28 = vpack.c.bf16 %v2528_v23, %v2524_v45  ;;  %v2388_v32 = vcvt.s32.f32 %v2132_v31 }
 0x22e   :  { %v2392_v5 = vcvt.s32.f32 %v2136_v55  ;;  %v2260_v9 = vunpack.c.0.s8 %v2088_v8  ;;  %v2736_v20 = vpack.c.bf16 %v2592_v49, %v2588_v41  ;;  %v2264_v52 = vunpack.c.1.s8 %v2088_v8  ;;  %v2999_v49 = vld [vmem:[#allocation14 + $0x10] sm:$0xff] }
 0x22f   :  { %v2452_v3 = vcvt.s32.f32 %v2196_v33  ;;  %v2456_v26 = vcvt.s32.f32 %v2200_v54  ;;  %v2324_v61 = vunpack.c.0.s8 %v2104_v39  ;;  %v2328_v36 = vunpack.c.1.s8 %v2104_v39 }
 0x230   :  { %2912 = vmatpush.bf16.msrb.mxu0 %v2644_v34  ;;  %2925 = vmatpush.bf16.msrb.mxu1 %v2676_v57  ;;  %v2636_v43 = vpack.c.bf16 %v2392_v5, %v2388_v32  ;;  %v2516_v2 = vcvt.s32.f32 %v2260_v9  ;;  %v2520_v38 = vcvt.s32.f32 %v2264_v52  ;;  %v2124_v25 = vunpack.c.2.s8 %v2052_v22 }
 0x231   :  { %2938 = vmatpush.bf16.msrb.mxu2 %v2708_v4  ;;  %2951 = vmatpush.bf16.msrb.mxu3 %v2740_v0  ;;  %v2668_v42 = vpack.c.bf16 %v2456_v26, %v2452_v3  ;;  %v2128_v6 = vunpack.c.3.s8 %v2052_v22  ;;  %v2580_v21 = vcvt.s32.f32 %v2324_v61  ;;  %v2584_v27 = vcvt.s32.f32 %v2328_v36 }
 0x232   :  { %v2188_v16 = vunpack.c.2.s8 %v2068_v19  ;;  %v2192_v53 = vunpack.c.3.s8 %v2068_v19  ;;  %v2700_v58 = vpack.c.bf16 %v2520_v38, %v2516_v2  ;;  %v2380_v37 = vcvt.s32.f32 %v2124_v25 }
 0x233   :  { %v2384_v34 = vcvt.s32.f32 %v2128_v6  ;;  %v2252_v56 = vunpack.c.2.s8 %v2084_v17  ;;  %v2732_v35 = vpack.c.bf16 %v2584_v27, %v2580_v21  ;;  %v2256_v57 = vunpack.c.3.s8 %v2084_v17 }
 0x234   :  { %2913 = vmatpush.bf16.msrb.mxu0 %v2640_v48  ;;  %2926 = vmatpush.bf16.msrb.mxu1 %v2672_v24  ;;  %v2444_v30 = vcvt.s32.f32 %v2188_v16  ;;  %v2448_v8 = vcvt.s32.f32 %v2192_v53  ;;  %v2316_v62 = vunpack.c.2.s8 %v2100_v50  ;;  %v2320_v12 = vunpack.c.3.s8 %v2100_v50  ;;  %v3000_v48 = vld [vmem:[#allocation14 + $0x18] sm:$0xff]  ;;  %v2998_v16 = vld [vmem:[#allocation14 + $0x8] sm:$0xff] }
 0x235   :  { %2939 = vmatpush.bf16.msrb.mxu2 %v2704_v28  ;;  %2952 = vmatpush.bf16.msrb.mxu3 %v2736_v20  ;;  %v2632_v60 = vpack.c.bf16 %v2384_v34, %v2380_v37  ;;  %v2508_v63 = vcvt.s32.f32 %v2252_v56  ;;  %v2512_v40 = vcvt.s32.f32 %v2256_v57  ;;  %v2116_v46 = vunpack.c.0.s8 %v2052_v22  ;;  %v3004_v53 = vld [vmem:[#allocation14 + $0x38] sm:$0xff] }
 0x236   :  { %v2664_v7 = vpack.c.bf16 %v2448_v8, %v2444_v30  ;;  %v2120_v39 = vunpack.c.1.s8 %v2052_v22  ;;  %v2572_v4 = vcvt.s32.f32 %v2316_v62  ;;  %v2576_v10 = vcvt.s32.f32 %v2320_v12 }
 0x237   :  { %v2180_v13 = vunpack.c.0.s8 %v2068_v19  ;;  %v2184_v47 = vunpack.c.1.s8 %v2068_v19  ;;  %v2696_v0 = vpack.c.bf16 %v2512_v40, %v2508_v63  ;;  %v2372_v14 = vcvt.s32.f32 %v2116_v46 }
 0x238   :  { %2914 = vmatpush.bf16.msrb.mxu0 %v2636_v43  ;;  %2927 = vmatpush.bf16.msrb.mxu1 %v2668_v42  ;;  %v2376_v11 = vcvt.s32.f32 %v2120_v39  ;;  %v2244_v29 = vunpack.c.0.s8 %v2084_v17  ;;  %v2728_v45 = vpack.c.bf16 %v2576_v10, %v2572_v4  ;;  %v2248_v24 = vunpack.c.1.s8 %v2084_v17  ;;  %v2997_v4 = vld [vmem:[#allocation14] sm:$0xff]  ;;  %v3003_v10 = vld [vmem:[#allocation14 + $0x30] sm:$0xff] }
 0x239   :  { %2940 = vmatpush.bf16.msrb.mxu2 %v2700_v58  ;;  %2953 = vmatpush.bf16.msrb.mxu3 %v2732_v35  ;;  %v2436_v44 = vcvt.s32.f32 %v2180_v13  ;;  %v2440_v18 = vcvt.s32.f32 %v2184_v47  ;;  %v2308_v55 = vunpack.c.0.s8 %v2100_v50  ;;  %v2312_v41 = vunpack.c.1.s8 %v2100_v50 }
 0x23a   :  { %v2628_v23 = vpack.c.bf16 %v2376_v11, %v2372_v14  ;;  %v2500_v31 = vcvt.s32.f32 %v2244_v29  ;;  %v2504_v54 = vcvt.s32.f32 %v2248_v24  ;;  %v3027_v28 = vunpack.c.2.s8 %v3000_v48 }
 0x23b   :  { %v2660_v33 = vpack.c.bf16 %v2440_v18, %v2436_v44  ;;  %v3028_v32 = vunpack.c.3.s8 %v3000_v48  ;;  %v2564_v5 = vcvt.s32.f32 %v2308_v55  ;;  %v2568_v9 = vcvt.s32.f32 %v2312_v41  ;;  %v3008_v55 = vld [vmem:[#allocation14 + $0x58] sm:$0xff] }
 0x23c   :  { %2915 = vmatpush.bf16.msrb.mxu0 %v2632_v60  ;;  %2928 = vmatpush.bf16.msrb.mxu1 %v2664_v7  ;;  %v3025_v22 = vunpack.c.0.s8 %v3000_v48  ;;  %v3026_v20 = vunpack.c.1.s8 %v3000_v48  ;;  %v2692_v3 = vpack.c.bf16 %v2504_v54, %v2500_v31  ;;  %v3091_v26 = vcvt.s32.f32 %v3027_v28  ;;  %v3002_v31 = vld [vmem:[#allocation14 + $0x28] sm:$0xff] }
 0x23d   :  { %2941 = vmatpush.bf16.msrb.mxu2 %v2696_v0  ;;  %2954 = vmatpush.bf16.msrb.mxu3 %v2728_v45  ;;  %v3092_v52 = vcvt.s32.f32 %v3028_v32  ;;  %v3023_v19 = vunpack.c.2.s8 %v2999_v49  ;;  %v2724_v43 = vpack.c.bf16 %v2568_v9, %v2564_v5  ;;  %v3024_v36 = vunpack.c.3.s8 %v2999_v49 }
 0x23e   :  { %v3089_v2 = vcvt.s32.f32 %v3025_v22  ;;  %v3090_v61 = vcvt.s32.f32 %v3026_v20  ;;  %v3021_v21 = vunpack.c.0.s8 %v2999_v49  ;;  %v3022_v27 = vunpack.c.1.s8 %v2999_v49 }
 0x23f   :  { %v3148_v17 = vpack.c.bf16 %v3092_v52, %v3091_v26  ;;  %v3087_v38 = vcvt.s32.f32 %v3023_v19  ;;  %v3088_v25 = vcvt.s32.f32 %v3024_v36  ;;  %v3020_v50 = vunpack.c.3.s8 %v2998_v16 }
 0x240   :  { %2916 = vmatpush.bf16.msrb.mxu0 %v2628_v23  ;;  %2929 = vmatpush.bf16.msrb.mxu1 %v2660_v33  ;;  %v3147_v42 = vpack.c.bf16 %v3090_v61, %v3089_v2  ;;  %v3043_v58 = vunpack.c.2.s8 %v3004_v53  ;;  %v3044_v37 = vunpack.c.3.s8 %v3004_v53  ;;  %v3086_v34 = vcvt.s32.f32 %v3022_v27 }
 0x241   :  { %2942 = vmatpush.bf16.msrb.mxu2 %v2692_v3  ;;  %2955 = vmatpush.bf16.msrb.mxu3 %v2724_v43  ;;  %v3146_v6 = vpack.c.bf16 %v3088_v25, %v3087_v38  ;;  %v3084_v35 = vcvt.s32.f32 %v3020_v50  ;;  %v3017_v60 = vunpack.c.0.s8 %v2998_v16  ;;  %v3018_v63 = vunpack.c.1.s8 %v2998_v16 }
 0x242   :  { %v3107_v30 = vcvt.s32.f32 %v3043_v58  ;;  %v3108_v8 = vcvt.s32.f32 %v3044_v37  ;;  %v3041_v62 = vunpack.c.0.s8 %v3004_v53  ;;  %v3042_v12 = vunpack.c.1.s8 %v3004_v53 }
 0x243   :  { %2917 = vmatmul.bf16.vlgmr.msrb.gmra.mxu0 %v3844_v51  ;;  %2930 = vmatmul.bf16.vlgmr.msrb.gmra.mxu1 %v3846_v1  ;;  %v3019_v51 = vunpack.c.2.s8 %v2998_v16  ;;  %v3085_v1 = vcvt.s32.f32 %v3021_v21  ;;  %v3081_v7 = vcvt.s32.f32 %v3017_v60  ;;  %v3082_v40 = vcvt.s32.f32 %v3018_v63 }
 0x244   :  { %3173 = vmatpush.bf16.msra.mxu0 %v3148_v17  ;;  %2943 = vmatmul.bf16.vlgmr.msrb.gmra.mxu2 %v3852_v59  ;;  %v3156_v57 = vpack.c.bf16 %v3108_v8, %v3107_v30  ;;  %v3105_v46 = vcvt.s32.f32 %v3041_v62  ;;  %v3106_v39 = vcvt.s32.f32 %v3042_v12  ;;  %v3015_v0 = vunpack.c.2.s8 %v2997_v4 }
 0x245   :  { %2956 = vmatmul.bf16.vlgmr.msrb.gmra.mxu3 %v3854_v15  ;;  %v3083_v56 = vcvt.s32.f32 %v3019_v51  ;;  %v3145_v59 = vpack.c.bf16 %v3086_v34, %v3085_v1  ;;  %v3143_v13 = vpack.c.bf16 %v3082_v40, %v3081_v7  ;;  %v3016_v14 = vunpack.c.3.s8 %v2997_v4  ;;  %v3001_v1 = vld [vmem:[#allocation14 + $0x20] sm:$0xff]  ;;  %v3007_v34 = vld [vmem:[#allocation14 + $0x50] sm:$0xff]  ;;  %v3006_v40 = vld [vmem:[#allocation14 + $0x48] sm:$0xff] }
 0x246   :  { %3186 = vmatpush.bf16.msra.mxu1 %v3156_v57  ;;  %v3155_v47 = vpack.c.bf16 %v3106_v39, %v3105_v46  ;;  %v3039_v11 = vunpack.c.2.s8 %v3003_v10  ;;  %v3040_v29 = vunpack.c.3.s8 %v3003_v10  ;;  %v3013_v48 = vunpack.c.0.s8 %v2997_v4  ;;  %v3924_v46 = vld [vmem:[%s3950_s5] sm:$0xf] }
 0x247   :  { %v3144_v15 = vpack.c.bf16 %v3084_v35, %v3083_v56  ;;  %v3014_v45 = vunpack.c.1.s8 %v2997_v4  ;;  %v3079_v44 = vcvt.s32.f32 %v3015_v0  ;;  %v3080_v18 = vcvt.s32.f32 %v3016_v14 }
 0x248   :  { %3174 = vmatpush.bf16.msra.mxu0 %v3147_v42  ;;  %v3037_v24 = vunpack.c.0.s8 %v3003_v10  ;;  %v3038_v23 = vunpack.c.1.s8 %v3003_v10  ;;  %v3103_v41 = vcvt.s32.f32 %v3039_v11  ;;  %v3104_v49 = vcvt.s32.f32 %v3040_v29 }
 0x249   :  { %v3077_v33 = vcvt.s32.f32 %v3013_v48  ;;  %v3078_v54 = vcvt.s32.f32 %v3014_v45  ;;  %v3142_v28 = vpack.c.bf16 %v3080_v18, %v3079_v44  ;;  %v3035_v9 = vunpack.c.2.s8 %v3002_v31  ;;  %v3926_v45 = vld [vmem:[#allocation12] sm:$0xf] }
 0x24a   :  { %3187 = vmatpush.bf16.msra.mxu1 %v3155_v47  ;;  %v3101_v32 = vcvt.s32.f32 %v3037_v24  ;;  %v3102_v5 = vcvt.s32.f32 %v3038_v23  ;;  %v3154_v22 = vpack.c.bf16 %v3104_v49, %v3103_v41  ;;  %v3036_v20 = vunpack.c.3.s8 %v3002_v31 }
 0x24b   :  { %v3059_v3 = vunpack.c.2.s8 %v3008_v55  ;;  %v3141_v26 = vpack.c.bf16 %v3078_v54, %v3077_v33  ;;  %v3060_v52 = vunpack.c.3.s8 %v3008_v55  ;;  %v3099_v43 = vcvt.s32.f32 %v3035_v9 }
 0x24c   :  { %3175 = vmatpush.bf16.msra.mxu0 %v3146_v6  ;;  %v3153_v19 = vpack.c.bf16 %v3102_v5, %v3101_v32  ;;  %v3100_v2 = vcvt.s32.f32 %v3036_v20  ;;  %v3033_v38 = vunpack.c.0.s8 %v3002_v31  ;;  %v3034_v25 = vunpack.c.1.s8 %v3002_v31 }
 0x24d   :  { %v3123_v61 = vcvt.s32.f32 %v3059_v3  ;;  %v3124_v36 = vcvt.s32.f32 %v3060_v52  ;;  %v3057_v6 = vunpack.c.0.s8 %v3008_v55  ;;  %v3058_v21 = vunpack.c.1.s8 %v3008_v55 }
 0x24e   :  { %3188 = vmatpush.bf16.msra.mxu1 %v3154_v22  ;;  %v3152_v42 = vpack.c.bf16 %v3100_v2, %v3099_v43  ;;  %v3097_v53 = vcvt.s32.f32 %v3033_v38  ;;  %v3098_v51 = vcvt.s32.f32 %v3034_v25  ;;  %v3031_v30 = vunpack.c.2.s8 %v3001_v1 }
 0x24f   :  { %v3164_v17 = vpack.c.bf16 %v3124_v36, %v3123_v61  ;;  %v3121_v50 = vcvt.s32.f32 %v3057_v6  ;;  %v3122_v58 = vcvt.s32.f32 %v3058_v21  ;;  %v3032_v8 = vunpack.c.3.s8 %v3001_v1 }
 0x250   :  { %3176 = vmatpush.bf16.msra.mxu0 %v3145_v59  ;;  %v3151_v56 = vpack.c.bf16 %v3098_v51, %v3097_v53  ;;  %v3055_v59 = vunpack.c.2.s8 %v3007_v34  ;;  %v3056_v57 = vunpack.c.3.s8 %v3007_v34  ;;  %v3030_v60 = vunpack.c.1.s8 %v3001_v1  ;;  %v3012_v51 = vld [vmem:[#allocation14 + $0x78] sm:$0xff] }
 0x251   :  { %3199 = vmatpush.bf16.msra.mxu2 %v3164_v17  ;;  %v3163_v35 = vpack.c.bf16 %v3122_v58, %v3121_v50  ;;  %v3095_v63 = vcvt.s32.f32 %v3031_v30  ;;  %v3096_v62 = vcvt.s32.f32 %v3032_v8  ;;  %v3053_v12 = vunpack.c.0.s8 %v3007_v34  ;;  %v3005_v17 = vld [vmem:[#allocation14 + $0x40] sm:$0xff]  ;;  %v3011_v30 = vld [vmem:[#allocation14 + $0x70] sm:$0xff] }
 0x252   :  { %3189 = vmatpush.bf16.msra.mxu1 %v3153_v19  ;;  %v3054_v7 = vunpack.c.1.s8 %v3007_v34  ;;  %v3119_v39 = vcvt.s32.f32 %v3055_v59  ;;  %v3120_v4 = vcvt.s32.f32 %v3056_v57  ;;  %v3051_v11 = vunpack.c.2.s8 %v3006_v40 }
 0x253   :  { %v3150_v47 = vpack.c.bf16 %v3096_v62, %v3095_v63  ;;  %v3117_v0 = vcvt.s32.f32 %v3053_v12  ;;  %v3052_v18 = vunpack.c.3.s8 %v3006_v40  ;;  %v2963_v23 = vperm.slane %v3924_v46, 0 }
 0x254   :  { %3177 = vmatpush.bf16.msra.mxu0 %v3144_v15  ;;  %v3029_v15 = vunpack.c.0.s8 %v3001_v1  ;;  %v3118_v14 = vcvt.s32.f32 %v3054_v7  ;;  %v3162_v44 = vpack.c.bf16 %v3120_v4, %v3119_v39  ;;  %v3115_v33 = vcvt.s32.f32 %v3051_v11 }
 0x255   :  { %3200 = vmatpush.bf16.msra.mxu2 %v3163_v35  ;;  %v3116_v54 = vcvt.s32.f32 %v3052_v18  ;;  %v2977_v32 = vperm.slane %v3926_v45, 0  ;;  %v3049_v20 = vunpack.c.0.s8 %v3006_v40  ;;  %v3050_v3 = vunpack.c.1.s8 %v3006_v40 }
 0x256   :  { %3190 = vmatpush.bf16.msra.mxu1 %v3152_v42  ;;  %v3093_v10 = vcvt.s32.f32 %v3029_v15  ;;  %v3161_v49 = vpack.c.bf16 %v3118_v14, %v3117_v0  ;;  %v3047_v25 = vunpack.c.2.s8 %v3005_v17  ;;  %v3048_v6 = vunpack.c.3.s8 %v3005_v17 }
 0x257   :  { %v3160_v9 = vpack.c.bf16 %v3116_v54, %v3115_v33  ;;  %v3113_v61 = vcvt.s32.f32 %v3049_v20  ;;  %v3114_v36 = vcvt.s32.f32 %v3050_v3  ;;  %v3046_v53 = vunpack.c.1.s8 %v3005_v17 }
 0x258   :  { %3178 = vmatpush.bf16.msra.mxu0 %v3143_v13  ;;  %v3094_v13 = vcvt.s32.f32 %v3030_v60  ;;  %v3111_v21 = vcvt.s32.f32 %v3047_v25  ;;  %v3075_v58 = vunpack.c.2.s8 %v3012_v51  ;;  %v3073_v35 = vunpack.c.0.s8 %v3012_v51 }
 0x259   :  { %3201 = vmatpush.bf16.msra.mxu2 %v3162_v44  ;;  %v3159_v38 = vpack.c.bf16 %v3114_v36, %v3113_v61  ;;  %v3074_v60 = vunpack.c.1.s8 %v3012_v51  ;;  %v3071_v63 = vunpack.c.2.s8 %v3011_v30  ;;  %v2964_v12 = vperm.slane %v3924_v46, 1 }
 0x25a   :  { %3191 = vmatpush.bf16.msra.mxu1 %v3151_v56  ;;  %v3149_v41 = vpack.c.bf16 %v3094_v13, %v3093_v10  ;;  %v3110_v56 = vcvt.s32.f32 %v3046_v53  ;;  %v3139_v57 = vcvt.s32.f32 %v3075_v58  ;;  %v3137_v39 = vcvt.s32.f32 %v3073_v35 }
 0x25b   :  { %v3072_v4 = vunpack.c.3.s8 %v3011_v30  ;;  %v2978_v14 = vperm.slane %v3926_v45, 1  ;;  %v3069_v54 = vunpack.c.0.s8 %v3011_v30  ;;  %v2965_v61 = vperm.slane %v3924_v46, 2 }
 0x25c   :  { %3179 = vmatpush.bf16.msra.mxu0 %v3142_v28 }
 0x25d   :  { %3202 = vmatpush.bf16.msra.mxu2 %v3161_v49 }
 0x25e   :  { %3192 = vmatpush.bf16.msra.mxu1 %v3150_v47  ;;  %v3138_v47 = vcvt.s32.f32 %v3074_v60 }
 0x260   :  { %3180 = vmatpush.bf16.msra.mxu0 %v3141_v26  ;;  %v3171_v11 = vpack.c.bf16 %v3138_v47, %v3137_v39 }
 0x261   :  { %3203 = vmatpush.bf16.msra.mxu2 %v3160_v9  ;;  %v3010_v9 = vld [vmem:[#allocation14 + $0x68] sm:$0xff] }
 0x262   :  { %3193 = vmatpush.bf16.msra.mxu1 %v3149_v41  ;;  %v3067_v20 = vunpack.c.2.s8 %v3010_v9  ;;  %v3068_v3 = vunpack.c.3.s8 %v3010_v9  ;;  %v3065_v25 = vunpack.c.0.s8 %v3010_v9 }
 0x265   :  { %3204 = vmatpush.bf16.msra.mxu2 %v3159_v38 }
 0x27f   :  { %v2762_v27 = vpop.f32.mrf.mxu0  ;;  %v2775_v16 = vpop.f32.mrf.mxu1 }
 0x280   :  { %v2776_v37 = vadd.f32 %v2775_v16, %v2762_v27  ;;  %v3112_v27 = vcvt.s32.f32 %v3048_v6  ;;  %v3045_v16 = vunpack.c.0.s8 %v3005_v17  ;;  %v3066_v6 = vunpack.c.1.s8 %v3010_v9 }
 0x282   :  { %v3158_v1 = vpack.c.bf16 %v3112_v27, %v3111_v21  ;;  %v3109_v34 = vcvt.s32.f32 %v3045_v16  ;;  %v2979_v27 = vperm.slane %v3926_v45, 2  ;;  %v3129_v16 = vcvt.s32.f32 %v3065_v25 }
 0x283   :  { %v3130_v53 = vcvt.s32.f32 %v3066_v6 }
 0x284   :  { %3205 = vmatpush.bf16.msra.mxu2 %v3158_v1  ;;  %v3157_v10 = vpack.c.bf16 %v3110_v56, %v3109_v34 }
 0x285   :  { %v3167_v58 = vpack.c.bf16 %v3130_v53, %v3129_v16 }
 0x286   :  { %v2788_v29 = vpop.f32.mrf.mxu2  ;;  %v2801_v48 = vpop.f32.mrf.mxu3 }
 0x287   :  { %v2789_v24 = vadd.f32 %v2788_v29, %v2776_v37  ;;  %v2764_v31 = vpop.f32.mrf.mxu0  ;;  %v2777_v55 = vpop.f32.mrf.mxu1  ;;  %v3076_v37 = vunpack.c.3.s8 %v3012_v51  ;;  %v3135_v29 = vcvt.s32.f32 %v3071_v63  ;;  %v3009_v51 = vld [vmem:[#allocation14 + $0x60] sm:$0xff] }
 0x288   :  { %3206 = vmatpush.bf16.msra.mxu2 %v3157_v10  ;;  %v3064_v1 = vunpack.c.3.s8 %v3009_v51  ;;  %v3062_v60 = vunpack.c.1.s8 %v3009_v51 }
 0x289   :  { %v2802_v28 = vadd.f32 %v2801_v48, %v2789_v24  ;;  %v3140_v15 = vcvt.s32.f32 %v3076_v37  ;;  %v3136_v48 = vcvt.s32.f32 %v3072_v4  ;;  %v3063_v37 = vunpack.c.2.s8 %v3009_v51 }
 0x28a   :  { %v3128_v35 = vcvt.s32.f32 %v3064_v1 }
 0x28b   :  { %v2971_v5 = vmul.f32 %v2963_v23, %v2802_v28  ;;  %v3172_v13 = vpack.c.bf16 %v3140_v15, %v3139_v57  ;;  %v3170_v31 = vpack.c.bf16 %v3136_v48, %v3135_v29  ;;  %v3070_v28 = vunpack.c.1.s8 %v3011_v30 }
 0x28c   :  { %v3127_v56 = vcvt.s32.f32 %v3063_v37  ;;  %v3061_v15 = vunpack.c.0.s8 %v3009_v51  ;;  %v2980_v48 = vperm.slane %v3926_v45, 3 }
 0x28d   :  { %v2985_v22 = vadd.f32 %v2977_v32, %v2971_v5  ;;  %3212 = vmatpush.bf16.msra.mxu3 %v3172_v13  ;;  %v3133_v32 = vcvt.s32.f32 %v3069_v54  ;;  %v3134_v5 = vcvt.s32.f32 %v3070_v28 }
 0x28e   :  { %v2790_v26 = vpop.f32.mrf.mxu2  ;;  %v2803_v52 = vpop.f32.mrf.mxu3  ;;  %v3166_v57 = vpack.c.bf16 %v3128_v35, %v3127_v56 }
 0x28f   :  { %v2989_v19 = vmax.f32 %v2985_v22, 0.0  ;;  %v2814_v43 = vpop.f32.mrf.mxu0  ;;  %v2827_v2 = vpop.f32.mrf.mxu1  ;;  %v3169_v22 = vpack.c.bf16 %v3134_v5, %v3133_v32  ;;  %v3131_v52 = vcvt.s32.f32 %v3067_v20  ;;  %v3269_v20 = vld [vmem:[%s3954_s9] ss:$0 sm:$0xff] }
 0x290   :  { %v2828_v50 = vadd.f32 %v2827_v2, %v2814_v43 }
 0x291   :  { %v2993_v42 = vpack.c.bf16 %v2989_v19, %v2989_v19  ;;  %3213 = vmatpush.bf16.msra.mxu3 %v3171_v11  ;;  %v3132_v19 = vcvt.s32.f32 %v3068_v3  ;;  %v2966_v11 = vperm.slane %v3924_v46, 3  ;;  %v3268_v46 = vld [vmem:[%s3953_s8] ss:$0 sm:$0xff] }
 0x293   :  { %3181 = vmatmul.bf16.vlgmr.msra.gmra.mxu0 %v2993_v42  ;;  %v3168_v38 = vpack.c.bf16 %v3132_v19, %v3131_v52 }
 0x295   :  { %3214 = vmatpush.bf16.msra.mxu3 %v3170_v31 }
 0x296   :  { %v2840_v8 = vpop.f32.mrf.mxu2  ;;  %v2853_v59 = vpop.f32.mrf.mxu3 }
 0x297   :  { %v2841_v62 = vadd.f32 %v2840_v8, %v2828_v50  ;;  %v2816_v7 = vpop.f32.mrf.mxu0  ;;  %v2829_v40 = vpop.f32.mrf.mxu1 }
 0x299   :  { %v2854_v0 = vadd.f32 %v2853_v59, %v2841_v62  ;;  %3215 = vmatpush.bf16.msra.mxu3 %v3169_v22  ;;  %v3125_v62 = vcvt.s32.f32 %v3061_v15 }
 0x29b   :  { %v2972_v44 = vmul.f32 %v2964_v12, %v2854_v0  ;;  %v3126_v12 = vcvt.s32.f32 %v3062_v60 }
 0x29d   :  { %v2986_v18 = vadd.f32 %v2978_v14, %v2972_v44  ;;  %3216 = vmatpush.bf16.msra.mxu3 %v3168_v38  ;;  %v3165_v7 = vpack.c.bf16 %v3126_v12, %v3125_v62 }
 0x29e   :  { %v2842_v24 = vpop.f32.mrf.mxu2  ;;  %v2855_v23 = vpop.f32.mrf.mxu3 }
 0x29f   :  { %v2990_v55 = vmax.f32 %v2986_v18, 0.0 }
 0x2a0   :  { %v2866_v41 = vpop.f32.mrf.mxu0  ;;  %v2879_v33 = vpop.f32.mrf.mxu1 }
 0x2a1   :  { %v2994_v49 = vpack.c.bf16 %v2990_v55, %v2990_v55  ;;  %v2880_v26 = vadd.f32 %v2879_v33, %v2866_v41  ;;  %3217 = vmatpush.bf16.msra.mxu3 %v3167_v58 }
 0x2a3   :  { %3194 = vmatmul.bf16.vlgmr.msra.gmra.mxu1 %v2994_v49 }
 0x2a5   :  { %3218 = vmatpush.bf16.msra.mxu3 %v3166_v57 }
 0x2a8   :  { %v2868_v17 = vpop.f32.mrf.mxu0  ;;  %v2881_v42 = vpop.f32.mrf.mxu1 }
 0x2a9   :  { %v2892_v43 = vpop.f32.mrf.mxu2  ;;  %v2905_v2 = vpop.f32.mrf.mxu3  ;;  %3219 = vmatpush.bf16.msra.mxu3 %v3165_v7 }
 0x2aa   :  { %v2893_v36 = vadd.f32 %v2892_v43, %v2880_v26 }
 0x2ac   :  { %v2906_v21 = vadd.f32 %v2905_v2, %v2893_v36 }
 0x2ae   :  { %v2973_v50 = vmul.f32 %v2965_v61, %v2906_v21 }
 0x2b0   :  { %v2987_v34 = vadd.f32 %v2979_v27, %v2973_v50 }
 0x2b1   :  { %v2894_v30 = vpop.f32.mrf.mxu2  ;;  %v2907_v8 = vpop.f32.mrf.mxu3 }
 0x2b2   :  { %v2991_v59 = vmax.f32 %v2987_v34, 0.0 }
 0x2b4   :  { %v2995_v63 = vpack.c.bf16 %v2991_v59, %v2991_v59 }
 0x2b6   :  { %3207 = vmatmul.bf16.vlgmr.msra.gmra.mxu2 %v2995_v63 }
 0x2c0   :  { %v2918_v40 = vpop.f32.mrf.mxu0  ;;  %v2931_v39 = vpop.f32.mrf.mxu1 }
 0x2c1   :  { %v2932_v4 = vadd.f32 %v2931_v39, %v2918_v40 }
 0x2c7   :  { %v2944_v13 = vpop.f32.mrf.mxu2 }
 0x2c8   :  { %v2920_v10 = vpop.f32.mrf.mxu0  ;;  %v2933_v47 = vpop.f32.mrf.mxu1  ;;  %v2945_v0 = vadd.f32 %v2944_v13, %v2932_v4 }
 0x2c9   :  { %v2957_v14 = vpop.f32.mrf.mxu3 }
 0x2ca   :  { %v2958_v29 = vadd.f32 %v2957_v14, %v2945_v0 }
 0x2cc   :  { %v2974_v44 = vmul.f32 %v2966_v11, %v2958_v29 }
 0x2ce   :  { %v2988_v18 = vadd.f32 %v2980_v48, %v2974_v44 }
 0x2cf   :  { %v2946_v24 = vpop.f32.mrf.mxu2 }
 0x2d0   :  { %v2992_v23 = vmax.f32 %v2988_v18, 0.0 }
 0x2d1   :  { %v2959_v31 = vpop.f32.mrf.mxu3 }
 0x2d2   :  { %v2996_v55 = vpack.c.bf16 %v2992_v23, %v2992_v23 }
 0x2d4   :  { %3220 = vmatmul.bf16.vlgmr.msra.gmra.mxu3 %v2996_v55 }
 0x310   :  { %v3182_v41 = vpop.f32.mrf.mxu0 }
 0x318   :  { %v3184_v49 = vpop.f32.mrf.mxu0 }
 0x320   :  { %v3195_v33 = vpop.f32.mrf.mxu1 }
 0x321   :  { %v3196_v5 = vadd.f32 %v3195_v33, %v3182_v41 }
 0x328   :  { %v3197_v54 = vpop.f32.mrf.mxu1 }
 0x339   :  { %v3208_v28 = vpop.f32.mrf.mxu2 }
 0x33a   :  { %v3209_v9 = vadd.f32 %v3208_v28, %v3196_v5 }
 0x341   :  { %v3210_v32 = vpop.f32.mrf.mxu2 }
 0x357   :  { %v3221_v45 = vpop.f32.mrf.mxu3 }
 0x358   :  { %v3222_v22 = vadd.f32 %v3221_v45, %v3209_v9 }
 0x35a   :  { %v3229_v3 = vmul.f32 %v3268_v46, %v3222_v22 }
 0x35c   :  { %v3234_v26 = vadd.f32 %v3269_v20, %v3229_v3 }
 0x35e   :  { %3235 = vst [vmem:[#allocation15] sm:$0x3] %v3234_v26 }
 0x35f   :  { %v3223_v52 = vpop.f32.mrf.mxu3  ;;  %3246 = dma.vmem_to_hbm [thread:$0]  %s3242_s29, 32, %s3244_s12, [#allocation5]  }
 0x360   :  { %3478 = dma.done.wait [#allocation5], 32  }
 0x361   :  { %3479 = vsyncadd [#allocation5], 4294967264 }
 0x362   :  { %3251 = vsyncpa [#allocation4], 1 }
 0x363   :  { %3252 = vsyncpa [#allocation7], 1 }
 0x364   :  { %3253 = vsyncpa [#allocation10], 1 }
 0x365   :  { %3254 = vsyncpa [#allocation13], 1 }
 0x366   :  { %3255 = vsyncpa [#allocation5], 1 }

</bundles_post_ra>
